<compile_context>
chip_gen: v7x
topology: tpu7x:2x2x1
jax: 0.10.0
libtpu: 0.0.40
codegen_flags: <defaults>
</compile_context>

<pallas_src>
import jax
import jax.numpy as jnp
from jax.experimental import pallas as pl
from jax.experimental.pallas import tpu as pltpu


# ----------------------------------------------------------------------------
# Fused kernel: conv1 -> pool1 -> conv2 -> pool2 -> fc1 -> fc2
# One grid step per batch element; weights use constant index maps so they are
# DMA'd into VMEM once and reused across grid steps.
# ----------------------------------------------------------------------------
def _word_prediction_kernel(x_ref, w1_ref, b1_ref, w2_ref, b2_ref,
                            wf1_ref, bf1_ref, wf2_ref, bf2_ref, o_ref):
    f32 = jnp.float32
    bf16 = jnp.bfloat16

    # ---- conv1: 3x3, cin=1, stride 1 (input pre-padded to 20x20) -> (18,18,32)
    # cin == 1 and K == 9, so use 9 VPU broadcast-FMAs instead of a tiny MXU dot.
    xp = x_ref[0]                                    # (20, 20, 1) f32
    w1 = w1_ref[...]                                 # (9, 32) f32
    acc1 = jnp.zeros((18, 18, 32), f32)
    for di in range(3):
        for dj in range(3):
            t = di * 3 + dj
            patch = xp[di:di + 18, dj:dj + 18, :]    # (18, 18, 1)
            wtap = w1[t:t + 1, :][None]              # (1, 1, 32)
            acc1 = acc1 + patch * wtap
    acc1 = acc1 + b1_ref[...][None]                  # + bias

    # ---- maxpool1: k=3, s=2 -> (8, 8, 32)   (unit-stride slices + maxima only)
    nm = jnp.maximum(jnp.maximum(acc1[0:16], acc1[1:17]), acc1[2:18])  # (16,18,32)
    nm = nm.reshape(8, 2, 18, 32)[:, 0]              # keep rows 0,2,...,14 -> (8,18,32)
    cols = []
    for ow in range(8):
        c = jnp.maximum(
            jnp.maximum(nm[:, 2 * ow:2 * ow + 1, :],
                        nm[:, 2 * ow + 1:2 * ow + 2, :]),
            nm[:, 2 * ow + 2:2 * ow + 3, :])         # (8, 1, 32)
        cols.append(c)
    p1 = jnp.concatenate(cols, axis=1)               # (8, 8, 32)

    # ---- conv2: 5x5, 32 -> 64, pad=2, stride 1 -> (8, 8, 64)
    # Zero-pad in VMEM via concatenation, then per-output-row im2col + MXU dot.
    zr = jnp.zeros((2, 12, 32), f32)
    zc = jnp.zeros((8, 2, 32), f32)
    pad2 = jnp.concatenate(
        [zr, jnp.concatenate([zc, p1, zc], axis=1), zr], axis=0)       # (12,12,32)
    w2 = w2_ref[...]                                 # (800, 64) bf16
    rows = []
    for oh in range(8):
        taps = [pad2[oh + di, dj:dj + 8, :]          # (8, 32) each
                for di in range(5) for dj in range(5)]
        rp = jnp.concatenate(taps, axis=1).astype(bf16)                # (8, 800)
        r = jnp.dot(rp, w2, preferred_element_type=f32)                # (8, 64)
        rows.append(r[None])                                           # (1, 8, 64)
    c2 = jnp.concatenate(rows, axis=0) + b2_ref[...][None]             # (8, 8, 64)

    # ---- maxpool2: k=2, s=2 -> (4, 4, 64); flatten in (h, w, c) order
    c2r = c2.reshape(4, 2, 8, 64)
    nm2 = jnp.maximum(c2r[:, 0], c2r[:, 1])          # (4, 8, 64)
    pieces = []
    for h in range(4):
        for w in range(4):
            q = jnp.maximum(nm2[h:h + 1, 2 * w:2 * w + 1, :],
                            nm2[h:h + 1, 2 * w + 1:2 * w + 2, :])      # (1, 1, 64)
            pieces.append(q)
    flat = jnp.concatenate(pieces, axis=2).reshape(1, 1024)            # (1, 1024)

    # ---- fc1 -> fc2 (fc2 padded to 128 lanes for a dense, unmasked store)
    h1 = jnp.dot(flat.astype(bf16), wf1_ref[...],
                 preferred_element_type=f32) + bf1_ref[...]            # (1, 128)
    y = jnp.dot(h1.astype(bf16), wf2_ref[...],
                preferred_element_type=f32) + bf2_ref[...]             # (1, 128)
    o_ref[...] = y[None]                                               # (1, 1, 128)


# ----------------------------------------------------------------------------
# Parameters (same semantics / scales as the previous version)
# ----------------------------------------------------------------------------
def init_params(key):
    k = jax.random.split(key, 8)
    return {
        "conv1_w": jax.random.normal(k[0], (3, 3, 1, 32), jnp.float32) * 0.1,
        "conv1_b": jax.random.normal(k[1], (32,), jnp.float32) * 0.1,
        "conv2_w": jax.random.normal(k[2], (5, 5, 32, 64), jnp.float32) * 0.05,
        "conv2_b": jax.random.normal(k[3], (64,), jnp.float32) * 0.05,
        "fc1_w": jax.random.normal(k[4], (64 * 4 * 4, 128), jnp.float32) * 0.02,
        "fc1_b": jax.random.normal(k[5], (128,), jnp.float32) * 0.02,
        "fc2_w": jax.random.normal(k[6], (128, 10), jnp.float32) * 0.05,
        "fc2_b": jax.random.normal(k[7], (10,), jnp.float32) * 0.05,
    }


# ----------------------------------------------------------------------------
# Forward pass wrapper: one fused pallas_call
# ----------------------------------------------------------------------------
def word_prediction_forward(params, x_nchw):
    N = x_nchw.shape[0]

    # NCHW -> (N, H+4, W+4, 1): spatial zero-pad of 2 (conv1 padding) done once
    # on the tiny raw input; the trailing singleton channel keeps W in sublanes
    # so the in-kernel per-channel broadcast happens along lanes.
    x = jnp.transpose(x_nchw, (0, 2, 3, 1))                  # (N, 16, 16, 1)
    xpad = jnp.pad(x, ((0, 0), (2, 2), (2, 2), (0, 0)))      # (N, 20, 20, 1)

    # One-time weight plumbing (tiny XLA reshapes on parameters).
    w1 = params["conv1_w"].reshape(9, 32)                               # (kh*kw, 32)
    b1 = params["conv1_b"].reshape(1, 32)
    w2 = params["conv2_w"].reshape(5 * 5 * 32, 64).astype(jnp.bfloat16)  # ((kh,kw,cin), 64)
    b2 = params["conv2_b"].reshape(1, 64)
    # fc1 rows are in PyTorch NCHW-flatten order (c*16 + h*4 + w); the kernel
    # flattens in (h, w, c) order, so permute the weight rows once here.
    wf1 = (params["fc1_w"].reshape(64, 4, 4, 128)
           .transpose(1, 2, 0, 3).reshape(1024, 128).astype(jnp.bfloat16))
    bf1 = params["fc1_b"].reshape(1, 128)
    # Pad fc2 to 128 output lanes (lane-dense store); sliced back to 10 below.
    wf2 = (jnp.zeros((128, 128), jnp.float32)
           .at[:, :10].set(params["fc2_w"]).astype(jnp.bfloat16))
    bf2 = jnp.zeros((1, 128), jnp.float32).at[0, :10].set(params["fc2_b"])

    def full(shape):
        return pl.BlockSpec(shape, lambda n, _s=shape: (0,) * len(_s))

    out = pl.pallas_call(
        _word_prediction_kernel,
        out_shape=jax.ShapeDtypeStruct((N, 1, 128), jnp.float32),
        grid=(N,),
        in_specs=[
            pl.BlockSpec((1, 20, 20, 1), lambda n: (n, 0, 0, 0)),
            full((9, 32)), full((1, 32)),
            full((800, 64)), full((1, 64)),
            full((1024, 128)), full((1, 128)),
            full((128, 128)), full((1, 128)),
        ],
        out_specs=pl.BlockSpec((1, 1, 128), lambda n: (n, 0, 0)),
        compiler_params=pltpu.CompilerParams(
            dimension_semantics=("parallel",)),
    )(xpad, w1, b1, w2, b2, wf1, bf1, wf2, bf2)

    return out.reshape(N, 128)[:, :10]


if __name__ == "__main__":
    key = jax.random.PRNGKey(0)
    pkey, xkey = jax.random.split(key)
    params = init_params(pkey)

    # Small deterministic input, NCHW like the PyTorch module: (batch=2, C=1, 16, 16)
    x = jax.random.normal(xkey, (2, 1, 16, 16), jnp.float32)

    fwd = jax.jit(word_prediction_forward)
    out = jax.block_until_ready(fwd(params, x))
    assert out.shape == (2, 10), out.shape
    assert bool(jnp.all(jnp.isfinite(out)))
    print("KERNEL_OK")
</pallas_src>

<mosaic_0001>
module attributes {stable_mosaic.version = 11 : i64} {
  func.func @_word_prediction_kernel(%arg0: i32, %arg1: memref<1x20x20x1xf32, #tpu.memory_space<vmem>>, %arg2: memref<9x32xf32, #tpu.memory_space<vmem>>, %arg3: memref<1x32xf32, #tpu.memory_space<vmem>>, %arg4: memref<800x64xbf16, #tpu.memory_space<vmem>>, %arg5: memref<1x64xf32, #tpu.memory_space<vmem>>, %arg6: memref<1024x128xbf16, #tpu.memory_space<vmem>>, %arg7: memref<1x128xf32, #tpu.memory_space<vmem>>, %arg8: memref<128x128xbf16, #tpu.memory_space<vmem>>, %arg9: memref<1x128xf32, #tpu.memory_space<vmem>>, %arg10: memref<1x1x128xf32, #tpu.memory_space<vmem>>) attributes {dimension_semantics = [#tpu.dimension_semantics<parallel>], iteration_bounds = array<i64: 2>, scalar_prefetch = 0 : i64, scratch_operands = 0 : i64, tpu.core_type = #tpu.core_type<tc>, window_params = [{transform_indices = @transform_0, window_bounds = array<i64: 1, 20, 20, 1>}, {pipeline_mode = #tpu.pipeline_mode<synchronous>, transform_indices = @transform_1, window_bounds = array<i64: 9, 32>}, {pipeline_mode = #tpu.pipeline_mode<synchronous>, transform_indices = @transform_2, window_bounds = array<i64: 1, 32>}, {pipeline_mode = #tpu.pipeline_mode<synchronous>, transform_indices = @transform_3, window_bounds = array<i64: 800, 64>}, {pipeline_mode = #tpu.pipeline_mode<synchronous>, transform_indices = @transform_4, window_bounds = array<i64: 1, 64>}, {pipeline_mode = #tpu.pipeline_mode<synchronous>, transform_indices = @transform_5, window_bounds = array<i64: 1024, 128>}, {pipeline_mode = #tpu.pipeline_mode<synchronous>, transform_indices = @transform_6, window_bounds = array<i64: 1, 128>}, {pipeline_mode = #tpu.pipeline_mode<synchronous>, transform_indices = @transform_7, window_bounds = array<i64: 128, 128>}, {pipeline_mode = #tpu.pipeline_mode<synchronous>, transform_indices = @transform_8, window_bounds = array<i64: 1, 128>}, {transform_indices = @transform_9, window_bounds = array<i64: 1, 1, 128>}]} {
    %c0 = arith.constant 0 : index
    %c0_0 = arith.constant 0 : index
    %c0_1 = arith.constant 0 : index
    %c0_2 = arith.constant 0 : index
    %0 = vector.load %arg1[%c0, %c0_0, %c0_1, %c0_2] : memref<1x20x20x1xf32, #tpu.memory_space<vmem>>, vector<1x20x20x1xf32>
    %1 = vector.shape_cast %0 : vector<1x20x20x1xf32> to vector<20x20x1xf32>
    %c0_3 = arith.constant 0 : index
    %c0_4 = arith.constant 0 : index
    %2 = vector.load %arg2[%c0_3, %c0_4] : memref<9x32xf32, #tpu.memory_space<vmem>>, vector<9x32xf32>
    %cst = arith.constant 0.000000e+00 : f32
    %3 = vector.broadcast %cst : f32 to vector<18x18x32xf32>
    %4 = vector.extract_strided_slice %1 {offsets = [0, 0, 0], sizes = [18, 18, 1], strides = [1, 1, 1]} : vector<20x20x1xf32> to vector<18x18x1xf32>
    %5 = vector.extract_strided_slice %2 {offsets = [0, 0], sizes = [1, 32], strides = [1, 1]} : vector<9x32xf32> to vector<1x32xf32>
    %6 = vector.shape_cast %5 : vector<1x32xf32> to vector<1x1x32xf32>
    %7 = vector.broadcast %4 : vector<18x18x1xf32> to vector<18x18x32xf32>
    %8 = vector.broadcast %6 : vector<1x1x32xf32> to vector<18x18x32xf32>
    %9 = arith.mulf %7, %8 : vector<18x18x32xf32>
    %10 = arith.addf %3, %9 : vector<18x18x32xf32>
    %11 = vector.extract_strided_slice %1 {offsets = [0, 1, 0], sizes = [18, 18, 1], strides = [1, 1, 1]} : vector<20x20x1xf32> to vector<18x18x1xf32>
    %12 = vector.extract_strided_slice %2 {offsets = [1, 0], sizes = [1, 32], strides = [1, 1]} : vector<9x32xf32> to vector<1x32xf32>
    %13 = vector.shape_cast %12 : vector<1x32xf32> to vector<1x1x32xf32>
    %14 = vector.broadcast %11 : vector<18x18x1xf32> to vector<18x18x32xf32>
    %15 = vector.broadcast %13 : vector<1x1x32xf32> to vector<18x18x32xf32>
    %16 = arith.mulf %14, %15 : vector<18x18x32xf32>
    %17 = arith.addf %10, %16 : vector<18x18x32xf32>
    %18 = vector.extract_strided_slice %1 {offsets = [0, 2, 0], sizes = [18, 18, 1], strides = [1, 1, 1]} : vector<20x20x1xf32> to vector<18x18x1xf32>
    %19 = vector.extract_strided_slice %2 {offsets = [2, 0], sizes = [1, 32], strides = [1, 1]} : vector<9x32xf32> to vector<1x32xf32>
    %20 = vector.shape_cast %19 : vector<1x32xf32> to vector<1x1x32xf32>
    %21 = vector.broadcast %18 : vector<18x18x1xf32> to vector<18x18x32xf32>
    %22 = vector.broadcast %20 : vector<1x1x32xf32> to vector<18x18x32xf32>
    %23 = arith.mulf %21, %22 : vector<18x18x32xf32>
    %24 = arith.addf %17, %23 : vector<18x18x32xf32>
    %25 = vector.extract_strided_slice %1 {offsets = [1, 0, 0], sizes = [18, 18, 1], strides = [1, 1, 1]} : vector<20x20x1xf32> to vector<18x18x1xf32>
    %26 = vector.extract_strided_slice %2 {offsets = [3, 0], sizes = [1, 32], strides = [1, 1]} : vector<9x32xf32> to vector<1x32xf32>
    %27 = vector.shape_cast %26 : vector<1x32xf32> to vector<1x1x32xf32>
    %28 = vector.broadcast %25 : vector<18x18x1xf32> to vector<18x18x32xf32>
    %29 = vector.broadcast %27 : vector<1x1x32xf32> to vector<18x18x32xf32>
    %30 = arith.mulf %28, %29 : vector<18x18x32xf32>
    %31 = arith.addf %24, %30 : vector<18x18x32xf32>
    %32 = vector.extract_strided_slice %1 {offsets = [1, 1, 0], sizes = [18, 18, 1], strides = [1, 1, 1]} : vector<20x20x1xf32> to vector<18x18x1xf32>
    %33 = vector.extract_strided_slice %2 {offsets = [4, 0], sizes = [1, 32], strides = [1, 1]} : vector<9x32xf32> to vector<1x32xf32>
    %34 = vector.shape_cast %33 : vector<1x32xf32> to vector<1x1x32xf32>
    %35 = vector.broadcast %32 : vector<18x18x1xf32> to vector<18x18x32xf32>
    %36 = vector.broadcast %34 : vector<1x1x32xf32> to vector<18x18x32xf32>
    %37 = arith.mulf %35, %36 : vector<18x18x32xf32>
    %38 = arith.addf %31, %37 : vector<18x18x32xf32>
    %39 = vector.extract_strided_slice %1 {offsets = [1, 2, 0], sizes = [18, 18, 1], strides = [1, 1, 1]} : vector<20x20x1xf32> to vector<18x18x1xf32>
    %40 = vector.extract_strided_slice %2 {offsets = [5, 0], sizes = [1, 32], strides = [1, 1]} : vector<9x32xf32> to vector<1x32xf32>
    %41 = vector.shape_cast %40 : vector<1x32xf32> to vector<1x1x32xf32>
    %42 = vector.broadcast %39 : vector<18x18x1xf32> to vector<18x18x32xf32>
    %43 = vector.broadcast %41 : vector<1x1x32xf32> to vector<18x18x32xf32>
    %44 = arith.mulf %42, %43 : vector<18x18x32xf32>
    %45 = arith.addf %38, %44 : vector<18x18x32xf32>
    %46 = vector.extract_strided_slice %1 {offsets = [2, 0, 0], sizes = [18, 18, 1], strides = [1, 1, 1]} : vector<20x20x1xf32> to vector<18x18x1xf32>
    %47 = vector.extract_strided_slice %2 {offsets = [6, 0], sizes = [1, 32], strides = [1, 1]} : vector<9x32xf32> to vector<1x32xf32>
    %48 = vector.shape_cast %47 : vector<1x32xf32> to vector<1x1x32xf32>
    %49 = vector.broadcast %46 : vector<18x18x1xf32> to vector<18x18x32xf32>
    %50 = vector.broadcast %48 : vector<1x1x32xf32> to vector<18x18x32xf32>
    %51 = arith.mulf %49, %50 : vector<18x18x32xf32>
    %52 = arith.addf %45, %51 : vector<18x18x32xf32>
    %53 = vector.extract_strided_slice %1 {offsets = [2, 1, 0], sizes = [18, 18, 1], strides = [1, 1, 1]} : vector<20x20x1xf32> to vector<18x18x1xf32>
    %54 = vector.extract_strided_slice %2 {offsets = [7, 0], sizes = [1, 32], strides = [1, 1]} : vector<9x32xf32> to vector<1x32xf32>
    %55 = vector.shape_cast %54 : vector<1x32xf32> to vector<1x1x32xf32>
    %56 = vector.broadcast %53 : vector<18x18x1xf32> to vector<18x18x32xf32>
    %57 = vector.broadcast %55 : vector<1x1x32xf32> to vector<18x18x32xf32>
    %58 = arith.mulf %56, %57 : vector<18x18x32xf32>
    %59 = arith.addf %52, %58 : vector<18x18x32xf32>
    %60 = vector.extract_strided_slice %1 {offsets = [2, 2, 0], sizes = [18, 18, 1], strides = [1, 1, 1]} : vector<20x20x1xf32> to vector<18x18x1xf32>
    %61 = vector.extract_strided_slice %2 {offsets = [8, 0], sizes = [1, 32], strides = [1, 1]} : vector<9x32xf32> to vector<1x32xf32>
    %62 = vector.shape_cast %61 : vector<1x32xf32> to vector<1x1x32xf32>
    %63 = vector.broadcast %60 : vector<18x18x1xf32> to vector<18x18x32xf32>
    %64 = vector.broadcast %62 : vector<1x1x32xf32> to vector<18x18x32xf32>
    %65 = arith.mulf %63, %64 : vector<18x18x32xf32>
    %66 = arith.addf %59, %65 : vector<18x18x32xf32>
    %c0_5 = arith.constant 0 : index
    %c0_6 = arith.constant 0 : index
    %67 = vector.load %arg3[%c0_5, %c0_6] : memref<1x32xf32, #tpu.memory_space<vmem>>, vector<1x32xf32>
    %68 = vector.shape_cast %67 : vector<1x32xf32> to vector<1x1x32xf32>
    %69 = vector.broadcast %68 : vector<1x1x32xf32> to vector<18x18x32xf32>
    %70 = arith.addf %66, %69 : vector<18x18x32xf32>
    %71 = vector.extract_strided_slice %70 {offsets = [0, 0, 0], sizes = [16, 18, 32], strides = [1, 1, 1]} : vector<18x18x32xf32> to vector<16x18x32xf32>
    %72 = vector.extract_strided_slice %70 {offsets = [1, 0, 0], sizes = [16, 18, 32], strides = [1, 1, 1]} : vector<18x18x32xf32> to vector<16x18x32xf32>
    %73 = arith.maximumf %71, %72 : vector<16x18x32xf32>
    %74 = vector.extract_strided_slice %70 {offsets = [2, 0, 0], sizes = [16, 18, 32], strides = [1, 1, 1]} : vector<18x18x32xf32> to vector<16x18x32xf32>
    %75 = arith.maximumf %73, %74 : vector<16x18x32xf32>
    %76 = vector.shape_cast %75 : vector<16x18x32xf32> to vector<8x2x18x32xf32>
    %77 = vector.extract_strided_slice %76 {offsets = [0, 0, 0, 0], sizes = [8, 1, 18, 32], strides = [1, 1, 1, 1]} : vector<8x2x18x32xf32> to vector<8x1x18x32xf32>
    %78 = vector.shape_cast %77 : vector<8x1x18x32xf32> to vector<8x18x32xf32>
    %79 = vector.extract_strided_slice %78 {offsets = [0, 0, 0], sizes = [8, 1, 32], strides = [1, 1, 1]} : vector<8x18x32xf32> to vector<8x1x32xf32>
    %80 = vector.extract_strided_slice %78 {offsets = [0, 1, 0], sizes = [8, 1, 32], strides = [1, 1, 1]} : vector<8x18x32xf32> to vector<8x1x32xf32>
    %81 = arith.maximumf %79, %80 : vector<8x1x32xf32>
    %82 = vector.extract_strided_slice %78 {offsets = [0, 2, 0], sizes = [8, 1, 32], strides = [1, 1, 1]} : vector<8x18x32xf32> to vector<8x1x32xf32>
    %83 = arith.maximumf %81, %82 : vector<8x1x32xf32>
    %84 = vector.extract_strided_slice %78 {offsets = [0, 2, 0], sizes = [8, 1, 32], strides = [1, 1, 1]} : vector<8x18x32xf32> to vector<8x1x32xf32>
    %85 = vector.extract_strided_slice %78 {offsets = [0, 3, 0], sizes = [8, 1, 32], strides = [1, 1, 1]} : vector<8x18x32xf32> to vector<8x1x32xf32>
    %86 = arith.maximumf %84, %85 : vector<8x1x32xf32>
    %87 = vector.extract_strided_slice %78 {offsets = [0, 4, 0], sizes = [8, 1, 32], strides = [1, 1, 1]} : vector<8x18x32xf32> to vector<8x1x32xf32>
    %88 = arith.maximumf %86, %87 : vector<8x1x32xf32>
    %89 = vector.extract_strided_slice %78 {offsets = [0, 4, 0], sizes = [8, 1, 32], strides = [1, 1, 1]} : vector<8x18x32xf32> to vector<8x1x32xf32>
    %90 = vector.extract_strided_slice %78 {offsets = [0, 5, 0], sizes = [8, 1, 32], strides = [1, 1, 1]} : vector<8x18x32xf32> to vector<8x1x32xf32>
    %91 = arith.maximumf %89, %90 : vector<8x1x32xf32>
    %92 = vector.extract_strided_slice %78 {offsets = [0, 6, 0], sizes = [8, 1, 32], strides = [1, 1, 1]} : vector<8x18x32xf32> to vector<8x1x32xf32>
    %93 = arith.maximumf %91, %92 : vector<8x1x32xf32>
    %94 = vector.extract_strided_slice %78 {offsets = [0, 6, 0], sizes = [8, 1, 32], strides = [1, 1, 1]} : vector<8x18x32xf32> to vector<8x1x32xf32>
    %95 = vector.extract_strided_slice %78 {offsets = [0, 7, 0], sizes = [8, 1, 32], strides = [1, 1, 1]} : vector<8x18x32xf32> to vector<8x1x32xf32>
    %96 = arith.maximumf %94, %95 : vector<8x1x32xf32>
    %97 = vector.extract_strided_slice %78 {offsets = [0, 8, 0], sizes = [8, 1, 32], strides = [1, 1, 1]} : vector<8x18x32xf32> to vector<8x1x32xf32>
    %98 = arith.maximumf %96, %97 : vector<8x1x32xf32>
    %99 = vector.extract_strided_slice %78 {offsets = [0, 8, 0], sizes = [8, 1, 32], strides = [1, 1, 1]} : vector<8x18x32xf32> to vector<8x1x32xf32>
    %100 = vector.extract_strided_slice %78 {offsets = [0, 9, 0], sizes = [8, 1, 32], strides = [1, 1, 1]} : vector<8x18x32xf32> to vector<8x1x32xf32>
    %101 = arith.maximumf %99, %100 : vector<8x1x32xf32>
    %102 = vector.extract_strided_slice %78 {offsets = [0, 10, 0], sizes = [8, 1, 32], strides = [1, 1, 1]} : vector<8x18x32xf32> to vector<8x1x32xf32>
    %103 = arith.maximumf %101, %102 : vector<8x1x32xf32>
    %104 = vector.extract_strided_slice %78 {offsets = [0, 10, 0], sizes = [8, 1, 32], strides = [1, 1, 1]} : vector<8x18x32xf32> to vector<8x1x32xf32>
    %105 = vector.extract_strided_slice %78 {offsets = [0, 11, 0], sizes = [8, 1, 32], strides = [1, 1, 1]} : vector<8x18x32xf32> to vector<8x1x32xf32>
    %106 = arith.maximumf %104, %105 : vector<8x1x32xf32>
    %107 = vector.extract_strided_slice %78 {offsets = [0, 12, 0], sizes = [8, 1, 32], strides = [1, 1, 1]} : vector<8x18x32xf32> to vector<8x1x32xf32>
    %108 = arith.maximumf %106, %107 : vector<8x1x32xf32>
    %109 = vector.extract_strided_slice %78 {offsets = [0, 12, 0], sizes = [8, 1, 32], strides = [1, 1, 1]} : vector<8x18x32xf32> to vector<8x1x32xf32>
    %110 = vector.extract_strided_slice %78 {offsets = [0, 13, 0], sizes = [8, 1, 32], strides = [1, 1, 1]} : vector<8x18x32xf32> to vector<8x1x32xf32>
    %111 = arith.maximumf %109, %110 : vector<8x1x32xf32>
    %112 = vector.extract_strided_slice %78 {offsets = [0, 14, 0], sizes = [8, 1, 32], strides = [1, 1, 1]} : vector<8x18x32xf32> to vector<8x1x32xf32>
    %113 = arith.maximumf %111, %112 : vector<8x1x32xf32>
    %114 = vector.extract_strided_slice %78 {offsets = [0, 14, 0], sizes = [8, 1, 32], strides = [1, 1, 1]} : vector<8x18x32xf32> to vector<8x1x32xf32>
    %115 = vector.extract_strided_slice %78 {offsets = [0, 15, 0], sizes = [8, 1, 32], strides = [1, 1, 1]} : vector<8x18x32xf32> to vector<8x1x32xf32>
    %116 = arith.maximumf %114, %115 : vector<8x1x32xf32>
    %117 = vector.extract_strided_slice %78 {offsets = [0, 16, 0], sizes = [8, 1, 32], strides = [1, 1, 1]} : vector<8x18x32xf32> to vector<8x1x32xf32>
    %118 = arith.maximumf %116, %117 : vector<8x1x32xf32>
    %119 = tpu.concatenate %83, %88, %93, %98, %103, %108, %113, %118 in 1 : vector<8x1x32xf32>, vector<8x1x32xf32>, vector<8x1x32xf32>, vector<8x1x32xf32>, vector<8x1x32xf32>, vector<8x1x32xf32>, vector<8x1x32xf32>, vector<8x1x32xf32> -> vector<8x8x32xf32>
    %cst_7 = arith.constant 0.000000e+00 : f32
    %120 = vector.broadcast %cst_7 : f32 to vector<2x12x32xf32>
    %cst_8 = arith.constant 0.000000e+00 : f32
    %121 = vector.broadcast %cst_8 : f32 to vector<8x2x32xf32>
    %122 = tpu.concatenate %121, %119, %121 in 1 : vector<8x2x32xf32>, vector<8x8x32xf32>, vector<8x2x32xf32> -> vector<8x12x32xf32>
    %123 = tpu.concatenate %120, %122, %120 in 0 : vector<2x12x32xf32>, vector<8x12x32xf32>, vector<2x12x32xf32> -> vector<12x12x32xf32>
    %c0_9 = arith.constant 0 : index
    %c0_10 = arith.constant 0 : index
    %124 = vector.load %arg4[%c0_9, %c0_10] : memref<800x64xbf16, #tpu.memory_space<vmem>>, vector<800x64xbf16>
    %125 = vector.extract_strided_slice %123 {offsets = [0, 0, 0], sizes = [1, 8, 32], strides = [1, 1, 1]} : vector<12x12x32xf32> to vector<1x8x32xf32>
    %126 = vector.shape_cast %125 : vector<1x8x32xf32> to vector<8x32xf32>
    %127 = vector.extract_strided_slice %123 {offsets = [0, 1, 0], sizes = [1, 8, 32], strides = [1, 1, 1]} : vector<12x12x32xf32> to vector<1x8x32xf32>
    %128 = vector.shape_cast %127 : vector<1x8x32xf32> to vector<8x32xf32>
    %129 = vector.extract_strided_slice %123 {offsets = [0, 2, 0], sizes = [1, 8, 32], strides = [1, 1, 1]} : vector<12x12x32xf32> to vector<1x8x32xf32>
    %130 = vector.shape_cast %129 : vector<1x8x32xf32> to vector<8x32xf32>
    %131 = vector.extract_strided_slice %123 {offsets = [0, 3, 0], sizes = [1, 8, 32], strides = [1, 1, 1]} : vector<12x12x32xf32> to vector<1x8x32xf32>
    %132 = vector.shape_cast %131 : vector<1x8x32xf32> to vector<8x32xf32>
    %133 = vector.extract_strided_slice %123 {offsets = [0, 4, 0], sizes = [1, 8, 32], strides = [1, 1, 1]} : vector<12x12x32xf32> to vector<1x8x32xf32>
    %134 = vector.shape_cast %133 : vector<1x8x32xf32> to vector<8x32xf32>
    %135 = vector.extract_strided_slice %123 {offsets = [1, 0, 0], sizes = [1, 8, 32], strides = [1, 1, 1]} : vector<12x12x32xf32> to vector<1x8x32xf32>
    %136 = vector.shape_cast %135 : vector<1x8x32xf32> to vector<8x32xf32>
    %137 = vector.extract_strided_slice %123 {offsets = [1, 1, 0], sizes = [1, 8, 32], strides = [1, 1, 1]} : vector<12x12x32xf32> to vector<1x8x32xf32>
    %138 = vector.shape_cast %137 : vector<1x8x32xf32> to vector<8x32xf32>
    %139 = vector.extract_strided_slice %123 {offsets = [1, 2, 0], sizes = [1, 8, 32], strides = [1, 1, 1]} : vector<12x12x32xf32> to vector<1x8x32xf32>
    %140 = vector.shape_cast %139 : vector<1x8x32xf32> to vector<8x32xf32>
    %141 = vector.extract_strided_slice %123 {offsets = [1, 3, 0], sizes = [1, 8, 32], strides = [1, 1, 1]} : vector<12x12x32xf32> to vector<1x8x32xf32>
    %142 = vector.shape_cast %141 : vector<1x8x32xf32> to vector<8x32xf32>
    %143 = vector.extract_strided_slice %123 {offsets = [1, 4, 0], sizes = [1, 8, 32], strides = [1, 1, 1]} : vector<12x12x32xf32> to vector<1x8x32xf32>
    %144 = vector.shape_cast %143 : vector<1x8x32xf32> to vector<8x32xf32>
    %145 = vector.extract_strided_slice %123 {offsets = [2, 0, 0], sizes = [1, 8, 32], strides = [1, 1, 1]} : vector<12x12x32xf32> to vector<1x8x32xf32>
    %146 = vector.shape_cast %145 : vector<1x8x32xf32> to vector<8x32xf32>
    %147 = vector.extract_strided_slice %123 {offsets = [2, 1, 0], sizes = [1, 8, 32], strides = [1, 1, 1]} : vector<12x12x32xf32> to vector<1x8x32xf32>
    %148 = vector.shape_cast %147 : vector<1x8x32xf32> to vector<8x32xf32>
    %149 = vector.extract_strided_slice %123 {offsets = [2, 2, 0], sizes = [1, 8, 32], strides = [1, 1, 1]} : vector<12x12x32xf32> to vector<1x8x32xf32>
    %150 = vector.shape_cast %149 : vector<1x8x32xf32> to vector<8x32xf32>
    %151 = vector.extract_strided_slice %123 {offsets = [2, 3, 0], sizes = [1, 8, 32], strides = [1, 1, 1]} : vector<12x12x32xf32> to vector<1x8x32xf32>
    %152 = vector.shape_cast %151 : vector<1x8x32xf32> to vector<8x32xf32>
    %153 = vector.extract_strided_slice %123 {offsets = [2, 4, 0], sizes = [1, 8, 32], strides = [1, 1, 1]} : vector<12x12x32xf32> to vector<1x8x32xf32>
    %154 = vector.shape_cast %153 : vector<1x8x32xf32> to vector<8x32xf32>
    %155 = vector.extract_strided_slice %123 {offsets = [3, 0, 0], sizes = [1, 8, 32], strides = [1, 1, 1]} : vector<12x12x32xf32> to vector<1x8x32xf32>
    %156 = vector.shape_cast %155 : vector<1x8x32xf32> to vector<8x32xf32>
    %157 = vector.extract_strided_slice %123 {offsets = [3, 1, 0], sizes = [1, 8, 32], strides = [1, 1, 1]} : vector<12x12x32xf32> to vector<1x8x32xf32>
    %158 = vector.shape_cast %157 : vector<1x8x32xf32> to vector<8x32xf32>
    %159 = vector.extract_strided_slice %123 {offsets = [3, 2, 0], sizes = [1, 8, 32], strides = [1, 1, 1]} : vector<12x12x32xf32> to vector<1x8x32xf32>
    %160 = vector.shape_cast %159 : vector<1x8x32xf32> to vector<8x32xf32>
    %161 = vector.extract_strided_slice %123 {offsets = [3, 3, 0], sizes = [1, 8, 32], strides = [1, 1, 1]} : vector<12x12x32xf32> to vector<1x8x32xf32>
    %162 = vector.shape_cast %161 : vector<1x8x32xf32> to vector<8x32xf32>
    %163 = vector.extract_strided_slice %123 {offsets = [3, 4, 0], sizes = [1, 8, 32], strides = [1, 1, 1]} : vector<12x12x32xf32> to vector<1x8x32xf32>
    %164 = vector.shape_cast %163 : vector<1x8x32xf32> to vector<8x32xf32>
    %165 = vector.extract_strided_slice %123 {offsets = [4, 0, 0], sizes = [1, 8, 32], strides = [1, 1, 1]} : vector<12x12x32xf32> to vector<1x8x32xf32>
    %166 = vector.shape_cast %165 : vector<1x8x32xf32> to vector<8x32xf32>
    %167 = vector.extract_strided_slice %123 {offsets = [4, 1, 0], sizes = [1, 8, 32], strides = [1, 1, 1]} : vector<12x12x32xf32> to vector<1x8x32xf32>
    %168 = vector.shape_cast %167 : vector<1x8x32xf32> to vector<8x32xf32>
    %169 = vector.extract_strided_slice %123 {offsets = [4, 2, 0], sizes = [1, 8, 32], strides = [1, 1, 1]} : vector<12x12x32xf32> to vector<1x8x32xf32>
    %170 = vector.shape_cast %169 : vector<1x8x32xf32> to vector<8x32xf32>
    %171 = vector.extract_strided_slice %123 {offsets = [4, 3, 0], sizes = [1, 8, 32], strides = [1, 1, 1]} : vector<12x12x32xf32> to vector<1x8x32xf32>
    %172 = vector.shape_cast %171 : vector<1x8x32xf32> to vector<8x32xf32>
    %173 = vector.extract_strided_slice %123 {offsets = [4, 4, 0], sizes = [1, 8, 32], strides = [1, 1, 1]} : vector<12x12x32xf32> to vector<1x8x32xf32>
    %174 = vector.shape_cast %173 : vector<1x8x32xf32> to vector<8x32xf32>
    %175 = tpu.concatenate %126, %128, %130, %132, %134, %136, %138, %140, %142, %144, %146, %148, %150, %152, %154, %156 in 1 : vector<8x32xf32>, vector<8x32xf32>, vector<8x32xf32>, vector<8x32xf32>, vector<8x32xf32>, vector<8x32xf32>, vector<8x32xf32>, vector<8x32xf32>, vector<8x32xf32>, vector<8x32xf32>, vector<8x32xf32>, vector<8x32xf32>, vector<8x32xf32>, vector<8x32xf32>, vector<8x32xf32>, vector<8x32xf32> -> vector<8x512xf32>
    %176 = tpu.concatenate %158, %160, %162, %164, %166, %168, %170, %172, %174 in 1 : vector<8x32xf32>, vector<8x32xf32>, vector<8x32xf32>, vector<8x32xf32>, vector<8x32xf32>, vector<8x32xf32>, vector<8x32xf32>, vector<8x32xf32>, vector<8x32xf32> -> vector<8x288xf32>
    %177 = tpu.concatenate %175, %176 in 1 : vector<8x512xf32>, vector<8x288xf32> -> vector<8x800xf32>
    %178 = arith.truncf %177 : vector<8x800xf32> to vector<8x800xbf16>
    %cst_11 = arith.constant dense<0.000000e+00> : vector<8x64xf32>
    %179 = tpu.matmul %178, %124, %cst_11 {dimension_numbers = #tpu.dot_dimension_numbers<[1], [0], [0], [1], [0, 0, 1, 1], [], []>} : vector<8x800xbf16>, vector<800x64xbf16>, vector<8x64xf32> -> vector<8x64xf32>
    %180 = vector.shape_cast %179 : vector<8x64xf32> to vector<1x8x64xf32>
    %181 = vector.extract_strided_slice %123 {offsets = [1, 0, 0], sizes = [1, 8, 32], strides = [1, 1, 1]} : vector<12x12x32xf32> to vector<1x8x32xf32>
    %182 = vector.shape_cast %181 : vector<1x8x32xf32> to vector<8x32xf32>
    %183 = vector.extract_strided_slice %123 {offsets = [1, 1, 0], sizes = [1, 8, 32], strides = [1, 1, 1]} : vector<12x12x32xf32> to vector<1x8x32xf32>
    %184 = vector.shape_cast %183 : vector<1x8x32xf32> to vector<8x32xf32>
    %185 = vector.extract_strided_slice %123 {offsets = [1, 2, 0], sizes = [1, 8, 32], strides = [1, 1, 1]} : vector<12x12x32xf32> to vector<1x8x32xf32>
    %186 = vector.shape_cast %185 : vector<1x8x32xf32> to vector<8x32xf32>
    %187 = vector.extract_strided_slice %123 {offsets = [1, 3, 0], sizes = [1, 8, 32], strides = [1, 1, 1]} : vector<12x12x32xf32> to vector<1x8x32xf32>
    %188 = vector.shape_cast %187 : vector<1x8x32xf32> to vector<8x32xf32>
    %189 = vector.extract_strided_slice %123 {offsets = [1, 4, 0], sizes = [1, 8, 32], strides = [1, 1, 1]} : vector<12x12x32xf32> to vector<1x8x32xf32>
    %190 = vector.shape_cast %189 : vector<1x8x32xf32> to vector<8x32xf32>
    %191 = vector.extract_strided_slice %123 {offsets = [2, 0, 0], sizes = [1, 8, 32], strides = [1, 1, 1]} : vector<12x12x32xf32> to vector<1x8x32xf32>
    %192 = vector.shape_cast %191 : vector<1x8x32xf32> to vector<8x32xf32>
    %193 = vector.extract_strided_slice %123 {offsets = [2, 1, 0], sizes = [1, 8, 32], strides = [1, 1, 1]} : vector<12x12x32xf32> to vector<1x8x32xf32>
    %194 = vector.shape_cast %193 : vector<1x8x32xf32> to vector<8x32xf32>
    %195 = vector.extract_strided_slice %123 {offsets = [2, 2, 0], sizes = [1, 8, 32], strides = [1, 1, 1]} : vector<12x12x32xf32> to vector<1x8x32xf32>
    %196 = vector.shape_cast %195 : vector<1x8x32xf32> to vector<8x32xf32>
    %197 = vector.extract_strided_slice %123 {offsets = [2, 3, 0], sizes = [1, 8, 32], strides = [1, 1, 1]} : vector<12x12x32xf32> to vector<1x8x32xf32>
    %198 = vector.shape_cast %197 : vector<1x8x32xf32> to vector<8x32xf32>
    %199 = vector.extract_strided_slice %123 {offsets = [2, 4, 0], sizes = [1, 8, 32], strides = [1, 1, 1]} : vector<12x12x32xf32> to vector<1x8x32xf32>
    %200 = vector.shape_cast %199 : vector<1x8x32xf32> to vector<8x32xf32>
    %201 = vector.extract_strided_slice %123 {offsets = [3, 0, 0], sizes = [1, 8, 32], strides = [1, 1, 1]} : vector<12x12x32xf32> to vector<1x8x32xf32>
    %202 = vector.shape_cast %201 : vector<1x8x32xf32> to vector<8x32xf32>
    %203 = vector.extract_strided_slice %123 {offsets = [3, 1, 0], sizes = [1, 8, 32], strides = [1, 1, 1]} : vector<12x12x32xf32> to vector<1x8x32xf32>
    %204 = vector.shape_cast %203 : vector<1x8x32xf32> to vector<8x32xf32>
    %205 = vector.extract_strided_slice %123 {offsets = [3, 2, 0], sizes = [1, 8, 32], strides = [1, 1, 1]} : vector<12x12x32xf32> to vector<1x8x32xf32>
    %206 = vector.shape_cast %205 : vector<1x8x32xf32> to vector<8x32xf32>
    %207 = vector.extract_strided_slice %123 {offsets = [3, 3, 0], sizes = [1, 8, 32], strides = [1, 1, 1]} : vector<12x12x32xf32> to vector<1x8x32xf32>
    %208 = vector.shape_cast %207 : vector<1x8x32xf32> to vector<8x32xf32>
    %209 = vector.extract_strided_slice %123 {offsets = [3, 4, 0], sizes = [1, 8, 32], strides = [1, 1, 1]} : vector<12x12x32xf32> to vector<1x8x32xf32>
    %210 = vector.shape_cast %209 : vector<1x8x32xf32> to vector<8x32xf32>
    %211 = vector.extract_strided_slice %123 {offsets = [4, 0, 0], sizes = [1, 8, 32], strides = [1, 1, 1]} : vector<12x12x32xf32> to vector<1x8x32xf32>
    %212 = vector.shape_cast %211 : vector<1x8x32xf32> to vector<8x32xf32>
    %213 = vector.extract_strided_slice %123 {offsets = [4, 1, 0], sizes = [1, 8, 32], strides = [1, 1, 1]} : vector<12x12x32xf32> to vector<1x8x32xf32>
    %214 = vector.shape_cast %213 : vector<1x8x32xf32> to vector<8x32xf32>
    %215 = vector.extract_strided_slice %123 {offsets = [4, 2, 0], sizes = [1, 8, 32], strides = [1, 1, 1]} : vector<12x12x32xf32> to vector<1x8x32xf32>
    %216 = vector.shape_cast %215 : vector<1x8x32xf32> to vector<8x32xf32>
    %217 = vector.extract_strided_slice %123 {offsets = [4, 3, 0], sizes = [1, 8, 32], strides = [1, 1, 1]} : vector<12x12x32xf32> to vector<1x8x32xf32>
    %218 = vector.shape_cast %217 : vector<1x8x32xf32> to vector<8x32xf32>
    %219 = vector.extract_strided_slice %123 {offsets = [4, 4, 0], sizes = [1, 8, 32], strides = [1, 1, 1]} : vector<12x12x32xf32> to vector<1x8x32xf32>
    %220 = vector.shape_cast %219 : vector<1x8x32xf32> to vector<8x32xf32>
    %221 = vector.extract_strided_slice %123 {offsets = [5, 0, 0], sizes = [1, 8, 32], strides = [1, 1, 1]} : vector<12x12x32xf32> to vector<1x8x32xf32>
    %222 = vector.shape_cast %221 : vector<1x8x32xf32> to vector<8x32xf32>
    %223 = vector.extract_strided_slice %123 {offsets = [5, 1, 0], sizes = [1, 8, 32], strides = [1, 1, 1]} : vector<12x12x32xf32> to vector<1x8x32xf32>
    %224 = vector.shape_cast %223 : vector<1x8x32xf32> to vector<8x32xf32>
    %225 = vector.extract_strided_slice %123 {offsets = [5, 2, 0], sizes = [1, 8, 32], strides = [1, 1, 1]} : vector<12x12x32xf32> to vector<1x8x32xf32>
    %226 = vector.shape_cast %225 : vector<1x8x32xf32> to vector<8x32xf32>
    %227 = vector.extract_strided_slice %123 {offsets = [5, 3, 0], sizes = [1, 8, 32], strides = [1, 1, 1]} : vector<12x12x32xf32> to vector<1x8x32xf32>
    %228 = vector.shape_cast %227 : vector<1x8x32xf32> to vector<8x32xf32>
    %229 = vector.extract_strided_slice %123 {offsets = [5, 4, 0], sizes = [1, 8, 32], strides = [1, 1, 1]} : vector<12x12x32xf32> to vector<1x8x32xf32>
    %230 = vector.shape_cast %229 : vector<1x8x32xf32> to vector<8x32xf32>
    %231 = tpu.concatenate %182, %184, %186, %188, %190, %192, %194, %196, %198, %200, %202, %204, %206, %208, %210, %212 in 1 : vector<8x32xf32>, vector<8x32xf32>, vector<8x32xf32>, vector<8x32xf32>, vector<8x32xf32>, vector<8x32xf32>, vector<8x32xf32>, vector<8x32xf32>, vector<8x32xf32>, vector<8x32xf32>, vector<8x32xf32>, vector<8x32xf32>, vector<8x32xf32>, vector<8x32xf32>, vector<8x32xf32>, vector<8x32xf32> -> vector<8x512xf32>
    %232 = tpu.concatenate %214, %216, %218, %220, %222, %224, %226, %228, %230 in 1 : vector<8x32xf32>, vector<8x32xf32>, vector<8x32xf32>, vector<8x32xf32>, vector<8x32xf32>, vector<8x32xf32>, vector<8x32xf32>, vector<8x32xf32>, vector<8x32xf32> -> vector<8x288xf32>
    %233 = tpu.concatenate %231, %232 in 1 : vector<8x512xf32>, vector<8x288xf32> -> vector<8x800xf32>
    %234 = arith.truncf %233 : vector<8x800xf32> to vector<8x800xbf16>
    %cst_12 = arith.constant dense<0.000000e+00> : vector<8x64xf32>
    %235 = tpu.matmul %234, %124, %cst_12 {dimension_numbers = #tpu.dot_dimension_numbers<[1], [0], [0], [1], [0, 0, 1, 1], [], []>} : vector<8x800xbf16>, vector<800x64xbf16>, vector<8x64xf32> -> vector<8x64xf32>
    %236 = vector.shape_cast %235 : vector<8x64xf32> to vector<1x8x64xf32>
    %237 = vector.extract_strided_slice %123 {offsets = [2, 0, 0], sizes = [1, 8, 32], strides = [1, 1, 1]} : vector<12x12x32xf32> to vector<1x8x32xf32>
    %238 = vector.shape_cast %237 : vector<1x8x32xf32> to vector<8x32xf32>
    %239 = vector.extract_strided_slice %123 {offsets = [2, 1, 0], sizes = [1, 8, 32], strides = [1, 1, 1]} : vector<12x12x32xf32> to vector<1x8x32xf32>
    %240 = vector.shape_cast %239 : vector<1x8x32xf32> to vector<8x32xf32>
    %241 = vector.extract_strided_slice %123 {offsets = [2, 2, 0], sizes = [1, 8, 32], strides = [1, 1, 1]} : vector<12x12x32xf32> to vector<1x8x32xf32>
    %242 = vector.shape_cast %241 : vector<1x8x32xf32> to vector<8x32xf32>
    %243 = vector.extract_strided_slice %123 {offsets = [2, 3, 0], sizes = [1, 8, 32], strides = [1, 1, 1]} : vector<12x12x32xf32> to vector<1x8x32xf32>
    %244 = vector.shape_cast %243 : vector<1x8x32xf32> to vector<8x32xf32>
    %245 = vector.extract_strided_slice %123 {offsets = [2, 4, 0], sizes = [1, 8, 32], strides = [1, 1, 1]} : vector<12x12x32xf32> to vector<1x8x32xf32>
    %246 = vector.shape_cast %245 : vector<1x8x32xf32> to vector<8x32xf32>
    %247 = vector.extract_strided_slice %123 {offsets = [3, 0, 0], sizes = [1, 8, 32], strides = [1, 1, 1]} : vector<12x12x32xf32> to vector<1x8x32xf32>
    %248 = vector.shape_cast %247 : vector<1x8x32xf32> to vector<8x32xf32>
    %249 = vector.extract_strided_slice %123 {offsets = [3, 1, 0], sizes = [1, 8, 32], strides = [1, 1, 1]} : vector<12x12x32xf32> to vector<1x8x32xf32>
    %250 = vector.shape_cast %249 : vector<1x8x32xf32> to vector<8x32xf32>
    %251 = vector.extract_strided_slice %123 {offsets = [3, 2, 0], sizes = [1, 8, 32], strides = [1, 1, 1]} : vector<12x12x32xf32> to vector<1x8x32xf32>
    %252 = vector.shape_cast %251 : vector<1x8x32xf32> to vector<8x32xf32>
    %253 = vector.extract_strided_slice %123 {offsets = [3, 3, 0], sizes = [1, 8, 32], strides = [1, 1, 1]} : vector<12x12x32xf32> to vector<1x8x32xf32>
    %254 = vector.shape_cast %253 : vector<1x8x32xf32> to vector<8x32xf32>
    %255 = vector.extract_strided_slice %123 {offsets = [3, 4, 0], sizes = [1, 8, 32], strides = [1, 1, 1]} : vector<12x12x32xf32> to vector<1x8x32xf32>
    %256 = vector.shape_cast %255 : vector<1x8x32xf32> to vector<8x32xf32>
    %257 = vector.extract_strided_slice %123 {offsets = [4, 0, 0], sizes = [1, 8, 32], strides = [1, 1, 1]} : vector<12x12x32xf32> to vector<1x8x32xf32>
    %258 = vector.shape_cast %257 : vector<1x8x32xf32> to vector<8x32xf32>
    %259 = vector.extract_strided_slice %123 {offsets = [4, 1, 0], sizes = [1, 8, 32], strides = [1, 1, 1]} : vector<12x12x32xf32> to vector<1x8x32xf32>
    %260 = vector.shape_cast %259 : vector<1x8x32xf32> to vector<8x32xf32>
    %261 = vector.extract_strided_slice %123 {offsets = [4, 2, 0], sizes = [1, 8, 32], strides = [1, 1, 1]} : vector<12x12x32xf32> to vector<1x8x32xf32>
    %262 = vector.shape_cast %261 : vector<1x8x32xf32> to vector<8x32xf32>
    %263 = vector.extract_strided_slice %123 {offsets = [4, 3, 0], sizes = [1, 8, 32], strides = [1, 1, 1]} : vector<12x12x32xf32> to vector<1x8x32xf32>
    %264 = vector.shape_cast %263 : vector<1x8x32xf32> to vector<8x32xf32>
    %265 = vector.extract_strided_slice %123 {offsets = [4, 4, 0], sizes = [1, 8, 32], strides = [1, 1, 1]} : vector<12x12x32xf32> to vector<1x8x32xf32>
    %266 = vector.shape_cast %265 : vector<1x8x32xf32> to vector<8x32xf32>
    %267 = vector.extract_strided_slice %123 {offsets = [5, 0, 0], sizes = [1, 8, 32], strides = [1, 1, 1]} : vector<12x12x32xf32> to vector<1x8x32xf32>
    %268 = vector.shape_cast %267 : vector<1x8x32xf32> to vector<8x32xf32>
    %269 = vector.extract_strided_slice %123 {offsets = [5, 1, 0], sizes = [1, 8, 32], strides = [1, 1, 1]} : vector<12x12x32xf32> to vector<1x8x32xf32>
    %270 = vector.shape_cast %269 : vector<1x8x32xf32> to vector<8x32xf32>
    %271 = vector.extract_strided_slice %123 {offsets = [5, 2, 0], sizes = [1, 8, 32], strides = [1, 1, 1]} : vector<12x12x32xf32> to vector<1x8x32xf32>
    %272 = vector.shape_cast %271 : vector<1x8x32xf32> to vector<8x32xf32>
    %273 = vector.extract_strided_slice %123 {offsets = [5, 3, 0], sizes = [1, 8, 32], strides = [1, 1, 1]} : vector<12x12x32xf32> to vector<1x8x32xf32>
    %274 = vector.shape_cast %273 : vector<1x8x32xf32> to vector<8x32xf32>
    %275 = vector.extract_strided_slice %123 {offsets = [5, 4, 0], sizes = [1, 8, 32], strides = [1, 1, 1]} : vector<12x12x32xf32> to vector<1x8x32xf32>
    %276 = vector.shape_cast %275 : vector<1x8x32xf32> to vector<8x32xf32>
    %277 = vector.extract_strided_slice %123 {offsets = [6, 0, 0], sizes = [1, 8, 32], strides = [1, 1, 1]} : vector<12x12x32xf32> to vector<1x8x32xf32>
    %278 = vector.shape_cast %277 : vector<1x8x32xf32> to vector<8x32xf32>
    %279 = vector.extract_strided_slice %123 {offsets = [6, 1, 0], sizes = [1, 8, 32], strides = [1, 1, 1]} : vector<12x12x32xf32> to vector<1x8x32xf32>
    %280 = vector.shape_cast %279 : vector<1x8x32xf32> to vector<8x32xf32>
    %281 = vector.extract_strided_slice %123 {offsets = [6, 2, 0], sizes = [1, 8, 32], strides = [1, 1, 1]} : vector<12x12x32xf32> to vector<1x8x32xf32>
    %282 = vector.shape_cast %281 : vector<1x8x32xf32> to vector<8x32xf32>
    %283 = vector.extract_strided_slice %123 {offsets = [6, 3, 0], sizes = [1, 8, 32], strides = [1, 1, 1]} : vector<12x12x32xf32> to vector<1x8x32xf32>
    %284 = vector.shape_cast %283 : vector<1x8x32xf32> to vector<8x32xf32>
    %285 = vector.extract_strided_slice %123 {offsets = [6, 4, 0], sizes = [1, 8, 32], strides = [1, 1, 1]} : vector<12x12x32xf32> to vector<1x8x32xf32>
    %286 = vector.shape_cast %285 : vector<1x8x32xf32> to vector<8x32xf32>
    %287 = tpu.concatenate %238, %240, %242, %244, %246, %248, %250, %252, %254, %256, %258, %260, %262, %264, %266, %268 in 1 : vector<8x32xf32>, vector<8x32xf32>, vector<8x32xf32>, vector<8x32xf32>, vector<8x32xf32>, vector<8x32xf32>, vector<8x32xf32>, vector<8x32xf32>, vector<8x32xf32>, vector<8x32xf32>, vector<8x32xf32>, vector<8x32xf32>, vector<8x32xf32>, vector<8x32xf32>, vector<8x32xf32>, vector<8x32xf32> -> vector<8x512xf32>
    %288 = tpu.concatenate %270, %272, %274, %276, %278, %280, %282, %284, %286 in 1 : vector<8x32xf32>, vector<8x32xf32>, vector<8x32xf32>, vector<8x32xf32>, vector<8x32xf32>, vector<8x32xf32>, vector<8x32xf32>, vector<8x32xf32>, vector<8x32xf32> -> vector<8x288xf32>
    %289 = tpu.concatenate %287, %288 in 1 : vector<8x512xf32>, vector<8x288xf32> -> vector<8x800xf32>
    %290 = arith.truncf %289 : vector<8x800xf32> to vector<8x800xbf16>
    %cst_13 = arith.constant dense<0.000000e+00> : vector<8x64xf32>
    %291 = tpu.matmul %290, %124, %cst_13 {dimension_numbers = #tpu.dot_dimension_numbers<[1], [0], [0], [1], [0, 0, 1, 1], [], []>} : vector<8x800xbf16>, vector<800x64xbf16>, vector<8x64xf32> -> vector<8x64xf32>
    %292 = vector.shape_cast %291 : vector<8x64xf32> to vector<1x8x64xf32>
    %293 = vector.extract_strided_slice %123 {offsets = [3, 0, 0], sizes = [1, 8, 32], strides = [1, 1, 1]} : vector<12x12x32xf32> to vector<1x8x32xf32>
    %294 = vector.shape_cast %293 : vector<1x8x32xf32> to vector<8x32xf32>
    %295 = vector.extract_strided_slice %123 {offsets = [3, 1, 0], sizes = [1, 8, 32], strides = [1, 1, 1]} : vector<12x12x32xf32> to vector<1x8x32xf32>
    %296 = vector.shape_cast %295 : vector<1x8x32xf32> to vector<8x32xf32>
    %297 = vector.extract_strided_slice %123 {offsets = [3, 2, 0], sizes = [1, 8, 32], strides = [1, 1, 1]} : vector<12x12x32xf32> to vector<1x8x32xf32>
    %298 = vector.shape_cast %297 : vector<1x8x32xf32> to vector<8x32xf32>
    %299 = vector.extract_strided_slice %123 {offsets = [3, 3, 0], sizes = [1, 8, 32], strides = [1, 1, 1]} : vector<12x12x32xf32> to vector<1x8x32xf32>
    %300 = vector.shape_cast %299 : vector<1x8x32xf32> to vector<8x32xf32>
    %301 = vector.extract_strided_slice %123 {offsets = [3, 4, 0], sizes = [1, 8, 32], strides = [1, 1, 1]} : vector<12x12x32xf32> to vector<1x8x32xf32>
    %302 = vector.shape_cast %301 : vector<1x8x32xf32> to vector<8x32xf32>
    %303 = vector.extract_strided_slice %123 {offsets = [4, 0, 0], sizes = [1, 8, 32], strides = [1, 1, 1]} : vector<12x12x32xf32> to vector<1x8x32xf32>
    %304 = vector.shape_cast %303 : vector<1x8x32xf32> to vector<8x32xf32>
    %305 = vector.extract_strided_slice %123 {offsets = [4, 1, 0], sizes = [1, 8, 32], strides = [1, 1, 1]} : vector<12x12x32xf32> to vector<1x8x32xf32>
    %306 = vector.shape_cast %305 : vector<1x8x32xf32> to vector<8x32xf32>
    %307 = vector.extract_strided_slice %123 {offsets = [4, 2, 0], sizes = [1, 8, 32], strides = [1, 1, 1]} : vector<12x12x32xf32> to vector<1x8x32xf32>
    %308 = vector.shape_cast %307 : vector<1x8x32xf32> to vector<8x32xf32>
    %309 = vector.extract_strided_slice %123 {offsets = [4, 3, 0], sizes = [1, 8, 32], strides = [1, 1, 1]} : vector<12x12x32xf32> to vector<1x8x32xf32>
    %310 = vector.shape_cast %309 : vector<1x8x32xf32> to vector<8x32xf32>
    %311 = vector.extract_strided_slice %123 {offsets = [4, 4, 0], sizes = [1, 8, 32], strides = [1, 1, 1]} : vector<12x12x32xf32> to vector<1x8x32xf32>
    %312 = vector.shape_cast %311 : vector<1x8x32xf32> to vector<8x32xf32>
    %313 = vector.extract_strided_slice %123 {offsets = [5, 0, 0], sizes = [1, 8, 32], strides = [1, 1, 1]} : vector<12x12x32xf32> to vector<1x8x32xf32>
    %314 = vector.shape_cast %313 : vector<1x8x32xf32> to vector<8x32xf32>
    %315 = vector.extract_strided_slice %123 {offsets = [5, 1, 0], sizes = [1, 8, 32], strides = [1, 1, 1]} : vector<12x12x32xf32> to vector<1x8x32xf32>
    %316 = vector.shape_cast %315 : vector<1x8x32xf32> to vector<8x32xf32>
    %317 = vector.extract_strided_slice %123 {offsets = [5, 2, 0], sizes = [1, 8, 32], strides = [1, 1, 1]} : vector<12x12x32xf32> to vector<1x8x32xf32>
    %318 = vector.shape_cast %317 : vector<1x8x32xf32> to vector<8x32xf32>
    %319 = vector.extract_strided_slice %123 {offsets = [5, 3, 0], sizes = [1, 8, 32], strides = [1, 1, 1]} : vector<12x12x32xf32> to vector<1x8x32xf32>
    %320 = vector.shape_cast %319 : vector<1x8x32xf32> to vector<8x32xf32>
    %321 = vector.extract_strided_slice %123 {offsets = [5, 4, 0], sizes = [1, 8, 32], strides = [1, 1, 1]} : vector<12x12x32xf32> to vector<1x8x32xf32>
    %322 = vector.shape_cast %321 : vector<1x8x32xf32> to vector<8x32xf32>
    %323 = vector.extract_strided_slice %123 {offsets = [6, 0, 0], sizes = [1, 8, 32], strides = [1, 1, 1]} : vector<12x12x32xf32> to vector<1x8x32xf32>
    %324 = vector.shape_cast %323 : vector<1x8x32xf32> to vector<8x32xf32>
    %325 = vector.extract_strided_slice %123 {offsets = [6, 1, 0], sizes = [1, 8, 32], strides = [1, 1, 1]} : vector<12x12x32xf32> to vector<1x8x32xf32>
    %326 = vector.shape_cast %325 : vector<1x8x32xf32> to vector<8x32xf32>
    %327 = vector.extract_strided_slice %123 {offsets = [6, 2, 0], sizes = [1, 8, 32], strides = [1, 1, 1]} : vector<12x12x32xf32> to vector<1x8x32xf32>
    %328 = vector.shape_cast %327 : vector<1x8x32xf32> to vector<8x32xf32>
    %329 = vector.extract_strided_slice %123 {offsets = [6, 3, 0], sizes = [1, 8, 32], strides = [1, 1, 1]} : vector<12x12x32xf32> to vector<1x8x32xf32>
    %330 = vector.shape_cast %329 : vector<1x8x32xf32> to vector<8x32xf32>
    %331 = vector.extract_strided_slice %123 {offsets = [6, 4, 0], sizes = [1, 8, 32], strides = [1, 1, 1]} : vector<12x12x32xf32> to vector<1x8x32xf32>
    %332 = vector.shape_cast %331 : vector<1x8x32xf32> to vector<8x32xf32>
    %333 = vector.extract_strided_slice %123 {offsets = [7, 0, 0], sizes = [1, 8, 32], strides = [1, 1, 1]} : vector<12x12x32xf32> to vector<1x8x32xf32>
    %334 = vector.shape_cast %333 : vector<1x8x32xf32> to vector<8x32xf32>
    %335 = vector.extract_strided_slice %123 {offsets = [7, 1, 0], sizes = [1, 8, 32], strides = [1, 1, 1]} : vector<12x12x32xf32> to vector<1x8x32xf32>
    %336 = vector.shape_cast %335 : vector<1x8x32xf32> to vector<8x32xf32>
    %337 = vector.extract_strided_slice %123 {offsets = [7, 2, 0], sizes = [1, 8, 32], strides = [1, 1, 1]} : vector<12x12x32xf32> to vector<1x8x32xf32>
    %338 = vector.shape_cast %337 : vector<1x8x32xf32> to vector<8x32xf32>
    %339 = vector.extract_strided_slice %123 {offsets = [7, 3, 0], sizes = [1, 8, 32], strides = [1, 1, 1]} : vector<12x12x32xf32> to vector<1x8x32xf32>
    %340 = vector.shape_cast %339 : vector<1x8x32xf32> to vector<8x32xf32>
    %341 = vector.extract_strided_slice %123 {offsets = [7, 4, 0], sizes = [1, 8, 32], strides = [1, 1, 1]} : vector<12x12x32xf32> to vector<1x8x32xf32>
    %342 = vector.shape_cast %341 : vector<1x8x32xf32> to vector<8x32xf32>
    %343 = tpu.concatenate %294, %296, %298, %300, %302, %304, %306, %308, %310, %312, %314, %316, %318, %320, %322, %324 in 1 : vector<8x32xf32>, vector<8x32xf32>, vector<8x32xf32>, vector<8x32xf32>, vector<8x32xf32>, vector<8x32xf32>, vector<8x32xf32>, vector<8x32xf32>, vector<8x32xf32>, vector<8x32xf32>, vector<8x32xf32>, vector<8x32xf32>, vector<8x32xf32>, vector<8x32xf32>, vector<8x32xf32>, vector<8x32xf32> -> vector<8x512xf32>
    %344 = tpu.concatenate %326, %328, %330, %332, %334, %336, %338, %340, %342 in 1 : vector<8x32xf32>, vector<8x32xf32>, vector<8x32xf32>, vector<8x32xf32>, vector<8x32xf32>, vector<8x32xf32>, vector<8x32xf32>, vector<8x32xf32>, vector<8x32xf32> -> vector<8x288xf32>
    %345 = tpu.concatenate %343, %344 in 1 : vector<8x512xf32>, vector<8x288xf32> -> vector<8x800xf32>
    %346 = arith.truncf %345 : vector<8x800xf32> to vector<8x800xbf16>
    %cst_14 = arith.constant dense<0.000000e+00> : vector<8x64xf32>
    %347 = tpu.matmul %346, %124, %cst_14 {dimension_numbers = #tpu.dot_dimension_numbers<[1], [0], [0], [1], [0, 0, 1, 1], [], []>} : vector<8x800xbf16>, vector<800x64xbf16>, vector<8x64xf32> -> vector<8x64xf32>
    %348 = vector.shape_cast %347 : vector<8x64xf32> to vector<1x8x64xf32>
    %349 = vector.extract_strided_slice %123 {offsets = [4, 0, 0], sizes = [1, 8, 32], strides = [1, 1, 1]} : vector<12x12x32xf32> to vector<1x8x32xf32>
    %350 = vector.shape_cast %349 : vector<1x8x32xf32> to vector<8x32xf32>
    %351 = vector.extract_strided_slice %123 {offsets = [4, 1, 0], sizes = [1, 8, 32], strides = [1, 1, 1]} : vector<12x12x32xf32> to vector<1x8x32xf32>
    %352 = vector.shape_cast %351 : vector<1x8x32xf32> to vector<8x32xf32>
    %353 = vector.extract_strided_slice %123 {offsets = [4, 2, 0], sizes = [1, 8, 32], strides = [1, 1, 1]} : vector<12x12x32xf32> to vector<1x8x32xf32>
    %354 = vector.shape_cast %353 : vector<1x8x32xf32> to vector<8x32xf32>
    %355 = vector.extract_strided_slice %123 {offsets = [4, 3, 0], sizes = [1, 8, 32], strides = [1, 1, 1]} : vector<12x12x32xf32> to vector<1x8x32xf32>
    %356 = vector.shape_cast %355 : vector<1x8x32xf32> to vector<8x32xf32>
    %357 = vector.extract_strided_slice %123 {offsets = [4, 4, 0], sizes = [1, 8, 32], strides = [1, 1, 1]} : vector<12x12x32xf32> to vector<1x8x32xf32>
    %358 = vector.shape_cast %357 : vector<1x8x32xf32> to vector<8x32xf32>
    %359 = vector.extract_strided_slice %123 {offsets = [5, 0, 0], sizes = [1, 8, 32], strides = [1, 1, 1]} : vector<12x12x32xf32> to vector<1x8x32xf32>
    %360 = vector.shape_cast %359 : vector<1x8x32xf32> to vector<8x32xf32>
    %361 = vector.extract_strided_slice %123 {offsets = [5, 1, 0], sizes = [1, 8, 32], strides = [1, 1, 1]} : vector<12x12x32xf32> to vector<1x8x32xf32>
    %362 = vector.shape_cast %361 : vector<1x8x32xf32> to vector<8x32xf32>
    %363 = vector.extract_strided_slice %123 {offsets = [5, 2, 0], sizes = [1, 8, 32], strides = [1, 1, 1]} : vector<12x12x32xf32> to vector<1x8x32xf32>
    %364 = vector.shape_cast %363 : vector<1x8x32xf32> to vector<8x32xf32>
    %365 = vector.extract_strided_slice %123 {offsets = [5, 3, 0], sizes = [1, 8, 32], strides = [1, 1, 1]} : vector<12x12x32xf32> to vector<1x8x32xf32>
    %366 = vector.shape_cast %365 : vector<1x8x32xf32> to vector<8x32xf32>
    %367 = vector.extract_strided_slice %123 {offsets = [5, 4, 0], sizes = [1, 8, 32], strides = [1, 1, 1]} : vector<12x12x32xf32> to vector<1x8x32xf32>
    %368 = vector.shape_cast %367 : vector<1x8x32xf32> to vector<8x32xf32>
    %369 = vector.extract_strided_slice %123 {offsets = [6, 0, 0], sizes = [1, 8, 32], strides = [1, 1, 1]} : vector<12x12x32xf32> to vector<1x8x32xf32>
    %370 = vector.shape_cast %369 : vector<1x8x32xf32> to vector<8x32xf32>
    %371 = vector.extract_strided_slice %123 {offsets = [6, 1, 0], sizes = [1, 8, 32], strides = [1, 1, 1]} : vector<12x12x32xf32> to vector<1x8x32xf32>
    %372 = vector.shape_cast %371 : vector<1x8x32xf32> to vector<8x32xf32>
    %373 = vector.extract_strided_slice %123 {offsets = [6, 2, 0], sizes = [1, 8, 32], strides = [1, 1, 1]} : vector<12x12x32xf32> to vector<1x8x32xf32>
    %374 = vector.shape_cast %373 : vector<1x8x32xf32> to vector<8x32xf32>
    %375 = vector.extract_strided_slice %123 {offsets = [6, 3, 0], sizes = [1, 8, 32], strides = [1, 1, 1]} : vector<12x12x32xf32> to vector<1x8x32xf32>
    %376 = vector.shape_cast %375 : vector<1x8x32xf32> to vector<8x32xf32>
    %377 = vector.extract_strided_slice %123 {offsets = [6, 4, 0], sizes = [1, 8, 32], strides = [1, 1, 1]} : vector<12x12x32xf32> to vector<1x8x32xf32>
    %378 = vector.shape_cast %377 : vector<1x8x32xf32> to vector<8x32xf32>
    %379 = vector.extract_strided_slice %123 {offsets = [7, 0, 0], sizes = [1, 8, 32], strides = [1, 1, 1]} : vector<12x12x32xf32> to vector<1x8x32xf32>
    %380 = vector.shape_cast %379 : vector<1x8x32xf32> to vector<8x32xf32>
    %381 = vector.extract_strided_slice %123 {offsets = [7, 1, 0], sizes = [1, 8, 32], strides = [1, 1, 1]} : vector<12x12x32xf32> to vector<1x8x32xf32>
    %382 = vector.shape_cast %381 : vector<1x8x32xf32> to vector<8x32xf32>
    %383 = vector.extract_strided_slice %123 {offsets = [7, 2, 0], sizes = [1, 8, 32], strides = [1, 1, 1]} : vector<12x12x32xf32> to vector<1x8x32xf32>
    %384 = vector.shape_cast %383 : vector<1x8x32xf32> to vector<8x32xf32>
    %385 = vector.extract_strided_slice %123 {offsets = [7, 3, 0], sizes = [1, 8, 32], strides = [1, 1, 1]} : vector<12x12x32xf32> to vector<1x8x32xf32>
    %386 = vector.shape_cast %385 : vector<1x8x32xf32> to vector<8x32xf32>
    %387 = vector.extract_strided_slice %123 {offsets = [7, 4, 0], sizes = [1, 8, 32], strides = [1, 1, 1]} : vector<12x12x32xf32> to vector<1x8x32xf32>
    %388 = vector.shape_cast %387 : vector<1x8x32xf32> to vector<8x32xf32>
    %389 = vector.extract_strided_slice %123 {offsets = [8, 0, 0], sizes = [1, 8, 32], strides = [1, 1, 1]} : vector<12x12x32xf32> to vector<1x8x32xf32>
    %390 = vector.shape_cast %389 : vector<1x8x32xf32> to vector<8x32xf32>
    %391 = vector.extract_strided_slice %123 {offsets = [8, 1, 0], sizes = [1, 8, 32], strides = [1, 1, 1]} : vector<12x12x32xf32> to vector<1x8x32xf32>
    %392 = vector.shape_cast %391 : vector<1x8x32xf32> to vector<8x32xf32>
    %393 = vector.extract_strided_slice %123 {offsets = [8, 2, 0], sizes = [1, 8, 32], strides = [1, 1, 1]} : vector<12x12x32xf32> to vector<1x8x32xf32>
    %394 = vector.shape_cast %393 : vector<1x8x32xf32> to vector<8x32xf32>
    %395 = vector.extract_strided_slice %123 {offsets = [8, 3, 0], sizes = [1, 8, 32], strides = [1, 1, 1]} : vector<12x12x32xf32> to vector<1x8x32xf32>
    %396 = vector.shape_cast %395 : vector<1x8x32xf32> to vector<8x32xf32>
    %397 = vector.extract_strided_slice %123 {offsets = [8, 4, 0], sizes = [1, 8, 32], strides = [1, 1, 1]} : vector<12x12x32xf32> to vector<1x8x32xf32>
    %398 = vector.shape_cast %397 : vector<1x8x32xf32> to vector<8x32xf32>
    %399 = tpu.concatenate %350, %352, %354, %356, %358, %360, %362, %364, %366, %368, %370, %372, %374, %376, %378, %380 in 1 : vector<8x32xf32>, vector<8x32xf32>, vector<8x32xf32>, vector<8x32xf32>, vector<8x32xf32>, vector<8x32xf32>, vector<8x32xf32>, vector<8x32xf32>, vector<8x32xf32>, vector<8x32xf32>, vector<8x32xf32>, vector<8x32xf32>, vector<8x32xf32>, vector<8x32xf32>, vector<8x32xf32>, vector<8x32xf32> -> vector<8x512xf32>
    %400 = tpu.concatenate %382, %384, %386, %388, %390, %392, %394, %396, %398 in 1 : vector<8x32xf32>, vector<8x32xf32>, vector<8x32xf32>, vector<8x32xf32>, vector<8x32xf32>, vector<8x32xf32>, vector<8x32xf32>, vector<8x32xf32>, vector<8x32xf32> -> vector<8x288xf32>
    %401 = tpu.concatenate %399, %400 in 1 : vector<8x512xf32>, vector<8x288xf32> -> vector<8x800xf32>
    %402 = arith.truncf %401 : vector<8x800xf32> to vector<8x800xbf16>
    %cst_15 = arith.constant dense<0.000000e+00> : vector<8x64xf32>
    %403 = tpu.matmul %402, %124, %cst_15 {dimension_numbers = #tpu.dot_dimension_numbers<[1], [0], [0], [1], [0, 0, 1, 1], [], []>} : vector<8x800xbf16>, vector<800x64xbf16>, vector<8x64xf32> -> vector<8x64xf32>
    %404 = vector.shape_cast %403 : vector<8x64xf32> to vector<1x8x64xf32>
    %405 = vector.extract_strided_slice %123 {offsets = [5, 0, 0], sizes = [1, 8, 32], strides = [1, 1, 1]} : vector<12x12x32xf32> to vector<1x8x32xf32>
    %406 = vector.shape_cast %405 : vector<1x8x32xf32> to vector<8x32xf32>
    %407 = vector.extract_strided_slice %123 {offsets = [5, 1, 0], sizes = [1, 8, 32], strides = [1, 1, 1]} : vector<12x12x32xf32> to vector<1x8x32xf32>
    %408 = vector.shape_cast %407 : vector<1x8x32xf32> to vector<8x32xf32>
    %409 = vector.extract_strided_slice %123 {offsets = [5, 2, 0], sizes = [1, 8, 32], strides = [1, 1, 1]} : vector<12x12x32xf32> to vector<1x8x32xf32>
    %410 = vector.shape_cast %409 : vector<1x8x32xf32> to vector<8x32xf32>
    %411 = vector.extract_strided_slice %123 {offsets = [5, 3, 0], sizes = [1, 8, 32], strides = [1, 1, 1]} : vector<12x12x32xf32> to vector<1x8x32xf32>
    %412 = vector.shape_cast %411 : vector<1x8x32xf32> to vector<8x32xf32>
    %413 = vector.extract_strided_slice %123 {offsets = [5, 4, 0], sizes = [1, 8, 32], strides = [1, 1, 1]} : vector<12x12x32xf32> to vector<1x8x32xf32>
    %414 = vector.shape_cast %413 : vector<1x8x32xf32> to vector<8x32xf32>
    %415 = vector.extract_strided_slice %123 {offsets = [6, 0, 0], sizes = [1, 8, 32], strides = [1, 1, 1]} : vector<12x12x32xf32> to vector<1x8x32xf32>
    %416 = vector.shape_cast %415 : vector<1x8x32xf32> to vector<8x32xf32>
    %417 = vector.extract_strided_slice %123 {offsets = [6, 1, 0], sizes = [1, 8, 32], strides = [1, 1, 1]} : vector<12x12x32xf32> to vector<1x8x32xf32>
    %418 = vector.shape_cast %417 : vector<1x8x32xf32> to vector<8x32xf32>
    %419 = vector.extract_strided_slice %123 {offsets = [6, 2, 0], sizes = [1, 8, 32], strides = [1, 1, 1]} : vector<12x12x32xf32> to vector<1x8x32xf32>
    %420 = vector.shape_cast %419 : vector<1x8x32xf32> to vector<8x32xf32>
    %421 = vector.extract_strided_slice %123 {offsets = [6, 3, 0], sizes = [1, 8, 32], strides = [1, 1, 1]} : vector<12x12x32xf32> to vector<1x8x32xf32>
    %422 = vector.shape_cast %421 : vector<1x8x32xf32> to vector<8x32xf32>
    %423 = vector.extract_strided_slice %123 {offsets = [6, 4, 0], sizes = [1, 8, 32], strides = [1, 1, 1]} : vector<12x12x32xf32> to vector<1x8x32xf32>
    %424 = vector.shape_cast %423 : vector<1x8x32xf32> to vector<8x32xf32>
    %425 = vector.extract_strided_slice %123 {offsets = [7, 0, 0], sizes = [1, 8, 32], strides = [1, 1, 1]} : vector<12x12x32xf32> to vector<1x8x32xf32>
    %426 = vector.shape_cast %425 : vector<1x8x32xf32> to vector<8x32xf32>
    %427 = vector.extract_strided_slice %123 {offsets = [7, 1, 0], sizes = [1, 8, 32], strides = [1, 1, 1]} : vector<12x12x32xf32> to vector<1x8x32xf32>
    %428 = vector.shape_cast %427 : vector<1x8x32xf32> to vector<8x32xf32>
    %429 = vector.extract_strided_slice %123 {offsets = [7, 2, 0], sizes = [1, 8, 32], strides = [1, 1, 1]} : vector<12x12x32xf32> to vector<1x8x32xf32>
    %430 = vector.shape_cast %429 : vector<1x8x32xf32> to vector<8x32xf32>
    %431 = vector.extract_strided_slice %123 {offsets = [7, 3, 0], sizes = [1, 8, 32], strides = [1, 1, 1]} : vector<12x12x32xf32> to vector<1x8x32xf32>
    %432 = vector.shape_cast %431 : vector<1x8x32xf32> to vector<8x32xf32>
    %433 = vector.extract_strided_slice %123 {offsets = [7, 4, 0], sizes = [1, 8, 32], strides = [1, 1, 1]} : vector<12x12x32xf32> to vector<1x8x32xf32>
    %434 = vector.shape_cast %433 : vector<1x8x32xf32> to vector<8x32xf32>
    %435 = vector.extract_strided_slice %123 {offsets = [8, 0, 0], sizes = [1, 8, 32], strides = [1, 1, 1]} : vector<12x12x32xf32> to vector<1x8x32xf32>
    %436 = vector.shape_cast %435 : vector<1x8x32xf32> to vector<8x32xf32>
    %437 = vector.extract_strided_slice %123 {offsets = [8, 1, 0], sizes = [1, 8, 32], strides = [1, 1, 1]} : vector<12x12x32xf32> to vector<1x8x32xf32>
    %438 = vector.shape_cast %437 : vector<1x8x32xf32> to vector<8x32xf32>
    %439 = vector.extract_strided_slice %123 {offsets = [8, 2, 0], sizes = [1, 8, 32], strides = [1, 1, 1]} : vector<12x12x32xf32> to vector<1x8x32xf32>
    %440 = vector.shape_cast %439 : vector<1x8x32xf32> to vector<8x32xf32>
    %441 = vector.extract_strided_slice %123 {offsets = [8, 3, 0], sizes = [1, 8, 32], strides = [1, 1, 1]} : vector<12x12x32xf32> to vector<1x8x32xf32>
    %442 = vector.shape_cast %441 : vector<1x8x32xf32> to vector<8x32xf32>
    %443 = vector.extract_strided_slice %123 {offsets = [8, 4, 0], sizes = [1, 8, 32], strides = [1, 1, 1]} : vector<12x12x32xf32> to vector<1x8x32xf32>
    %444 = vector.shape_cast %443 : vector<1x8x32xf32> to vector<8x32xf32>
    %445 = vector.extract_strided_slice %123 {offsets = [9, 0, 0], sizes = [1, 8, 32], strides = [1, 1, 1]} : vector<12x12x32xf32> to vector<1x8x32xf32>
    %446 = vector.shape_cast %445 : vector<1x8x32xf32> to vector<8x32xf32>
    %447 = vector.extract_strided_slice %123 {offsets = [9, 1, 0], sizes = [1, 8, 32], strides = [1, 1, 1]} : vector<12x12x32xf32> to vector<1x8x32xf32>
    %448 = vector.shape_cast %447 : vector<1x8x32xf32> to vector<8x32xf32>
    %449 = vector.extract_strided_slice %123 {offsets = [9, 2, 0], sizes = [1, 8, 32], strides = [1, 1, 1]} : vector<12x12x32xf32> to vector<1x8x32xf32>
    %450 = vector.shape_cast %449 : vector<1x8x32xf32> to vector<8x32xf32>
    %451 = vector.extract_strided_slice %123 {offsets = [9, 3, 0], sizes = [1, 8, 32], strides = [1, 1, 1]} : vector<12x12x32xf32> to vector<1x8x32xf32>
    %452 = vector.shape_cast %451 : vector<1x8x32xf32> to vector<8x32xf32>
    %453 = vector.extract_strided_slice %123 {offsets = [9, 4, 0], sizes = [1, 8, 32], strides = [1, 1, 1]} : vector<12x12x32xf32> to vector<1x8x32xf32>
    %454 = vector.shape_cast %453 : vector<1x8x32xf32> to vector<8x32xf32>
    %455 = tpu.concatenate %406, %408, %410, %412, %414, %416, %418, %420, %422, %424, %426, %428, %430, %432, %434, %436 in 1 : vector<8x32xf32>, vector<8x32xf32>, vector<8x32xf32>, vector<8x32xf32>, vector<8x32xf32>, vector<8x32xf32>, vector<8x32xf32>, vector<8x32xf32>, vector<8x32xf32>, vector<8x32xf32>, vector<8x32xf32>, vector<8x32xf32>, vector<8x32xf32>, vector<8x32xf32>, vector<8x32xf32>, vector<8x32xf32> -> vector<8x512xf32>
    %456 = tpu.concatenate %438, %440, %442, %444, %446, %448, %450, %452, %454 in 1 : vector<8x32xf32>, vector<8x32xf32>, vector<8x32xf32>, vector<8x32xf32>, vector<8x32xf32>, vector<8x32xf32>, vector<8x32xf32>, vector<8x32xf32>, vector<8x32xf32> -> vector<8x288xf32>
    %457 = tpu.concatenate %455, %456 in 1 : vector<8x512xf32>, vector<8x288xf32> -> vector<8x800xf32>
    %458 = arith.truncf %457 : vector<8x800xf32> to vector<8x800xbf16>
    %cst_16 = arith.constant dense<0.000000e+00> : vector<8x64xf32>
    %459 = tpu.matmul %458, %124, %cst_16 {dimension_numbers = #tpu.dot_dimension_numbers<[1], [0], [0], [1], [0, 0, 1, 1], [], []>} : vector<8x800xbf16>, vector<800x64xbf16>, vector<8x64xf32> -> vector<8x64xf32>
    %460 = vector.shape_cast %459 : vector<8x64xf32> to vector<1x8x64xf32>
    %461 = vector.extract_strided_slice %123 {offsets = [6, 0, 0], sizes = [1, 8, 32], strides = [1, 1, 1]} : vector<12x12x32xf32> to vector<1x8x32xf32>
    %462 = vector.shape_cast %461 : vector<1x8x32xf32> to vector<8x32xf32>
    %463 = vector.extract_strided_slice %123 {offsets = [6, 1, 0], sizes = [1, 8, 32], strides = [1, 1, 1]} : vector<12x12x32xf32> to vector<1x8x32xf32>
    %464 = vector.shape_cast %463 : vector<1x8x32xf32> to vector<8x32xf32>
    %465 = vector.extract_strided_slice %123 {offsets = [6, 2, 0], sizes = [1, 8, 32], strides = [1, 1, 1]} : vector<12x12x32xf32> to vector<1x8x32xf32>
    %466 = vector.shape_cast %465 : vector<1x8x32xf32> to vector<8x32xf32>
    %467 = vector.extract_strided_slice %123 {offsets = [6, 3, 0], sizes = [1, 8, 32], strides = [1, 1, 1]} : vector<12x12x32xf32> to vector<1x8x32xf32>
    %468 = vector.shape_cast %467 : vector<1x8x32xf32> to vector<8x32xf32>
    %469 = vector.extract_strided_slice %123 {offsets = [6, 4, 0], sizes = [1, 8, 32], strides = [1, 1, 1]} : vector<12x12x32xf32> to vector<1x8x32xf32>
    %470 = vector.shape_cast %469 : vector<1x8x32xf32> to vector<8x32xf32>
    %471 = vector.extract_strided_slice %123 {offsets = [7, 0, 0], sizes = [1, 8, 32], strides = [1, 1, 1]} : vector<12x12x32xf32> to vector<1x8x32xf32>
    %472 = vector.shape_cast %471 : vector<1x8x32xf32> to vector<8x32xf32>
    %473 = vector.extract_strided_slice %123 {offsets = [7, 1, 0], sizes = [1, 8, 32], strides = [1, 1, 1]} : vector<12x12x32xf32> to vector<1x8x32xf32>
    %474 = vector.shape_cast %473 : vector<1x8x32xf32> to vector<8x32xf32>
    %475 = vector.extract_strided_slice %123 {offsets = [7, 2, 0], sizes = [1, 8, 32], strides = [1, 1, 1]} : vector<12x12x32xf32> to vector<1x8x32xf32>
    %476 = vector.shape_cast %475 : vector<1x8x32xf32> to vector<8x32xf32>
    %477 = vector.extract_strided_slice %123 {offsets = [7, 3, 0], sizes = [1, 8, 32], strides = [1, 1, 1]} : vector<12x12x32xf32> to vector<1x8x32xf32>
    %478 = vector.shape_cast %477 : vector<1x8x32xf32> to vector<8x32xf32>
    %479 = vector.extract_strided_slice %123 {offsets = [7, 4, 0], sizes = [1, 8, 32], strides = [1, 1, 1]} : vector<12x12x32xf32> to vector<1x8x32xf32>
    %480 = vector.shape_cast %479 : vector<1x8x32xf32> to vector<8x32xf32>
    %481 = vector.extract_strided_slice %123 {offsets = [8, 0, 0], sizes = [1, 8, 32], strides = [1, 1, 1]} : vector<12x12x32xf32> to vector<1x8x32xf32>
    %482 = vector.shape_cast %481 : vector<1x8x32xf32> to vector<8x32xf32>
    %483 = vector.extract_strided_slice %123 {offsets = [8, 1, 0], sizes = [1, 8, 32], strides = [1, 1, 1]} : vector<12x12x32xf32> to vector<1x8x32xf32>
    %484 = vector.shape_cast %483 : vector<1x8x32xf32> to vector<8x32xf32>
    %485 = vector.extract_strided_slice %123 {offsets = [8, 2, 0], sizes = [1, 8, 32], strides = [1, 1, 1]} : vector<12x12x32xf32> to vector<1x8x32xf32>
    %486 = vector.shape_cast %485 : vector<1x8x32xf32> to vector<8x32xf32>
    %487 = vector.extract_strided_slice %123 {offsets = [8, 3, 0], sizes = [1, 8, 32], strides = [1, 1, 1]} : vector<12x12x32xf32> to vector<1x8x32xf32>
    %488 = vector.shape_cast %487 : vector<1x8x32xf32> to vector<8x32xf32>
    %489 = vector.extract_strided_slice %123 {offsets = [8, 4, 0], sizes = [1, 8, 32], strides = [1, 1, 1]} : vector<12x12x32xf32> to vector<1x8x32xf32>
    %490 = vector.shape_cast %489 : vector<1x8x32xf32> to vector<8x32xf32>
    %491 = vector.extract_strided_slice %123 {offsets = [9, 0, 0], sizes = [1, 8, 32], strides = [1, 1, 1]} : vector<12x12x32xf32> to vector<1x8x32xf32>
    %492 = vector.shape_cast %491 : vector<1x8x32xf32> to vector<8x32xf32>
    %493 = vector.extract_strided_slice %123 {offsets = [9, 1, 0], sizes = [1, 8, 32], strides = [1, 1, 1]} : vector<12x12x32xf32> to vector<1x8x32xf32>
    %494 = vector.shape_cast %493 : vector<1x8x32xf32> to vector<8x32xf32>
    %495 = vector.extract_strided_slice %123 {offsets = [9, 2, 0], sizes = [1, 8, 32], strides = [1, 1, 1]} : vector<12x12x32xf32> to vector<1x8x32xf32>
    %496 = vector.shape_cast %495 : vector<1x8x32xf32> to vector<8x32xf32>
    %497 = vector.extract_strided_slice %123 {offsets = [9, 3, 0], sizes = [1, 8, 32], strides = [1, 1, 1]} : vector<12x12x32xf32> to vector<1x8x32xf32>
    %498 = vector.shape_cast %497 : vector<1x8x32xf32> to vector<8x32xf32>
    %499 = vector.extract_strided_slice %123 {offsets = [9, 4, 0], sizes = [1, 8, 32], strides = [1, 1, 1]} : vector<12x12x32xf32> to vector<1x8x32xf32>
    %500 = vector.shape_cast %499 : vector<1x8x32xf32> to vector<8x32xf32>
    %501 = vector.extract_strided_slice %123 {offsets = [10, 0, 0], sizes = [1, 8, 32], strides = [1, 1, 1]} : vector<12x12x32xf32> to vector<1x8x32xf32>
    %502 = vector.shape_cast %501 : vector<1x8x32xf32> to vector<8x32xf32>
    %503 = vector.extract_strided_slice %123 {offsets = [10, 1, 0], sizes = [1, 8, 32], strides = [1, 1, 1]} : vector<12x12x32xf32> to vector<1x8x32xf32>
    %504 = vector.shape_cast %503 : vector<1x8x32xf32> to vector<8x32xf32>
    %505 = vector.extract_strided_slice %123 {offsets = [10, 2, 0], sizes = [1, 8, 32], strides = [1, 1, 1]} : vector<12x12x32xf32> to vector<1x8x32xf32>
    %506 = vector.shape_cast %505 : vector<1x8x32xf32> to vector<8x32xf32>
    %507 = vector.extract_strided_slice %123 {offsets = [10, 3, 0], sizes = [1, 8, 32], strides = [1, 1, 1]} : vector<12x12x32xf32> to vector<1x8x32xf32>
    %508 = vector.shape_cast %507 : vector<1x8x32xf32> to vector<8x32xf32>
    %509 = vector.extract_strided_slice %123 {offsets = [10, 4, 0], sizes = [1, 8, 32], strides = [1, 1, 1]} : vector<12x12x32xf32> to vector<1x8x32xf32>
    %510 = vector.shape_cast %509 : vector<1x8x32xf32> to vector<8x32xf32>
    %511 = tpu.concatenate %462, %464, %466, %468, %470, %472, %474, %476, %478, %480, %482, %484, %486, %488, %490, %492 in 1 : vector<8x32xf32>, vector<8x32xf32>, vector<8x32xf32>, vector<8x32xf32>, vector<8x32xf32>, vector<8x32xf32>, vector<8x32xf32>, vector<8x32xf32>, vector<8x32xf32>, vector<8x32xf32>, vector<8x32xf32>, vector<8x32xf32>, vector<8x32xf32>, vector<8x32xf32>, vector<8x32xf32>, vector<8x32xf32> -> vector<8x512xf32>
    %512 = tpu.concatenate %494, %496, %498, %500, %502, %504, %506, %508, %510 in 1 : vector<8x32xf32>, vector<8x32xf32>, vector<8x32xf32>, vector<8x32xf32>, vector<8x32xf32>, vector<8x32xf32>, vector<8x32xf32>, vector<8x32xf32>, vector<8x32xf32> -> vector<8x288xf32>
    %513 = tpu.concatenate %511, %512 in 1 : vector<8x512xf32>, vector<8x288xf32> -> vector<8x800xf32>
    %514 = arith.truncf %513 : vector<8x800xf32> to vector<8x800xbf16>
    %cst_17 = arith.constant dense<0.000000e+00> : vector<8x64xf32>
    %515 = tpu.matmul %514, %124, %cst_17 {dimension_numbers = #tpu.dot_dimension_numbers<[1], [0], [0], [1], [0, 0, 1, 1], [], []>} : vector<8x800xbf16>, vector<800x64xbf16>, vector<8x64xf32> -> vector<8x64xf32>
    %516 = vector.shape_cast %515 : vector<8x64xf32> to vector<1x8x64xf32>
    %517 = vector.extract_strided_slice %123 {offsets = [7, 0, 0], sizes = [1, 8, 32], strides = [1, 1, 1]} : vector<12x12x32xf32> to vector<1x8x32xf32>
    %518 = vector.shape_cast %517 : vector<1x8x32xf32> to vector<8x32xf32>
    %519 = vector.extract_strided_slice %123 {offsets = [7, 1, 0], sizes = [1, 8, 32], strides = [1, 1, 1]} : vector<12x12x32xf32> to vector<1x8x32xf32>
    %520 = vector.shape_cast %519 : vector<1x8x32xf32> to vector<8x32xf32>
    %521 = vector.extract_strided_slice %123 {offsets = [7, 2, 0], sizes = [1, 8, 32], strides = [1, 1, 1]} : vector<12x12x32xf32> to vector<1x8x32xf32>
    %522 = vector.shape_cast %521 : vector<1x8x32xf32> to vector<8x32xf32>
    %523 = vector.extract_strided_slice %123 {offsets = [7, 3, 0], sizes = [1, 8, 32], strides = [1, 1, 1]} : vector<12x12x32xf32> to vector<1x8x32xf32>
    %524 = vector.shape_cast %523 : vector<1x8x32xf32> to vector<8x32xf32>
    %525 = vector.extract_strided_slice %123 {offsets = [7, 4, 0], sizes = [1, 8, 32], strides = [1, 1, 1]} : vector<12x12x32xf32> to vector<1x8x32xf32>
    %526 = vector.shape_cast %525 : vector<1x8x32xf32> to vector<8x32xf32>
    %527 = vector.extract_strided_slice %123 {offsets = [8, 0, 0], sizes = [1, 8, 32], strides = [1, 1, 1]} : vector<12x12x32xf32> to vector<1x8x32xf32>
    %528 = vector.shape_cast %527 : vector<1x8x32xf32> to vector<8x32xf32>
    %529 = vector.extract_strided_slice %123 {offsets = [8, 1, 0], sizes = [1, 8, 32], strides = [1, 1, 1]} : vector<12x12x32xf32> to vector<1x8x32xf32>
    %530 = vector.shape_cast %529 : vector<1x8x32xf32> to vector<8x32xf32>
    %531 = vector.extract_strided_slice %123 {offsets = [8, 2, 0], sizes = [1, 8, 32], strides = [1, 1, 1]} : vector<12x12x32xf32> to vector<1x8x32xf32>
    %532 = vector.shape_cast %531 : vector<1x8x32xf32> to vector<8x32xf32>
    %533 = vector.extract_strided_slice %123 {offsets = [8, 3, 0], sizes = [1, 8, 32], strides = [1, 1, 1]} : vector<12x12x32xf32> to vector<1x8x32xf32>
    %534 = vector.shape_cast %533 : vector<1x8x32xf32> to vector<8x32xf32>
    %535 = vector.extract_strided_slice %123 {offsets = [8, 4, 0], sizes = [1, 8, 32], strides = [1, 1, 1]} : vector<12x12x32xf32> to vector<1x8x32xf32>
    %536 = vector.shape_cast %535 : vector<1x8x32xf32> to vector<8x32xf32>
    %537 = vector.extract_strided_slice %123 {offsets = [9, 0, 0], sizes = [1, 8, 32], strides = [1, 1, 1]} : vector<12x12x32xf32> to vector<1x8x32xf32>
    %538 = vector.shape_cast %537 : vector<1x8x32xf32> to vector<8x32xf32>
    %539 = vector.extract_strided_slice %123 {offsets = [9, 1, 0], sizes = [1, 8, 32], strides = [1, 1, 1]} : vector<12x12x32xf32> to vector<1x8x32xf32>
    %540 = vector.shape_cast %539 : vector<1x8x32xf32> to vector<8x32xf32>
    %541 = vector.extract_strided_slice %123 {offsets = [9, 2, 0], sizes = [1, 8, 32], strides = [1, 1, 1]} : vector<12x12x32xf32> to vector<1x8x32xf32>
    %542 = vector.shape_cast %541 : vector<1x8x32xf32> to vector<8x32xf32>
    %543 = vector.extract_strided_slice %123 {offsets = [9, 3, 0], sizes = [1, 8, 32], strides = [1, 1, 1]} : vector<12x12x32xf32> to vector<1x8x32xf32>
    %544 = vector.shape_cast %543 : vector<1x8x32xf32> to vector<8x32xf32>
    %545 = vector.extract_strided_slice %123 {offsets = [9, 4, 0], sizes = [1, 8, 32], strides = [1, 1, 1]} : vector<12x12x32xf32> to vector<1x8x32xf32>
    %546 = vector.shape_cast %545 : vector<1x8x32xf32> to vector<8x32xf32>
    %547 = vector.extract_strided_slice %123 {offsets = [10, 0, 0], sizes = [1, 8, 32], strides = [1, 1, 1]} : vector<12x12x32xf32> to vector<1x8x32xf32>
    %548 = vector.shape_cast %547 : vector<1x8x32xf32> to vector<8x32xf32>
    %549 = vector.extract_strided_slice %123 {offsets = [10, 1, 0], sizes = [1, 8, 32], strides = [1, 1, 1]} : vector<12x12x32xf32> to vector<1x8x32xf32>
    %550 = vector.shape_cast %549 : vector<1x8x32xf32> to vector<8x32xf32>
    %551 = vector.extract_strided_slice %123 {offsets = [10, 2, 0], sizes = [1, 8, 32], strides = [1, 1, 1]} : vector<12x12x32xf32> to vector<1x8x32xf32>
    %552 = vector.shape_cast %551 : vector<1x8x32xf32> to vector<8x32xf32>
    %553 = vector.extract_strided_slice %123 {offsets = [10, 3, 0], sizes = [1, 8, 32], strides = [1, 1, 1]} : vector<12x12x32xf32> to vector<1x8x32xf32>
    %554 = vector.shape_cast %553 : vector<1x8x32xf32> to vector<8x32xf32>
    %555 = vector.extract_strided_slice %123 {offsets = [10, 4, 0], sizes = [1, 8, 32], strides = [1, 1, 1]} : vector<12x12x32xf32> to vector<1x8x32xf32>
    %556 = vector.shape_cast %555 : vector<1x8x32xf32> to vector<8x32xf32>
    %557 = vector.extract_strided_slice %123 {offsets = [11, 0, 0], sizes = [1, 8, 32], strides = [1, 1, 1]} : vector<12x12x32xf32> to vector<1x8x32xf32>
    %558 = vector.shape_cast %557 : vector<1x8x32xf32> to vector<8x32xf32>
    %559 = vector.extract_strided_slice %123 {offsets = [11, 1, 0], sizes = [1, 8, 32], strides = [1, 1, 1]} : vector<12x12x32xf32> to vector<1x8x32xf32>
    %560 = vector.shape_cast %559 : vector<1x8x32xf32> to vector<8x32xf32>
    %561 = vector.extract_strided_slice %123 {offsets = [11, 2, 0], sizes = [1, 8, 32], strides = [1, 1, 1]} : vector<12x12x32xf32> to vector<1x8x32xf32>
    %562 = vector.shape_cast %561 : vector<1x8x32xf32> to vector<8x32xf32>
    %563 = vector.extract_strided_slice %123 {offsets = [11, 3, 0], sizes = [1, 8, 32], strides = [1, 1, 1]} : vector<12x12x32xf32> to vector<1x8x32xf32>
    %564 = vector.shape_cast %563 : vector<1x8x32xf32> to vector<8x32xf32>
    %565 = vector.extract_strided_slice %123 {offsets = [11, 4, 0], sizes = [1, 8, 32], strides = [1, 1, 1]} : vector<12x12x32xf32> to vector<1x8x32xf32>
    %566 = vector.shape_cast %565 : vector<1x8x32xf32> to vector<8x32xf32>
    %567 = tpu.concatenate %518, %520, %522, %524, %526, %528, %530, %532, %534, %536, %538, %540, %542, %544, %546, %548 in 1 : vector<8x32xf32>, vector<8x32xf32>, vector<8x32xf32>, vector<8x32xf32>, vector<8x32xf32>, vector<8x32xf32>, vector<8x32xf32>, vector<8x32xf32>, vector<8x32xf32>, vector<8x32xf32>, vector<8x32xf32>, vector<8x32xf32>, vector<8x32xf32>, vector<8x32xf32>, vector<8x32xf32>, vector<8x32xf32> -> vector<8x512xf32>
    %568 = tpu.concatenate %550, %552, %554, %556, %558, %560, %562, %564, %566 in 1 : vector<8x32xf32>, vector<8x32xf32>, vector<8x32xf32>, vector<8x32xf32>, vector<8x32xf32>, vector<8x32xf32>, vector<8x32xf32>, vector<8x32xf32>, vector<8x32xf32> -> vector<8x288xf32>
    %569 = tpu.concatenate %567, %568 in 1 : vector<8x512xf32>, vector<8x288xf32> -> vector<8x800xf32>
    %570 = arith.truncf %569 : vector<8x800xf32> to vector<8x800xbf16>
    %cst_18 = arith.constant dense<0.000000e+00> : vector<8x64xf32>
    %571 = tpu.matmul %570, %124, %cst_18 {dimension_numbers = #tpu.dot_dimension_numbers<[1], [0], [0], [1], [0, 0, 1, 1], [], []>} : vector<8x800xbf16>, vector<800x64xbf16>, vector<8x64xf32> -> vector<8x64xf32>
    %572 = vector.shape_cast %571 : vector<8x64xf32> to vector<1x8x64xf32>
    %573 = tpu.concatenate %180, %236, %292, %348, %404, %460, %516, %572 in 0 : vector<1x8x64xf32>, vector<1x8x64xf32>, vector<1x8x64xf32>, vector<1x8x64xf32>, vector<1x8x64xf32>, vector<1x8x64xf32>, vector<1x8x64xf32>, vector<1x8x64xf32> -> vector<8x8x64xf32>
    %c0_19 = arith.constant 0 : index
    %c0_20 = arith.constant 0 : index
    %574 = vector.load %arg5[%c0_19, %c0_20] : memref<1x64xf32, #tpu.memory_space<vmem>>, vector<1x64xf32>
    %575 = vector.shape_cast %574 : vector<1x64xf32> to vector<1x1x64xf32>
    %576 = vector.broadcast %575 : vector<1x1x64xf32> to vector<8x8x64xf32>
    %577 = arith.addf %573, %576 : vector<8x8x64xf32>
    %578 = vector.shape_cast %577 : vector<8x8x64xf32> to vector<4x2x8x64xf32>
    %579 = vector.extract_strided_slice %578 {offsets = [0, 0, 0, 0], sizes = [4, 1, 8, 64], strides = [1, 1, 1, 1]} : vector<4x2x8x64xf32> to vector<4x1x8x64xf32>
    %580 = vector.shape_cast %579 : vector<4x1x8x64xf32> to vector<4x8x64xf32>
    %581 = vector.extract_strided_slice %578 {offsets = [0, 1, 0, 0], sizes = [4, 1, 8, 64], strides = [1, 1, 1, 1]} : vector<4x2x8x64xf32> to vector<4x1x8x64xf32>
    %582 = vector.shape_cast %581 : vector<4x1x8x64xf32> to vector<4x8x64xf32>
    %583 = arith.maximumf %580, %582 : vector<4x8x64xf32>
    %584 = vector.extract_strided_slice %583 {offsets = [0, 0, 0], sizes = [1, 1, 64], strides = [1, 1, 1]} : vector<4x8x64xf32> to vector<1x1x64xf32>
    %585 = vector.extract_strided_slice %583 {offsets = [0, 1, 0], sizes = [1, 1, 64], strides = [1, 1, 1]} : vector<4x8x64xf32> to vector<1x1x64xf32>
    %586 = arith.maximumf %584, %585 : vector<1x1x64xf32>
    %587 = vector.extract_strided_slice %583 {offsets = [0, 2, 0], sizes = [1, 1, 64], strides = [1, 1, 1]} : vector<4x8x64xf32> to vector<1x1x64xf32>
    %588 = vector.extract_strided_slice %583 {offsets = [0, 3, 0], sizes = [1, 1, 64], strides = [1, 1, 1]} : vector<4x8x64xf32> to vector<1x1x64xf32>
    %589 = arith.maximumf %587, %588 : vector<1x1x64xf32>
    %590 = vector.extract_strided_slice %583 {offsets = [0, 4, 0], sizes = [1, 1, 64], strides = [1, 1, 1]} : vector<4x8x64xf32> to vector<1x1x64xf32>
    %591 = vector.extract_strided_slice %583 {offsets = [0, 5, 0], sizes = [1, 1, 64], strides = [1, 1, 1]} : vector<4x8x64xf32> to vector<1x1x64xf32>
    %592 = arith.maximumf %590, %591 : vector<1x1x64xf32>
    %593 = vector.extract_strided_slice %583 {offsets = [0, 6, 0], sizes = [1, 1, 64], strides = [1, 1, 1]} : vector<4x8x64xf32> to vector<1x1x64xf32>
    %594 = vector.extract_strided_slice %583 {offsets = [0, 7, 0], sizes = [1, 1, 64], strides = [1, 1, 1]} : vector<4x8x64xf32> to vector<1x1x64xf32>
    %595 = arith.maximumf %593, %594 : vector<1x1x64xf32>
    %596 = vector.extract_strided_slice %583 {offsets = [1, 0, 0], sizes = [1, 1, 64], strides = [1, 1, 1]} : vector<4x8x64xf32> to vector<1x1x64xf32>
    %597 = vector.extract_strided_slice %583 {offsets = [1, 1, 0], sizes = [1, 1, 64], strides = [1, 1, 1]} : vector<4x8x64xf32> to vector<1x1x64xf32>
    %598 = arith.maximumf %596, %597 : vector<1x1x64xf32>
    %599 = vector.extract_strided_slice %583 {offsets = [1, 2, 0], sizes = [1, 1, 64], strides = [1, 1, 1]} : vector<4x8x64xf32> to vector<1x1x64xf32>
    %600 = vector.extract_strided_slice %583 {offsets = [1, 3, 0], sizes = [1, 1, 64], strides = [1, 1, 1]} : vector<4x8x64xf32> to vector<1x1x64xf32>
    %601 = arith.maximumf %599, %600 : vector<1x1x64xf32>
    %602 = vector.extract_strided_slice %583 {offsets = [1, 4, 0], sizes = [1, 1, 64], strides = [1, 1, 1]} : vector<4x8x64xf32> to vector<1x1x64xf32>
    %603 = vector.extract_strided_slice %583 {offsets = [1, 5, 0], sizes = [1, 1, 64], strides = [1, 1, 1]} : vector<4x8x64xf32> to vector<1x1x64xf32>
    %604 = arith.maximumf %602, %603 : vector<1x1x64xf32>
    %605 = vector.extract_strided_slice %583 {offsets = [1, 6, 0], sizes = [1, 1, 64], strides = [1, 1, 1]} : vector<4x8x64xf32> to vector<1x1x64xf32>
    %606 = vector.extract_strided_slice %583 {offsets = [1, 7, 0], sizes = [1, 1, 64], strides = [1, 1, 1]} : vector<4x8x64xf32> to vector<1x1x64xf32>
    %607 = arith.maximumf %605, %606 : vector<1x1x64xf32>
    %608 = vector.extract_strided_slice %583 {offsets = [2, 0, 0], sizes = [1, 1, 64], strides = [1, 1, 1]} : vector<4x8x64xf32> to vector<1x1x64xf32>
    %609 = vector.extract_strided_slice %583 {offsets = [2, 1, 0], sizes = [1, 1, 64], strides = [1, 1, 1]} : vector<4x8x64xf32> to vector<1x1x64xf32>
    %610 = arith.maximumf %608, %609 : vector<1x1x64xf32>
    %611 = vector.extract_strided_slice %583 {offsets = [2, 2, 0], sizes = [1, 1, 64], strides = [1, 1, 1]} : vector<4x8x64xf32> to vector<1x1x64xf32>
    %612 = vector.extract_strided_slice %583 {offsets = [2, 3, 0], sizes = [1, 1, 64], strides = [1, 1, 1]} : vector<4x8x64xf32> to vector<1x1x64xf32>
    %613 = arith.maximumf %611, %612 : vector<1x1x64xf32>
    %614 = vector.extract_strided_slice %583 {offsets = [2, 4, 0], sizes = [1, 1, 64], strides = [1, 1, 1]} : vector<4x8x64xf32> to vector<1x1x64xf32>
    %615 = vector.extract_strided_slice %583 {offsets = [2, 5, 0], sizes = [1, 1, 64], strides = [1, 1, 1]} : vector<4x8x64xf32> to vector<1x1x64xf32>
    %616 = arith.maximumf %614, %615 : vector<1x1x64xf32>
    %617 = vector.extract_strided_slice %583 {offsets = [2, 6, 0], sizes = [1, 1, 64], strides = [1, 1, 1]} : vector<4x8x64xf32> to vector<1x1x64xf32>
    %618 = vector.extract_strided_slice %583 {offsets = [2, 7, 0], sizes = [1, 1, 64], strides = [1, 1, 1]} : vector<4x8x64xf32> to vector<1x1x64xf32>
    %619 = arith.maximumf %617, %618 : vector<1x1x64xf32>
    %620 = vector.extract_strided_slice %583 {offsets = [3, 0, 0], sizes = [1, 1, 64], strides = [1, 1, 1]} : vector<4x8x64xf32> to vector<1x1x64xf32>
    %621 = vector.extract_strided_slice %583 {offsets = [3, 1, 0], sizes = [1, 1, 64], strides = [1, 1, 1]} : vector<4x8x64xf32> to vector<1x1x64xf32>
    %622 = arith.maximumf %620, %621 : vector<1x1x64xf32>
    %623 = vector.extract_strided_slice %583 {offsets = [3, 2, 0], sizes = [1, 1, 64], strides = [1, 1, 1]} : vector<4x8x64xf32> to vector<1x1x64xf32>
    %624 = vector.extract_strided_slice %583 {offsets = [3, 3, 0], sizes = [1, 1, 64], strides = [1, 1, 1]} : vector<4x8x64xf32> to vector<1x1x64xf32>
    %625 = arith.maximumf %623, %624 : vector<1x1x64xf32>
    %626 = vector.extract_strided_slice %583 {offsets = [3, 4, 0], sizes = [1, 1, 64], strides = [1, 1, 1]} : vector<4x8x64xf32> to vector<1x1x64xf32>
    %627 = vector.extract_strided_slice %583 {offsets = [3, 5, 0], sizes = [1, 1, 64], strides = [1, 1, 1]} : vector<4x8x64xf32> to vector<1x1x64xf32>
    %628 = arith.maximumf %626, %627 : vector<1x1x64xf32>
    %629 = vector.extract_strided_slice %583 {offsets = [3, 6, 0], sizes = [1, 1, 64], strides = [1, 1, 1]} : vector<4x8x64xf32> to vector<1x1x64xf32>
    %630 = vector.extract_strided_slice %583 {offsets = [3, 7, 0], sizes = [1, 1, 64], strides = [1, 1, 1]} : vector<4x8x64xf32> to vector<1x1x64xf32>
    %631 = arith.maximumf %629, %630 : vector<1x1x64xf32>
    %632 = tpu.concatenate %586, %589, %592, %595, %598, %601, %604, %607, %610, %613, %616, %619, %622, %625, %628, %631 in 2 : vector<1x1x64xf32>, vector<1x1x64xf32>, vector<1x1x64xf32>, vector<1x1x64xf32>, vector<1x1x64xf32>, vector<1x1x64xf32>, vector<1x1x64xf32>, vector<1x1x64xf32>, vector<1x1x64xf32>, vector<1x1x64xf32>, vector<1x1x64xf32>, vector<1x1x64xf32>, vector<1x1x64xf32>, vector<1x1x64xf32>, vector<1x1x64xf32>, vector<1x1x64xf32> -> vector<1x1x1024xf32>
    %633 = vector.shape_cast %632 : vector<1x1x1024xf32> to vector<1x1024xf32>
    %634 = arith.truncf %633 : vector<1x1024xf32> to vector<1x1024xbf16>
    %c0_21 = arith.constant 0 : index
    %c0_22 = arith.constant 0 : index
    %635 = vector.load %arg6[%c0_21, %c0_22] : memref<1024x128xbf16, #tpu.memory_space<vmem>>, vector<1024x128xbf16>
    %cst_23 = arith.constant dense<0.000000e+00> : vector<1x128xf32>
    %636 = tpu.matmul %634, %635, %cst_23 {dimension_numbers = #tpu.dot_dimension_numbers<[1], [0], [0], [1], [0, 0, 1, 1], [], []>} : vector<1x1024xbf16>, vector<1024x128xbf16>, vector<1x128xf32> -> vector<1x128xf32>
    %c0_24 = arith.constant 0 : index
    %c0_25 = arith.constant 0 : index
    %637 = vector.load %arg7[%c0_24, %c0_25] : memref<1x128xf32, #tpu.memory_space<vmem>>, vector<1x128xf32>
    %638 = arith.addf %636, %637 : vector<1x128xf32>
    %639 = arith.truncf %638 : vector<1x128xf32> to vector<1x128xbf16>
    %c0_26 = arith.constant 0 : index
    %c0_27 = arith.constant 0 : index
    %640 = vector.load %arg8[%c0_26, %c0_27] : memref<128x128xbf16, #tpu.memory_space<vmem>>, vector<128x128xbf16>
    %cst_28 = arith.constant dense<0.000000e+00> : vector<1x128xf32>
    %641 = tpu.matmul %639, %640, %cst_28 {dimension_numbers = #tpu.dot_dimension_numbers<[1], [0], [0], [1], [0, 0, 1, 1], [], []>} : vector<1x128xbf16>, vector<128x128xbf16>, vector<1x128xf32> -> vector<1x128xf32>
    %c0_29 = arith.constant 0 : index
    %c0_30 = arith.constant 0 : index
    %642 = vector.load %arg9[%c0_29, %c0_30] : memref<1x128xf32, #tpu.memory_space<vmem>>, vector<1x128xf32>
    %643 = arith.addf %641, %642 : vector<1x128xf32>
    %644 = vector.shape_cast %643 : vector<1x128xf32> to vector<1x1x128xf32>
    %c0_31 = arith.constant 0 : index
    %c0_32 = arith.constant 0 : index
    %c0_33 = arith.constant 0 : index
    %645 = vector.load %arg10[%c0_31, %c0_32, %c0_33] : memref<1x1x128xf32, #tpu.memory_space<vmem>>, vector<1x1x128xf32>
    tpu.vector_store %arg10[%c0_31, %c0_32, %c0_33], %644 {strides = array<i32>} : memref<1x1x128xf32, #tpu.memory_space<vmem>>, vector<1x1x128xf32>,
    return
  }
  func.func @transform_0(%arg0: i32) -> (i32, i32, i32, i32) {
    %c0_i32 = arith.constant 0 : i32
    %c0_i32_0 = arith.constant 0 : i32
    %c0_i32_1 = arith.constant 0 : i32
    %c0_i32_2 = arith.constant 0 : i32
    return %arg0, %c0_i32, %c0_i32_0, %c0_i32_1 : i32, i32, i32, i32
  }
  func.func @transform_1(%arg0: i32) -> (i32, i32) {
    %c0_i32 = arith.constant 0 : i32
    %c0_i32_0 = arith.constant 0 : i32
    %c0_i32_1 = arith.constant 0 : i32
    return %c0_i32, %c0_i32_0 : i32, i32
  }
  func.func @transform_2(%arg0: i32) -> (i32, i32) {
    %c0_i32 = arith.constant 0 : i32
    %c0_i32_0 = arith.constant 0 : i32
    %c0_i32_1 = arith.constant 0 : i32
    return %c0_i32, %c0_i32_0 : i32, i32
  }
  func.func @transform_3(%arg0: i32) -> (i32, i32) {
    %c0_i32 = arith.constant 0 : i32
    %c0_i32_0 = arith.constant 0 : i32
    %c0_i32_1 = arith.constant 0 : i32
    return %c0_i32, %c0_i32_0 : i32, i32
  }
  func.func @transform_4(%arg0: i32) -> (i32, i32) {
    %c0_i32 = arith.constant 0 : i32
    %c0_i32_0 = arith.constant 0 : i32
    %c0_i32_1 = arith.constant 0 : i32
    return %c0_i32, %c0_i32_0 : i32, i32
  }
  func.func @transform_5(%arg0: i32) -> (i32, i32) {
    %c0_i32 = arith.constant 0 : i32
    %c0_i32_0 = arith.constant 0 : i32
    %c0_i32_1 = arith.constant 0 : i32
    return %c0_i32, %c0_i32_0 : i32, i32
  }
  func.func @transform_6(%arg0: i32) -> (i32, i32) {
    %c0_i32 = arith.constant 0 : i32
    %c0_i32_0 = arith.constant 0 : i32
    %c0_i32_1 = arith.constant 0 : i32
    return %c0_i32, %c0_i32_0 : i32, i32
  }
  func.func @transform_7(%arg0: i32) -> (i32, i32) {
    %c0_i32 = arith.constant 0 : i32
    %c0_i32_0 = arith.constant 0 : i32
    %c0_i32_1 = arith.constant 0 : i32
    return %c0_i32, %c0_i32_0 : i32, i32
  }
  func.func @transform_8(%arg0: i32) -> (i32, i32) {
    %c0_i32 = arith.constant 0 : i32
    %c0_i32_0 = arith.constant 0 : i32
    %c0_i32_1 = arith.constant 0 : i32
    return %c0_i32, %c0_i32_0 : i32, i32
  }
  func.func @transform_9(%arg0: i32) -> (i32, i32, i32) {
    %c0_i32 = arith.constant 0 : i32
    %c0_i32_0 = arith.constant 0 : i32
    %c0_i32_1 = arith.constant 0 : i32
    return %arg0, %c0_i32, %c0_i32_0 : i32, i32, i32
  }
}

</mosaic_0001>

<bundles_post_ra>
// kernel: word_prediction_forward.1
= control target key start
LH: loop header
LB: loop body
LE: loop exit
PB: predicated region body
PF: predicated region fallthrough
CT: control target
= control target key end

     0   :  { %14 = vsyncpa [#allocation3], 0  ;;  %s13616_s0 = inlined_call_operand.vmem [shape: f32[2,20,20,1], index: 0, kind: input, shape index: {}]   ;;  %s13617_s1 = inlined_call_operand.vmem [shape: f32[9,32], index: 1, kind: input, shape index: {}]   ;;  %s13618_s2 = inlined_call_operand.vmem [shape: f32[1,32], index: 2, kind: input, shape index: {}]   ;;  %s13619_s3 = inlined_call_operand.vmem [shape: bf16[800,64], index: 3, kind: input, shape index: {}]   ;;  %s13620_s4 = inlined_call_operand.vmem [shape: f32[1,64], index: 4, kind: input, shape index: {}]   ;;  %s13621_s5 = inlined_call_operand.vmem [shape: bf16[1024,128], index: 5, kind: input, shape index: {}]   ;;  %s13622_s6 = inlined_call_operand.vmem [shape: f32[1,128], index: 6, kind: input, shape index: {}]   ;;  %s13623_s7 = inlined_call_operand.vmem [shape: bf16[128,128], index: 7, kind: input, shape index: {}]   ;;  %s13624_s8 = inlined_call_operand.vmem [shape: f32[1,128], index: 8, kind: input, shape index: {}]   ;;  %s13625_s9 = inlined_call_operand.hbm [shape: f32[2,1,128], index: 9, kind: output, shape index: {}]  }
   0x1   :  { %16 = vsyncpa [#allocation3 + $0x1], 0  ;;  %s8491_s30 = smov 0   ;;  %s8493_s10 = smov 0  }
   0x2   :  { %s8495_s11 = smov 0   ;;  %s8497_s12 = smov 0  }
   0x3 LB: > { %s8512_s13 = sadd.s32 4294967295, %s8432_s12   ;;  %s6834_s14 = sadd.s32 4294967294, %s8432_s12   ;;  %s8432_s12 = sphi %s8497_s12, %s14257_s12   ;;  %s8428_s11 = sphi %s8495_s11, %s14256_s11   ;;  %s8424_s10 = sphi %s8493_s10, %s14255_s10   ;;  %s8420_s30 = sphi %s8491_s30, %s14254_s30  }
   0x4   : > { %s8516_s15 = sadd.s32 1, %s8432_s12   ;;  %s223_s16 = sadd.s32 1, %s8428_s11 }
   0x5   : > { %s220_s17 = ssub.s32 %s8432_s12, %s8516_s15  ;;  %p233_p0 = scmp.ne.s32.totalorder %s8428_s11, %s8424_s10 }
   0x6   : > { %p221_p1 = scmp.eq.s32.totalorder %s220_s17, 0  ;;  %p234_p2 = scmp.eq.s32.totalorder %s8512_s13, 1 }
   0x7   : > { %p239_p3 = scmp.ne.s32.totalorder %s8424_s10, %s8420_s30  ;;  %p240_p4 = scmp.eq.s32.totalorder %s6834_s14, 1 }
   0x8   : > { %s8527_s18 = scalar_select %p221_p1, %s8428_s11, %s223_s16  }
   0x9   : > { %p8529_p5 = por %p234_p2, %p233_p0  ;;  %p8533_p6 = por %p240_p4, %p239_p3 }
   0xa   : > { %p6837_p7 = scmp.ge.s32.totalorder %s8432_s12, 1  ;;  %p290_p8 = scmp.lt.s32.totalorder %s8432_s12, 3 }
   0xc   : > { %p291_p9 = pnand %p6837_p7, %p290_p8 }
   0xe   : > { %294 = sbr.rel (%p291_p9) target bundleno = 1927 (0x787), region = 56 }
  0x15   : > { %p325_p10 = scmp.lt.s32.totalorder %s8512_s13, 1  ;;  %v8434_v0 = vmov 0   ;;  %v645_v34 = vlaneseq  ;;  %v388_v37 = vld [vmem:[%s13617_s1] sm:$0xff]  ;;  %vm857_vm0 = vcmask 1046528   ;;  %vm1151_vm1 = vcmask 1045504   ;;  %s8436_s16 = smov 64  }
  0x16   : > { %7755 = vset.pattern.permute.xlu1 %v8434_v0  ;;  %7754 = vset.pattern.permute.xlu0 %v8434_v0  ;;  %vm3155_vm2 = vcmask 1040384   ;;  %vm3164_vm3 = vcmask 1041408   ;;  %vm3173_vm4 = vcmask 1042432   ;;  %vm3182_vm5 = vcmask 1043456   ;;  %s8437_s17 = smov 32   ;;  %s6972_s14 = sshll.u32 %s8512_s13, 4 }
  0x17   : > { %s326_s21 = scalar_select %p325_p10, %s8512_s13, 1  ;;  %v646_v35 = vshrl.u32 %v645_v34, 7  ;;  %vm3191_vm6 = vcmask 1044480   ;;  %vm3419_vm7 = vcmask 261120   ;;  %vm3421_vm8 = vcmask 523264  }
  0x18   : > { %vm3423_vm9 = vcmask 785408   ;;  %vm8439_vm10 = vmmov 0   ;;  %s8440_s27 = smov [#allocation2]  }
  0x19   : > { %s7708_s22 = smul.u32 480, %s326_s21  ;;  %v753_v36 = vsub.s32 1, %v646_v35  ;;  %v1047_v40 = vsub.s32 2, %v646_v35  ;;  %v647_v42 = vsub.s32 0, %v646_v35  ;;  %v1462_v51 = vsub.s32 4, %v646_v35  ;;  %s8374_s28 = sshll.u32 %s8440_s27, 4  ;;  %s8375_s28 = int_to_ptr.vmem [resolvable:$false] %s8374_s28 }
  0x1a   : > { %v1356_v54 = vsub.s32 3, %v646_v35  ;;  %v1755_v57 = vsub.s32 5, %v646_v35  ;;  %s8376_s29 = scalar_lea.vmem %s8375_s28, 32 }
  0x1b   : > { %s8544_s25 = scalar_lea.vmem %s13616_s0, %s7708_s22  ;;  %v8582_v39 = vrot.slane %v388_v37, %v753_v36  ;;  %v8591_v46 = vrot.slane %v388_v37, %v1047_v40  ;;  %v8593_v47 = vrot.slane %v388_v37, %v647_v42  ;;  %v8606_v60 = vrot.slane %v388_v37, %v1462_v51  ;;  %s8438_s22 = smov 96  }
  0x1c   : > { %v334_v1 = vld [vmem:[%s8544_s25 + $0x18] sm:$0xff]  ;;  %v331_v2 = vld [vmem:[%s8544_s25] sm:$0xff]  ;;  %v332_v4 = vld [vmem:[%s8544_s25 + $0x8] sm:$0xff]  ;;  %v8611_v63 = vrot.slane %v388_v37, %v1356_v54 }
  0x1d   : > { %407 = vperm.xlu1 %7755, %v334_v1   ;;  %392 = vperm.xlu0 %7754, %v331_v2   ;;  %v335_v3 = vld [vmem:[%s8544_s25 + $0x20] sm:$0xff]  ;;  %v338_v5 = vld [vmem:[%s8544_s25 + $0x38] sm:$0xff]  ;;  %v337_v6 = vld [vmem:[%s8544_s25 + $0x30] sm:$0xff]  ;;  %13822 = vst [vmem:[#allocation5_spill] sm:$0xff] %v8593_v47  ;;  %v8615_v1 = vrot.slane %v388_v37, %v1755_v57 }
  0x1e   : > { %v336_v7 = vld [vmem:[%s8544_s25 + $0x28] sm:$0xf]  ;;  %v333_v8 = vld [vmem:[%s8544_s25 + $0x10] sm:$0xf]  ;;  %v339_v10 = vld [vmem:[%s8544_s25 + $0x40] sm:$0xf] }
  0x1f   : > { %v340_v9 = vld [vmem:[%s8544_s25 + $0x48] sm:$0xff]  ;;  %v343_v11 = vld [vmem:[%s8544_s25 + $0x60] sm:$0xff]  ;;  %v341_v12 = vld [vmem:[%s8544_s25 + $0x50] sm:$0xff]  ;;  %13823 = vst [vmem:[#allocation6_spill] sm:$0xff] %v8606_v60 }
  0x20   : > { %v342_v13 = vld [vmem:[%s8544_s25 + $0x58] sm:$0xf]  ;;  %v344_v14 = vld [vmem:[%s8544_s25 + $0x68] sm:$0xff]  ;;  %v345_v16 = vld [vmem:[%s8544_s25 + $0x70] sm:$0xf]  ;;  %13824 = vst [vmem:[#allocation7_spill] sm:$0xff] %v8611_v63 }
  0x21   : > { %412 = vperm.xlu1 %7755, %v335_v3   ;;  %397 = vperm.xlu0 %7754, %v332_v4   ;;  %v346_v15 = vld [vmem:[%s8544_s25 + $0x78] sm:$0xff]  ;;  %v348_v17 = vld [vmem:[%s8544_s25 + $0x88] sm:$0xf]  ;;  %v347_v18 = vld [vmem:[%s8544_s25 + $0x80] sm:$0xff] }
  0x22   : > { %v350_v19 = vld [vmem:[%s8544_s25 + $0x98] sm:$0xff]  ;;  %v349_v20 = vld [vmem:[%s8544_s25 + $0x90] sm:$0xff]  ;;  %v352_v21 = vld [vmem:[%s8544_s25 + $0xa8] sm:$0xff] }
  0x23   : > { %v351_v22 = vld [vmem:[%s8544_s25 + $0xa0] sm:$0xf]  ;;  %v353_v24 = vld [vmem:[%s8544_s25 + $0xb0] sm:$0xff]  ;;  %v354_v25 = vld [vmem:[%s8544_s25 + $0xb8] sm:$0xf] }
  0x24   : > { %v355_v23 = vld [vmem:[%s8544_s25 + $0xc0] sm:$0xff]  ;;  %v356_v26 = vld [vmem:[%s8544_s25 + $0xc8] sm:$0xff]  ;;  %v358_v27 = vld [vmem:[%s8544_s25 + $0xd8] sm:$0xff] }
  0x25   : > { %427 = vperm.xlu1 %7755, %v338_v5   ;;  %422 = vperm.xlu0 %7754, %v337_v6   ;;  %v357_v28 = vld [vmem:[%s8544_s25 + $0xd0] sm:$0xf]  ;;  %v360_v29 = vld [vmem:[%s8544_s25 + $0xe8] sm:$0xf]  ;;  %v359_v30 = vld [vmem:[%s8544_s25 + $0xe0] sm:$0xff] }
  0x26   : > { %v362_v31 = vld [vmem:[%s8544_s25 + $0xf8] sm:$0xff]  ;;  %v361_v32 = vld [vmem:[%s8544_s25 + $0xf0] sm:$0xff]  ;;  %v363_v33 = vld [vmem:[%s8544_s25 + $0x100] sm:$0xf] }
  0x29   : > { %417 = vperm.xlu1 %7755, %v336_v7   ;;  %402 = vperm.xlu0 %7754, %v333_v8   ;;  %v2169_v8 = vsub.s32 7, %v646_v35 }
  0x2d   : > { %437 = vperm.xlu1 %7755, %v340_v9   ;;  %432 = vperm.xlu0 %7754, %v339_v10  }
  0x31   : > { %452 = vperm.xlu1 %7755, %v343_v11   ;;  %442 = vperm.xlu0 %7754, %v341_v12  }
  0x35   : > { %447 = vperm.xlu1 %7755, %v342_v13   ;;  %457 = vperm.xlu0 %7754, %v344_v14   ;;  %v2063_v13 = vsub.s32 6, %v646_v35 }
  0x39   : > { %467 = vperm.xlu1 %7755, %v346_v15   ;;  %462 = vperm.xlu0 %7754, %v345_v16  }
  0x3d   : > { %477 = vperm.xlu1 %7755, %v348_v17   ;;  %472 = vperm.xlu0 %7754, %v347_v18  }
  0x41   : > { %487 = vperm.xlu1 %7755, %v350_v19   ;;  %482 = vperm.xlu0 %7754, %v349_v20  }
  0x45   : > { %497 = vperm.xlu1 %7755, %v352_v21   ;;  %492 = vperm.xlu0 %7754, %v351_v22   ;;  %v8641_v22 = vrot.slane %v388_v37, %v2169_v8 }
  0x49   : > { %512 = vperm.xlu1 %7755, %v355_v23   ;;  %502 = vperm.xlu0 %7754, %v353_v24  }
  0x4d   : > { %507 = vperm.xlu1 %7755, %v354_v25   ;;  %517 = vperm.xlu0 %7754, %v356_v26   ;;  %v8645_v26 = vrot.slane %v388_v37, %v2063_v13 }
  0x51   : > { %527 = vperm.xlu1 %7755, %v358_v27   ;;  %522 = vperm.xlu0 %7754, %v357_v28  }
  0x55   : > { %537 = vperm.xlu1 %7755, %v360_v29   ;;  %532 = vperm.xlu0 %7754, %v359_v30  }
  0x59   : > { %547 = vperm.xlu1 %7755, %v362_v31   ;;  %542 = vperm.xlu0 %7754, %v361_v32  }
  0x5d   : > { %552 = vperm.xlu0 %7754, %v363_v33  }
  0x9c   : > { %v393_v38 = vpop.permute.xlu0 %392  ;;  %v408_v44 = vpop.permute.xlu1 %407 }
  0x9d   : > { %v755_v43 = vmul.f32 %v8582_v39, %v393_v38  ;;  %v1049_v52 = vmul.f32 %v8591_v46, %v393_v38  ;;  %v649_v55 = vmul.f32 %v8593_v47, %v393_v38  ;;  %v758_v2 = vmul.f32 %v8582_v39, %v408_v44 }
  0x9e   : > { %v1464_v6 = vmul.f32 %v8606_v60, %v408_v44  ;;  %v1052_v10 = vmul.f32 %v8591_v46, %v408_v44  ;;  %v1358_v11 = vmul.f32 %v8611_v63, %v408_v44  ;;  %v1757_v15 = vmul.f32 %v8615_v1, %v408_v44 }
  0x9f   : > { %v858_v49 = vrot.slane %v755_v43, 1  ;;  %v1152_v61 = vrot.slane %v1049_v52, 2  ;;  %v863_v14 = vrot.slane %v758_v2, 1  ;;  %v652_v23 = vmul.f32 %v8593_v47, %v408_v44  ;;  %v8682_v44 = vld [vmem:[%s13617_s1 + $0x8] ss:$0 sm:$0xff] }
  0xa0   : > { %v8584_v41 = vpop.permute.xlu0 %397  ;;  %v413_v56 = vpop.permute.xlu1 %412  ;;  %v1566_v20 = vrot.slane %v1464_v6, 1  ;;  %v1157_v24 = vrot.slane %v1052_v10, 2  ;;  %v1859_v27 = vrot.slane %v1757_v15, 2 }
  0xa1   : > { %v8589_v45 = vmul.f32 %v8582_v39, %v8584_v41  ;;  %v8598_v50 = vmul.f32 %v8591_v46, %v8584_v41  ;;  %v8609_v62 = vmul.f32 %v8582_v39, %v413_v56  ;;  %v8619_v3 = vmul.f32 %v8606_v60, %v413_v56 }
  0xa2   : > { %v8631_v12 = vmul.f32 %v8591_v46, %v413_v56  ;;  %v8636_v17 = vmul.f32 %v8615_v1, %v413_v56  ;;  %v653_v36 = vmul.f32 %v8593_v47, %v413_v56  ;;  %v8664_v37 = vmul.f32 %v8611_v63, %v413_v56 }
  0xa3   : > { %v859_v48 = vrot.slane %v8589_v45, 1  ;;  %v1153_v58 = vrot.slane %v8598_v50, 2  ;;  %v864_v7 = vrot.slane %v8609_v62, 1  ;;  %v1567_v16 = vrot.slane %v8619_v3, 1 }
  0xa4   : > { %v8613_v0 = vpop.permute.xlu0 %422  ;;  %v8626_v9 = vpop.permute.xlu1 %427  ;;  %v1158_v25 = vrot.slane %v8631_v12, 2  ;;  %v1860_v28 = vrot.slane %v8636_v17, 2  ;;  %v650_v43 = vmul.f32 %v8593_v47, %v8584_v41 }
  0xa5   : > { %v860_v53 = vsel %vm857_vm0, %v858_v49, %v859_v48  ;;  %v1154_v4 = vsel %vm1151_vm1, %v1152_v61, %v1153_v58  ;;  %v865_v21 = vsel %vm857_vm0, %v863_v14, %v864_v7  ;;  %v1568_v29 = vsel %vm857_vm0, %v1566_v20, %v1567_v16 }
  0xa6   : > { %v994_v59 = vadd.f32 %v860_v53, %v649_v55  ;;  %v997_v32 = vadd.f32 %v865_v21, %v652_v23  ;;  %v8656_v34 = vmul.f32 %v8582_v39, %v8626_v9  ;;  %v8660_v35 = vmul.f32 %v8591_v46, %v8626_v9 }
  0xa7   : > { %v8668_v38 = vmul.f32 %v8606_v60, %v8626_v9  ;;  %v8672_v40 = vmul.f32 %v8615_v1, %v8626_v9  ;;  %v1159_v42 = vsel %vm1151_vm1, %v1157_v24, %v1158_v25  ;;  %v8686_v49 = vmul.f32 %v8641_v22, %v8626_v9 }
  0xa8   : > { %v1288_v5 = vadd.f32 %v1154_v4, %v994_v59  ;;  %v403_v19 = vpop.permute.xlu0 %402  ;;  %v8651_v30 = vpop.permute.xlu1 %417  ;;  %v1861_v52 = vsel %vm1151_vm1, %v1859_v27, %v1860_v28  ;;  %v8695_v53 = vmul.f32 %v8593_v47, %v8626_v9  ;;  %v2171_v41 = vmul.f32 %v8641_v22, %v8613_v0 }
  0xa9   : > { %v757_v31 = vmul.f32 %v8582_v39, %v403_v19  ;;  %v760_v51 = vmul.f32 %v8582_v39, %v8651_v30  ;;  %v1291_v55 = vadd.f32 %v1159_v42, %v997_v32  ;;  %v869_v57 = vrot.slane %v8656_v34, 1 }
  0xaa   : > { %v1409_v18 = vadd.f32 %v1358_v11, %v1288_v5  ;;  %v1163_v59 = vrot.slane %v8660_v35, 2  ;;  %v1572_v61 = vrot.slane %v8668_v38, 1  ;;  %v8705_v4 = vmul.f32 %v8682_v44, %v8626_v9 }
  0xab   : > { %v861_v54 = vrot.slane %v757_v31, 1  ;;  %v1051_v5 = vmul.f32 %v8591_v46, %v403_v19  ;;  %v2274_v6 = vrot.slane %v8686_v49, 1  ;;  %v655_v8 = vmul.f32 %v8593_v47, %v8613_v0 }
  0xac   : > { %v1702_v33 = vadd.f32 %v1568_v29, %v1409_v18  ;;  %v2065_v10 = vmul.f32 %v8645_v26, %v8613_v0  ;;  %v866_v11 = vrot.slane %v760_v51, 1  ;;  %v761_v13 = vmul.f32 %v8582_v39, %v8613_v0 }
  0xad   : > { %v2273_v14 = vrot.slane %v2171_v41, 1  ;;  %v2464_v15 = vmul.f32 %v8682_v44, %v8613_v0  ;;  %v862_v18 = vsel %vm857_vm0, %v859_v48, %v861_v54  ;;  %v1055_v20 = vmul.f32 %v8591_v46, %v8613_v0 }
  0xae   : > { %v1995_v56 = vadd.f32 %v1861_v52, %v1702_v33  ;;  %v1054_v23 = vmul.f32 %v8591_v46, %v8651_v30  ;;  %v651_v24 = vmul.f32 %v8593_v47, %v403_v19  ;;  %v2567_v27 = vrot.slane %v8705_v4, 2 }
  0xaf   : > { %v1361_v29 = vmul.f32 %v8611_v63, %v8613_v0  ;;  %v1467_v31 = vmul.f32 %v8606_v60, %v8613_v0  ;;  %v1155_v45 = vrot.slane %v1051_v5, 2  ;;  %v1760_v48 = vmul.f32 %v8615_v1, %v8613_v0 }
  0xb0   : > { %v2116_v21 = vadd.f32 %v2065_v10, %v1995_v56  ;;  %v867_v32 = vsel %vm857_vm0, %v864_v7, %v866_v11  ;;  %v995_v33 = vadd.f32 %v862_v18, %v650_v43  ;;  %v996_v42 = vadd.f32 %v861_v54, %v651_v24  ;;  %v438_v18 = vpop.permute.xlu1 %437 }
  0xb1   : > { %v868_v51 = vrot.slane %v761_v13, 1  ;;  %v2275_v19 = vsel %vm857_vm0, %v2273_v14, %v2274_v6  ;;  %v2566_v52 = vrot.slane %v2464_v15, 2  ;;  %v1759_v41 = vmul.f32 %v8615_v1, %v8651_v30 }
  0xb2   : > { %v1162_v56 = vrot.slane %v1055_v20, 2  ;;  %v2409_v5 = vadd.f32 %v2275_v19, %v2116_v21  ;;  %v1160_v10 = vrot.slane %v1054_v23, 2  ;;  %v1466_v0 = vmul.f32 %v8606_v60, %v8651_v30 }
  0xb3   : > { %v1412_v62 = vadd.f32 %v1361_v29, %v1291_v55  ;;  %v1571_v2 = vrot.slane %v1467_v31, 1  ;;  %v998_v7 = vadd.f32 %v867_v32, %v653_v36  ;;  %v1156_v43 = vsel %vm1151_vm1, %v1153_v58, %v1155_v45  ;;  %v433_v29 = vpop.permute.xlu0 %432  ;;  %v8761_v31 = vld [vmem:[%s13618_s2] ss:$0 sm:$0xff] }
  0xb4   : > { %v1864_v54 = vrot.slane %v1760_v48, 2  ;;  %v654_v13 = vmul.f32 %v8593_v47, %v8651_v30  ;;  %v1289_v14 = vadd.f32 %v1156_v43, %v995_v33  ;;  %v1290_v15 = vadd.f32 %v1155_v45, %v996_v42 }
  0xb5   : > { %v870_v20 = vsel %vm857_vm0, %v868_v51, %v869_v57  ;;  %v2568_v55 = vsel %vm1151_vm1, %v2566_v52, %v2567_v27  ;;  %v1862_v36 = vrot.slane %v1759_v41, 2  ;;  %v1360_v50 = vmul.f32 %v8611_v63, %v8651_v30 }
  0xb6   : > { %v2702_v58 = vadd.f32 %v2568_v55, %v2409_v5  ;;  %v999_v21 = vadd.f32 %v866_v11, %v654_v13  ;;  %v1161_v23 = vsel %vm1151_vm1, %v1158_v25, %v1160_v10  ;;  %v1569_v24 = vrot.slane %v1466_v0, 1 }
  0xb7   : > { %v1362_v45 = vmul.f32 %v8611_v63, %v8626_v9  ;;  %v1292_v48 = vadd.f32 %v1161_v23, %v998_v7  ;;  %v8766_v32 = vmul.f32 %v8582_v39, %v438_v18  ;;  %v8769_v30 = vmul.f32 %v8591_v46, %v438_v18 }
  0xb8   : > { %v1000_v12 = vadd.f32 %v870_v20, %v655_v8  ;;  %v1573_v25 = vsel %vm857_vm0, %v1571_v2, %v1572_v61  ;;  %v1410_v11 = vadd.f32 %v8664_v37, %v1289_v14  ;;  %v1411_v33 = vadd.f32 %v1360_v50, %v1290_v15 }
  0xb9   : > { %v1705_v42 = vadd.f32 %v1573_v25, %v1412_v62  ;;  %v1863_v51 = vsel %vm1151_vm1, %v1860_v28, %v1862_v36  ;;  %v2066_v19 = vmul.f32 %v8645_v26, %v8626_v9  ;;  %v763_v52 = vmul.f32 %v8582_v39, %v433_v29 }
  0xba   : > { %v8782_v41 = vadd.f32 %v8761_v31, %v2702_v58  ;;  %v1293_v8 = vadd.f32 %v1160_v10, %v999_v21  ;;  %v1570_v2 = vsel %vm857_vm0, %v1567_v16, %v1569_v24  ;;  %v8788_v37 = vmul.f32 %v8593_v47, %v438_v18 }
  0xbb   : > { %v8790_v5 = vadd.f32 %v1362_v45, %v1292_v48  ;;  %v873_v17 = vrot.slane %v8766_v32, 1  ;;  %v1164_v9 = vsel %vm1151_vm1, %v1162_v56, %v1163_v59  ;;  %v1703_v0 = vadd.f32 %v1570_v2, %v1410_v11 }
  0xbc   : > { %13825 = vst [vmem:[#allocation8_spill] sm:$0xff] %v8782_v41  ;;  %v1704_v62 = vadd.f32 %v1569_v24, %v1411_v33  ;;  %v1294_v10 = vadd.f32 %v1164_v9, %v1000_v12  ;;  %v1364_v3 = vmul.f32 %v8611_v63, %v438_v18  ;;  %v8799_v16 = vmul.f32 %v8606_v60, %v438_v18 }
  0xbd   : > { %v8802_v7 = vmul.f32 %v8615_v1, %v438_v18  ;;  %v871_v43 = vrot.slane %v763_v52, 1  ;;  %v1469_v13 = vmul.f32 %v8606_v60, %v433_v29  ;;  %v13826_v14 = vrot.slane %v8672_v40, 2 }
  0xbe   : > { %v2068_v15 = vmul.f32 %v8645_v26, %v438_v18  ;;  %v8810_v20 = vmul.f32 %v8641_v22, %v438_v18  ;;  %v1363_v55 = vmul.f32 %v8611_v63, %v433_v29  ;;  %v657_v58 = vmul.f32 %v8593_v47, %v433_v29 }
  0xbf   : > { %v1866_v56 = vsel %vm1151_vm1, %v1864_v54, %v13826_v14  ;;  %v1057_v21 = vmul.f32 %v8591_v46, %v433_v29  ;;  %v2173_v23 = vmul.f32 %v8641_v22, %v433_v29  ;;  %v1996_v24 = vadd.f32 %v1863_v51, %v1703_v0  ;;  %v453_v0 = vpop.permute.xlu1 %452 }
  0xc0   : > { %v1998_v50 = vadd.f32 %v1866_v56, %v1705_v42  ;;  %v1997_v45 = vadd.f32 %v1862_v36, %v1704_v62  ;;  %v8817_v48 = vmul.f32 %v8682_v44, %v438_v18  ;;  %v1414_v54 = vadd.f32 %v1363_v55, %v1293_v8  ;;  %v443_v62 = vpop.permute.xlu0 %442 }
  0xc1   : > { %v8819_v12 = vadd.f32 %v1364_v3, %v1294_v10  ;;  %v1002_v25 = vadd.f32 %v871_v43, %v657_v58  ;;  %v1574_v11 = vrot.slane %v1469_v13, 1  ;;  %v1762_v33 = vmul.f32 %v8615_v1, %v433_v29 }
  0xc2   : > { %v1576_v42 = vrot.slane %v8799_v16, 1  ;;  %v2067_v2 = vmul.f32 %v8645_v26, %v433_v29  ;;  %v8826_v9 = vmul.f32 %v8682_v44, %v433_v29  ;;  %v2119_v36 = vadd.f32 %v2068_v15, %v1998_v50 }
  0xc3   : > { %v2278_v18 = vrot.slane %v8810_v20, 1  ;;  %v1165_v51 = vrot.slane %v1057_v21, 2  ;;  %v2276_v8 = vrot.slane %v2173_v23, 1  ;;  %v2117_v10 = vadd.f32 %v2066_v19, %v1996_v24 }
  0xc4   : > { %13827 = vst [vmem:[#allocation9_spill] sm:$0xff] %v8826_v9  ;;  %v1707_v13 = vadd.f32 %v1574_v11, %v1414_v54  ;;  %v2118_v14 = vadd.f32 %v2067_v2, %v1997_v45  ;;  %v872_v16 = vsel %vm857_vm0, %v869_v57, %v871_v43  ;;  %v1575_v29 = vsel %vm857_vm0, %v1572_v61, %v1574_v11  ;;  %v458_v52 = vpop.permute.xlu0 %457 }
  0xc5   : > { %v8833_v56 = vadd.f32 %v1165_v51, %v1002_v25  ;;  %v1867_v15 = vrot.slane %v1762_v33, 2  ;;  %v13626_v20 = vrot.slane %v8826_v9, 2  ;;  %v8840_v55 = vmul.f32 %v8593_v47, %v453_v0 }
  0xc6   : > { %v8843_v19 = vmul.f32 %v8582_v39, %v453_v0  ;;  %v8846_v50 = vmul.f32 %v8641_v22, %v443_v62  ;;  %v2277_v34 = vsel %vm857_vm0, %v2274_v6, %v2276_v8  ;;  %v8852_v38 = vmul.f32 %v8591_v46, %v453_v0 }
  0xc7   : > { %v8855_v57 = vmul.f32 %v8606_v60, %v453_v0  ;;  %v765_v61 = vmul.f32 %v8582_v39, %v443_v62  ;;  %v8858_v43 = vadd.f32 %v1867_v15, %v1707_v13  ;;  %v8860_v58 = vadd.f32 %v2276_v8, %v2118_v14  ;;  %v448_v14 = vpop.permute.xlu1 %447 }
  0xc8   : > { %v8863_v21 = vmul.f32 %v8615_v1, %v453_v0  ;;  %v1471_v23 = vmul.f32 %v8606_v60, %v443_v62  ;;  %v8866_v49 = vadd.f32 %v2277_v34, %v2117_v10  ;;  %v8869_v6 = vmul.f32 %v8611_v63, %v453_v0 }
  0xc9   : > { %13828 = vst [vmem:[#allocation10_spill] sm:$0xff] %v8860_v58  ;;  %v8872_v24 = vmul.f32 %v8641_v22, %v453_v0  ;;  %v8875_v45 = vmul.f32 %v8682_v44, %v453_v0  ;;  %v8882_v54 = vsel %vm1151_vm1, %v2567_v27, %v13626_v20  ;;  %v1001_v11 = vadd.f32 %v872_v16, %v8695_v53 }
  0xca   : > { %v13627_v33 = vrot.slane %v8846_v50, 1  ;;  %v8890_v10 = vmul.f32 %v8645_v26, %v453_v0  ;;  %v874_v13 = vrot.slane %v765_v61, 1  ;;  %v1166_v27 = vsel %vm1151_vm1, %v1163_v59, %v1165_v51 }
  0xcb   : > { %v1577_v34 = vrot.slane %v1471_v23, 1  ;;  %v8897_v53 = vmul.f32 %v8682_v44, %v443_v62  ;;  %v1706_v2 = vadd.f32 %v1575_v29, %v8790_v5  ;;  %v1059_v0 = vmul.f32 %v8591_v46, %v443_v62 }
  0xcc   : > { %v1295_v61 = vadd.f32 %v1166_v27, %v1001_v11  ;;  %v1764_v8 = vmul.f32 %v8615_v1, %v443_v62  ;;  %v2280_v35 = vsel %vm857_vm0, %v2278_v18, %v13627_v33  ;;  %v766_v59 = vmul.f32 %v8582_v39, %v448_v14 }
  0xcd   : > { %v13829_v51 = vrot.slane %v8672_v40, 2  ;;  %v659_v4 = vmul.f32 %v8593_v47, %v443_v62  ;;  %v875_v5 = vsel %vm857_vm0, %v873_v17, %v874_v13  ;;  %v1472_v29 = vmul.f32 %v8606_v60, %v448_v14 }
  0xce   : > { %v1365_v11 = vmul.f32 %v8611_v63, %v443_v62  ;;  %v1578_v27 = vsel %vm857_vm0, %v1576_v42, %v1577_v34  ;;  %v2572_v18 = vrot.slane %v8897_v53, 2  ;;  %v1366_v20 = vmul.f32 %v8611_v63, %v448_v14 }
  0xcf   : > { %v1868_v23 = vsel %vm1151_vm1, %v13829_v51, %v1867_v15  ;;  %v1168_v40 = vrot.slane %v1059_v0, 2  ;;  %v2069_v15 = vmul.f32 %v8645_v26, %v443_v62  ;;  %v2412_v51 = vadd.f32 %v2280_v35, %v2119_v36 }
  0xd0   : > { %v1999_v16 = vadd.f32 %v1868_v23, %v1706_v2  ;;  %v1003_v25 = vadd.f32 %v875_v5, %v8788_v37  ;;  %v1416_v32 = vadd.f32 %v1365_v11, %v1295_v61  ;;  %v1870_v33 = vrot.slane %v1764_v8, 2 }
  0xd1   : > { %v876_v17 = vrot.slane %v766_v59, 1  ;;  %v1708_v28 = vadd.f32 %v1578_v27, %v8819_v12  ;;  %v1060_v3 = vmul.f32 %v8591_v46, %v448_v14  ;;  %v1579_v42 = vrot.slane %v1472_v29, 1 }
  0xd2   : > { %v2176_v53 = vmul.f32 %v8641_v22, %v448_v14  ;;  %v13830_v41 = vrot.slane %v8817_v48, 2  ;;  %v660_v62 = vmul.f32 %v8593_v47, %v448_v14  ;;  %v1417_v36 = vadd.f32 %v1366_v20, %v8833_v56 }
  0xd3   : > { %v1765_v37 = vmul.f32 %v8615_v1, %v448_v14  ;;  %v13831_v8 = vrot.slane %v8769_v30, 2  ;;  %v2120_v12 = vadd.f32 %v2069_v15, %v1999_v16  ;;  %v8935_v35 = vmul.f32 %v8582_v39, %v458_v52 }
  0xd4   : > { %v2573_v2 = vsel %vm1151_vm1, %v13830_v41, %v2572_v18  ;;  %v13832_v59 = vrot.slane %v8802_v7, 2  ;;  %v877_v41 = vsel %vm857_vm0, %v874_v13, %v876_v17  ;;  %v1005_v23 = vadd.f32 %v876_v17, %v660_v62 }
  0xd5   : > { %v1169_v0 = vsel %vm1151_vm1, %v13831_v8, %v1168_v40  ;;  %v2705_v61 = vadd.f32 %v2573_v2, %v2412_v51  ;;  %v2070_v56 = vmul.f32 %v8645_v26, %v448_v14  ;;  %v1170_v20 = vrot.slane %v1060_v3, 2 }
  0xd6   : > { %v1871_v48 = vsel %vm1151_vm1, %v13832_v59, %v1870_v33  ;;  %v1580_v5 = vsel %vm857_vm0, %v1577_v34, %v1579_v42  ;;  %v2281_v30 = vrot.slane %v2176_v53, 1  ;;  %v8944_v29 = vmul.f32 %v8682_v44, %v448_v14 }
  0xd7   : > { %v1297_v16 = vadd.f32 %v1169_v0, %v1003_v25  ;;  %v2001_v11 = vadd.f32 %v1871_v48, %v1708_v28  ;;  %v1710_v27 = vadd.f32 %v1579_v42, %v1417_v36  ;;  %v1872_v15 = vrot.slane %v1765_v37, 2  ;;  %v463_v48 = vpop.permute.xlu0 %462 }
  0xd8   : > { %13833 = vst [vmem:[#allocation11_spill] sm:$0xff] %v8944_v29  ;;  %v8947_v7 = vadd.f32 %v8761_v31, %v2705_v61  ;;  %v1004_v51 = vadd.f32 %v877_v41, %v659_v4  ;;  %v879_v13 = vrot.slane %v8935_v35, 1  ;;  %v8951_v17 = vmul.f32 %v8641_v22, %v458_v52 }
  0xd9   : > { %v1299_v3 = vadd.f32 %v1170_v20, %v1005_v23  ;;  %v2121_v34 = vadd.f32 %v2070_v56, %v8858_v43  ;;  %v1709_v53 = vadd.f32 %v1580_v5, %v1416_v32  ;;  %v8955_v14 = vmul.f32 %v8606_v60, %v458_v52 }
  0xda   : > { %13834 = vst [vmem:[#allocation12_spill] sm:$0xff] %v8947_v7  ;;  %v13835_v28 = vrot.slane %v8846_v50, 1  ;;  %v13628_v42 = vrot.slane %v8944_v29, 2  ;;  %v1171_v4 = vsel %vm1151_vm1, %v1168_v40, %v1170_v20  ;;  %v8963_v2 = vmul.f32 %v8591_v46, %v458_v52 }
  0xdb   : > { %v8965_v62 = vadd.f32 %v1872_v15, %v1710_v27  ;;  %v1873_v36 = vsel %vm1151_vm1, %v1870_v33, %v1872_v15  ;;  %v2122_v43 = vadd.f32 %v8890_v10, %v2001_v11  ;;  %v8970_v32 = vmul.f32 %v8682_v44, %v458_v52 }
  0xdc   : > { %v2282_v25 = vsel %vm857_vm0, %v13835_v28, %v2281_v30  ;;  %v1298_v37 = vadd.f32 %v1171_v4, %v1004_v51  ;;  %v13837_v50 = vrot.slane %v8843_v19, 1  ;;  %v8978_v40 = vmul.f32 %v8615_v1, %v458_v52 }
  0xdd   : > { %13836 = vst [vmem:[#allocation13_spill] sm:$0xff] %v8970_v32  ;;  %v2284_v0 = vrot.slane %v8951_v17, 1  ;;  %v8981_v61 = vadd.f32 %v2282_v25, %v2120_v12  ;;  %v8983_v33 = vadd.f32 %v2281_v30, %v2121_v34  ;;  %v2002_v10 = vadd.f32 %v1873_v36, %v1709_v53  ;;  %v468_v12 = vpop.permute.xlu1 %467 }
  0xde   : > { %v880_v8 = vsel %vm857_vm0, %v13837_v50, %v879_v13  ;;  %v1582_v59 = vrot.slane %v8955_v14, 1  ;;  %v8989_v41 = vsel %vm1151_vm1, %v2572_v18, %v13628_v42  ;;  %v8992_v19 = vmul.f32 %v8593_v47, %v458_v52 }
  0xdf   : > { %13838 = vst [vmem:[#allocation14_spill] sm:$0xff] %v8981_v61  ;;  %13839 = vst [vmem:[#allocation15_spill] sm:$0xff] %v8983_v33  ;;  %v13630_v23 = vrot.slane %v8963_v2, 2  ;;  %v1368_v56 = vmul.f32 %v8611_v63, %v458_v52  ;;  %v2072_v20 = vmul.f32 %v8645_v26, %v458_v52  ;;  %v13629_v5 = vrot.slane %v8970_v32, 2 }
  0xe0   : > { %13840 = vst [vmem:[#allocation16_spill] sm:$0xff] %v8989_v41  ;;  %v1006_v30 = vadd.f32 %v880_v8, %v8840_v55  ;;  %v1418_v11 = vadd.f32 %v8869_v6, %v1297_v16  ;;  %v13631_v18 = vrot.slane %v8978_v40, 2  ;;  %v13841_v15 = vrot.slane %v8872_v24, 1 }
  0xe1   : > { %v9000_v27 = vadd.f32 %v1368_v56, %v1298_v37  ;;  %v769_v34 = vmul.f32 %v8582_v39, %v463_v48  ;;  %v13842_v52 = vrot.slane %v8855_v57, 1  ;;  %v9014_v53 = vadd.f32 %v2072_v20, %v2002_v10 }
  0xe2   : > { %v2285_v51 = vsel %vm857_vm0, %v13841_v15, %v2284_v0  ;;  %v9017_v16 = vmul.f32 %v8593_v47, %v468_v12  ;;  %v9020_v28 = vmul.f32 %v8582_v39, %v468_v12  ;;  %v13843_v24 = vrot.slane %v8852_v38, 2 }
  0xe3   : > { %v1583_v55 = vsel %vm857_vm0, %v13842_v52, %v1582_v59  ;;  %v2415_v6 = vadd.f32 %v2285_v51, %v2122_v43  ;;  %v1369_v4 = vmul.f32 %v8611_v63, %v463_v48  ;;  %v1475_v57 = vmul.f32 %v8606_v60, %v463_v48 }
  0xe4   : > { %v1174_v25 = vsel %vm1151_vm1, %v13843_v24, %v13630_v23  ;;  %v13844_v36 = vrot.slane %v8875_v45, 2  ;;  %v9035_v37 = vmul.f32 %v8591_v46, %v468_v12  ;;  %v1711_v8 = vadd.f32 %v1583_v55, %v1418_v11 }
  0xe5   : > { %v1300_v50 = vadd.f32 %v1174_v25, %v1006_v30  ;;  %v1370_v10 = vmul.f32 %v8611_v63, %v468_v12  ;;  %v9039_v38 = vmul.f32 %v8606_v60, %v468_v12  ;;  %v881_v56 = vrot.slane %v769_v34, 1 }
  0xe6   : > { %v2578_v43 = vsel %vm1151_vm1, %v13844_v36, %v13629_v5  ;;  %v1420_v20 = vadd.f32 %v1369_v4, %v1299_v3  ;;  %v9042_v51 = vmul.f32 %v8615_v1, %v468_v12  ;;  %v13845_v45 = vrot.slane %v8863_v21, 2 }
  0xe7   : > { %v2708_v15 = vadd.f32 %v2578_v43, %v2415_v6  ;;  %v9050_v30 = vmul.f32 %v8641_v22, %v468_v12  ;;  %v663_v11 = vmul.f32 %v8593_v47, %v463_v48  ;;  %v1063_v55 = vmul.f32 %v8591_v46, %v463_v48 }
  0xe8   : > { %v1876_v52 = vsel %vm1151_vm1, %v13845_v45, %v13631_v18  ;;  %v1584_v24 = vrot.slane %v1475_v57, 1  ;;  %v1768_v3 = vmul.f32 %v8615_v1, %v463_v48  ;;  %v9058_v4 = vmul.f32 %v8682_v44, %v468_v12 }
  0xe9   : > { %v2004_v25 = vadd.f32 %v1876_v52, %v1711_v8  ;;  %v9060_v21 = vadd.f32 %v1370_v10, %v1300_v50  ;;  %v2074_v36 = vmul.f32 %v8645_v26, %v468_v12  ;;  %v1008_v43 = vadd.f32 %v881_v56, %v663_v11  ;;  %v478_v8 = vpop.permute.xlu1 %477  ;;  %v473_v12 = vpop.permute.xlu0 %472 }
  0xea   : > { %v1713_v45 = vadd.f32 %v1584_v24, %v1420_v20  ;;  %v9064_v42 = vadd.f32 %v8761_v31, %v2708_v15  ;;  %v9069_v34 = vmul.f32 %v8641_v22, %v463_v48  ;;  %v2288_v52 = vrot.slane %v9050_v30, 1 }
  0xeb   : > { %v1175_v6 = vrot.slane %v1063_v55, 2  ;;  %v1877_v50 = vrot.slane %v1768_v3, 2  ;;  %v2073_v10 = vmul.f32 %v8645_v26, %v463_v48  ;;  %v9073_v11 = vadd.f32 %v2074_v36, %v2004_v25 }
  0xec   : > { %13846 = vst [vmem:[#allocation17_spill] sm:$0xff] %v9064_v42  ;;  %v882_v15 = vsel %vm857_vm0, %v879_v13, %v881_v56  ;;  %v9080_v5 = vmul.f32 %v8682_v44, %v463_v48  ;;  %v772_v55 = vmul.f32 %v8582_v39, %v478_v8  ;;  %v1585_v3 = vsel %vm857_vm0, %v1582_v59, %v1584_v24 }
  0xed   : > { %v1302_v57 = vadd.f32 %v1175_v6, %v1008_v43  ;;  %v2006_v23 = vadd.f32 %v1877_v50, %v1713_v45  ;;  %v9083_v30 = vadd.f32 %v2073_v10, %v8965_v62  ;;  %v13633_v25 = vrot.slane %v9069_v34, 1 }
  0xee   : > { %13847 = vst [vmem:[#allocation18_spill] sm:$0xff] %v9080_v5  ;;  %v666_v35 = vmul.f32 %v8593_v47, %v478_v8  ;;  %v771_v13 = vmul.f32 %v8582_v39, %v473_v12  ;;  %v1372_v48 = vmul.f32 %v8611_v63, %v478_v8  ;;  %v1478_v56 = vmul.f32 %v8606_v60, %v478_v8 }
  0xef   : > { %v2076_v36 = vmul.f32 %v8645_v26, %v478_v8  ;;  %v2182_v62 = vmul.f32 %v8641_v22, %v478_v8  ;;  %v1066_v14 = vmul.f32 %v8591_v46, %v478_v8  ;;  %v1712_v59 = vadd.f32 %v1585_v3, %v9000_v27 }
  0xf0   : > { %v2181_v24 = vmul.f32 %v8641_v22, %v473_v12  ;;  %v886_v45 = vrot.slane %v772_v55, 1  ;;  %v1423_v10 = vadd.f32 %v1372_v48, %v1302_v57  ;;  %v1007_v18 = vadd.f32 %v882_v15, %v8992_v19 }
  0xf1   : > { %v2127_v20 = vadd.f32 %v2076_v36, %v2006_v23  ;;  %v9106_v7 = vsel %vm857_vm0, %v2284_v0, %v13633_v25  ;;  %v9109_v43 = vmul.f32 %v8615_v1, %v478_v8  ;;  %v884_v29 = vrot.slane %v771_v13, 1 }
  0xf2   : > { %v1477_v27 = vmul.f32 %v8606_v60, %v473_v12  ;;  %v1589_v3 = vrot.slane %v1478_v56, 1  ;;  %v2291_v33 = vrot.slane %v2182_v62, 1  ;;  %v2475_v57 = vmul.f32 %v8682_v44, %v478_v8 }
  0xf3   : > { %v13848_v23 = vrot.slane %v8978_v40, 2  ;;  %v13849_v15 = vrot.slane %v8963_v2, 2  ;;  %v9120_v55 = vmul.f32 %v8591_v46, %v473_v12  ;;  %v2289_v48 = vrot.slane %v2181_v24, 1 }
  0xf4   : > { %v1011_v13 = vadd.f32 %v886_v45, %v666_v35  ;;  %v1716_v36 = vadd.f32 %v1589_v3, %v1423_v10  ;;  %v2420_v25 = vadd.f32 %v2291_v33, %v2127_v20  ;;  %v887_v62 = vsel %vm857_vm0, %v884_v29, %v886_v45  ;;  %v488_v20 = vpop.permute.xlu1 %487 }
  0xf5   : > { %v1878_v19 = vsel %vm1151_vm1, %v13848_v23, %v1877_v50  ;;  %v1176_v17 = vsel %vm1151_vm1, %v13849_v15, %v1175_v6  ;;  %v1587_v8 = vrot.slane %v1477_v27, 1  ;;  %v2075_v40 = vmul.f32 %v8645_v26, %v473_v12 }
  0xf6   : > { %v2005_v0 = vadd.f32 %v1878_v19, %v1712_v59  ;;  %v1301_v56 = vadd.f32 %v1176_v17, %v1007_v18  ;;  %v2474_v50 = vmul.f32 %v8682_v44, %v473_v12  ;;  %v1180_v23 = vrot.slane %v1066_v14, 2 }
  0xf7   : > { %v1882_v2 = vrot.slane %v9109_v43, 2  ;;  %v665_v6 = vmul.f32 %v8593_v47, %v473_v12  ;;  %v1371_v59 = vmul.f32 %v8611_v63, %v473_v12  ;;  %v2584_v19 = vrot.slane %v2475_v57, 2 }
  0xf8   : > { %v1178_v35 = vrot.slane %v9120_v55, 2  ;;  %v2126_v24 = vadd.f32 %v2075_v40, %v2005_v0  ;;  %v2290_v18 = vsel %vm857_vm0, %v2288_v52, %v2289_v48  ;;  %v9130_v45 = vadd.f32 %v1180_v23, %v1011_v13 }
  0xf9   : > { %v1010_v10 = vadd.f32 %v887_v62, %v665_v6  ;;  %v1422_v27 = vadd.f32 %v1371_v59, %v1301_v56  ;;  %v1770_v15 = vmul.f32 %v8615_v1, %v473_v12  ;;  %v9133_v14 = vadd.f32 %v1882_v2, %v1716_v36  ;;  %v483_v56 = vpop.permute.xlu0 %482 }
  0xfa   : > { %v9135_v43 = vadd.f32 %v2584_v19, %v2420_v25  ;;  %v13851_v17 = vrot.slane %v9039_v38, 1  ;;  %v2582_v41 = vrot.slane %v2474_v50, 2  ;;  %v1590_v0 = vsel %vm857_vm0, %v1587_v8, %v1589_v3 }
  0xfb   : > { %v2292_v52 = vsel %vm857_vm0, %v2289_v48, %v2291_v33  ;;  %v2418_v55 = vadd.f32 %v2290_v18, %v9073_v11  ;;  %v9144_v13 = vmul.f32 %v8582_v39, %v488_v20  ;;  %v9147_v36 = vmul.f32 %v8591_v46, %v488_v20 }
  0xfc   : > { %13850 = vst [vmem:[#allocation19_spill] sm:$0xff] %v9135_v43  ;;  %v1588_v57 = vsel %vm857_vm0, %v13851_v17, %v1587_v8  ;;  %v2419_v12 = vadd.f32 %v2292_v52, %v2126_v24  ;;  %v1181_v25 = vsel %vm1151_vm1, %v1178_v35, %v1180_v23  ;;  %v9151_v38 = vmul.f32 %v8606_v60, %v488_v20 }
  0xfd   : > { %v13852_v62 = vrot.slane %v9020_v28, 1  ;;  %v1715_v33 = vadd.f32 %v1590_v0, %v1422_v27  ;;  %v1880_v48 = vrot.slane %v1770_v15, 2  ;;  %v1304_v11 = vadd.f32 %v1181_v25, %v1010_v10 }
  0xfe   : > { %v13853_v8 = vrot.slane %v9058_v4, 2  ;;  %v9160_v50 = vmul.f32 %v8593_v47, %v488_v20  ;;  %v1714_v6 = vadd.f32 %v1588_v57, %v9060_v21  ;;  %v773_v23 = vmul.f32 %v8582_v39, %v483_v56 }
  0xff   : > { %v885_v3 = vsel %vm857_vm0, %v13852_v62, %v884_v29  ;;  %v2585_v59 = vsel %vm1151_vm1, %v2582_v41, %v2584_v19  ;;  %v13634_v28 = vrot.slane %v9144_v13, 1  ;;  %v1374_v29 = vmul.f32 %v8611_v63, %v488_v20 }
 0x100   : > { %v2583_v40 = vsel %vm1151_vm1, %v13853_v8, %v2582_v41  ;;  %v9167_v18 = vadd.f32 %v2585_v59, %v2419_v12  ;;  %v13636_v4 = vrot.slane %v9147_v36, 2  ;;  %v13635_v10 = vrot.slane %v9151_v38, 1 }
 0x101   : > { %v2711_v24 = vadd.f32 %v2583_v40, %v2418_v55  ;;  %v1009_v27 = vadd.f32 %v885_v3, %v9017_v16  ;;  %v9172_v15 = vadd.f32 %v1374_v29, %v1304_v11  ;;  %v9175_v21 = vmul.f32 %v8641_v22, %v488_v20  ;;  %v498_v29 = vpop.permute.xlu1 %497 }
 0x102   : > { %13854 = vst [vmem:[#allocation20_spill] sm:$0xff] %v9167_v18  ;;  %v13855_v41 = vrot.slane %v9042_v51, 2  ;;  %v2183_v17 = vmul.f32 %v8641_v22, %v483_v56  ;;  %v9182_v57 = vmul.f32 %v8615_v1, %v488_v20  ;;  %v888_v52 = vrot.slane %v773_v23, 1 }
 0x103   : > { %v1479_v55 = vmul.f32 %v8606_v60, %v483_v56  ;;  %v9186_v16 = vadd.f32 %v8761_v31, %v2711_v24  ;;  %v1883_v12 = vsel %vm1151_vm1, %v1880_v48, %v1882_v2  ;;  %v9190_v25 = vmul.f32 %v8682_v44, %v488_v20 }
 0x104   : > { %v1881_v19 = vsel %vm1151_vm1, %v13855_v41, %v1880_v48  ;;  %v13856_v51 = vrot.slane %v9035_v37, 2  ;;  %v1067_v11 = vmul.f32 %v8591_v46, %v483_v56  ;;  %v2077_v8 = vmul.f32 %v8645_v26, %v483_v56 }
 0x105   : > { %v2007_v0 = vadd.f32 %v1881_v19, %v1714_v6  ;;  %v2476_v40 = vmul.f32 %v8682_v44, %v483_v56  ;;  %v2008_v6 = vadd.f32 %v1883_v12, %v1715_v33  ;;  %v13638_v23 = vrot.slane %v9175_v21, 1 }
 0x106   : > { %v1179_v62 = vsel %vm1151_vm1, %v13856_v51, %v1178_v35  ;;  %v1373_v59 = vmul.f32 %v8611_v63, %v483_v56  ;;  %v2293_v2 = vrot.slane %v2183_v17, 1  ;;  %v890_v48 = vsel %vm857_vm0, %v888_v52, %v13634_v28  ;;  %v493_v52 = vpop.permute.xlu0 %492 }
 0x107   : > { %v1303_v3 = vadd.f32 %v1179_v62, %v1009_v27  ;;  %v1591_v37 = vrot.slane %v1479_v55, 1  ;;  %v1772_v35 = vmul.f32 %v8615_v1, %v483_v56  ;;  %v2128_v24 = vadd.f32 %v2077_v8, %v2007_v0 }
 0x108   : > { %v13639_v41 = vrot.slane %v9182_v57, 2  ;;  %v2078_v33 = vmul.f32 %v8645_v26, %v488_v20  ;;  %v667_v19 = vmul.f32 %v8593_v47, %v483_v56  ;;  %v13637_v17 = vrot.slane %v9190_v25, 2 }
 0x109   : > { %v1182_v12 = vrot.slane %v1067_v11, 2  ;;  %v1424_v51 = vadd.f32 %v1373_v59, %v1303_v3  ;;  %v2586_v62 = vrot.slane %v2476_v40, 2  ;;  %v2295_v0 = vsel %vm857_vm0, %v2293_v2, %v13638_v23 }
 0x10a   : > { %v1012_v55 = vadd.f32 %v890_v48, %v667_v19  ;;  %v9214_v8 = vmul.f32 %v8582_v39, %v498_v29  ;;  %v9217_v28 = vmul.f32 %v8591_v46, %v498_v29  ;;  %v2129_v20 = vadd.f32 %v2078_v33, %v2008_v6 }
 0x10b   : > { %v1593_v56 = vsel %vm857_vm0, %v1591_v37, %v13635_v10  ;;  %v1884_v11 = vrot.slane %v1772_v35, 2  ;;  %v2421_v3 = vadd.f32 %v2295_v0, %v2128_v24  ;;  %v9223_v40 = vmul.f32 %v8593_v47, %v498_v29 }
 0x10c   : > { %v775_v59 = vmul.f32 %v8582_v39, %v493_v52  ;;  %v1375_v2 = vmul.f32 %v8611_v63, %v493_v52  ;;  %v1481_v48 = vmul.f32 %v8606_v60, %v493_v52  ;;  %v1717_v19 = vadd.f32 %v1593_v56, %v1424_v51 }
 0x10d   : > { %v2588_v6 = vsel %vm1151_vm1, %v2586_v62, %v13637_v17  ;;  %v1184_v37 = vsel %vm1151_vm1, %v1182_v12, %v13636_v4  ;;  %v1376_v35 = vmul.f32 %v8611_v63, %v498_v29  ;;  %v2185_v10 = vmul.f32 %v8641_v22, %v493_v52 }
 0x10e   : > { %v1306_v0 = vadd.f32 %v1184_v37, %v1012_v55  ;;  %v2714_v27 = vadd.f32 %v2588_v6, %v2421_v3  ;;  %v9239_v51 = vmul.f32 %v8606_v60, %v498_v29  ;;  %v9242_v56 = vmul.f32 %v8615_v1, %v498_v29 }
 0x10f   : > { %v2079_v62 = vmul.f32 %v8645_v26, %v493_v52  ;;  %v1886_v12 = vsel %vm1151_vm1, %v1884_v11, %v13639_v41  ;;  %v891_v4 = vrot.slane %v775_v59, 1  ;;  %v1426_v24 = vadd.f32 %v1375_v2, %v9130_v45 }
 0x110   : > { %v1594_v33 = vrot.slane %v1481_v48, 1  ;;  %v2010_v55 = vadd.f32 %v1886_v12, %v1717_v19  ;;  %v9250_v37 = vmul.f32 %v8641_v22, %v498_v29  ;;  %v1069_v3 = vmul.f32 %v8591_v46, %v493_v52  ;;  %v513_v48 = vpop.permute.xlu1 %512 }
 0x111   : > { %v1774_v6 = vmul.f32 %v8615_v1, %v493_v52  ;;  %v2080_v17 = vmul.f32 %v8645_v26, %v498_v29  ;;  %v669_v23 = vmul.f32 %v8593_v47, %v493_v52  ;;  %v2296_v43 = vrot.slane %v2185_v10, 1 }
 0x112   : > { %v2478_v18 = vmul.f32 %v8682_v44, %v493_v52  ;;  %v9258_v11 = vadd.f32 %v8761_v31, %v2714_v27  ;;  %v9260_v45 = vadd.f32 %v1376_v35, %v1306_v0  ;;  %v9263_v59 = vmul.f32 %v8682_v44, %v498_v29 }
 0x113   : > { %v2130_v2 = vadd.f32 %v2079_v62, %v9133_v14  ;;  %v1596_v19 = vrot.slane %v9239_v51, 1  ;;  %v1014_v41 = vadd.f32 %v891_v4, %v669_v23  ;;  %v1719_v61 = vadd.f32 %v1594_v33, %v1426_v24  ;;  %v503_v62 = vpop.permute.xlu0 %502 }
 0x114   : > { %v9268_v10 = vadd.f32 %v2080_v17, %v2010_v55  ;;  %v2298_v52 = vrot.slane %v9250_v37, 1  ;;  %v1185_v27 = vrot.slane %v1069_v3, 2  ;;  %v1887_v9 = vrot.slane %v1774_v6, 2 }
 0x115   : > { %v13857_v35 = vrot.slane %v9175_v21, 1  ;;  %v2589_v0 = vrot.slane %v2478_v18, 2  ;;  %v9275_v14 = vmul.f32 %v8582_v39, %v513_v48  ;;  %v9278_v51 = vmul.f32 %v8591_v46, %v513_v48 }
 0x116   : > { %v13858_v23 = vmax.f32 %v9064_v42, %v9186_v16  ;;  %v13860_v21 = vrot.slane %v9144_v13, 1  ;;  %v2423_v18 = vadd.f32 %v2296_v43, %v2130_v2  ;;  %v9290_v37 = vadd.f32 %v1185_v27, %v1014_v41 }
 0x117   : > { %v2297_v29 = vsel %vm857_vm0, %v13857_v35, %v2296_v43  ;;  %v13861_v3 = vrot.slane %v9151_v38, 1  ;;  %v9295_v35 = vadd.f32 %v1887_v9, %v1719_v61  ;;  %v9298_v12 = vmul.f32 %v8593_v47, %v513_v48 }
 0x118   : > { %v9284_v17 = vmax.f32 %v13858_v23, %v9258_v11  ;;  %v892_v55 = vsel %vm857_vm0, %v13860_v21, %v891_v4  ;;  %v2422_v16 = vadd.f32 %v2297_v29, %v2129_v20  ;;  %v9301_v23 = vmul.f32 %v8582_v39, %v503_v62 }
 0x119   : > { %v1595_v6 = vsel %vm857_vm0, %v13861_v3, %v1594_v33  ;;  %v9304_v13 = vmul.f32 %v8606_v60, %v503_v62  ;;  %v9307_v43 = vmul.f32 %v8641_v22, %v503_v62  ;;  %v13862_v4 = vrot.slane %v9190_v25, 2 }
 0x11a   : > { %13859 = vst [vmem:[#allocation21_spill] sm:$0xff] %v9284_v17  ;;  %v9315_v33 = vmul.f32 %v8606_v60, %v513_v48  ;;  %v9317_v20 = vadd.f32 %v2589_v0, %v2423_v18  ;;  %v9320_v2 = vmul.f32 %v8611_v63, %v513_v48  ;;  %v9323_v29 = vmul.f32 %v8615_v1, %v513_v48 }
 0x11b   : > { %v2590_v38 = vsel %vm1151_vm1, %v13862_v4, %v2589_v0  ;;  %v1013_v21 = vadd.f32 %v892_v55, %v9160_v50  ;;  %v9327_v25 = vmul.f32 %v8645_v26, %v513_v48  ;;  %v9330_v3 = vmul.f32 %v8641_v22, %v513_v48 }
 0x11c   : > { %13863 = vst [vmem:[#allocation22_spill] sm:$0xff] %v9317_v20  ;;  %v1718_v4 = vadd.f32 %v1595_v6, %v9172_v15  ;;  %v9334_v41 = vmul.f32 %v8591_v46, %v503_v62  ;;  %v9336_v0 = vadd.f32 %v2590_v38, %v2422_v16  ;;  %v894_v18 = vrot.slane %v9301_v23, 1  ;;  %v508_v16 = vpop.permute.xlu1 %507 }
 0x11d   : > { %v1597_v61 = vrot.slane %v9304_v13, 1  ;;  %v2299_v24 = vrot.slane %v9307_v43, 1  ;;  %v9343_v55 = vmul.f32 %v8682_v44, %v513_v48  ;;  %v13865_v17 = vrot.slane %v9147_v36, 2 }
 0x11e   : > { %13864 = vst [vmem:[#allocation23_spill] sm:$0xff] %v9336_v0  ;;  %v9349_v6 = vmul.f32 %v8615_v1, %v503_v62  ;;  %v13866_v13 = vrot.slane %v9182_v57, 2  ;;  %v9356_v50 = vmul.f32 %v8682_v44, %v503_v62  ;;  %v13643_v36 = vrot.slane %v9334_v41, 2 }
 0x11f   : > { %v1186_v15 = vsel %vm1151_vm1, %v13865_v17, %v1185_v27  ;;  %v1377_v27 = vmul.f32 %v8611_v63, %v503_v62  ;;  %v13867_v17 = vrot.slane %v9214_v8, 1  ;;  %v2300_v57 = vsel %vm857_vm0, %v2298_v52, %v2299_v24 }
 0x120   : > { %v1307_v23 = vadd.f32 %v1186_v15, %v1013_v21  ;;  %v1888_v43 = vsel %vm1151_vm1, %v13866_v13, %v1887_v9  ;;  %v1598_v21 = vsel %vm857_vm0, %v1596_v19, %v1597_v61  ;;  %v778_v9 = vmul.f32 %v8582_v39, %v508_v16  ;;  %v9374_v19 = vpop.permute.xlu0 %517 }
 0x121   : > { %v2011_v20 = vadd.f32 %v1888_v43, %v1718_v4  ;;  %v895_v0 = vsel %vm857_vm0, %v13867_v17, %v894_v18  ;;  %v2081_v4 = vmul.f32 %v8645_v26, %v503_v62  ;;  %v1484_v13 = vmul.f32 %v8606_v60, %v508_v16 }
 0x122   : > { %v671_v43 = vmul.f32 %v8593_v47, %v503_v62  ;;  %v1428_v38 = vadd.f32 %v1377_v27, %v1307_v23  ;;  %v2592_v8 = vrot.slane %v9356_v50, 2  ;;  %v2188_v17 = vmul.f32 %v8641_v22, %v508_v16 }
 0x123   : > { %v1015_v52 = vadd.f32 %v895_v0, %v9223_v40  ;;  %v1720_v48 = vadd.f32 %v1598_v21, %v9260_v45  ;;  %v2132_v44 = vadd.f32 %v2081_v4, %v2011_v20  ;;  %v2424_v15 = vadd.f32 %v2300_v57, %v9268_v10 }
 0x124   : > { %v13868_v42 = vrot.slane %v9217_v28, 2  ;;  %v896_v23 = vrot.slane %v778_v9, 1  ;;  %v1072_v50 = vmul.f32 %v8591_v46, %v508_v16  ;;  %v1378_v27 = vmul.f32 %v8611_v63, %v508_v16 }
 0x125   : > { %v13869_v58 = vrot.slane %v9349_v6, 2  ;;  %v13870_v40 = vrot.slane %v9242_v56, 2  ;;  %v1599_v20 = vrot.slane %v1484_v13, 1  ;;  %v2082_v10 = vmul.f32 %v8645_v26, %v508_v16 }
 0x126   : > { %v1189_v62 = vsel %vm1151_vm1, %v13868_v42, %v13643_v36  ;;  %v9394_v0 = vmul.f32 %v8582_v39, %v9374_v19  ;;  %v13871_v42 = vrot.slane %v9263_v59, 2  ;;  %v672_v21 = vmul.f32 %v8593_v47, %v508_v16  ;;  %v9409_v59 = vld [vmem:[%s13617_s1 + $0x8] ss:$0 sm:$0xff] }
 0x127   : > { %v1891_v45 = vsel %vm1151_vm1, %v13870_v40, %v13869_v58  ;;  %v2301_v57 = vrot.slane %v2188_v17, 1  ;;  %v9402_v9 = vmul.f32 %v8641_v22, %v9374_v19  ;;  %v1309_v56 = vadd.f32 %v1189_v62, %v1015_v52 }
 0x128   : > { %v2593_v28 = vsel %vm1151_vm1, %v13871_v42, %v2592_v8  ;;  %v2013_v58 = vadd.f32 %v1891_v45, %v1720_v48  ;;  %v1777_v13 = vmul.f32 %v8615_v1, %v508_v16  ;;  %v1017_v40 = vadd.f32 %v896_v23, %v672_v21 }
 0x129   : > { %v2717_v4 = vadd.f32 %v2593_v28, %v2424_v15  ;;  %v1190_v36 = vrot.slane %v1072_v50, 2  ;;  %v1429_v32 = vadd.f32 %v1378_v27, %v9290_v37  ;;  %v2481_v17 = vmul.f32 %v9409_v59, %v508_v16 }
 0x12a   : > { %v897_v42 = vsel %vm857_vm0, %v894_v18, %v896_v23  ;;  %v1600_v5 = vsel %vm857_vm0, %v1597_v61, %v1599_v20  ;;  %v2133_v48 = vadd.f32 %v2082_v10, %v9295_v35  ;;  %v899_v15 = vrot.slane %v9394_v0, 1 }
 0x12b   : > { %v2302_v52 = vsel %vm857_vm0, %v2299_v24, %v2301_v57  ;;  %v9419_v37 = vmul.f32 %v8606_v60, %v9374_v19  ;;  %v9424_v50 = vmul.f32 %v9409_v59, %v9374_v19  ;;  %v9427_v18 = vadd.f32 %v8761_v31, %v2717_v4 }
 0x12c   : > { %v1892_v61 = vrot.slane %v1777_v13, 2  ;;  %v2134_v35 = vadd.f32 %v9327_v25, %v2013_v58  ;;  %v9432_v16 = vmul.f32 %v8591_v46, %v9374_v19  ;;  %v1311_v24 = vadd.f32 %v1190_v36, %v1017_v40 }
 0x12d   : > { %v1722_v23 = vadd.f32 %v1599_v20, %v1429_v32  ;;  %v2594_v27 = vrot.slane %v2481_v17, 2  ;;  %v1016_v45 = vadd.f32 %v897_v42, %v671_v43  ;;  %v2425_v10 = vadd.f32 %v2302_v52, %v2132_v44 }
 0x12e   : > { %v2426_v28 = vadd.f32 %v2301_v57, %v2133_v48  ;;  %v1721_v21 = vadd.f32 %v1600_v5, %v1428_v38  ;;  %v13872_v62 = vrot.slane %v9275_v14, 1  ;;  %v1602_v4 = vrot.slane %v9419_v37, 1 }
 0x12f   : > { %v9442_v25 = vmul.f32 %v8615_v1, %v9374_v19  ;;  %v13873_v58 = vrot.slane %v9402_v9, 1  ;;  %v13874_v32 = vrot.slane %v9330_v3, 1  ;;  %v2597_v5 = vrot.slane %v9424_v50, 2 }
 0x130   : > { %v900_v31 = vsel %vm857_vm0, %v13872_v62, %v899_v15  ;;  %v2817_v38 = vmax.f32 %v9258_v11, %v9427_v18  ;;  %v1193_v14 = vrot.slane %v9432_v16, 2  ;;  %v1430_v20 = vadd.f32 %v9320_v2, %v1309_v56  ;;  %v9464_v18 = vpop.permute.xlu1 %527  ;;  %v523_v2 = vpop.permute.xlu0 %522 }
 0x131   : > { %v2305_v44 = vsel %vm857_vm0, %v13874_v32, %v13873_v58  ;;  %v9454_v57 = vadd.f32 %v1892_v61, %v1722_v23  ;;  %v2595_v13 = vsel %vm1151_vm1, %v2592_v8, %v2594_v27  ;;  %v13875_v40 = vrot.slane %v9334_v41, 2 }
 0x132   : > { %v2427_v43 = vadd.f32 %v2305_v44, %v2134_v35  ;;  %v1018_v17 = vadd.f32 %v900_v31, %v9298_v12  ;;  %v2718_v42 = vadd.f32 %v2595_v13, %v2425_v10  ;;  %v2719_v48 = vadd.f32 %v2594_v27, %v2426_v28 }
 0x133   : > { %v1191_v3 = vsel %vm1151_vm1, %v13875_v40, %v1190_v36  ;;  %v13876_v11 = vrot.slane %v9349_v6, 2  ;;  %v13877_v8 = vrot.slane %v9315_v33, 1  ;;  %v1895_v36 = vrot.slane %v9442_v25, 2 }
 0x134   : > { %v1310_v52 = vadd.f32 %v1191_v3, %v1016_v45  ;;  %v13878_v12 = vrot.slane %v9343_v55, 2  ;;  %v13879_v23 = vrot.slane %v9278_v51, 2  ;;  %v674_v45 = vmul.f32 %v8593_v47, %v9374_v19 }
 0x135   : > { %v1893_v62 = vsel %vm1151_vm1, %v13876_v11, %v1892_v61  ;;  %v1603_v41 = vsel %vm857_vm0, %v13877_v8, %v1602_v4  ;;  %v1380_v61 = vmul.f32 %v8611_v63, %v9374_v19  ;;  %v9488_v55 = vmul.f32 %v8606_v60, %v9464_v18 }
 0x136   : > { %v2014_v56 = vadd.f32 %v1893_v62, %v1721_v21  ;;  %v2598_v6 = vsel %vm1151_vm1, %v13878_v12, %v2597_v5  ;;  %v1194_v33 = vsel %vm1151_vm1, %v13879_v23, %v1193_v14  ;;  %v1723_v27 = vadd.f32 %v1603_v41, %v1430_v20  ;;  %v9494_v21 = vld [vmem:[%s13618_s2] ss:$0 sm:$0xff] }
 0x137   : > { %v2720_v35 = vadd.f32 %v2598_v6, %v2427_v43  ;;  %v1312_v10 = vadd.f32 %v1194_v33, %v1018_v17  ;;  %v781_v28 = vmul.f32 %v8582_v39, %v523_v2  ;;  %v9497_v51 = vadd.f32 %v9494_v21, %v2718_v42 }
 0x138   : > { %v9500_v31 = vadd.f32 %v9494_v21, %v2719_v48  ;;  %v1431_v58 = vadd.f32 %v1380_v61, %v1310_v52  ;;  %v2084_v32 = vmul.f32 %v8645_v26, %v9374_v19  ;;  %v1382_v44 = vmul.f32 %v8611_v63, %v9464_v18 }
 0x139   : > { %v13880_v43 = vrot.slane %v9323_v29, 2  ;;  %v1381_v13 = vmul.f32 %v8611_v63, %v523_v2  ;;  %v1487_v40 = vmul.f32 %v8606_v60, %v523_v2  ;;  %v9514_v17 = vadd.f32 %v9494_v21, %v2720_v35  ;;  %v9537_v35 = vpop.permute.xlu0 %532 }
 0x13a   : > { %v2135_v3 = vadd.f32 %v2084_v32, %v2014_v56  ;;  %v9518_v19 = vmul.f32 %v8615_v1, %v9464_v18  ;;  %v9520_v48 = vadd.f32 %v1382_v44, %v1312_v10  ;;  %v1606_v52 = vrot.slane %v9488_v55, 1 }
 0x13b   : > { %v1896_v20 = vsel %vm1151_vm1, %v13880_v43, %v1895_v36  ;;  %v901_v29 = vrot.slane %v781_v28, 1  ;;  %v1432_v11 = vadd.f32 %v1381_v13, %v1311_v24  ;;  %v2086_v62 = vmul.f32 %v8645_v26, %v9464_v18  ;;  %v9552_v13 = vpop.permute.xlu1 %537 }
 0x13c   : > { %v2016_v42 = vadd.f32 %v1896_v20, %v1723_v27  ;;  %v9527_v56 = vmul.f32 %v8641_v22, %v9464_v18  ;;  %v9531_v8 = vmul.f32 %v9409_v59, %v9464_v18  ;;  %v2191_v41 = vmul.f32 %v8641_v22, %v523_v2 }
 0x13d   : > { %v675_v12 = vmul.f32 %v8593_v47, %v523_v2  ;;  %v1075_v6 = vmul.f32 %v8591_v46, %v523_v2  ;;  %v1604_v61 = vrot.slane %v1487_v40, 1  ;;  %v1780_v24 = vmul.f32 %v8615_v1, %v523_v2  ;;  %v9611_v50 = vpop.permute.xlu0 %542 }
 0x13e   : > { %v9540_v23 = vmax.f32 %v2817_v38, %v9514_v17  ;;  %v1899_v33 = vrot.slane %v9518_v19, 2  ;;  %v9543_v27 = vadd.f32 %v2086_v62, %v2016_v42  ;;  %v2085_v10 = vmul.f32 %v8645_v26, %v523_v2 }
 0x13f   : > { %v902_v55 = vsel %vm857_vm0, %v899_v15, %v901_v29  ;;  %v1020_v28 = vadd.f32 %v901_v29, %v675_v12  ;;  %v1725_v32 = vadd.f32 %v1604_v61, %v1432_v11  ;;  %v2484_v44 = vmul.f32 %v9409_v59, %v523_v2 }
 0x140   : > { %v2308_v43 = vrot.slane %v9527_v56, 1  ;;  %v2306_v38 = vrot.slane %v2191_v41, 1  ;;  %v1489_v40 = vmul.f32 %v8606_v60, %v9537_v35  ;;  %v1195_v19 = vrot.slane %v1075_v6, 2 }
 0x141   : > { %v1605_v0 = vsel %vm857_vm0, %v1602_v4, %v1604_v61  ;;  %v1897_v15 = vrot.slane %v1780_v24, 2  ;;  %v2136_v42 = vadd.f32 %v2085_v10, %v9454_v57  ;;  %v1019_v29 = vadd.f32 %v902_v55, %v674_v45 }
 0x142   : > { %v1724_v11 = vadd.f32 %v1605_v0, %v1431_v58  ;;  %v2193_v62 = vmul.f32 %v8641_v22, %v9537_v35  ;;  %v1314_v56 = vadd.f32 %v1195_v19, %v1020_v28  ;;  %v2599_v12 = vrot.slane %v2484_v44, 2 }
 0x143   : > { %v2018_v41 = vadd.f32 %v1897_v15, %v1725_v32  ;;  %v1384_v6 = vmul.f32 %v8611_v63, %v9552_v13  ;;  %v13881_v37 = vrot.slane %v9402_v9, 1  ;;  %v9570_v57 = vmul.f32 %v8606_v60, %v9552_v13 }
 0x144   : > { %v1607_v61 = vrot.slane %v1489_v40, 1  ;;  %v9574_v45 = vmul.f32 %v8615_v1, %v9537_v35  ;;  %v2429_v58 = vadd.f32 %v2306_v38, %v2136_v42  ;;  %v2194_v24 = vmul.f32 %v8641_v22, %v9552_v13 }
 0x145   : > { %v2307_v4 = vsel %vm857_vm0, %v13881_v37, %v2306_v38  ;;  %v1196_v10 = vsel %vm1151_vm1, %v1193_v14, %v1195_v19  ;;  %v1898_v9 = vsel %vm1151_vm1, %v1895_v36, %v1897_v15  ;;  %v2309_v44 = vrot.slane %v2193_v62, 1 }
 0x146   : > { %v2428_v55 = vadd.f32 %v2307_v4, %v2135_v3  ;;  %v1313_v28 = vadd.f32 %v1196_v10, %v1019_v29  ;;  %v2017_v32 = vadd.f32 %v1898_v9, %v1724_v11  ;;  %v9586_v40 = vmul.f32 %v8615_v1, %v9552_v13  ;;  %v9606_v11 = vpop.permute.xlu1 %547 }
 0x147   : > { %v2088_v38 = vmul.f32 %v8645_v26, %v9552_v13  ;;  %v9592_v16 = vmul.f32 %v9409_v59, %v9552_v13  ;;  %v2486_v25 = vmul.f32 %v9409_v59, %v9537_v35  ;;  %v1383_v14 = vmul.f32 %v8611_v63, %v9537_v35 }
 0x148   : > { %v1608_v36 = vsel %vm857_vm0, %v1606_v52, %v1607_v61  ;;  %v1900_v3 = vrot.slane %v9574_v45, 2  ;;  %v2087_v19 = vmul.f32 %v8645_v26, %v9537_v35  ;;  %v2600_v0 = vsel %vm1151_vm1, %v2597_v5, %v2599_v12  ;;  %v8127_v45 = vld [vmem:[%s13619_s3 + $0xd0] sm:$0xff]  }
 0x149   : > { %v1435_v15 = vadd.f32 %v1384_v6, %v1314_v56  ;;  %v1609_v42 = vrot.slane %v9570_v57, 1  ;;  %v2311_v29 = vrot.slane %v2194_v24, 1  ;;  %v2139_v62 = vadd.f32 %v2088_v38, %v2018_v41 }
 0x14a   : > { %v1434_v37 = vadd.f32 %v1383_v14, %v1313_v28  ;;  %v2138_v4 = vadd.f32 %v2087_v19, %v2017_v32  ;;  %v2310_v52 = vsel %vm857_vm0, %v2308_v43, %v2309_v44  ;;  %v2722_v10 = vadd.f32 %v2599_v12, %v2429_v58 }
 0x14b   : > { %v2604_v9 = vrot.slane %v9592_v16, 2  ;;  %v2602_v2 = vrot.slane %v2486_v25, 2  ;;  %v1726_v20 = vadd.f32 %v1608_v36, %v9520_v48  ;;  %v2721_v5 = vadd.f32 %v2600_v0, %v2428_v55 }
 0x14c   : > { %v1902_v56 = vrot.slane %v9586_v40, 2  ;;  %v9616_v6 = vmul.f32 %v8641_v22, %v9606_v11  ;;  %v1901_v41 = vsel %vm1151_vm1, %v1899_v33, %v1900_v3  ;;  %v1610_v43 = vsel %vm857_vm0, %v1607_v61, %v1609_v42 }
 0x14d   : > { %v2312_v12 = vsel %vm857_vm0, %v2309_v44, %v2311_v29  ;;  %v2430_v57 = vadd.f32 %v2310_v52, %v9543_v27  ;;  %v2019_v48 = vadd.f32 %v1901_v41, %v1726_v20  ;;  %v2432_v58 = vadd.f32 %v2311_v29, %v2139_v62  ;;  %v8121_v20 = vld [vmem:[%s13619_s3 + $0xc0] sm:$0xff]   ;;  %v13884_v29 = vld [vmem:[#allocation18_spill] sm:$0xff] }
 0x14e   : > { %v1727_v24 = vadd.f32 %v1610_v43, %v1434_v37  ;;  %v2431_v55 = vadd.f32 %v2312_v12, %v2138_v4  ;;  %v2195_v28 = vmul.f32 %v8641_v22, %v9611_v50  ;;  %v13882_v32 = vrot.slane %v9531_v8, 2  ;;  %6997 = vmatprep.subr.bf16.mxu1 %v8121_v20  ;;  %v13886_v37 = vld [vmem:[#allocation13_spill] sm:$0xff]  ;;  %v13888_v41 = vld [vmem:[#allocation10_spill] sm:$0xff] }
 0x14f   : > { %v2605_v16 = vsel %vm1151_vm1, %v2602_v2, %v2604_v9  ;;  %v9632_v33 = vmul.f32 %v9409_v59, %v9606_v11  ;;  %v2089_v27 = vmul.f32 %v8645_v26, %v9611_v50  ;;  %v2314_v61 = vrot.slane %v9616_v6, 1  ;;  %v13889_v43 = vld [vmem:[#allocation9_spill] sm:$0xff] }
 0x150   : > { %v2603_v38 = vsel %vm1151_vm1, %v13882_v32, %v2602_v2  ;;  %v2313_v44 = vrot.slane %v2195_v28, 1  ;;  %v2488_v8 = vmul.f32 %v9409_v59, %v9611_v50  ;;  %v2416_v2 = vadd.f32 %v9106_v7, %v9014_v53  ;;  %v13891_v53 = vld [vmem:[#allocation14_spill] sm:$0xff]  ;;  %v13893_v28 = vld [vmem:[#allocation15_spill] sm:$0xff] }
 0x151   : > { %v2723_v25 = vadd.f32 %v2603_v38, %v2430_v57  ;;  %v2140_v14 = vadd.f32 %v2089_v27, %v2019_v48  ;;  %v13883_v36 = vrot.slane %v9069_v34, 1  ;;  %v2703_v0 = vadd.f32 %v8882_v54, %v8866_v49  ;;  %v13892_v57 = vld [vmem:[#allocation16_spill] sm:$0xff]  ;;  %v13894_v34 = vld [vmem:[#allocation11_spill] sm:$0xff] }
 0x152   : > { %v13885_v62 = vrot.slane %v13884_v29, 2  ;;  %v13887_v4 = vrot.slane %v13886_v37, 2  ;;  %v13890_v12 = vrot.slane %v13889_v43, 2  ;;  %v2706_v48 = vadd.f32 %v13892_v57, %v13891_v53  ;;  %v8122_v49 = vld [vmem:[%s13619_s3 + $0x80] sm:$0xff]  }
 0x153   : > { %v2417_v19 = vadd.f32 %v13883_v36, %v9083_v30  ;;  %v13895_v30 = vrot.slane %v13894_v34, 2  ;;  %v2724_v54 = vadd.f32 %v2605_v16, %v2431_v55  ;;  %v2607_v38 = vrot.slane %v9632_v33, 2  ;;  %6998 = vmatpush3.bf16.msra.mxu1 %v8122_v49  ;;  %v8124_v55 = vld [vmem:[%s13619_s3 + $0x88] sm:$0xff]   ;;  %v13897_v29 = vld [vmem:[#allocation12_spill] sm:$0xff] }
 0x154   : > { %v2580_v52 = vsel %vm1151_vm1, %v13887_v4, %v13885_v62  ;;  %v2704_v7 = vadd.f32 %v13890_v12, %v13888_v41  ;;  %v13896_v20 = vmov %v13885_v62  ;;  %v8123_v62 = vld [vmem:[%s13619_s3 + $0xc8] sm:$0xff]   ;;  %v2315_v37 = vsel %vm857_vm0, %v2313_v44, %v2314_v61 }
 0x155   : > { %v2707_v32 = vadd.f32 %v13895_v30, %v13893_v28  ;;  %v2709_v27 = vadd.f32 %v2580_v52, %v2416_v2  ;;  %v2710_v36 = vadd.f32 %v13896_v20, %v2417_v19  ;;  %v2606_v4 = vrot.slane %v2488_v8, 2  ;;  %v13898_v52 = vld [vmem:[#allocation8_spill] sm:$0xff]  ;;  %6999 = vmatprep.subr.bf16.mxu1 %v8123_v62  ;;  %v13899_v28 = vld [vmem:[#allocation17_spill] sm:$0xff]  ;;  %v8128_v30 = vld [vmem:[%s13619_s3 + $0x90] sm:$0xff]  }
 0x156   : > { %v2761_v41 = vadd.f32 %v9494_v21, %v2703_v0  ;;  %v2764_v43 = vadd.f32 %v9494_v21, %v2706_v48  ;;  %v2762_v16 = vadd.f32 %v9494_v21, %v2704_v7  ;;  %v2811_v44 = vmax.f32 %v13898_v52, %v13897_v29  ;;  %v9760_v29 = vld [vmem:[%s13619_s3 + $0x50] sm:$0xff]  }
 0x157   : > { %v2765_v2 = vadd.f32 %v9494_v21, %v2707_v32  ;;  %v9682_v19 = vadd.f32 %v9494_v21, %v2709_v27  ;;  %v9687_v8 = vadd.f32 %v9494_v21, %v2722_v10  ;;  %v1728_v0 = vadd.f32 %v1609_v42, %v1435_v15  ;;  %v9704_v15 = vld [vmem:[%s13619_s3 + $0x40] sm:$0xff]   ;;  %7000 = vmatpush3.bf16.msra.mxu1 %v8124_v55 }
 0x158   : > { %v2433_v12 = vadd.f32 %v2315_v37, %v2140_v14  ;;  %v2812_v53 = vmax.f32 %v2761_v41, %v2764_v43  ;;  %v9690_v57 = vadd.f32 %v9494_v21, %v2721_v5  ;;  %v1903_v7 = vsel %vm1151_vm1, %v1900_v3, %v1902_v56  ;;  %v9709_v42 = vld [vmem:[%s13619_s3] sm:$0xff]   ;;  %6975 = vmatprep.subr.bf16.mxu0 %v9704_v15  ;;  %v9742_v41 = vld [vmem:[%s13619_s3 + $0x8] sm:$0xff]   ;;  %v8131_v43 = vld [vmem:[%s13619_s3 + $0xd8] sm:$0xff]  }
 0x159   : > { %v9698_v48 = vadd.f32 %v9494_v21, %v2710_v36  ;;  %v2835_v34 = vmax.f32 %v2811_v44, %v13899_v28  ;;  %v2725_v3 = vadd.f32 %v2604_v9, %v2432_v58  ;;  %v9715_v10 = vadd.f32 %v9494_v21, %v2723_v25  ;;  %7001 = vmatprep.subr.bf16.mxu1 %v8127_v45 }
 0x15a   : > { %v2020_v5 = vadd.f32 %v1903_v7, %v1727_v24  ;;  %v2836_v14 = vmax.f32 %v2812_v53, %v9682_v19  ;;  %v9722_v32 = vadd.f32 %v9494_v21, %v2724_v54  ;;  %v2608_v49 = vsel %vm1151_vm1, %v2606_v4, %v2607_v38  ;;  %6976 = vmatpush3.bf16.msra.mxu0 %v9709_v42  ;;  %v9737_v4 = vld [vmem:[%s13619_s3 + $0x48] sm:$0xff]   ;;  %v13901_v7 = vld [vmem:[#allocation20_spill] sm:$0xff] }
 0x15b   : > { %v2813_v27 = vmax.f32 %v2762_v16, %v2765_v2  ;;  %v2867_v9 = vrot.slane %v2835_v34, 1  ;;  %v2090_v58 = vmul.f32 %v8645_v26, %v9606_v11  ;;  %v2726_v24 = vadd.f32 %v2608_v49, %v2433_v12  ;;  %7002 = vmatpush3.bf16.msra.mxu1 %v8128_v30  ;;  %v8132_v2 = vld [vmem:[%s13619_s3 + $0x98] sm:$0xff]   ;;  %6977 = vmatprep.subr.bf16.mxu0 %v9737_v4 }
 0x15c   : > { %v2923_v25 = vrot.slane %v2836_v14, 2  ;;  %v2947_v20 = vrot.slane %v2836_v14, 1  ;;  %v2021_v54 = vadd.f32 %v1902_v56, %v1728_v0  ;;  %v2891_v37 = vrot.slane %v2835_v34, 2  ;;  %7003 = vmatprep.subr.bf16.mxu1 %v8131_v43  ;;  %v9785_v30 = vld [vmem:[%s13619_s3 + $0x58] sm:$0xff]  }
 0x15d   : > { %v2837_v36 = vmax.f32 %v2813_v27, %v9698_v48  ;;  %v2883_v62 = vmax.f32 %v2835_v34, %v2867_v9  ;;  %v9748_v40 = vadd.f32 %v9494_v21, %v2725_v3  ;;  %v2820_v56 = vmax.f32 %v9514_v17, %v9715_v10  ;;  %v8135_v17 = vld [vmem:[%s13619_s3 + $0xe0] sm:$0xff]   ;;  %v9777_v34 = vld [vmem:[%s13619_s3 + $0x10] sm:$0xff]  }
 0x15e   : > { %v9752_v55 = vadd.f32 %v2090_v58, %v2020_v5  ;;  %v2963_v16 = vmax.f32 %v2836_v14, %v2947_v20  ;;  %v9769_v12 = vadd.f32 %v9494_v21, %v2726_v24  ;;  %v2770_v28 = vadd.f32 %v9494_v21, %v13901_v7  ;;  %6978 = vmatpush3.bf16.msra.mxu0 %v9742_v41  ;;  %v9779_v14 = vpop.permute.xlu0 %552  ;;  %v8136_v27 = vld [vmem:[%s13619_s3 + $0xa0] sm:$0xff]  }
 0x15f   : > { %v2907_v44 = vmax.f32 %v2883_v62, %v2891_v37  ;;  %v2939_v0 = vmax.f32 %v2883_v62, %v2923_v25  ;;  %v2987_v45 = vrot.slane %v2837_v36, 2  ;;  %6979 = vmatprep.subr.bf16.mxu0 %v9760_v29  ;;  %7004 = vmatpush3.bf16.msra.mxu1 %v8132_v2  ;;  %v2091_v62 = vmul.f32 %v8645_v26, %v9779_v14 }
 0x160   : > { %13900 = vst [vmem:[#allocation18_spill] sm:$0xff] %v9769_v12  ;;  %v2971_v53 = vmax.f32 %v2963_v16, %v2923_v25  ;;  %v13902_v25 = vld [vmem:[#allocation19_spill] sm:$0xff]  ;;  %7005 = vmatprep.subr.bf16.mxu1 %v8135_v17  ;;  %v2197_v37 = vmul.f32 %v8641_v22, %v9779_v14  ;;  %v2490_v43 = vmul.f32 %v9409_v59, %v9779_v14 }
 0x161   : > { %v3019_v3 = vrot.slane %v2907_v44, 1  ;;  %v3035_v10 = vrot.slane %v2907_v44, 2  ;;  %v3059_v5 = vrot.slane %v2939_v0, 3  ;;  %v3003_v9 = vmax.f32 %v2963_v16, %v2987_v45 }
 0x162   : > { %v3083_v49 = vrot.slane %v2971_v53, 4  ;;  %v3099_v58 = vrot.slane %v2971_v53, 5  ;;  %v2771_v20 = vadd.f32 %v9494_v21, %v13902_v25  ;;  %6980 = vmatpush3.bf16.msra.mxu0 %v9777_v34  ;;  %v9802_v16 = vmax.f32 %v2820_v56, %v9769_v12 }
 0x163   : > { %v3156_v24 = vsel %vm3155_vm2, %v2907_v44, %v3019_v3  ;;  %v2815_v44 = vmax.f32 %v9682_v19, %v2770_v28  ;;  %6981 = vmatprep.subr.bf16.mxu0 %v9785_v30  ;;  %v3115_v0 = vrot.slane %v2971_v53, 6  ;;  %v2142_v7 = vadd.f32 %v2091_v62, %v2021_v54  ;;  %7006 = vmatpush3.bf16.msra.mxu1 %v8136_v27  ;;  %v9816_v19 = vld [vmem:[%s13619_s3 + $0x18] sm:$0xff]   ;;  %v8139_v53 = vld [vmem:[%s13619_s3 + $0xe8] sm:$0xff]  }
 0x164   : > { %v3165_v36 = vsel %vm3164_vm3, %v3156_v24, %v3035_v10  ;;  %v2316_v45 = vrot.slane %v2197_v37, 1  ;;  %v3139_v3 = vrot.slane %v3003_v9, 7  ;;  %v2609_v10 = vrot.slane %v2490_v43, 2  ;;  %v13903_v24 = vld [vmem:[#allocation23_spill] sm:$0xff]  ;;  %v8140_v54 = vld [vmem:[%s13619_s3 + $0xa8] sm:$0xff]   ;;  %v9832_v9 = vld [vmem:[%s13619_s3 + $0x60] sm:$0xff]   ;;  %7007 = vmatprep.subr.bf16.mxu1 %v8139_v53 }
 0x165   : > { %v3174_v2 = vsel %vm3173_vm4, %v3165_v36, %v3059_v5  ;;  %v9811_v56 = vadd.f32 %v9494_v21, %v13903_v24  ;;  %v2816_v5 = vmax.f32 %v9698_v48, %v2771_v20  ;;  %13904 = vst [vmem:[#allocation13_spill] sm:$0xff] %v9832_v9  ;;  %v13647_v36 = vmov 0.0   ;;  %v9851_v48 = vld [vmem:[%s13619_s3 + $0x20] sm:$0xff]   ;;  %v13908_v37 = vld [vmem:[#allocation22_spill] sm:$0xff] }
 0x166   : > { %v3183_v17 = vsel %vm3182_vm5, %v3174_v2, %v3083_v49  ;;  %v2317_v49 = vsel %vm857_vm0, %v2314_v61, %v2316_v45  ;;  %v2435_v27 = vadd.f32 %v2316_v45, %v2142_v7  ;;  %v9839_v62 = vrot.slane %v13647_v36, 4  ;;  %6982 = vmatpush3.bf16.msra.mxu0 %v9816_v19  ;;  %13907 = vst [vmem:[#allocation14_spill] sm:$0xff] %v9851_v48  ;;  %v9863_v7 = vld [vmem:[%s13619_s3 + $0x68] sm:$0xff]  }
 0x167   : > { %v3192_v59 = vsel %vm3191_vm6, %v3183_v17, %v3099_v58  ;;  %v8143_v58 = vld [vmem:[%s13619_s3 + $0xf0] sm:$0xff]   ;;  %v9842_v6 = vrot.slane %v13647_v36, 1  ;;  %v9845_v61 = vrot.slane %v13647_v36, 2  ;;  %v9855_v43 = vadd.f32 %v9494_v21, %v13908_v37  ;;  %6983 = vmatprep.subr.bf16.mxu0 %v9832_v9  ;;  %13910 = vst [vmem:[#allocation16_spill] sm:$0xff] %v9863_v7  ;;  %7008 = vmatpush3.bf16.msra.mxu1 %v8140_v54 }
 0x168   : > { %v3200_v28 = vsel %vm1151_vm1, %v3192_v59, %v3115_v0  ;;  %v2839_v2 = vmax.f32 %v2815_v44, %v9811_v56  ;;  %v13909_v0 = vld [vmem:[#allocation21_spill] sm:$0xff]  ;;  %v2434_v45 = vadd.f32 %v2317_v49, %v9752_v55  ;;  %v2728_v59 = vadd.f32 %v2609_v10, %v2435_v27  ;;  %v8144_v44 = vld [vmem:[%s13619_s3 + $0xb0] sm:$0xff]   ;;  %7009 = vmatprep.subr.bf16.mxu1 %v8143_v58 }
 0x169   : > { %v3208_v25 = vsel %vm857_vm0, %v3200_v28, %v3139_v3  ;;  %13905 = vst [vmem:[#allocation10_spill] sm:$0xff] %v9842_v6  ;;  %13906 = vst [vmem:[#allocation9_spill] sm:$0xff] %v9845_v61  ;;  %v2868_v17 = vrot.slane %v13909_v0, 1  ;;  %v2610_v3 = vsel %vm1151_vm1, %v2607_v38, %v2609_v10  ;;  %v9870_v24 = vrot.slane %v13647_v36, 3 }
 0x16a   : > { %v3224_v20 = vrot.slane %v3208_v25, 6  ;;  %v2892_v33 = vrot.slane %v13909_v0, 2  ;;  %6984 = vmatpush3.bf16.msra.mxu0 %v9851_v48  ;;  %v2840_v27 = vmax.f32 %v2816_v5, %v9855_v43  ;;  %v2948_v37 = vrot.slane %v2839_v2, 1 }
 0x16b   : > { %13911 = vst [vmem:[#allocation15_spill] sm:$0xff] %v9870_v24  ;;  %v2884_v55 = vmax.f32 %v13909_v0, %v2868_v17  ;;  %6985 = vmatprep.subr.bf16.mxu0 %v9863_v7  ;;  %v2727_v52 = vadd.f32 %v2610_v3, %v2434_v45  ;;  %7010 = vmatpush3.bf16.msra.mxu1 %v8144_v44  ;;  %v13915_v48 = vmov 0.0  }
 0x16c   : > { %v9876_v53 = vsel %vm3164_vm3, 0.0, %v3224_v20  ;;  %v9879_v28 = vsel %vm3164_vm3, %v3224_v20, 0.0  ;;  %v2924_v20 = vrot.slane %v2839_v2, 2  ;;  %v2964_v12 = vmax.f32 %v2839_v2, %v2948_v37 }
 0x16d   : > { %13912 = vst [vmem:[#allocation11_spill] sm:$0xff] %v9876_v53  ;;  %v3409_v38 = vrot.slane %v9876_v53, 4  ;;  %v3410_v10 = vrot.slane %v9879_v28, 4  ;;  %v3403_v54 = vrot.slane %v9876_v53, 3  ;;  %v3404_v49 = vrot.slane %v9879_v28, 3 }
 0x16e   : > { %v2908_v25 = vmax.f32 %v2884_v55, %v2892_v33  ;;  %v2940_v33 = vmax.f32 %v2884_v55, %v2924_v20  ;;  %v7771_v7 = vpack.i.bf16 %v9842_v6, %v13915_v48  ;;  %v9908_v45 = vadd.f32 %v9494_v21, %v2728_v59  ;;  %v8147_v59 = vld [vmem:[%s13619_s3 + $0xf8] sm:$0xff]  }
 0x16f   : > { %v9892_v58 = vsel %vm3182_vm5, %v3409_v38, %v3410_v10  ;;  %v9895_v17 = vsel %vm3191_vm6, %v3403_v54, %v3404_v49  ;;  %v2818_v38 = vmax.f32 %v9811_v56, %v9497_v51  ;;  %v7781_v2 = vpack.i.bf16 %v9870_v24, %v9845_v61  ;;  %7011 = vmatprep.subr.bf16.mxu1 %v8147_v59 }
 0x170   : > { %13913 = vst [vmem:[#allocation12_spill] sm:$0xff] %v9892_v58  ;;  %13914 = vst [vmem:[#allocation8_spill] sm:$0xff] %v9895_v17  ;;  %v7761_v36 = vpack.i.bf16 %v9876_v53, %v9892_v58  ;;  %v7756_v5 = vpack.i.bf16 %v9839_v62, %v9895_v17  ;;  %v3020_v0 = vrot.slane %v2908_v25, 1  ;;  %v3036_v9 = vrot.slane %v2908_v25, 2 }
 0x171   : > { %13916 = vst [vmem:[#allocation17_spill] sm:$0xff] %v9908_v45  ;;  %v2972_v3 = vmax.f32 %v2964_v12, %v2924_v20  ;;  %v2988_v44 = vrot.slane %v2840_v27, 2  ;;  %v9913_v55 = vadd.f32 %v9494_v21, %v2727_v52  ;;  %v3393_v51 = vrot.slane %v9876_v53, 1  ;;  %v8148_v21 = vld [vmem:[%s13619_s3 + $0xb8] sm:$0xff]  }
 0x172   : > { %7762 = vrot.lane.b32.xlu0 %v7761_v36, %s8436_s16  ;;  %7757 = vrot.lane.b32.xlu1 %v7756_v5, %s8437_s17  ;;  %v3157_v10 = vsel %vm3155_vm2, %v2908_v25, %v3020_v0  ;;  %v2842_v56 = vmax.f32 %v2818_v38, %v9690_v57  ;;  %v9921_v36 = vld [vmem:[%s13619_s3 + $0x28] sm:$0xff]   ;;  %v3060_v54 = vrot.slane %v2940_v33, 3  ;;  %v2819_v27 = vmax.f32 %v9855_v43, %v9500_v31  ;;  %v9934_v25 = vld [vmem:[%s13619_s3 + $0x70] sm:$0xff]  }
 0x173   : > { %13917 = vst [vmem:[#allocation20_spill] sm:$0xff] %v9913_v55  ;;  %13918 = vst [vmem:[#allocation19_spill] sm:$0xff] %v9921_v36  ;;  %v3004_v52 = vmax.f32 %v2964_v12, %v2988_v44  ;;  %v3084_v49 = vrot.slane %v2972_v3, 4  ;;  %v3166_v20 = vsel %vm3164_vm3, %v3157_v10, %v3036_v9  ;;  %v2869_v37 = vrot.slane %v9540_v23, 1  ;;  %6986 = vmatpush3.bf16.msra.mxu0 %v9921_v36 }
 0x174   : > { %v2925_v0 = vrot.slane %v2842_v56, 2  ;;  %v2949_v5 = vrot.slane %v2842_v56, 1  ;;  %v3100_v12 = vrot.slane %v2972_v3, 5  ;;  %v3175_v33 = vsel %vm3173_vm4, %v3166_v20, %v3060_v54  ;;  %7012 = vmatpush3.bf16.msra.mxu1 %v8148_v21  ;;  %6987 = vmatprep.subr.bf16.mxu0 %v9934_v25 }
 0x175   : > { %v3394_v31 = vrot.slane %v9879_v28, 1  ;;  %v2843_v43 = vmax.f32 %v2819_v27, %v9687_v8  ;;  %v3116_v38 = vrot.slane %v2972_v3, 6  ;;  %v3184_v9 = vsel %vm3182_vm5, %v3175_v33, %v3084_v49  ;;  %7624 = vmatprep.subr.bf16.mxu1 %v13915_v48 }
 0x176   : > { %7772 = vrot.lane.b32.xlu0 %v7771_v7, %s8437_s17  ;;  %v2885_v44 = vmax.f32 %v9540_v23, %v2869_v37  ;;  %v2965_v10 = vmax.f32 %v2842_v56, %v2949_v5  ;;  %v3140_v36 = vrot.slane %v3004_v52, 7  ;;  %v3193_v59 = vsel %vm3191_vm6, %v3184_v9, %v3100_v12  ;;  %v9959_v52 = vld [vmem:[%s13619_s3 + $0x30] sm:$0xff]  }
 0x177   : > { %v13919_v7 = vmax.f32 %v9690_v57, %v9722_v32  ;;  %v2870_v27 = vrot.slane %v9802_v16, 1  ;;  %v3201_v3 = vsel %vm1151_vm1, %v3193_v59, %v3116_v38  ;;  %v13920_v21 = vrot.slane %v9540_v23, 2  ;;  %6988 = vmatpush3.bf16.msra.mxu0 %v9959_v52  ;;  %v9980_v59 = vld [vmem:[%s13619_s3 + $0x38] sm:$0xff]  }
 0x178   : > { %v2941_v49 = vmax.f32 %v2885_v44, %v2925_v0  ;;  %v2973_v20 = vmax.f32 %v2965_v10, %v2925_v0  ;;  %v9963_v57 = vsel %vm857_vm0, %v3201_v3, %v3140_v36  ;;  %v7776_v32 = vpack.i.bf16 %v9845_v61, %v9842_v6  ;;  %v364_v0 = vld [vmem:[%s8544_s25 + $0x108] sm:$0xff]  ;;  %13922 = vst [vmem:[#allocation22_spill] sm:$0xff] %v9980_v59 }
 0x179   : > { %v2845_v54 = vmax.f32 %v13919_v7, %v9913_v55  ;;  %v2909_v56 = vmax.f32 %v2885_v44, %v13920_v21  ;;  %v2989_v37 = vrot.slane %v2843_v43, 2  ;;  %v2886_v23 = vmax.f32 %v9802_v16, %v2870_v27 }
 0x17a   : > { %7782 = vrot.lane.b32.xlu0 %v7781_v2, %s8438_s22  ;;  %v13655_v5 = vrot.slane %v9963_v57, 6  ;;  %v3061_v38 = vrot.slane %v2941_v49, 3  ;;  %v9974_v2 = vld [vmem:[%s13619_s3 + $0x78] sm:$0xff]   ;;  %v3395_v36 = vsel %vm857_vm0, %v3393_v51, %v3394_v31  ;;  %v3085_v44 = vrot.slane %v2973_v20, 4 }
 0x17b   : > { %v3021_v12 = vrot.slane %v2909_v56, 1  ;;  %v3037_v33 = vrot.slane %v2909_v56, 2  ;;  %13921 = vst [vmem:[#allocation23_spill] sm:$0xff] %v9974_v2  ;;  %v3005_v9 = vmax.f32 %v2965_v10, %v2989_v37  ;;  %v3101_v43 = vrot.slane %v2973_v20, 5  ;;  %6989 = vmatprep.subr.bf16.mxu0 %v9974_v2 }
 0x17c   : > { %v9985_v7 = vsel %vm3164_vm3, 0.0, %v13655_v5  ;;  %v13924_v3 = vrot.slane %v9802_v16, 2  ;;  %v2926_v49 = vrot.slane %v2845_v54, 2  ;;  %v2822_v10 = vmax.f32 %v9687_v8, %v9748_v40  ;;  %6990 = vmatpush3.bf16.msra.mxu0 %v9980_v59 }
 0x17d   : > { %13923 = vst [vmem:[#allocation21_spill] sm:$0xff] %v9985_v7  ;;  %v3158_v27 = vsel %vm3155_vm2, %v2909_v56, %v3021_v12  ;;  %v9992_v51 = vpack.i.bf16 %v3395_v36, %v9985_v7  ;;  %v2950_v37 = vrot.slane %v2845_v54, 1  ;;  %v3117_v16 = vrot.slane %v2973_v20, 6 }
 0x17e   : > { %v2910_v21 = vmax.f32 %v2886_v23, %v13924_v3  ;;  %557 = vperm.xlu0 %7754, %v364_v0   ;;  %v3167_v31 = vsel %vm3164_vm3, %v3158_v27, %v3037_v33  ;;  %v2942_v61 = vmax.f32 %v2886_v23, %v2926_v49  ;;  %v2846_v0 = vmax.f32 %v2822_v10, %v9908_v45 }
 0x17f   : > { %v3176_v5 = vsel %vm3173_vm4, %v3167_v31, %v3061_v38  ;;  %7767 = vrot.lane.b32.xlu1 %v9992_v51, %s8438_s22  ;;  %v2966_v33 = vmax.f32 %v2845_v54, %v2950_v37  ;;  %v3141_v27 = vrot.slane %v3005_v9, 7 }
 0x180   : > { %v3022_v56 = vrot.slane %v2910_v21, 1  ;;  %v3038_v12 = vrot.slane %v2910_v21, 2  ;;  %v3185_v3 = vsel %vm3182_vm5, %v3176_v5, %v3085_v44  ;;  %v3062_v40 = vrot.slane %v2942_v61, 3 }
 0x181   : > { %v3194_v8 = vsel %vm3191_vm6, %v3185_v3, %v3101_v43  ;;  %v2974_v31 = vmax.f32 %v2966_v33, %v2926_v49  ;;  %v2990_v54 = vrot.slane %v2846_v0, 2  ;;  %v365_v0 = vld [vmem:[%s8544_s25 + $0x110] sm:$0xff] }
 0x182   : > { %v3159_v38 = vsel %vm3155_vm2, %v2910_v21, %v3022_v56  ;;  %v3202_v23 = vsel %vm1151_vm1, %v3194_v8, %v3117_v16 }
 0x183   : > { %v3168_v6 = vsel %vm3164_vm3, %v3159_v38, %v3038_v12  ;;  %v3210_v55 = vsel %vm857_vm0, %v3202_v23, %v3141_v27  ;;  %7777 = vrot.lane.b32.xlu1 %v7776_v32, %s8436_s16  ;;  %v3086_v44 = vrot.slane %v2974_v31, 4  ;;  %v3102_v43 = vrot.slane %v2974_v31, 5  ;;  %v366_v23 = vld [vmem:[%s8544_s25 + $0x118] sm:$0xf] }
 0x184   : > { %v3177_v20 = vsel %vm3173_vm4, %v3168_v6, %v3062_v40  ;;  %v3226_v5 = vrot.slane %v3210_v55, 6  ;;  %v3006_v55 = vmax.f32 %v2966_v33, %v2990_v54  ;;  %v3118_v56 = vrot.slane %v2974_v31, 6 }
 0x185   : > { %v3186_v21 = vsel %vm3182_vm5, %v3177_v20, %v3086_v44  ;;  %v3399_v33 = vrot.slane %v9876_v53, 2  ;;  %v3400_v27 = vrot.slane %v9879_v28, 2  ;;  %v367_v44 = vld [vmem:[%s8544_s25 + $0x120] sm:$0xff]  ;;  %v13928_v54 = vrot.slane %v9963_v57, 6 }
 0x186   : > { %v10011_v9 = vsel %vm3164_vm3, 0.0, %v3226_v5  ;;  %v10014_v61 = vsel %vm3164_vm3, %v3226_v5, 0.0  ;;  %v3195_v12 = vsel %vm3191_vm6, %v3186_v21, %v3102_v43  ;;  %v3142_v40 = vrot.slane %v3006_v55, 7  ;;  %v368_v5 = vld [vmem:[%s8544_s25 + $0x128] sm:$0xff] }
 0x187   : > { %13925 = vst [vmem:[#allocation24_spill] sm:$0xff] %v10011_v9  ;;  %13926 = vst [vmem:[#allocation25_spill] sm:$0xff] %v10014_v61  ;;  %v7786_v49 = vpack.i.bf16 %v10011_v9, %v9876_v53  ;;  %v3472_v6 = vrot.slane %v10011_v9, 1  ;;  %v3473_v32 = vrot.slane %v10014_v61, 1  ;;  %v3481_v10 = vrot.slane %v10011_v9, 2 }
 0x188   : > { %v3482_v37 = vrot.slane %v10014_v61, 2  ;;  %v3203_v8 = vsel %vm1151_vm1, %v3195_v12, %v3118_v56  ;;  %v10040_v31 = vsel %vm1151_vm1, %v3399_v33, %v3400_v27  ;;  %v10050_v43 = vsel %vm3164_vm3, %v13928_v54, 0.0 }
 0x189   : > { %7787 = vrot.lane.b32.xlu1 %v7786_v49, %s8437_s17  ;;  %v10026_v16 = vsel %vm857_vm0, %v3472_v6, %v3473_v32  ;;  %13929 = vst [vmem:[#allocation27_spill] sm:$0xff] %v10050_v43  ;;  %v369_v49 = vld [vmem:[%s8544_s25 + $0x130] sm:$0xf]  ;;  %v3436_v6 = vrot.slane %v10050_v43, 1  ;;  %v3444_v55 = vrot.slane %v9985_v7, 2  ;;  %v3453_v12 = vrot.slane %v9985_v7, 3 }
 0x18a   : > { %v7791_v3 = vpack.i.bf16 %v10026_v16, %v3395_v36  ;;  %v10035_v38 = vsel %vm1151_vm1, %v3481_v10, %v3482_v37  ;;  %v3211_v36 = vsel %vm857_vm0, %v3203_v8, %v3142_v40  ;;  %v3445_v10 = vrot.slane %v10050_v43, 2 }
 0x18b   : > { %13927 = vst [vmem:[#allocation26_spill] sm:$0xff] %v10035_v38  ;;  %v7796_v20 = vpack.i.bf16 %v10035_v38, %v10040_v31  ;;  %v3227_v28 = vrot.slane %v3211_v36, 6  ;;  %v3435_v40 = vrot.slane %v9985_v7, 1 }
 0x18c   : > { %7792 = vrot.lane.b32.xlu0 %v7791_v3, %s8436_s16  ;;  %v10062_v57 = vsel %vm1151_vm1, %v3444_v55, %v3445_v10  ;;  %v3454_v3 = vrot.slane %v10050_v43, 3 }
 0x18d   : > { %562 = vperm.xlu1 %7755, %v365_v0   ;;  %v10053_v21 = vsel %vm3164_vm3, 0.0, %v3227_v28  ;;  %13930 = vst [vmem:[#allocation28_spill] sm:$0xff] %v10062_v57  ;;  %v7811_v0 = vpack.i.bf16 %v10062_v57, %v3473_v32  ;;  %v10073_v27 = vsel %vm3164_vm3, %v3227_v28, 0.0  ;;  %v3437_v28 = vsel %vm857_vm0, %v3435_v40, %v3436_v6 }
 0x18e   : > { %v7801_v56 = vpack.i.bf16 %v10053_v21, %v3436_v6  ;;  %v10070_v33 = vsel %vm3191_vm6, %v3453_v12, %v3454_v3  ;;  %13932 = vst [vmem:[#allocation30_spill] sm:$0xff] %v10073_v27  ;;  %v4060_v36 = vrot.slane %v10053_v21, 1  ;;  %v4069_v54 = vrot.slane %v10053_v21, 2 }
 0x18f   : > { %13931 = vst [vmem:[#allocation29_spill] sm:$0xff] %v10070_v33  ;;  %v7821_v8 = vpack.i.bf16 %v10070_v33, %v3482_v37  ;;  %v10105_v6 = vrot.slane %v10014_v61, 3 }
 0x190   : > { %567 = vperm.xlu0 %7754, %v366_v23   ;;  %v10079_v23 = vrot.slane %v10073_v27, 1 }
 0x191   : > { %7797 = vrot.lane.b32.xlu1 %v7796_v20, %s8438_s22  ;;  %v7831_v20 = vpack.i.bf16 %v10026_v16, %v10073_v27 }
 0x192   : > { %13933 = vst [vmem:[#allocation31_spill] sm:$0xff] %v10079_v23  ;;  %v7836_v55 = vpack.i.bf16 %v10035_v38, %v10079_v23 }
 0x194   : > { %577 = vperm.xlu0 %7754, %v368_v5   ;;  %v7806_v5 = vpack.i.bf16 %v3437_v28, %v10014_v61 }
 0x195   : > { %572 = vperm.xlu1 %7755, %v367_v44   ;;  %v10096_v44 = vsel %vm857_vm0, %v4060_v36, %v10079_v23  ;;  %v372_v36 = vld [vmem:[%s8544_s25 + $0x148] sm:$0xf]  ;;  %v13970_v23 = vld [vmem:[#allocation19_spill] sm:$0xff] }
 0x196   : > { %13935 = vst [vmem:[#allocation33_spill] sm:$0xff] %v10096_v44 }
 0x198   : > { %582 = vperm.xlu0 %7754, %v369_v49   ;;  %v3490_v49 = vrot.slane %v10011_v9, 3 }
 0x199   : > { %7802 = vrot.lane.b32.xlu1 %v7801_v56, %s8437_s17  ;;  %v7816_v56 = vpack.i.bf16 %v10096_v44, %v3445_v10  ;;  %v370_v10 = vld [vmem:[%s8544_s25 + $0x138] sm:$0xff] }
 0x19c   : > { %7812 = vrot.lane.b32.xlu0 %v7811_v0, %s8436_s16  ;;  %v10118_v0 = vsel %vm3191_vm6, %v3490_v49, %v10105_v6  ;;  %v4014_v49 = vrot.slane %v9985_v7, 4 }
 0x19d   : > { %4034 = vrot.lane.b32.xlu1 %v3473_v32, %s8437_s17  ;;  %v10086_v32 = vld [vmem:[%s13619_s3 + $0x140] sm:$0xff]   ;;  %13938 = vst [vmem:[#allocation36_spill] sm:$0xff] %v10118_v0 }
 0x19e   : > { %13934 = vst [vmem:[#allocation32_spill] sm:$0xff] %v10086_v32  ;;  %7019 = vmatprep.subr.bf16.mxu0 %v10086_v32 }
 0x1a0   : > { %7822 = vrot.lane.b32.xlu0 %v7821_v8, %s8438_s22 }
 0x1a1   : > { %4040 = vrot.lane.b32.xlu1 %v3482_v37, %s8436_s16  ;;  %v10099_v37 = vrot.slane %v10073_v27, 2 }
 0x1a3   : > { %13936 = vst [vmem:[#allocation34_spill] sm:$0xff] %v10099_v37  ;;  %v10113_v12 = vsel %vm1151_vm1, %v4069_v54, %v10099_v37  ;;  %v7841_v8 = vpack.i.bf16 %v10118_v0, %v10099_v37  ;;  %v373_v54 = vld [vmem:[%s8544_s25 + $0x150] sm:$0xff] }
 0x1a4   : > { %7832 = vrot.lane.b32.xlu0 %v7831_v20, %s8437_s17  ;;  %13937 = vst [vmem:[#allocation35_spill] sm:$0xff] %v10113_v12  ;;  %v7826_v40 = vpack.i.bf16 %v10113_v12, %v3454_v3  ;;  %v371_v20 = vld [vmem:[%s8544_s25 + $0x140] sm:$0xff]  ;;  %v4015_v3 = vrot.slane %v10050_v43, 4  ;;  %v10224_v43 = vmul.f32 %v8615_v1, %v9606_v11 }
 0x1a5   : > { %7807 = vrot.lane.b32.xlu1 %v7806_v5, %s8437_s17  ;;  %v374_v5 = vld [vmem:[%s8544_s25 + $0x158] sm:$0xff] }
 0x1a6   : > { %v13965_v12 = vld [vmem:[#allocation16_spill] sm:$0xff] }
 0x1a8   : > { %7837 = vrot.lane.b32.xlu0 %v7836_v55, %s8436_s16  ;;  %v7846_v55 = vpack.i.bf16 %v9892_v58, %v10070_v33  ;;  %v676_v33 = vmul.f32 %v8593_v47, %v9464_v18 }
 0x1a9   : > { %7817 = vrot.lane.b32.xlu1 %v7816_v56, %s8436_s16  ;;  %v375_v56 = vld [vmem:[%s8544_s25 + $0x160] sm:$0xf] }
 0x1ac   : > { %7842 = vrot.lane.b32.xlu0 %v7841_v8, %s8438_s22  ;;  %v4311_v8 = vrot.slane %v10011_v9, 4 }
 0x1ad   : > { %7827 = vrot.lane.b32.xlu1 %v7826_v40, %s8438_s22  ;;  %v4312_v40 = vrot.slane %v10014_v61, 4 }
 0x1b0   : > { %587 = vperm.xlu0 %7754, %v370_v10   ;;  %v10141_v10 = vsel %vm3182_vm5, %v4014_v49, %v4015_v3  ;;  %v7871_v3 = vpack.i.bf16 %v10026_v16, %v10053_v21  ;;  %v379_v16 = vld [vmem:[%s8544_s25 + $0x180] sm:$0xff] }
 0x1b1   : > { %4046 = vrot.lane.b32.xlu1 %v10105_v6, %s8438_s22  ;;  %v7861_v49 = vpack.i.bf16 %v10141_v10, %v10118_v0 }
 0x1b4   : > { %597 = vperm.xlu0 %7754, %v372_v36   ;;  %v7856_v36 = vpack.i.bf16 %v3437_v28, %v10011_v9 }
 0x1b5   : > { %592 = vperm.xlu1 %7755, %v371_v20   ;;  %v7851_v20 = vpack.i.bf16 %v9985_v7, %v10141_v10 }
 0x1b8   : > { %607 = vperm.xlu0 %7754, %v374_v5   ;;  %v10147_v5 = vsel %vm3182_vm5, %v4311_v8, %v4312_v40  ;;  %v377_v8 = vld [vmem:[%s8544_s25 + $0x170] sm:$0xff]  ;;  %v376_v40 = vld [vmem:[%s8544_s25 + $0x168] sm:$0xff] }
 0x1b9   : > { %602 = vperm.xlu1 %7755, %v373_v54   ;;  %v7866_v54 = vpack.i.bf16 %v10011_v9, %v10147_v5 }
 0x1bc   : > { %7847 = vrot.lane.b32.xlu0 %v7846_v55, %s8437_s17  ;;  %v7886_v55 = vpack.i.bf16 %v9895_v17, %v10062_v57 }
 0x1bd   : > { %612 = vperm.xlu1 %7755, %v375_v56   ;;  %v7881_v56 = vpack.i.bf16 %v10040_v31, %v3437_v28  ;;  %v783_v28 = vmul.f32 %v8582_v39, %v9537_v35 }
 0x1c0   : > { %7857 = vrot.lane.b32.xlu0 %v7856_v36, %s8438_s22  ;;  %v378_v36 = vld [vmem:[%s8544_s25 + $0x178] sm:$0xf] }
 0x1c1   : > { %7852 = vrot.lane.b32.xlu1 %v7851_v20, %s8436_s16  ;;  %v381_v20 = vld [vmem:[%s8544_s25 + $0x190] sm:$0xf] }
 0x1c4   : > { %7867 = vrot.lane.b32.xlu0 %v7866_v54, %s8436_s16  ;;  %v784_v54 = vmul.f32 %v8582_v39, %v9552_v13 }
 0x1c5   : > { %7862 = vrot.lane.b32.xlu1 %v7861_v49, %s8437_s17 }
 0x1c6   : > { %v906_v49 = vrot.slane %v784_v54, 1 }
 0x1c8   : > { %7877 = vrot.lane.b32.xlu0 %v9992_v51, %s8437_s17  ;;  %v380_v51 = vld [vmem:[%s8544_s25 + $0x188] sm:$0xff] }
 0x1c9   : > { %7872 = vrot.lane.b32.xlu1 %v7871_v3, %s8438_s22  ;;  %v904_v3 = vrot.slane %v783_v28, 1 }
 0x1cc   : > { %7887 = vrot.lane.b32.xlu0 %v7886_v55, %s8438_s22  ;;  %v1078_v55 = vmul.f32 %v8591_v46, %v9552_v13 }
 0x1cd   : > { %7882 = vrot.lane.b32.xlu1 %v7881_v56, %s8436_s16  ;;  %v1077_v56 = vmul.f32 %v8591_v46, %v9537_v35 }
 0x1cf   : > { %v1198_v54 = vrot.slane %v1077_v56, 2 }
 0x1d0   : > { %622 = vperm.xlu0 %7754, %v377_v8   ;;  %v907_v8 = vsel %vm857_vm0, %v904_v3, %v906_v49 }
 0x1d1   : > { %617 = vperm.xlu1 %7755, %v376_v40   ;;  %v782_v40 = vmul.f32 %v8582_v39, %v9464_v18 }
 0x1d3   : > { %v903_v57 = vrot.slane %v782_v40, 1 }
 0x1d4   : > { %632 = vperm.xlu0 %7754, %v379_v16   ;;  %v678_v16 = vmul.f32 %v8593_v47, %v9552_v13 }
 0x1d5   : > { %627 = vperm.xlu1 %7755, %v378_v36   ;;  %v677_v36 = vmul.f32 %v8593_v47, %v9537_v35 }
 0x1d6   : > { %v1023_v53 = vadd.f32 %v906_v49, %v678_v16  ;;  %v905_v49 = vsel %vm857_vm0, %v903_v57, %v904_v3  ;;  %v5470_v16 = vrot.slane %v13915_v48, 7 }
 0x1d7   : > { %v1022_v58 = vadd.f32 %v907_v8, %v677_v36  ;;  %v10206_v8 = vmul.f32 %v8591_v46, %v9606_v11 }
 0x1d9   : > { %637 = vperm.xlu1 %7755, %v380_v51   ;;  %v1076_v51 = vmul.f32 %v8591_v46, %v9464_v18  ;;  %v10202_v18 = vmul.f32 %v8593_v47, %v9606_v11 }
 0x1db   : > { %v1197_v17 = vrot.slane %v1076_v51, 2 }
 0x1dd   : > { %642 = vperm.xlu1 %7755, %v381_v20   ;;  %v1200_v20 = vrot.slane %v1078_v55, 2  ;;  %v10197_v55 = vmul.f32 %v8582_v39, %v9606_v11 }
 0x1df   : > { %v1201_v45 = vsel %vm1151_vm1, %v1198_v54, %v1200_v20  ;;  %v10193_v35 = vadd.f32 %v1200_v20, %v1023_v53  ;;  %v1386_v53 = vmul.f32 %v8611_v63, %v9606_v11  ;;  %v10220_v20 = vmul.f32 %v8606_v60, %v9606_v11 }
 0x1e0   : > { %v1316_v56 = vadd.f32 %v1201_v45, %v1022_v58 }
 0x1e2   : > { %v10216_v51 = vadd.f32 %v1386_v53, %v1316_v56 }
 0x1e4   : > { %v7763_v28 = vpop.permute.xlu0 %7762  ;;  %v7758_v38 = vpop.permute.xlu1 %7757 }
 0x1e5   : > { %v7760_v13 = vunpack.i.h.bf16 %v7758_v38  ;;  %v7759_v61 = vunpack.i.l.bf16 %v7758_v38  ;;  %v7765_v38 = vunpack.i.h.bf16 %v7763_v28  ;;  %v7764_v40 = vunpack.i.l.bf16 %v7763_v28 }
 0x1e7   : > { %v3428_v58 = vsel %vm3419_vm7, %v9870_v24, %v7760_v13  ;;  %v3431_v57 = vsel %vm3419_vm7, %v10040_v31, %v7759_v61  ;;  %v1021_v13 = vadd.f32 %v905_v49, %v676_v33  ;;  %v1199_v61 = vsel %vm1151_vm1, %v1197_v17, %v1198_v54 }
 0x1e8   : > { %v7773_v7 = vpop.permute.xlu0 %7772  ;;  %v3432_v56 = vsel %vm3421_vm8, %v3431_v57, %v7764_v40  ;;  %v3429_v53 = vsel %vm3421_vm8, %v3428_v58, %v7765_v38  ;;  %v10240_v40 = vld [vmem:[%s13619_s3 + $0x180] sm:$0xff]   ;;  %v785_v38 = vmul.f32 %v8582_v39, %v9611_v50  ;;  %v10250_v58 = vmul.f32 %v8582_v39, %v9779_v14 }
 0x1e9   : > { %v7775_v36 = vunpack.i.h.bf16 %v7773_v7  ;;  %v7774_v45 = vunpack.i.l.bf16 %v7773_v7  ;;  %13940 = vst [vmem:[#allocation38_spill] sm:$0xff] %v10240_v40 }
 0x1eb   : > { %v3420_v31 = vsel %vm3419_vm7, 0.0, %v7775_v36  ;;  %v10231_v3 = vsel %vm3419_vm7, %v5470_v16, %v7774_v45  ;;  %v3425_v33 = vsel %vm3419_vm7, %v9839_v62, %v7774_v45  ;;  %v10246_v36 = vmul.f32 %v8606_v60, %v9611_v50 }
 0x1ec   : > { %v7783_v32 = vpop.permute.xlu0 %7782  ;;  %13939 = vst [vmem:[#allocation37_spill] sm:$0xff] %v10231_v3  ;;  %v10256_v45 = vmul.f32 %v8606_v60, %v9779_v14 }
 0x1ed   : > { %v7784_v2 = vunpack.i.l.bf16 %v7783_v32 }
 0x1f1   : > { %v7768_v28 = vpop.permute.xlu1 %7767 }
 0x1f2   : > { %v7770_v7 = vunpack.i.h.bf16 %v7768_v28  ;;  %v7769_v24 = vunpack.i.l.bf16 %v7768_v28  ;;  %v7785_v28 = vunpack.i.h.bf16 %v7783_v32  ;;  %v3516_v32 = vrot.slane %v10105_v6, 1 }
 0x1f4   : > { %v3433_v59 = vsel %vm3423_vm9, %v3432_v56, %v7769_v24  ;;  %v3430_v11 = vsel %vm3423_vm9, %v3429_v53, %v7770_v7 }
 0x1f5   : > { %v7778_v49 = vpop.permute.xlu1 %7777  ;;  %v3524_v17 = vpack.c.bf16 %v3433_v59, %v3433_v59  ;;  %v3523_v54 = vpack.c.bf16 %v3430_v11, %v3430_v11  ;;  %v3515_v59 = vrot.slane %v10118_v0, 1 }
 0x1f6   : > { %v7780_v16 = vunpack.i.h.bf16 %v7778_v49  ;;  %v7779_v24 = vunpack.i.l.bf16 %v7778_v49  ;;  %v10271_v49 = vld [vmem:[%s13619_s3 + $0x188] sm:$0xff]  }
 0x1f7   : > { %3903 = vmatprep.mubr.bf16.mxu1 %v3524_v17  ;;  %13942 = vst [vmem:[#allocation40_spill] sm:$0xff] %v10271_v49 }
 0x1f8   : > { %v5485_v57 = vsel %vm3421_vm8, %v10231_v3, %v7779_v24  ;;  %3904 = vmatmul.mubr.bf16.vlgmr.msra.gmra.mrb[0].mxu1 %v3523_v54  ;;  %v3426_v7 = vsel %vm3421_vm8, %v3425_v33, %v7779_v24  ;;  %v3422_v56 = vsel %vm3421_vm8, %v3420_v31, %v7780_v16  ;;  %v1612_v31 = vrot.slane %v10220_v20, 1  ;;  %v10294_v20 = vld [vmem:[%s13619_s3 + $0x100] sm:$0xff]  }
 0x1f9   : > { %v10264_v11 = vsel %vm3423_vm9, %v5485_v57, %v7784_v2  ;;  %7625 = vmatpush3.bf16.msra.mxu1 %v10240_v40  ;;  %v3427_v6 = vsel %vm3423_vm9, %v3426_v7, %v7784_v2  ;;  %v10274_v17 = vsel %vm3423_vm9, %v3422_v56, %v7785_v28  ;;  %7628 = vmatprep.mubr.msk.bf16.mxu1 %vm8439_vm10, %v13915_v48  ;;  %v908_v16 = vrot.slane %v785_v38, 1 }
 0x1fa   : > { %13941 = vst [vmem:[#allocation39_spill] sm:$0xff] %v10264_v11  ;;  %13943 = vst [vmem:[#allocation41_spill] sm:$0xff] %v10274_v17  ;;  %v1315_v33 = vadd.f32 %v1199_v61, %v1021_v13  ;;  %7626 = vmatprep.subr.bf16.mxu1 %v13915_v48  ;;  %v3522_v54 = vpack.c.bf16 %v3427_v6, %v3427_v6  ;;  %v10282_v2 = vpack.c.bf16 %v10274_v17, %v10274_v17 }
 0x1fb   : > { %v10286_v24 = vmul.f32 %v8591_v46, %v9611_v50  ;;  %v1385_v28 = vmul.f32 %v8611_v63, %v9611_v50  ;;  %v3517_v57 = vsel %vm857_vm0, %v3515_v59, %v3516_v32  ;;  %v1611_v13 = vrot.slane %v10246_v36, 1  ;;  %v10301_v56 = vpop.permute.xlu1 %7787  ;;  %v10308_v59 = vld [vmem:[%s13619_s3 + $0x148] sm:$0xff]  }
 0x1fc   : > { %v1784_v61 = vmul.f32 %v8615_v1, %v9611_v50  ;;  %v911_v38 = vrot.slane %v10250_v58, 1  ;;  %v1614_v7 = vrot.slane %v10256_v45, 1  ;;  %3863 = vmatprep.mubr.bf16.mxu0 %v3522_v54  ;;  %13944 = vst [vmem:[#allocation42_spill] sm:$0xff] %v10308_v59  ;;  %v10312_v36 = vmul.f32 %v8591_v46, %v9779_v14 }
 0x1fd   : > { %v10303_v6 = vpop.permute.xlu0 %557  ;;  %v1387_v32 = vmul.f32 %v8611_v63, %v9779_v14  ;;  %7627 = vmatpush3.bf16.msra.mxu1 %v10271_v49  ;;  %3864 = vmatmul.mubr.bf16.vlgmr.msra.gmra.mrb[0].mxu0 %v10282_v2  ;;  %v4078_v58 = vrot.slane %v10053_v21, 3  ;;  %v10320_v45 = vrot.slane %v10073_v27, 3  ;;  %v1905_v54 = vrot.slane %v10224_v43, 2  ;;  %v10339_v43 = vld [vmem:[%s13619_s3 + $0x108] sm:$0xff]  }
 0x1fe   : > { %v1436_v53 = vadd.f32 %v1385_v28, %v1315_v33  ;;  %v10325_v17 = vmul.f32 %v8615_v1, %v9779_v14  ;;  %7044 = vmatprep.subr.bf16.mxu1 %v9704_v15  ;;  %v3527_v11 = vpack.c.bf16 %v3517_v57, %v3517_v57  ;;  %v679_v3 = vmul.f32 %v8593_v47, %v9611_v50 }
 0x1ff   : > { %13945 = vst [vmem:[#allocation43_spill] sm:$0xff] %v10320_v45  ;;  %v1202_v0 = vrot.slane %v10286_v24, 2  ;;  %v13946_v40 = vrot.slane %v10197_v55, 1  ;;  %7020 = vmatpush3.bf16.msra.mxu0 %v10294_v20  ;;  %v1904_v15 = vrot.slane %v1784_v61, 2  ;;  %v681_v33 = vmul.f32 %v8593_v47, %v9779_v14 }
 0x200   : > { %7629 = vmatmul.mubr.msk.bf16.vlgmr.msra.gmra.mrb[4].mxu1 %vm3419_vm7, %v3527_v11  ;;  %7021 = vmatprep.subr.bf16.mxu0 %v10308_v59  ;;  %v1205_v57 = vrot.slane %v10312_v36, 2  ;;  %v1438_v14 = vadd.f32 %v1387_v32, %v10193_v35  ;;  %v1613_v11 = vsel %vm857_vm0, %v1611_v13, %v1612_v31  ;;  %v10362_v55 = vsel %vm3191_vm6, %v4078_v58, %v10320_v45 }
 0x201   : > { %v910_v48 = vsel %vm857_vm0, %v908_v16, %v13946_v40  ;;  %v10344_v50 = vpop.permute.xlu0 %7792  ;;  %v13947_v24 = vmov %v13946_v40  ;;  %v1615_v40 = vsel %vm857_vm0, %v1612_v31, %v1614_v7  ;;  %v10354_v16 = vld [vmem:[%s13619_s3 + $0x150] sm:$0xff]   ;;  %7045 = vmatpush3.bf16.msra.mxu1 %v9709_v42  ;;  %13948 = vst [vmem:[#allocation44_spill] sm:$0xff] %v10362_v55  ;;  %v1907_v61 = vrot.slane %v10325_v17, 2 }
 0x202   : > { %v912_v28 = vsel %vm857_vm0, %v13947_v24, %v911_v38  ;;  %v1024_v24 = vadd.f32 %v910_v48, %v679_v3  ;;  %v1729_v49 = vadd.f32 %v1613_v11, %v1436_v53  ;;  %7046 = vmatprep.subr.bf16.mxu1 %v9737_v4  ;;  %v13683_v59 = vunpack.i.h.bf16 %v10344_v50  ;;  %v10377_v48 = vld [vmem:[%s13619_s3 + $0x110] sm:$0xff]  }
 0x203   : > { %v13949_v36 = vunpack.i.h.bf16 %v10301_v56  ;;  %v1025_v42 = vadd.f32 %v912_v28, %v10202_v18  ;;  %v1730_v31 = vadd.f32 %v1615_v40, %v10216_v51  ;;  %7022 = vmatpush3.bf16.msra.mxu0 %v10339_v43  ;;  %v4594_v4 = vrot.slane %v10053_v21, 4 }
 0x204   : > { %7023 = vmatprep.subr.bf16.mxu0 %v10354_v16  ;;  %v4104_v18 = vrot.slane %v10320_v45, 1  ;;  %v4103_v51 = vrot.slane %v10362_v55, 1  ;;  %v4595_v53 = vrot.slane %v10073_v27, 4  ;;  %v13685_v17 = vrot.slane %v10011_v9, 7 }
 0x205   : > { %v4603_v35 = vsel %vm3419_vm7, %v10141_v10, %v13949_v36  ;;  %v10389_v10 = vld [vmem:[%s13619_s3 + $0x158] sm:$0xff]   ;;  %7047 = vmatpush3.bf16.msra.mxu1 %v9742_v41  ;;  %v1026_v13 = vadd.f32 %v911_v38, %v681_v33  ;;  %v13951_v32 = vrot.slane %v10206_v8, 2  ;;  %v1906_v28 = vsel %vm1151_vm1, %v1904_v15, %v1905_v54  ;;  %v10420_v8 = vld [vmem:[%s13619_s3 + $0x160] sm:$0xff]  }
 0x206   : > { %v10383_v3 = vsel %vm3421_vm8, %v4603_v35, %v13683_v59  ;;  %7048 = vmatprep.subr.bf16.mxu1 %v9760_v29  ;;  %v1731_v36 = vadd.f32 %v1614_v7, %v1438_v14  ;;  %v2022_v59 = vadd.f32 %v1906_v28, %v1729_v49  ;;  %v1908_v41 = vsel %vm1151_vm1, %v1905_v54, %v1907_v61 }
 0x207   : > { %13950 = vst [vmem:[#allocation45_spill] sm:$0xff] %v10383_v3  ;;  %v1204_v58 = vsel %vm1151_vm1, %v1202_v0, %v13951_v32  ;;  %v13952_v40 = vmov %v13951_v32  ;;  %7024 = vmatpush3.bf16.msra.mxu0 %v10377_v48  ;;  %v10411_v0 = vld [vmem:[%s13619_s3 + $0x118] sm:$0xff]   ;;  %v10413_v38 = vadd.f32 %v1908_v41, %v1730_v31  ;;  %13953 = vst [vmem:[#allocation46_spill] sm:$0xff] %v10420_v8  ;;  %v7789_v54 = vunpack.i.l.bf16 %v10301_v56 }
 0x208   : > { %v1206_v11 = vsel %vm1151_vm1, %v13952_v40, %v1205_v57  ;;  %v1318_v35 = vadd.f32 %v1204_v58, %v1024_v24  ;;  %7025 = vmatprep.subr.bf16.mxu0 %v10389_v10  ;;  %v10423_v49 = vsel %vm857_vm0, %v4103_v51, %v4104_v18  ;;  %v10426_v7 = vsel %vm3182_vm5, %v4594_v4, %v4595_v53  ;;  %v10478_v40 = vld [vmem:[%s13619_s3 + $0x168] sm:$0xff]  }
 0x209   : > { %v10404_v27 = vadd.f32 %v1206_v11, %v1025_v42  ;;  %13954 = vst [vmem:[#allocation47_spill] sm:$0xff] %v10423_v49  ;;  %13955 = vst [vmem:[#allocation48_spill] sm:$0xff] %v10426_v7  ;;  %7049 = vmatpush3.bf16.msra.mxu1 %v9777_v34  ;;  %v10430_v15 = vadd.f32 %v1205_v57, %v1026_v13  ;;  %v788_v24 = vmul.f32 %v8582_v39, %v10303_v6 }
 0x20a   : > { %7050 = vmatprep.subr.bf16.mxu1 %v9785_v30  ;;  %v10439_v42 = vadd.f32 %v1907_v61, %v1731_v36  ;;  %v10447_v57 = vmul.f32 %v8591_v46, %v10303_v6  ;;  %v2198_v4 = vmul.f32 %v8641_v22, %v10303_v6  ;;  %v10457_v30 = vld [vmem:[%s13619_s3 + $0x120] sm:$0xff]   ;;  %v13957_v53 = vunpack.i.h.bf16 %v10301_v56  ;;  %13958 = vst [vmem:[#allocation50_spill] sm:$0xff] %v10478_v40 }
 0x20b   : > { %7026 = vmatpush3.bf16.msra.mxu0 %v10411_v0  ;;  %13956 = vst [vmem:[#allocation49_spill] sm:$0xff] %v10457_v30  ;;  %v1388_v32 = vmul.f32 %v8611_v63, %v10303_v6  ;;  %v2092_v58 = vmul.f32 %v8645_v26, %v10303_v6  ;;  %v10482_v56 = vsel %vm3419_vm7, %v9839_v62, %v7789_v54  ;;  %v10504_v54 = vld [vmem:[%s13617_s1 + $0x8] ss:$0 sm:$0xff] }
 0x20c   : > { %v10451_v18 = vpop.permute.xlu1 %562  ;;  %v3499_v13 = vsel %vm3419_vm7, %v13685_v17, %v13957_v53  ;;  %7027 = vmatprep.subr.bf16.mxu0 %v10420_v8  ;;  %v10486_v11 = vmul.f32 %v8593_v47, %v10303_v6  ;;  %v10490_v36 = vmul.f32 %v8606_v60, %v10303_v6  ;;  %v913_v53 = vrot.slane %v788_v24, 1  ;;  %v10523_v17 = vld [vmem:[%s13619_s3 + $0x128] sm:$0xff]  }
 0x20d   : > { %v789_v28 = vmul.f32 %v8582_v39, %v10451_v18  ;;  %7051 = vmatpush3.bf16.msra.mxu1 %v9816_v19  ;;  %v10495_v41 = vmul.f32 %v8641_v22, %v10451_v18  ;;  %v10499_v51 = vmul.f32 %v8615_v1, %v10303_v6  ;;  %v10508_v34 = vmul.f32 %v10504_v54, %v10451_v18  ;;  %v13959_v19 = vld [vmem:[#allocation13_spill] sm:$0xff] }
 0x20e   : > { %7052 = vmatprep.subr.bf16.mxu1 %v13959_v19  ;;  %v2318_v14 = vrot.slane %v2198_v4, 1  ;;  %v2491_v33 = vmul.f32 %v10504_v54, %v10303_v6  ;;  %13961 = vst [vmem:[#allocation51_spill] sm:$0xff] %v10523_v17  ;;  %v10525_v19 = vadd.f32 %v1388_v32, %v1318_v35  ;;  %v2143_v29 = vadd.f32 %v2092_v58, %v2022_v59  ;;  %v10536_v4 = vld [vmem:[%s13619_s3 + $0x170] sm:$0xff]  }
 0x20f   : > { %v914_v62 = vrot.slane %v789_v28, 1  ;;  %v10511_v31 = vpop.permute.xlu0 %567  ;;  %7028 = vmatpush3.bf16.msra.mxu0 %v10457_v30  ;;  %13962 = vst [vmem:[#allocation52_spill] sm:$0xff] %v10536_v4  ;;  %v10540_v28 = vmul.f32 %v8591_v46, %v10451_v18  ;;  %v13963_v35 = vrot.slane %v10495_v41, 1  ;;  %v13964_v58 = vld [vmem:[#allocation14_spill] sm:$0xff]  ;;  %v7794_v32 = vunpack.i.l.bf16 %v10344_v50 }
 0x210   : > { %v10517_v61 = vpop.permute.xlu1 %7797  ;;  %v790_v6 = vmul.f32 %v8582_v39, %v10511_v31  ;;  %7029 = vmatprep.subr.bf16.mxu0 %v10478_v40  ;;  %v1390_v55 = vmul.f32 %v8611_v63, %v10511_v31  ;;  %v1496_v45 = vmul.f32 %v8606_v60, %v10511_v31  ;;  %v2093_v9 = vmul.f32 %v8645_v26, %v10451_v18 }
 0x211   : > { %13960 = vst [vmem:[#allocation13_spill] sm:$0xff] %v10517_v61  ;;  %v10528_v24 = vsel %vm857_vm0, %v913_v53, %v914_v62  ;;  %v2320_v59 = vsel %vm857_vm0, %v2318_v14, %v13963_v35  ;;  %7053 = vmatpush3.bf16.msra.mxu1 %v13964_v58  ;;  %v10549_v53 = vmul.f32 %v8591_v46, %v10511_v31  ;;  %v1616_v14 = vrot.slane %v10490_v36, 1  ;;  %v10582_v35 = vld [vmem:[%s13619_s3 + $0x178] sm:$0xff]  }
 0x212   : > { %v2436_v3 = vadd.f32 %v2320_v59, %v2143_v29  ;;  %v916_v7 = vrot.slane %v790_v6, 1  ;;  %7054 = vmatprep.subr.bf16.mxu1 %v13965_v12  ;;  %v2611_v58 = vrot.slane %v2491_v33, 2  ;;  %v10567_v29 = vld [vmem:[%s13619_s3 + $0x130] sm:$0xff]   ;;  %v13967_v12 = vunpack.i.h.bf16 %v10344_v50  ;;  %13968 = vst [vmem:[#allocation16_spill] sm:$0xff] %v10582_v35 }
 0x213   : > { %v10556_v37 = vpop.permute.xlu0 %577  ;;  %7030 = vmatpush3.bf16.msra.mxu0 %v10523_v17  ;;  %13966 = vst [vmem:[#allocation14_spill] sm:$0xff] %v10567_v29  ;;  %v683_v36 = vmul.f32 %v8593_v47, %v10451_v18  ;;  %v1210_v59 = vrot.slane %v10549_v53, 2  ;;  %v1389_v50 = vmul.f32 %v8611_v63, %v10451_v18  ;;  %v1208_v49 = vrot.slane %v10540_v28, 2 }
 0x214   : > { %v10561_v44 = vpop.permute.xlu1 %572  ;;  %v10572_v6 = vsel %vm3421_vm8, %v3499_v13, %v13967_v12  ;;  %v917_v33 = vsel %vm857_vm0, %v914_v62, %v916_v7  ;;  %7031 = vmatprep.subr.bf16.mxu0 %v10536_v4  ;;  %v1495_v13 = vmul.f32 %v8606_v60, %v10451_v18  ;;  %v10590_v12 = vmul.f32 %v8615_v1, %v10451_v18 }
 0x215   : > { %v13969_v62 = vrot.slane %v10508_v34, 2  ;;  %7055 = vmatpush3.bf16.msra.mxu1 %v13970_v23  ;;  %v1441_v17 = vadd.f32 %v1390_v55, %v10430_v15  ;;  %v1619_v40 = vrot.slane %v1496_v45, 1  ;;  %v684_v8 = vmul.f32 %v8593_v47, %v10511_v31 }
 0x216   : > { %7056 = vmatprep.subr.bf16.mxu1 %v9934_v25  ;;  %v2200_v23 = vmul.f32 %v8641_v22, %v10511_v31  ;;  %v10613_v25 = vld [vmem:[%s13619_s3 + $0x138] sm:$0xff]   ;;  %v10617_v45 = vsel %vm3421_vm8, %v10482_v56, %v7794_v32  ;;  %v10621_v55 = vmul.f32 %v8615_v1, %v10511_v31  ;;  %v1211_v15 = vsel %vm1151_vm1, %v1208_v49, %v1210_v59 }
 0x217   : > { %v2613_v53 = vsel %vm1151_vm1, %v2611_v58, %v13969_v62  ;;  %v10599_v30 = vpop.permute.xlu0 %582  ;;  %v2094_v58 = vmul.f32 %v8645_v26, %v10511_v31  ;;  %7032 = vmatpush3.bf16.msra.mxu0 %v10567_v29  ;;  %13971 = vst [vmem:[#allocation19_spill] sm:$0xff] %v10613_v25  ;;  %v1440_v18 = vadd.f32 %v1389_v50, %v10404_v27  ;;  %v1617_v28 = vrot.slane %v1495_v13, 1 }
 0x218   : > { %v2729_v4 = vadd.f32 %v2613_v53, %v2436_v3  ;;  %v1028_v3 = vadd.f32 %v917_v33, %v683_v36  ;;  %7033 = vmatprep.subr.bf16.mxu0 %v10582_v35  ;;  %v1029_v62 = vadd.f32 %v916_v7, %v684_v8  ;;  %v10628_v53 = vmul.f32 %v10504_v54, %v10511_v31  ;;  %v10631_v56 = vpop.permute.xlu1 %7802  ;;  %v10637_v36 = vld [vmem:[%s13618_s2] ss:$0 sm:$0xff]  ;;  %v13972_v7 = vld [vmem:[#allocation23_spill] sm:$0xff] }
 0x219   : > { %7057 = vmatpush3.bf16.msra.mxu1 %v9959_v52  ;;  %v1734_v27 = vadd.f32 %v1619_v40, %v1441_v17  ;;  %v10644_v31 = vadd.f32 %v2093_v9, %v10413_v38  ;;  %v2145_v52 = vadd.f32 %v2094_v58, %v10439_v42  ;;  %v2321_v50 = vrot.slane %v2200_v23, 1  ;;  %v10662_v38 = vld [vmem:[%s13619_s3 + $0xc0] sm:$0xff]  }
 0x21a   : > { %v10640_v33 = vadd.f32 %v10637_v36, %v2729_v4  ;;  %v1322_v8 = vadd.f32 %v1211_v15, %v1028_v3  ;;  %7058 = vmatprep.subr.bf16.mxu1 %v13972_v7  ;;  %v1620_v35 = vsel %vm857_vm0, %v1617_v28, %v1619_v40  ;;  %v13709_v4 = vrot.slane %v10621_v55, 2  ;;  %13973 = vst [vmem:[#allocation23_spill] sm:$0xff] %v10662_v38  ;;  %v13974_v3 = vld [vmem:[#allocation22_spill] sm:$0xff] }
 0x21b   : > { %v10648_v32 = vpop.permute.xlu0 %7812  ;;  %7034 = vmatpush3.bf16.msra.mxu0 %v10613_v25  ;;  %v10655_v17 = vmul.f32 %v8582_v39, %v10556_v37  ;;  %v1392_v9 = vmul.f32 %v8611_v63, %v10556_v37  ;;  %v1618_v42 = vsel %vm857_vm0, %v1616_v14, %v1617_v28  ;;  %v1323_v58 = vadd.f32 %v1210_v59, %v1029_v62  ;;  %v13975_v15 = vld [vmem:[#allocation18_spill] sm:$0xff]  ;;  %v13977_v14 = vld [vmem:[#allocation32_spill] sm:$0xff] }
 0x21c   : > { %7066 = vmatprep.subr.bf16.mxu0 %v10662_v38  ;;  %v2614_v40 = vrot.slane %v10628_v53, 2  ;;  %v10669_v23 = vmul.f32 %v8606_v60, %v10556_v37  ;;  %v10676_v13 = vadd.f32 %v13709_v4, %v1734_v27  ;;  %v7799_v38 = vunpack.i.l.bf16 %v10517_v61  ;;  %v10691_v27 = vpop.permute.xlu1 %4034 }
 0x21d   : > { %7059 = vmatpush3.bf16.msra.mxu1 %v13974_v3  ;;  %v10679_v25 = vadd.f32 %v1392_v9, %v1322_v8  ;;  %v13978_v59 = vrot.slane %v10495_v41, 1  ;;  %v2438_v62 = vadd.f32 %v2321_v50, %v2145_v52  ;;  %v13979_v53 = vunpack.i.h.bf16 %v10517_v61 }
 0x21e   : > { %7088 = vmatprep.subr.bf16.mxu1 %v13977_v14  ;;  %v1733_v7 = vadd.f32 %v1620_v35, %v1440_v18  ;;  %v919_v4 = vrot.slane %v10655_v17, 1  ;;  %v10696_v8 = vmul.f32 %v8641_v22, %v10556_v37  ;;  %v791_v41 = vmul.f32 %v8582_v39, %v10561_v44 }
 0x21f   : > { %13976 = vst [vmem:[#allocation22_spill] sm:$0xff] %v10679_v25  ;;  %v2322_v28 = vsel %vm857_vm0, %v13978_v59, %v2321_v50  ;;  %v10689_v3 = vsel %vm3423_vm9, %v10572_v6, %v13979_v53  ;;  %v1027_v52 = vadd.f32 %v10528_v24, %v10486_v11  ;;  %v1622_v50 = vrot.slane %v10669_v23, 1  ;;  %v10710_v9 = vpop.permute.xlu0 %7822 }
 0x220   : > { %v13980_v6 = vrot.slane %v10447_v57, 2  ;;  %v1391_v18 = vmul.f32 %v8611_v63, %v10561_v44  ;;  %v1497_v17 = vmul.f32 %v8606_v60, %v10561_v44  ;;  %v10714_v14 = vmul.f32 %v10504_v54, %v10556_v37 }
 0x221   : > { %v918_v59 = vrot.slane %v791_v41, 1  ;;  %v1732_v24 = vadd.f32 %v1618_v42, %v10525_v19  ;;  %v685_v57 = vmul.f32 %v8593_v47, %v10561_v44  ;;  %v13981_v23 = vrot.slane %v10590_v12, 2 }
 0x222   : > { %v1209_v35 = vsel %vm1151_vm1, %v13980_v6, %v1208_v49  ;;  %v1621_v49 = vrot.slane %v1497_v17, 1  ;;  %v13982_v53 = vrot.slane %v10499_v51, 2  ;;  %v2095_v61 = vmul.f32 %v8645_v26, %v10561_v44 }
 0x223   : > { %v1321_v11 = vadd.f32 %v1209_v35, %v1027_v52  ;;  %v920_v41 = vsel %vm857_vm0, %v918_v59, %v919_v4  ;;  %v2201_v17 = vmul.f32 %v8641_v22, %v10561_v44  ;;  %v2494_v51 = vmul.f32 %v10504_v54, %v10561_v44 }
 0x224   : > { %v1911_v6 = vsel %vm1151_vm1, %v13982_v53, %v13981_v23  ;;  %v10728_v19 = vadd.f32 %v920_v41, %v685_v57  ;;  %v1623_v42 = vsel %vm857_vm0, %v1621_v49, %v1622_v50  ;;  %v10735_v23 = vpop.permute.xlu1 %4040  ;;  %v793_v57 = vmul.f32 %v8582_v39, %v10599_v30  ;;  %v10744_v49 = vpop.permute.xlu0 %7832 }
 0x225   : > { %v1442_v52 = vadd.f32 %v1391_v18, %v1321_v11  ;;  %v2025_v35 = vadd.f32 %v1911_v6, %v1732_v24  ;;  %v4025_v18 = vsel %vm3423_vm9, %v10617_v45, %v7799_v38  ;;  %v2323_v59 = vrot.slane %v2201_v17, 1 }
 0x226   : > { %v2616_v11 = vrot.slane %v2494_v51, 2  ;;  %v4109_v24 = vpack.c.bf16 %v4025_v18, %v4025_v18  ;;  %v13983_v6 = vrot.slane %v10508_v34, 2  ;;  %v10755_v45 = vmul.f32 %v8615_v1, %v10599_v30 }
 0x227   : > { %v10738_v29 = vadd.f32 %v1623_v42, %v1442_v52  ;;  %v2146_v25 = vadd.f32 %v2095_v61, %v2025_v35  ;;  %v1393_v52 = vmul.f32 %v8611_v63, %v10599_v30  ;;  %v1499_v61 = vmul.f32 %v8606_v60, %v10599_v30 }
 0x228   : > { %v2615_v41 = vsel %vm1151_vm1, %v13983_v6, %v2614_v40  ;;  %v2437_v38 = vadd.f32 %v2322_v28, %v10644_v31  ;;  %v13984_v42 = vrot.slane %v10696_v8, 1  ;;  %4150 = vmatprep.mubr.bf16.mxu1 %v4109_v24  ;;  %v921_v17 = vrot.slane %v793_v57, 1 }
 0x229   : > { %v13985_v51 = vrot.slane %v10621_v55, 2  ;;  %v13986_v18 = vrot.slane %v10590_v12, 2  ;;  %v1444_v60 = vadd.f32 %v1393_v52, %v1323_v58  ;;  %v1624_v63 = vrot.slane %v1499_v61, 1  ;;  %4151 = vmatmul.mubr.bf16.vlgmr.msra.gmra.mrb[8].mxu1 %v10282_v2  ;;  %v10777_v12 = vpop.permute.xlu1 %7807 }
 0x22a   : > { %v2325_v34 = vsel %vm857_vm0, %v2323_v59, %v13984_v42  ;;  %v10768_v31 = vadd.f32 %v2614_v40, %v2438_v62  ;;  %v13987_v35 = vrot.slane %v10714_v14, 2  ;;  %v10774_v24 = vsel %vm857_vm0, %v919_v4, %v921_v17  ;;  %7089 = vmatpush3.bf16.msra.mxu1 %v10294_v20  ;;  %v13988_v40 = vld [vmem:[#allocation42_spill] sm:$0xff] }
 0x22b   : > { %v1913_v6 = vsel %vm1151_vm1, %v13986_v18, %v13985_v51  ;;  %v2439_v53 = vadd.f32 %v2325_v34, %v2146_v25  ;;  %v10780_v25 = vsel %vm857_vm0, %v1622_v50, %v1624_v63  ;;  %v1737_v55 = vadd.f32 %v1624_v63, %v1444_v60  ;;  %7090 = vmatprep.subr.bf16.mxu1 %v13988_v40  ;;  %v10796_v60 = vpop.permute.xlu0 %7837 }
 0x22c   : > { %v2026_v28 = vadd.f32 %v1913_v6, %v1733_v7  ;;  %v2618_v59 = vsel %vm1151_vm1, %v2616_v11, %v13987_v35  ;;  %v13716_v2 = vrot.slane %v10755_v45, 2  ;;  %v2203_v58 = vmul.f32 %v8641_v22, %v10599_v30 }
 0x22d   : > { %v10788_v7 = vmul.f32 %v8591_v46, %v10556_v37  ;;  %v2732_v4 = vadd.f32 %v2618_v59, %v2439_v53  ;;  %v687_v20 = vmul.f32 %v8593_v47, %v10599_v30  ;;  %v10794_v62 = vmul.f32 %v8591_v46, %v10599_v30 }
 0x22e   : > { %v10800_v63 = vmul.f32 %v8615_v1, %v10556_v37  ;;  %v1085_v50 = vmul.f32 %v8591_v46, %v10561_v44  ;;  %v10806_v11 = vadd.f32 %v13716_v2, %v1737_v55  ;;  %v2097_v53 = vmul.f32 %v8645_v26, %v10599_v30  ;;  %7091 = vmatpush3.bf16.msra.mxu1 %v10339_v43  ;;  %v10833_v43 = vpop.permute.xlu1 %7817 }
 0x22f   : > { %v10812_v57 = vmul.f32 %v8593_v47, %v10556_v37  ;;  %v1790_v52 = vmul.f32 %v8615_v1, %v10561_v44  ;;  %v1032_v61 = vadd.f32 %v921_v17, %v687_v20  ;;  %v10818_v35 = vmul.f32 %v10504_v54, %v10599_v30  ;;  %7092 = vmatprep.subr.bf16.mxu1 %v10354_v16 }
 0x230   : > { %v10821_v42 = vadd.f32 %v2615_v41, %v2437_v38  ;;  %v2096_v34 = vmul.f32 %v8645_v26, %v10556_v37  ;;  %v2326_v51 = vrot.slane %v2203_v58, 1  ;;  %v7805_v18 = vunpack.i.h.bf16 %v10631_v56 }
 0x231   : > { %v13720_v6 = vrot.slane %v10788_v7, 2  ;;  %v10829_v44 = vadd.f32 %v10637_v36, %v2732_v4  ;;  %v13717_v30 = vrot.slane %v10794_v62, 2  ;;  %v7804_v17 = vunpack.i.l.bf16 %v10631_v56  ;;  %v7843_v56 = vpop.permute.xlu0 %7842 }
 0x232   : > { %v2147_v38 = vadd.f32 %v2096_v34, %v2026_v28  ;;  %v1212_v37 = vrot.slane %v1085_v50, 2  ;;  %v2148_v59 = vadd.f32 %v2097_v53, %v10676_v13  ;;  %v1914_v55 = vrot.slane %v1790_v52, 2  ;;  %7093 = vmatpush3.bf16.msra.mxu1 %v10377_v48  ;;  %v13991_v48 = vld [vmem:[#allocation27_spill] sm:$0xff] }
 0x233   : > { %v10839_v16 = vadd.f32 %v13717_v30, %v1032_v61  ;;  %v13718_v58 = vrot.slane %v10818_v35, 2  ;;  %v7810_v40 = vunpack.i.h.bf16 %v10777_v12  ;;  %v13989_v4 = vrot.slane %v10696_v8, 1  ;;  %7094 = vmatprep.subr.bf16.mxu1 %v10389_v10 }
 0x234   : > { %v4883_v28 = vsel %vm3419_vm7, %v10147_v5, %v7805_v18  ;;  %v7815_v13 = vunpack.i.h.bf16 %v10648_v32  ;;  %v7820_v50 = vunpack.i.h.bf16 %v10833_v43  ;;  %v13990_v53 = vmax.f32 %v13975_v15, %v10640_v33 }
 0x235   : > { %v2327_v20 = vsel %vm857_vm0, %v13989_v4, %v2326_v51  ;;  %v3494_v8 = vsel %vm3419_vm7, %v13991_v48, %v7804_v17  ;;  %v13992_v61 = vrot.slane %v10053_v21, 7  ;;  %v13993_v4 = vld [vmem:[#allocation21_spill] sm:$0xff]  ;;  %v10865_v30 = vadd.f32 %v2326_v51, %v2148_v59  ;;  %v588_v48 = vpop.permute.xlu0 %587 }
 0x236   : > { %v10856_v52 = vmax.f32 %v13990_v53, %v10829_v44  ;;  %v3493_v2 = vsel %vm3419_vm7, %v13993_v4, %v7810_v40  ;;  %v7814_v10 = vunpack.i.l.bf16 %v10648_v32  ;;  %v7809_v41 = vunpack.i.l.bf16 %v10777_v12  ;;  %7095 = vmatpush3.bf16.msra.mxu1 %v10411_v0  ;;  %v10882_v32 = vpop.permute.xlu1 %7827 }
 0x237   : > { %v4087_v34 = vsel %vm3419_vm7, %v13992_v61, %v7805_v18  ;;  %v10870_v33 = vsel %vm3421_vm8, %v4883_v28, %v7820_v50  ;;  %v2440_v15 = vadd.f32 %v2327_v20, %v2147_v38  ;;  %v13995_v17 = vrot.slane %v10714_v14, 2  ;;  %v13996_v18 = vld [vmem:[#allocation25_spill] sm:$0xff]  ;;  %13997 = vst [vmem:[#allocation32_spill] sm:$0xff] %v10882_v32  ;;  %v13998_v20 = vld [vmem:[#allocation46_spill] sm:$0xff]  ;;  %v14001_v61 = vld [vmem:[#allocation24_spill] sm:$0xff] }
 0x238   : > { %13994 = vst [vmem:[#allocation18_spill] sm:$0xff] %v10870_v33  ;;  %v4082_v40 = vsel %vm3419_vm7, %v13996_v18, %v10691_v27  ;;  %v3495_v51 = vsel %vm3421_vm8, %v3493_v2, %v7815_v13  ;;  %v7825_v12 = vunpack.i.h.bf16 %v10710_v9  ;;  %v7824_v38 = vunpack.i.l.bf16 %v10710_v9  ;;  %7096 = vmatprep.subr.bf16.mxu1 %v13998_v20 }
 0x239   : > { %v2620_v53 = vsel %vm1151_vm1, %v13995_v17, %v13718_v58  ;;  %v7835_v59 = vunpack.i.h.bf16 %v10744_v49  ;;  %v7834_v14 = vunpack.i.l.bf16 %v10744_v49  ;;  %v7840_v28 = vunpack.i.h.bf16 %v10796_v60  ;;  %v14003_v58 = vld [vmem:[#allocation49_spill] sm:$0xff] }
 0x23a   : > { %v7839_v27 = vunpack.i.l.bf16 %v10796_v60  ;;  %v1214_v0 = vsel %vm1151_vm1, %v1212_v37, %v13720_v6  ;;  %v13999_v2 = vrot.slane %v10800_v63, 2  ;;  %v10898_v9 = vsel %vm3423_vm9, %v3495_v51, %v7825_v12  ;;  %7097 = vmatpush3.bf16.msra.mxu1 %v14003_v58 }
 0x23b   : > { %14000 = vst [vmem:[#allocation42_spill] sm:$0xff] %v10898_v9  ;;  %v14002_v49 = vrot.slane %v14001_v61, 7  ;;  %v7819_v17 = vunpack.i.l.bf16 %v10833_v43  ;;  %v7845_v18 = vunpack.i.h.bf16 %v7843_v56  ;;  %v7844_v60 = vunpack.i.l.bf16 %v7843_v56 }
 0x23c   : > { %v1916_v13 = vsel %vm1151_vm1, %v1914_v55, %v13999_v2  ;;  %v13719_v20 = vunpack.i.h.bf16 %v10882_v32  ;;  %v7829_v37 = vunpack.i.l.bf16 %v10882_v32  ;;  %v1324_v55 = vadd.f32 %v1214_v0, %v10728_v19  ;;  %v14005_v2 = vld [vmem:[#allocation50_spill] sm:$0xff] }
 0x23d   : > { %v3500_v4 = vsel %vm3419_vm7, %v14002_v49, %v7809_v41  ;;  %v4084_v51 = vsel %vm3421_vm8, %v4082_v40, %v10735_v23  ;;  %v4081_v12 = vsel %vm3419_vm7, %v14001_v61, %v7835_v59  ;;  %v14004_v41 = vrot.slane %v10053_v21, 7  ;;  %7098 = vmatprep.subr.bf16.mxu1 %v14005_v2  ;;  %v4047_v23 = vpop.permute.xlu1 %4046 }
 0x23e   : > { %v2028_v56 = vadd.f32 %v1916_v13, %v10738_v29  ;;  %v10917_v49 = vadd.f32 %v2620_v53, %v2440_v15  ;;  %v3502_v58 = vsel %vm3421_vm8, %v3500_v4, %v7814_v10  ;;  %v4083_v19 = vsel %vm3421_vm8, %v4081_v12, %v7840_v28  ;;  %v14008_v4 = vld [vmem:[#allocation52_spill] sm:$0xff] }
 0x23f   : > { %v4088_v43 = vsel %vm3419_vm7, %v14004_v41, %v7834_v14  ;;  %v3496_v59 = vsel %vm3421_vm8, %v3494_v8, %v7819_v17  ;;  %v4089_v61 = vsel %vm3421_vm8, %v4087_v34, %v7820_v50  ;;  %v10926_v14 = vsel %vm3423_vm9, %v4083_v19, %v7845_v18  ;;  %v14007_v8 = vld [vmem:[#allocation51_spill] sm:$0xff]  ;;  %v10943_v50 = vpop.permute.xlu0 %597 }
 0x240   : > { %v4090_v0 = vsel %vm3421_vm8, %v4088_v43, %v7839_v27  ;;  %14006 = vst [vmem:[#allocation27_spill] sm:$0xff] %v10926_v14  ;;  %v10932_v15 = vsel %vm3423_vm9, %v3496_v59, %v7829_v37  ;;  %v10937_v10 = vsel %vm3423_vm9, %v4089_v61, %v13719_v20  ;;  %v10940_v53 = vmul.f32 %v8593_v47, %v588_v48  ;;  %v14009_v17 = vld [vmem:[#allocation7_spill] sm:$0xff] }
 0x241   : > { %v10929_v29 = vsel %vm3423_vm9, %v4090_v0, %v7844_v60  ;;  %7099 = vmatpush3.bf16.msra.mxu1 %v14007_v8  ;;  %v794_v34 = vmul.f32 %v8582_v39, %v588_v48  ;;  %v10947_v28 = vmul.f32 %v8591_v46, %v588_v48  ;;  %v3504_v27 = vsel %vm3423_vm9, %v3502_v58, %v7824_v38  ;;  %v14010_v60 = vld [vmem:[#allocation6_spill] sm:$0xff]  ;;  %v10971_v61 = vpop.permute.xlu1 %592 }
 0x242   : > { %v4086_v13 = vsel %vm3423_vm9, %v4084_v51, %v4047_v23  ;;  %7100 = vmatprep.subr.bf16.mxu1 %v14008_v4  ;;  %v1394_v18 = vmul.f32 %v14009_v17, %v588_v48  ;;  %v10954_v37 = vmul.f32 %v14010_v60, %v588_v48  ;;  %v2098_v12 = vmul.f32 %v8645_v26, %v588_v48  ;;  %v14012_v8 = vld [vmem:[#allocation14_spill] sm:$0xff] }
 0x243   : > { %v3513_v41 = vrot.slane %v3504_v27, 1  ;;  %v4097_v43 = vrot.slane %v10926_v14, 1  ;;  %v4101_v2 = vrot.slane %v10929_v29, 1  ;;  %v10960_v19 = vmul.f32 %v8641_v22, %v588_v48 }
 0x244   : > { %v796_v38 = vmul.f32 %v8582_v39, %v10943_v50  ;;  %v3510_v51 = vrot.slane %v10932_v15, 1  ;;  %v10966_v58 = vmul.f32 %v10504_v54, %v588_v48  ;;  %v14011_v0 = vrot.slane %v10689_v3, 1  ;;  %v14013_v15 = vld [vmem:[#allocation16_spill] sm:$0xff]  ;;  %v14018_v3 = vld [vmem:[#allocation22_spill] sm:$0xff] }
 0x245   : > { %v4098_v59 = vrot.slane %v4086_v13, 1  ;;  %7101 = vmatpush3.bf16.msra.mxu1 %v14012_v8  ;;  %v4100_v29 = vrot.slane %v10937_v10, 1  ;;  %v923_v27 = vrot.slane %v794_v34, 1  ;;  %v10976_v4 = vmul.f32 %v8615_v1, %v588_v48 }
 0x246   : > { %v3514_v23 = vsel %vm857_vm0, %v14011_v0, %v3513_v41  ;;  %7102 = vmatprep.subr.bf16.mxu1 %v14013_v15  ;;  %v10980_v6 = vadd.f32 %v1394_v18, %v1324_v55  ;;  %v2149_v13 = vadd.f32 %v2098_v12, %v2028_v56  ;;  %v2328_v41 = vrot.slane %v10960_v19, 1  ;;  %v14014_v18 = vld [vmem:[#allocation19_spill] sm:$0xff] }
 0x247   : > { %v3526_v20 = vpack.c.bf16 %v3514_v23, %v3514_v23  ;;  %v926_v0 = vrot.slane %v796_v38, 1  ;;  %v1396_v10 = vmul.f32 %v14009_v17, %v10943_v50  ;;  %v795_v48 = vmul.f32 %v8582_v39, %v10971_v61 }
 0x248   : > { %v2621_v34 = vrot.slane %v10966_v58, 2  ;;  %v4099_v23 = vsel %vm857_vm0, %v4097_v43, %v4098_v59  ;;  %v10992_v55 = vmul.f32 %v14010_v60, %v10943_v50  ;;  %v1031_v56 = vadd.f32 %v10774_v24, %v10812_v57 }
 0x249   : > { %3943 = vmatprep.mubr.bf16.mxu0 %v3526_v20  ;;  %7103 = vmatpush3.bf16.msra.mxu1 %v14014_v18  ;;  %v10999_v20 = vmul.f32 %v8591_v46, %v10943_v50  ;;  %v11003_v12 = vmul.f32 %v8615_v1, %v10943_v50  ;;  %v924_v19 = vrot.slane %v795_v48, 1  ;;  %v14015_v43 = vrot.slane %v10794_v62, 2 }
 0x24a   : > { %v14016_v38 = vrot.slane %v10788_v7, 2  ;;  %v14017_v59 = vmov 0.0   ;;  %v690_v24 = vmul.f32 %v8593_v47, %v10943_v50  ;;  %v2100_v57 = vmul.f32 %v8645_v26, %v10943_v50 }
 0x24b   : > { %7632 = vmatprep.subr.bf16.mxu1 %v14017_v59  ;;  %v689_v8 = vmul.f32 %v8593_v47, %v10971_v61  ;;  %v4112_v48 = vpack.c.bf16 %v4099_v23, %v4099_v23  ;;  %v1447_v62 = vadd.f32 %v1396_v10, %v10839_v16  ;;  %v11021_v7 = vsel %vm857_vm0, %v923_v27, %v924_v19 }
 0x24c   : > { %v1216_v58 = vsel %vm1151_vm1, %v14016_v38, %v14015_v43  ;;  %v927_v18 = vsel %vm857_vm0, %v924_v19, %v926_v0  ;;  %v1035_v43 = vadd.f32 %v926_v0, %v690_v24  ;;  %v13725_v38 = vrot.slane %v10992_v55, 1 }
 0x24d   : > { %v11017_v15 = vadd.f32 %v1216_v58, %v1031_v56  ;;  %v1034_v40 = vadd.f32 %v927_v18, %v689_v8  ;;  %v1736_v14 = vadd.f32 %v10780_v25, %v14018_v3  ;;  %v1220_v33 = vrot.slane %v10999_v20, 2 }
 0x24e   : > { %v13722_v56 = vrot.slane %v11003_v12, 2  ;;  %v11031_v23 = vmul.f32 %v8641_v22, %v10943_v50  ;;  %v14019_v16 = vrot.slane %v10755_v45, 2  ;;  %v14020_v27 = vrot.slane %v10800_v63, 2 }
 0x24f   : > { %v11040_v10 = vmul.f32 %v8591_v46, %v10971_v61  ;;  %v11044_v25 = vmul.f32 %v8641_v22, %v10971_v61  ;;  %v11048_v3 = vmul.f32 %v10504_v54, %v10971_v61  ;;  %v2151_v20 = vadd.f32 %v2100_v57, %v10806_v11 }
 0x250   : > { %v1918_v0 = vsel %vm1151_vm1, %v14020_v27, %v14019_v16  ;;  %v11053_v45 = vmul.f32 %v10504_v54, %v10943_v50  ;;  %v14021_v63 = vrot.slane %v10898_v9, 1  ;;  %v11059_v24 = vadd.f32 %v1220_v33, %v1035_v43 }
 0x251   : > { %v2029_v19 = vadd.f32 %v1918_v0, %v1736_v14  ;;  %v4102_v14 = vsel %vm857_vm0, %v4100_v29, %v4101_v2  ;;  %v1740_v8 = vadd.f32 %v13725_v38, %v1447_v62  ;;  %v2329_v18 = vrot.slane %v11044_v25, 1  ;;  %v14029_v38 = vld [vmem:[#allocation23_spill] sm:$0xff] }
 0x252   : > { %v3511_v58 = vsel %vm857_vm0, %v14021_v63, %v3510_v51  ;;  %v13724_v16 = vrot.slane %v11048_v3, 2  ;;  %v4113_v57 = vpack.c.bf16 %v4102_v14, %v4102_v14  ;;  %v14022_v50 = vrot.slane %v10818_v35, 2 }
 0x253   : > { %v3525_v11 = vpack.c.bf16 %v3511_v58, %v3511_v58  ;;  %v2788_v51 = vadd.f32 %v10637_v36, %v10821_v42  ;;  %v2331_v2 = vrot.slane %v11031_v23, 1  ;;  %v13723_v29 = vrot.slane %v11040_v10, 2  ;;  %v11085_v23 = vld [vmem:[%s13619_s3 + $0x80] sm:$0xff]  }
 0x254   : > { %v2734_v27 = vadd.f32 %v14022_v50, %v10865_v30  ;;  %v2099_v62 = vmul.f32 %v8645_v26, %v10971_v61  ;;  %v2330_v43 = vsel %vm857_vm0, %v2328_v41, %v2329_v18  ;;  %v2623_v25 = vsel %vm1151_vm1, %v2621_v34, %v13724_v16  ;;  %4230 = vmatprep.mubr.bf16.mxu1 %v4113_v57  ;;  %v14025_v34 = vld [vmem:[#allocation20_spill] sm:$0xff]  ;;  %v14026_v58 = vld [vmem:[#allocation17_spill] sm:$0xff] }
 0x255   : > { %v2442_v0 = vadd.f32 %v2330_v43, %v2149_v13  ;;  %3944 = vmatmul.mubr.bf16.vlgmr.msra.gmra.mrb[4].mxu0 %v3525_v11  ;;  %v2789_v35 = vadd.f32 %v10637_v36, %v10768_v31  ;;  %v2871_v42 = vrot.slane %v10856_v52, 1  ;;  %v11090_v13 = vadd.f32 %v10637_v36, %v10917_v49  ;;  %4231 = vmatmul.mubr.bf16.vlgmr.msra.gmra.mrb[12].mxu1 %v4112_v48  ;;  %v8249_v50 = vld [vmem:[%s13619_s3 + $0xc8] sm:$0xff]   ;;  %v14028_v16 = vld [vmem:[#allocation40_spill] sm:$0xff] }
 0x256   : > { %7067 = vmatpush3.bf16.msra.mxu0 %v11085_v23  ;;  %v11093_v41 = vadd.f32 %v10637_v36, %v2734_v27  ;;  %v2824_v31 = vmax.f32 %v14025_v34, %v2788_v51  ;;  %v2895_v57 = vrot.slane %v10856_v52, 2  ;;  %v11104_v49 = vadd.f32 %v13722_v56, %v1740_v8  ;;  %v14027_v43 = vld [vmem:[#allocation38_spill] sm:$0xff]  ;;  %7636 = vmatprep.mubr.msk.bf16.mxu1 %vm8439_vm10, %v14017_v59 }
 0x257   : > { %14023 = vst [vmem:[#allocation21_spill] sm:$0xff] %v11090_v13  ;;  %v2735_v63 = vadd.f32 %v2623_v25, %v2442_v0  ;;  %v2825_v14 = vmax.f32 %v14026_v58, %v2789_v35  ;;  %v2887_v11 = vmax.f32 %v10856_v52, %v2871_v42  ;;  %7068 = vmatprep.subr.bf16.mxu0 %v8249_v50  ;;  %v11120_v58 = vpop.permute.xlu0 %607 }
 0x258   : > { %14024 = vst [vmem:[#allocation25_spill] sm:$0xff] %v11093_v41  ;;  %v1501_v27 = vmul.f32 %v14010_v60, %v10971_v61  ;;  %v2848_v48 = vmax.f32 %v2824_v31, %v11090_v13  ;;  %v1221_v51 = vsel %vm1151_vm1, %v13723_v29, %v1220_v33  ;;  %7633 = vmatpush3.bf16.msra.mxu1 %v14027_v43  ;;  %v8250_v33 = vld [vmem:[%s13619_s3 + $0x88] sm:$0xff]  }
 0x259   : > { %v11114_v52 = vadd.f32 %v10637_v36, %v2735_v63  ;;  %v2849_v0 = vmax.f32 %v2825_v14, %v11093_v41  ;;  %v2911_v25 = vmax.f32 %v2887_v11, %v2895_v57  ;;  %v1328_v35 = vadd.f32 %v1221_v51, %v1034_v40  ;;  %7634 = vmatprep.subr.bf16.mxu1 %v14017_v59  ;;  %v8251_v57 = vld [vmem:[%s13619_s3 + $0xd0] sm:$0xff]   ;;  %v14053_v41 = vld [vmem:[#allocation8_spill] sm:$0xff] }
 0x25a   : > { %v2444_v8 = vadd.f32 %v2331_v2, %v2151_v20  ;;  %v1395_v42 = vmul.f32 %v14009_v17, %v10971_v61  ;;  %v2927_v34 = vrot.slane %v2848_v48, 2  ;;  %v2951_v31 = vrot.slane %v2848_v48, 1  ;;  %7069 = vmatpush3.bf16.msra.mxu0 %v8250_v33 }
 0x25b   : > { %v2150_v63 = vadd.f32 %v2099_v62, %v2029_v19  ;;  %v3023_v20 = vrot.slane %v2911_v25, 1  ;;  %v3039_v14 = vrot.slane %v2911_v25, 2  ;;  %7070 = vmatprep.subr.bf16.mxu0 %v8251_v57  ;;  %v1627_v51 = vrot.slane %v1501_v27, 1 }
 0x25c   : > { %v2332_v43 = vsel %vm857_vm0, %v2329_v18, %v2331_v2  ;;  %v2943_v56 = vmax.f32 %v2887_v11, %v2927_v34  ;;  %v2967_v29 = vmax.f32 %v2848_v48, %v2951_v31  ;;  %7635 = vmatpush3.bf16.msra.mxu1 %v14028_v16  ;;  %v11136_v19 = vmul.f32 %v8615_v1, %v10971_v61  ;;  %v8252_v16 = vld [vmem:[%s13619_s3 + $0x90] sm:$0xff]  }
 0x25d   : > { %v2991_v62 = vrot.slane %v2849_v0, 2  ;;  %v3160_v40 = vsel %vm3155_vm2, %v2911_v25, %v3023_v20  ;;  %v1398_v30 = vmul.f32 %v14009_v17, %v11120_v58  ;;  %7135 = vmatprep.subr.bf16.mxu1 %v14029_v38  ;;  %v1446_v27 = vadd.f32 %v1395_v42, %v11017_v15  ;;  %v8253_v38 = vld [vmem:[%s13619_s3 + $0xd8] sm:$0xff]  }
 0x25e   : > { %v2975_v32 = vmax.f32 %v2967_v29, %v2927_v34  ;;  %v3063_v18 = vrot.slane %v2943_v56, 3  ;;  %v3169_v2 = vsel %vm3164_vm3, %v3160_v40, %v3039_v14  ;;  %7071 = vmatpush3.bf16.msra.mxu0 %v8252_v16  ;;  %v1919_v61 = vrot.slane %v10976_v4, 2  ;;  %v14030_v15 = vld [vmem:[#allocation47_spill] sm:$0xff] }
 0x25f   : > { %v2443_v11 = vadd.f32 %v2332_v43, %v2150_v63  ;;  %v3007_v48 = vmax.f32 %v2967_v29, %v2991_v62  ;;  %v11148_v0 = vadd.f32 %v1398_v30, %v1328_v35  ;;  %7072 = vmatprep.subr.bf16.mxu0 %v8253_v38  ;;  %v14031_v56 = vpack.c.bf16 %v14030_v15, %v14030_v15  ;;  %v11164_v30 = vpop.permute.xlu1 %602 }
 0x260   : > { %v14032_v25 = vrot.slane %v10992_v55, 1  ;;  %v3087_v34 = vrot.slane %v2975_v32, 4  ;;  %v3103_v4 = vrot.slane %v2975_v32, 5  ;;  %v11162_v29 = vmul.f32 %v14010_v60, %v11120_v58 }
 0x261   : > { %7637 = vmatmul.mubr.msk.bf16.vlgmr.msra.gmra.mrb[16].mxu1 %vm3419_vm7, %v14031_v56  ;;  %v14033_v35 = vrot.slane %v11053_v45, 2  ;;  %v14035_v63 = vrot.slane %v10954_v37, 1  ;;  %v1920_v40 = vrot.slane %v11136_v19, 2  ;;  %v3178_v20 = vsel %vm3173_vm4, %v3169_v2, %v3063_v18  ;;  %v11184_v37 = vpop.permute.xlu0 %7847 }
 0x262   : > { %v1630_v42 = vsel %vm857_vm0, %v1627_v51, %v14032_v25  ;;  %7136 = vmatpush3.bf16.msra.mxu1 %v11085_v23  ;;  %v14037_v43 = vrot.slane %v11048_v3, 2  ;;  %v3119_v23 = vrot.slane %v2975_v32, 6  ;;  %v3187_v15 = vsel %vm3182_vm5, %v3178_v20, %v3087_v34  ;;  %v8255_v32 = vld [vmem:[%s13619_s3 + $0xe0] sm:$0xff]  }
 0x263   : > { %v11169_v31 = vadd.f32 %v14033_v35, %v2444_v8  ;;  %v1628_v55 = vsel %vm857_vm0, %v14035_v63, %v1627_v51  ;;  %7137 = vmatprep.subr.bf16.mxu1 %v8249_v50  ;;  %v14036_v14 = vmov %v14033_v35  ;;  %v1033_v8 = vadd.f32 %v11021_v7, %v10940_v53  ;;  %v8254_v51 = vld [vmem:[%s13619_s3 + $0x98] sm:$0xff]   ;;  %v11225_v35 = vld [vmem:[%s13619_s3 + $0xa0] sm:$0xff]  }
 0x264   : > { %v2625_v62 = vsel %vm1151_vm1, %v14037_v43, %v14036_v14  ;;  %7073 = vmatpush3.bf16.msra.mxu0 %v8254_v51  ;;  %v1739_v50 = vadd.f32 %v1630_v42, %v1446_v27  ;;  %v3143_v45 = vrot.slane %v3007_v48, 7  ;;  %v3196_v3 = vsel %vm3191_vm6, %v3187_v15, %v3103_v4 }
 0x265   : > { %14034 = vst [vmem:[#allocation46_spill] sm:$0xff] %v11169_v31  ;;  %v11189_v19 = vadd.f32 %v2625_v62, %v2443_v11  ;;  %7074 = vmatprep.subr.bf16.mxu0 %v8255_v32  ;;  %v3204_v53 = vsel %vm1151_vm1, %v3196_v3, %v3119_v23  ;;  %v13727_v7 = vrot.slane %v11162_v29, 1  ;;  %v11199_v18 = vmul.f32 %v8641_v22, %v11120_v58  ;;  %v11250_v15 = vpop.permute.xlu0 %7857 }
 0x266   : > { %v14039_v27 = vrot.slane %v11040_v10, 2  ;;  %v14040_v2 = vrot.slane %v10947_v28, 2  ;;  %7138 = vmatpush3.bf16.msra.mxu1 %v8250_v33  ;;  %v3212_v48 = vsel %vm857_vm0, %v3204_v53, %v3143_v45  ;;  %v1397_v25 = vmul.f32 %v14009_v17, %v11164_v30  ;;  %v11220_v33 = vpop.permute.xlu1 %612 }
 0x267   : > { %14038 = vst [vmem:[#allocation24_spill] sm:$0xff] %v11189_v19  ;;  %v1503_v42 = vmul.f32 %v14010_v60, %v11164_v30  ;;  %7139 = vmatprep.subr.bf16.mxu1 %v8251_v57  ;;  %v3228_v34 = vrot.slane %v3212_v48, 6  ;;  %v11213_v4 = vmul.f32 %v8582_v39, %v11120_v58  ;;  %v11217_v28 = vmul.f32 %v8591_v46, %v11120_v58 }
 0x268   : > { %v1219_v11 = vsel %vm1151_vm1, %v14040_v2, %v14039_v27  ;;  %v1738_v10 = vadd.f32 %v1628_v55, %v10980_v6  ;;  %7075 = vmatpush3.bf16.msra.mxu0 %v11225_v35  ;;  %v11230_v57 = vmul.f32 %v10504_v54, %v11120_v58  ;;  %v11234_v63 = vmul.f32 %v8582_v39, %v11164_v30  ;;  %v11239_v6 = vld [vmem:[%s13619_s3 + $0xe8] sm:$0xff]  }
 0x269   : > { %v1327_v56 = vadd.f32 %v1219_v11, %v1033_v8  ;;  %v1631_v14 = vrot.slane %v1503_v42, 1  ;;  %7076 = vmatprep.subr.bf16.mxu0 %v11239_v6  ;;  %v11243_v55 = vsel %vm3164_vm3, 0.0, %v3228_v34  ;;  %v11246_v43 = vsel %vm3164_vm3, %v3228_v34, 0.0  ;;  %v11269_v11 = vld [vmem:[%s13619_s3 + $0xa8] sm:$0xff]   ;;  %v11284_v42 = vld [vmem:[%s13619_s3 + $0xf0] sm:$0xff]  }
 0x26a   : > { %v13728_v62 = vrot.slane %v11199_v18, 1  ;;  %v1921_v23 = vsel %vm1151_vm1, %v1919_v61, %v1920_v40  ;;  %7140 = vmatpush3.bf16.msra.mxu1 %v8252_v16  ;;  %v7891_v8 = vpack.i.bf16 %v11246_v43, %v11243_v55  ;;  %v2101_v53 = vmul.f32 %v8645_v26, %v11164_v30 }
 0x26b   : > { %v1448_v20 = vadd.f32 %v1397_v25, %v1327_v56  ;;  %v1633_v45 = vsel %vm857_vm0, %v1631_v14, %v13727_v7  ;;  %v2031_v3 = vadd.f32 %v1921_v23, %v1738_v10  ;;  %7141 = vmatprep.subr.bf16.mxu1 %v8253_v38  ;;  %v2207_v61 = vmul.f32 %v8641_v22, %v11164_v30 }
 0x26c   : > { %v2500_v16 = vmul.f32 %v10504_v54, %v11164_v30  ;;  %v4360_v2 = vrot.slane %v11243_v55, 1  ;;  %7077 = vmatpush3.bf16.msra.mxu0 %v11269_v11  ;;  %7892 = vrot.lane.b32.xlu0 %v7891_v8, %s8437_s17  ;;  %v14041_v38 = vrot.slane %v11003_v12, 2  ;;  %v11278_v56 = vmul.f32 %v8615_v1, %v11120_v58  ;;  %v11332_v8 = vld [vmem:[%s13619_s3 + $0xf8] sm:$0xff]  }
 0x26d   : > { %v11259_v27 = vadd.f32 %v1633_v45, %v1448_v20  ;;  %v2152_v54 = vadd.f32 %v2101_v53, %v2031_v3  ;;  %v4361_v25 = vrot.slane %v11246_v43, 1  ;;  %7078 = vmatprep.subr.bf16.mxu0 %v11284_v42  ;;  %v11289_v34 = vmul.f32 %v8593_v47, %v11120_v58  ;;  %v11292_v20 = vpop.permute.xlu1 %7852 }
 0x26e   : > { %v1923_v48 = vsel %vm1151_vm1, %v1920_v40, %v14041_v38  ;;  %v13729_v12 = vrot.slane %v11230_v57, 2  ;;  %v2333_v40 = vrot.slane %v2207_v61, 1  ;;  %v2626_v10 = vrot.slane %v2500_v16, 2  ;;  %7142 = vmatpush3.bf16.msra.mxu1 %v8254_v51  ;;  %v11315_v16 = vld [vmem:[%s13619_s3 + $0xb0] sm:$0xff]   ;;  %v14044_v38 = vld [vmem:[#allocation33_spill] sm:$0xff] }
 0x26f   : > { %v2032_v14 = vadd.f32 %v1923_v48, %v1739_v50  ;;  %v11297_v45 = vsel %vm857_vm0, %v4360_v2, %v4361_v25  ;;  %7143 = vmatprep.subr.bf16.mxu1 %v8255_v32  ;;  %v928_v3 = vrot.slane %v11234_v63, 1  ;;  %v11308_v51 = vmul.f32 %v8582_v39, %v11220_v33  ;;  %v11310_v50 = vpop.permute.xlu0 %7867  ;;  %v14043_v2 = vld [vmem:[#allocation31_spill] sm:$0xff] }
 0x270   : > { %14042 = vst [vmem:[#allocation49_spill] sm:$0xff] %v11297_v45  ;;  %v2335_v53 = vsel %vm857_vm0, %v2333_v40, %v13728_v62  ;;  %v11304_v61 = vpack.i.bf16 %v4361_v25, %v11297_v45  ;;  %7079 = vmatpush3.bf16.msra.mxu0 %v11315_v16  ;;  %v14045_v48 = vpack.i.bf16 %v14043_v2, %v14044_v38  ;;  %v7850_v38 = vunpack.i.h.bf16 %v11184_v37 }
 0x271   : > { %v2445_v63 = vadd.f32 %v2335_v53, %v2152_v54  ;;  %v1399_v25 = vmul.f32 %v14009_v17, %v11220_v33  ;;  %v11327_v40 = vmul.f32 %v14010_v60, %v11220_v33  ;;  %7080 = vmatprep.subr.bf16.mxu0 %v11332_v8  ;;  %v2102_v54 = vmul.f32 %v8645_v26, %v11120_v58  ;;  %v7863_v45 = vpop.permute.xlu1 %7862 }
 0x272   : > { %7897 = vrot.lane.b32.xlu0 %v14045_v48, %s8437_s17  ;;  %v11339_v53 = vmul.f32 %v8591_v46, %v11164_v30  ;;  %v2628_v2 = vsel %vm1151_vm1, %v2626_v10, %v13729_v12  ;;  %7902 = vrot.lane.b32.xlu1 %v11304_v61, %s8436_s16  ;;  %v11348_v48 = vmul.f32 %v8615_v1, %v11220_v33  ;;  %v14046_v10 = vrot.slane %v11213_v4, 1 }
 0x273   : > { %v691_v32 = vmul.f32 %v8593_v47, %v11164_v30  ;;  %v2738_v7 = vadd.f32 %v2628_v2, %v2445_v63  ;;  %v1450_v58 = vadd.f32 %v1399_v25, %v11059_v24  ;;  %v13732_v62 = vrot.slane %v11327_v40, 1  ;;  %7144 = vmatpush3.bf16.msra.mxu1 %v11225_v35  ;;  %v8262_v63 = vld [vmem:[%s13619_s3 + $0xb8] sm:$0xff]   ;;  %v11380_v2 = vld [vmem:[%s13619_s3 + $0x40] sm:$0xff]  }
 0x274   : > { %v11355_v23 = vadd.f32 %v2102_v54, %v2032_v14  ;;  %v930_v12 = vsel %vm857_vm0, %v928_v3, %v14046_v10  ;;  %v7849_v9 = vunpack.i.l.bf16 %v11184_v37  ;;  %7081 = vmatpush3.bf16.msra.mxu0 %v8262_v63  ;;  %7145 = vmatprep.subr.bf16.mxu1 %v11239_v6  ;;  %v931_v35 = vrot.slane %v11308_v51, 1  ;;  %v14047_v37 = vld [vmem:[#allocation34_spill] sm:$0xff]  ;;  %v14048_v25 = vld [vmem:[#allocation35_spill] sm:$0xff]  ;;  %14050 = vst [vmem:[#allocation50_spill] sm:$0xff] %v11380_v2 }
 0x275   : > { %v11367_v24 = vadd.f32 %v10637_v36, %v2738_v7  ;;  %v1743_v14 = vadd.f32 %v13732_v62, %v1450_v58  ;;  %v13734_v3 = vrot.slane %v11348_v48, 2  ;;  %v14049_v54 = vpack.i.bf16 %v14047_v37, %v14048_v25  ;;  %7113 = vmatprep.subr.bf16.mxu0 %v11380_v2  ;;  %v11390_v58 = vpop.permute.xlu0 %7877 }
 0x276   : > { %v11386_v7 = vmul.f32 %v8641_v22, %v11220_v33  ;;  %v4369_v6 = vrot.slane %v11243_v55, 2  ;;  %v4370_v51 = vrot.slane %v11246_v43, 2  ;;  %v11394_v10 = vmul.f32 %v8615_v1, %v11164_v30 }
 0x277   : > { %7907 = vrot.lane.b32.xlu0 %v14049_v54, %s8436_s16  ;;  %v14051_v37 = vmax.f32 %v10829_v44, %v11114_v52  ;;  %v693_v36 = vmul.f32 %v8593_v47, %v11220_v33  ;;  %v11406_v62 = vadd.f32 %v13734_v3, %v1743_v14  ;;  %7146 = vmatpush3.bf16.msra.mxu1 %v11269_v11  ;;  %v7865_v13 = vunpack.i.h.bf16 %v7863_v45 }
 0x278   : > { %v11409_v25 = vadd.f32 %v930_v12, %v691_v32  ;;  %v11413_v30 = vsel %vm3419_vm7, %v14053_v41, %v7850_v38  ;;  %v11417_v44 = vmul.f32 %v8591_v46, %v11220_v33  ;;  %v11420_v52 = vsel %vm1151_vm1, %v4369_v6, %v4370_v51  ;;  %7147 = vmatprep.subr.bf16.mxu1 %v11284_v42  ;;  %v14056_v41 = vld [vmem:[#allocation43_spill] sm:$0xff]  ;;  %v14057_v32 = vld [vmem:[#allocation44_spill] sm:$0xff]  ;;  %v7873_v42 = vpop.permute.xlu1 %7872 }
 0x279   : > { %v11400_v54 = vmax.f32 %v14051_v37, %v11367_v24  ;;  %14054 = vst [vmem:[#allocation52_spill] sm:$0xff] %v11420_v52  ;;  %v14055_v37 = vld [vmem:[#allocation28_spill] sm:$0xff]  ;;  %v1038_v3 = vadd.f32 %v931_v35, %v693_v36  ;;  %v7911_v11 = vpack.i.bf16 %v4370_v51, %v11420_v52  ;;  %v7854_v12 = vunpack.i.l.bf16 %v11292_v20  ;;  %v14060_v52 = vld [vmem:[#allocation26_spill] sm:$0xff] }
 0x27a   : > { %v4029_v14 = vsel %vm3419_vm7, %v14055_v37, %v7849_v9  ;;  %v14058_v38 = vpack.i.bf16 %v14056_v41, %v14057_v32  ;;  %v2336_v47 = vrot.slane %v11386_v7, 1  ;;  %v7859_v6 = vunpack.i.l.bf16 %v11250_v15  ;;  %v11437_v9 = vld [vmem:[%s13617_s1 + $0x8] ss:$0 sm:$0xff] }
 0x27b   : > { %14052 = vst [vmem:[#allocation51_spill] sm:$0xff] %v11400_v54  ;;  %v7864_v31 = vunpack.i.l.bf16 %v7863_v45  ;;  %v11441_v36 = vmul.f32 %v11437_v9, %v11220_v33  ;;  %7912 = vrot.lane.b32.xlu1 %v7911_v11, %s8438_s22  ;;  %v4030_v7 = vsel %vm3421_vm8, %v4029_v14, %v7854_v12  ;;  %7148 = vmatpush3.bf16.msra.mxu1 %v11315_v16  ;;  %v1225_v45 = vrot.slane %v11417_v44, 2  ;;  %v14059_v37 = vld [vmem:[#allocation29_spill] sm:$0xff]  ;;  %v11452_v54 = vpop.permute.xlu0 %7887 }
 0x27c   : > { %7917 = vrot.lane.b32.xlu0 %v14058_v38, %s8438_s22  ;;  %v2103_v51 = vmul.f32 %v8645_v26, %v11220_v33  ;;  %v4326_v41 = vsel %vm3419_vm7, %v14059_v37, %v7865_v13  ;;  %v4031_v38 = vsel %vm3423_vm9, %v4030_v7, %v7859_v6  ;;  %7149 = vmatprep.subr.bf16.mxu1 %v11332_v8  ;;  %v7875_v44 = vunpack.i.h.bf16 %v7873_v42 }
 0x27d   : > { %v4329_v19 = vsel %vm3419_vm7, %v14060_v52, %v7864_v31  ;;  %v4111_v16 = vpack.c.bf16 %v4031_v38, %v4031_v38  ;;  %v7874_v14 = vunpack.i.l.bf16 %v7873_v42  ;;  %v14061_v33 = vrot.slane %v11213_v4, 1 }
 0x27e   : > { %v14062_v13 = vrot.slane %v11199_v18, 1  ;;  %v7870_v7 = vunpack.i.h.bf16 %v11310_v50  ;;  %v7869_v8 = vunpack.i.l.bf16 %v11310_v50  ;;  %v11467_v37 = vadd.f32 %v1225_v45, %v1038_v3 }
 0x27f   : > { %v932_v12 = vsel %vm857_vm0, %v14061_v33, %v931_v35  ;;  %v14063_v31 = vrot.slane %v11327_v40, 1  ;;  %v13740_v4 = vrot.slane %v11441_v36, 2  ;;  %4190 = vmatprep.mubr.bf16.mxu0 %v4111_v16  ;;  %7150 = vmatpush3.bf16.msra.mxu1 %v8262_v63  ;;  %v11476_v35 = vpop.permute.xlu1 %7882  ;;  %v4378_v42 = vrot.slane %v11243_v55, 3 }
 0x280   : > { %7927 = vrot.lane.b32.xlu0 %v11304_v61, %s8437_s17  ;;  %v2337_v6 = vsel %vm857_vm0, %v14062_v13, %v2336_v47  ;;  %v14064_v61 = vrot.slane %v11162_v29, 1  ;;  %v4327_v18 = vsel %vm3421_vm8, %v4326_v41, %v7870_v7  ;;  %v11480_v50 = vrot.slane %v11246_v43, 3  ;;  %7640 = vmatprep.subr.bf16.mxu1 %v14017_v59  ;;  %v11495_v13 = vpop.permute.xlu0 %622 }
 0x281   : > { %v4330_v3 = vsel %vm3421_vm8, %v4329_v19, %v7869_v8  ;;  %v2154_v29 = vadd.f32 %v2103_v51, %v11104_v49  ;;  %v2446_v40 = vadd.f32 %v2337_v6, %v11355_v23  ;;  %v4328_v38 = vsel %vm3423_vm9, %v4327_v18, %v7875_v44 }
 0x282   : > { %v1635_v52 = vsel %vm857_vm0, %v14064_v61, %v14063_v31  ;;  %v4331_v63 = vsel %vm3423_vm9, %v4330_v3, %v7874_v14  ;;  %v7855_v41 = vunpack.i.h.bf16 %v11292_v20  ;;  %v7879_v16 = vunpack.i.l.bf16 %v11390_v58  ;;  %v383_v3 = vld [vmem:[%s8544_s25 + $0x1a0] sm:$0xff] }
 0x283   : > { %v11493_v33 = vsel %vm3191_vm6, %v4378_v42, %v11480_v50  ;;  %v4412_v19 = vpack.c.bf16 %v4331_v63, %v4331_v63  ;;  %v7884_v23 = vunpack.i.l.bf16 %v11476_v35  ;;  %v1742_v51 = vadd.f32 %v1635_v52, %v11148_v0  ;;  %v11533_v42 = vpop.permute.xlu1 %617 }
 0x284   : > { %7937 = vrot.lane.b32.xlu0 %v7911_v11, %s8436_s16  ;;  %14065 = vst [vmem:[#allocation7_spill] sm:$0xff] %v11493_v33  ;;  %v7946_v11 = vpack.i.bf16 %v11480_v50, %v11493_v33  ;;  %v14066_v20 = vrot.slane %v11230_v57, 2  ;;  %v4411_v14 = vpack.c.bf16 %v4328_v38, %v4328_v38  ;;  %v1037_v6 = vadd.f32 %v932_v12, %v11289_v34 }
 0x285   : > { %4491 = vmatprep.mubr.bf16.mxu1 %v4412_v19  ;;  %v14067_v7 = vrot.slane %v11348_v48, 2  ;;  %v14068_v8 = vrot.slane %v11278_v56, 2  ;;  %v11513_v61 = vadd.f32 %v2336_v47, %v2154_v29  ;;  %v11520_v52 = vmul.f32 %v14010_v60, %v11495_v13  ;;  %v14069_v48 = vld [vmem:[#allocation12_spill] sm:$0xff] }
 0x286   : > { %v2630_v44 = vsel %vm1151_vm1, %v14066_v20, %v13740_v4  ;;  %v11524_v34 = vsel %vm3421_vm8, %v11413_v30, %v7855_v41  ;;  %v4323_v12 = vsel %vm3419_vm7, %v14069_v48, %v7879_v16  ;;  %v11531_v47 = vmul.f32 %v8615_v1, %v11495_v13  ;;  %4492 = vmatmul.mubr.bf16.vlgmr.msra.gmra.mrb[20].mxu1 %v4411_v14  ;;  %v8265_v41 = vld [vmem:[%s13619_s3 + $0x180] sm:$0xff]  }
 0x287   : > { %v1928_v31 = vsel %vm1151_vm1, %v14068_v8, %v14067_v7  ;;  %v11515_v0 = vadd.f32 %v2630_v44, %v2446_v40  ;;  %v11537_v29 = vsel %vm3421_vm8, %v4323_v12, %v7884_v23  ;;  %v14070_v30 = vrot.slane %v11217_v28, 2  ;;  %7641 = vmatpush3.bf16.msra.mxu1 %v8265_v41  ;;  %7644 = vmatprep.mubr.msk.bf16.mxu1 %vm8439_vm10, %v14017_v59  ;;  %v11576_v12 = vpop.permute.xlu0 %632  ;;  %v385_v28 = vld [vmem:[%s8544_s25 + $0x1b0] sm:$0xff]  ;;  %v11593_v16 = vpop.permute.xlu1 %627 }
 0x288   : > { %7947 = vrot.lane.b32.xlu0 %v7946_v11, %s8438_s22  ;;  %v2035_v57 = vadd.f32 %v1928_v31, %v1742_v51  ;;  %v11545_v63 = vmul.f32 %v8641_v22, %v11495_v13  ;;  %v1401_v23 = vmul.f32 %v14009_v17, %v11495_v13  ;;  %7642 = vmatprep.subr.bf16.mxu1 %v14017_v59  ;;  %v1637_v11 = vrot.slane %v11520_v52, 1 }
 0x289   : > { %v1226_v38 = vsel %vm1151_vm1, %v14070_v30, %v1225_v45  ;;  %v2105_v45 = vmul.f32 %v8645_v26, %v11495_v13  ;;  %v11561_v51 = vmul.f32 %v11437_v9, %v11495_v13  ;;  %v14071_v20 = vmov %v14070_v30  ;;  %14073 = vst [vmem:[#allocation6_spill] sm:$0xff] %v11576_v12  ;;  %14076 = vst [vmem:[#allocation14_spill] sm:$0xff] %v11593_v16 }
 0x28a   : > { %v1331_v19 = vadd.f32 %v1226_v38, %v1037_v6  ;;  %v14072_v44 = vrot.slane %v11339_v53, 2  ;;  %v1400_v6 = vmul.f32 %v14009_v17, %v11533_v42  ;;  %v13742_v7 = vrot.slane %v11531_v47, 2 }
 0x28b   : > { %v1506_v31 = vmul.f32 %v14010_v60, %v11533_v42  ;;  %v1799_v48 = vmul.f32 %v8615_v1, %v11533_v42  ;;  %v2339_v53 = vrot.slane %v11545_v63, 1  ;;  %v14074_v30 = vrot.slane %v11278_v56, 2 }
 0x28c   : > { %v1224_v14 = vsel %vm1151_vm1, %v14072_v44, %v14071_v20  ;;  %1346 = vperm.xlu0 %7754, %v383_v3   ;;  %v14075_v38 = vrot.slane %v11394_v10, 2  ;;  %v2210_v41 = vmul.f32 %v8641_v22, %v11533_v42  ;;  %v8266_v20 = vld [vmem:[%s13619_s3 + $0x188] sm:$0xff]   ;;  %v2632_v10 = vrot.slane %v11561_v51, 2 }
 0x28d   : > { %v1330_v8 = vadd.f32 %v1224_v14, %v11409_v25  ;;  %v2104_v25 = vmul.f32 %v8645_v26, %v11533_v42  ;;  %7643 = vmatpush3.bf16.msra.mxu1 %v8266_v20  ;;  %v1636_v14 = vrot.slane %v1506_v31, 1  ;;  %v1929_v63 = vrot.slane %v1799_v48, 2 }
 0x28e   : > { %v1926_v3 = vsel %vm1151_vm1, %v14075_v38, %v14074_v30  ;;  %7182 = vmatprep.subr.bf16.mxu1 %v11380_v2  ;;  %v2338_v30 = vrot.slane %v2210_v41, 1  ;;  %v2503_v38 = vmul.f32 %v11437_v9, %v11533_v42  ;;  %v11601_v40 = vmul.f32 %v8641_v22, %v11576_v12 }
 0x28f   : > { %v1451_v44 = vadd.f32 %v1400_v6, %v1330_v8  ;;  %v2034_v56 = vadd.f32 %v1926_v3, %v11259_v27  ;;  %v11605_v6 = vmul.f32 %v8582_v39, %v11495_v13  ;;  %v11609_v27 = vmul.f32 %v8591_v46, %v11495_v13 }
 0x290   : > { %2048 = vperm.xlu0 %7754, %v385_v28   ;;  %v1638_v51 = vsel %vm857_vm0, %v1636_v14, %v1637_v11  ;;  %v1452_v31 = vadd.f32 %v1401_v23, %v1331_v19  ;;  %v2340_v3 = vsel %vm857_vm0, %v2338_v30, %v2339_v53  ;;  %v2631_v41 = vrot.slane %v2503_v38, 2  ;;  %v11652_v38 = vld [vmem:[%s13618_s2] ss:$0 sm:$0xff] }
 0x291   : > { %v2155_v8 = vadd.f32 %v2104_v25, %v2034_v56  ;;  %v1744_v48 = vadd.f32 %v1638_v51, %v1451_v44  ;;  %v2156_v20 = vadd.f32 %v2105_v45, %v2035_v57  ;;  %v1931_v4 = vsel %vm1151_vm1, %v1929_v63, %v13742_v7  ;;  %v11640_v63 = vpop.permute.xlu1 %637 }
 0x292   : > { %v2107_v18 = vmul.f32 %v8645_v26, %v11576_v12  ;;  %v2633_v49 = vsel %vm1151_vm1, %v2631_v41, %v2632_v10  ;;  %v11624_v19 = vmul.f32 %v11437_v9, %v11576_v12  ;;  %v1402_v23 = vmul.f32 %v14009_v17, %v11593_v16 }
 0x293   : > { %v2448_v28 = vadd.f32 %v2340_v3, %v2155_v8  ;;  %v14077_v57 = vpack.i.bf16 %v10147_v5, %v14057_v32  ;;  %v11634_v25 = vmul.f32 %v8582_v39, %v11593_v16  ;;  %v1508_v44 = vmul.f32 %v14010_v60, %v11593_v16 }
 0x294   : > { %v1801_v14 = vmul.f32 %v8615_v1, %v11593_v16  ;;  %v2037_v56 = vadd.f32 %v1931_v4, %v1744_v48  ;;  %v11644_v30 = vmul.f32 %v8591_v46, %v11593_v16  ;;  %v1453_v5 = vadd.f32 %v1402_v23, %v11467_v37 }
 0x295   : > { %7952 = vrot.lane.b32.xlu0 %v14077_v57, %s8437_s17  ;;  %v2741_v45 = vadd.f32 %v2633_v49, %v2448_v28  ;;  %v2106_v49 = vmul.f32 %v8645_v26, %v11593_v16  ;;  %v1639_v8 = vrot.slane %v1508_v44, 1  ;;  %v2212_v4 = vmul.f32 %v8641_v22, %v11593_v16  ;;  %v11683_v12 = vpop.permute.xlu1 %642 }
 0x296   : > { %v1932_v3 = vrot.slane %v1801_v14, 2  ;;  %v2505_v37 = vmul.f32 %v11437_v9, %v11593_v16  ;;  %v14078_v41 = vunpack.i.h.bf16 %v11250_v15  ;;  %v14079_v23 = vunpack.i.l.bf16 %v11452_v54 }
 0x297   : > { %v11655_v51 = vadd.f32 %v11652_v38, %v2741_v45  ;;  %v2157_v48 = vadd.f32 %v2106_v49, %v11406_v62  ;;  %v14080_v45 = vld [vmem:[#allocation48_spill] sm:$0xff]  ;;  %v1640_v15 = vsel %vm857_vm0, %v1637_v11, %v1639_v8  ;;  %v1746_v14 = vadd.f32 %v1639_v8, %v1453_v5 }
 0x298   : > { %v4028_v28 = vsel %vm3423_vm9, %v11524_v34, %v14078_v41  ;;  %v4325_v57 = vsel %vm3423_vm9, %v11537_v29, %v14079_v23  ;;  %v14081_v44 = vpack.i.bf16 %v10053_v21, %v14080_v45  ;;  %v2341_v49 = vrot.slane %v2212_v4, 1 }
 0x299   : > { %v2158_v34 = vadd.f32 %v2107_v18, %v2037_v56  ;;  %v2634_v41 = vrot.slane %v2505_v37, 2  ;;  %v4110_v2 = vpack.c.bf16 %v4028_v28, %v4028_v28  ;;  %v1745_v7 = vadd.f32 %v1640_v15, %v1452_v31  ;;  %v11702_v31 = vld [vmem:[%s13619_s3 + $0x48] sm:$0xff]   ;;  %v14084_v28 = vld [vmem:[#allocation24_spill] sm:$0xff]  ;;  %v14085_v15 = vld [vmem:[#allocation51_spill] sm:$0xff] }
 0x29a   : > { %7957 = vrot.lane.b32.xlu0 %v14081_v44, %s8436_s16  ;;  %v2342_v29 = vsel %vm857_vm0, %v2339_v53, %v2341_v49  ;;  %v2450_v23 = vadd.f32 %v2341_v49, %v2157_v48  ;;  %v4410_v32 = vpack.c.bf16 %v4325_v57, %v4325_v57  ;;  %v14082_v16 = vrot.slane %v11531_v47, 2  ;;  %v11690_v53 = vld [vmem:[%s13619_s3] sm:$0xff]  }
 0x29b   : > { %v2039_v62 = vadd.f32 %v1932_v3, %v1746_v14  ;;  %v2449_v52 = vadd.f32 %v2342_v29, %v2156_v20  ;;  %v2635_v11 = vsel %vm1151_vm1, %v2632_v10, %v2634_v41  ;;  %4191 = vmatmul.mubr.bf16.vlgmr.msra.gmra.mrb[8].mxu0 %v4110_v2  ;;  %v2636_v18 = vrot.slane %v11624_v19, 2 }
 0x29c   : > { %v1933_v44 = vsel %vm1151_vm1, %v14082_v16, %v1932_v3  ;;  %7114 = vmatpush3.bf16.msra.mxu0 %v11690_v53  ;;  %4451 = vmatprep.mubr.bf16.mxu0 %v4410_v32  ;;  %v2108_v47 = vmul.f32 %v8645_v26, %v11640_v63  ;;  %v2214_v16 = vmul.f32 %v8641_v22, %v11640_v63  ;;  %v14083_v3 = vrot.slane %v11441_v36, 2 }
 0x29d   : > { %v2038_v5 = vadd.f32 %v1933_v44, %v1745_v7  ;;  %v2507_v2 = vmul.f32 %v11437_v9, %v11640_v63  ;;  %v2742_v7 = vadd.f32 %v2635_v11, %v2449_v52  ;;  %v2743_v10 = vadd.f32 %v2634_v41, %v2450_v23  ;;  %7115 = vmatprep.subr.bf16.mxu0 %v11702_v31  ;;  %v11739_v11 = vld [vmem:[%s13619_s3 + $0x50] sm:$0xff]  }
 0x29e   : > { %v2109_v32 = vmul.f32 %v8645_v26, %v11683_v12  ;;  %v2215_v20 = vmul.f32 %v8641_v22, %v11683_v12  ;;  %v2344_v19 = vrot.slane %v2214_v16, 1  ;;  %v2508_v8 = vmul.f32 %v11437_v9, %v11683_v12  ;;  %v11723_v9 = vld [vmem:[%s13619_s3 + $0x8] sm:$0xff]  }
 0x29f   : > { %v2637_v56 = vrot.slane %v2507_v2, 2  ;;  %v2740_v4 = vadd.f32 %v14083_v3, %v11513_v61  ;;  %v2794_v57 = vadd.f32 %v11652_v38, %v14084_v28  ;;  %v2872_v14 = vrot.slane %v14085_v15, 1  ;;  %v14087_v61 = vld [vmem:[#allocation46_spill] sm:$0xff] }
 0x2a0   : > { %v2160_v48 = vadd.f32 %v2109_v32, %v2039_v62  ;;  %v2346_v37 = vrot.slane %v2215_v20, 1  ;;  %v2159_v49 = vadd.f32 %v2108_v47, %v2038_v5  ;;  %v14086_v41 = vrot.slane %v11601_v40, 1  ;;  %7116 = vmatpush3.bf16.msra.mxu0 %v11723_v9  ;;  %v14089_v20 = vld [vmem:[#allocation25_spill] sm:$0xff] }
 0x2a1   : > { %v2639_v36 = vrot.slane %v2508_v8, 2  ;;  %v2795_v62 = vadd.f32 %v11652_v38, %v14087_v61  ;;  %v11729_v23 = vadd.f32 %v11652_v38, %v2742_v7  ;;  %v11734_v40 = vadd.f32 %v11652_v38, %v11515_v0  ;;  %7117 = vmatprep.subr.bf16.mxu0 %v11739_v11  ;;  %v14088_v0 = vld [vmem:[#allocation21_spill] sm:$0xff] }
 0x2a2   : > { %v2345_v29 = vsel %vm857_vm0, %v14086_v41, %v2344_v19  ;;  %v2347_v52 = vsel %vm857_vm0, %v2344_v19, %v2346_v37  ;;  %v2638_v5 = vsel %vm1151_vm1, %v2636_v18, %v2637_v56  ;;  %v2453_v47 = vadd.f32 %v2346_v37, %v2160_v48  ;;  %v14092_v61 = vld [vmem:[#allocation13_spill] sm:$0xff] }
 0x2a3   : > { %v2451_v44 = vadd.f32 %v2345_v29, %v2158_v34  ;;  %v11744_v16 = vadd.f32 %v11652_v38, %v2740_v4  ;;  %v11747_v34 = vadd.f32 %v11652_v38, %v2743_v10  ;;  %v2452_v7 = vadd.f32 %v2347_v52, %v2159_v49  ;;  %v11759_v10 = vld [vmem:[%s13619_s3 + $0x10] sm:$0xff]  }
 0x2a4   : > { %v2827_v32 = vmax.f32 %v14088_v0, %v2794_v57  ;;  %v2828_v19 = vmax.f32 %v14089_v20, %v2795_v62  ;;  %v2640_v8 = vsel %vm1151_vm1, %v2637_v56, %v2639_v36  ;;  %v2888_v18 = vmax.f32 %v14085_v15, %v2872_v14  ;;  %7118 = vmatpush3.bf16.msra.mxu0 %v11759_v10  ;;  %v11772_v57 = vld [vmem:[%s13619_s3 + $0x58] sm:$0xff]  }
 0x2a5   : > { %v2744_v2 = vadd.f32 %v2638_v5, %v2451_v44  ;;  %v2831_v3 = vmax.f32 %v11744_v16, %v11747_v34  ;;  %v2896_v48 = vrot.slane %v14085_v15, 2  ;;  %v2830_v28 = vmax.f32 %v11734_v40, %v11729_v23  ;;  %7119 = vmatprep.subr.bf16.mxu0 %v11772_v57  ;;  %v14094_v23 = vld [vmem:[#allocation45_spill] sm:$0xff] }
 0x2a6   : > { %v2851_v37 = vmax.f32 %v2827_v32, %v11734_v40  ;;  %v2852_v56 = vmax.f32 %v2828_v19, %v11744_v16  ;;  %v7966_v14 = vpack.i.bf16 %v14080_v45, %v11493_v33  ;;  %v14090_v49 = vrot.slane %v11480_v50, 1  ;;  %v11793_v32 = vld [vmem:[%s13619_s3 + $0x18] sm:$0xff]  }
 0x2a7   : > { %v11763_v4 = vadd.f32 %v11652_v38, %v2744_v2  ;;  %v2912_v15 = vmax.f32 %v2888_v18, %v2896_v48  ;;  %v14091_v41 = vrot.slane %v11493_v33, 1  ;;  %v14093_v62 = vunpack.i.h.bf16 %v14092_v61  ;;  %v14096_v48 = vld [vmem:[#allocation5_spill] sm:$0xff]  ;;  %v14129_v33 = vld [vmem:[#allocation6_spill] sm:$0xff] }
 0x2a8   : > { %v2745_v52 = vadd.f32 %v2640_v8, %v2452_v7  ;;  %v2746_v40 = vadd.f32 %v2639_v36, %v2453_v47  ;;  %v2928_v5 = vrot.slane %v2851_v37, 2  ;;  %v2952_v16 = vrot.slane %v2851_v37, 1  ;;  %7120 = vmatpush3.bf16.msra.mxu0 %v11793_v32  ;;  %7967 = vrot.lane.b32.xlu0 %v7966_v14, %s8437_s17 }
 0x2a9   : > { %v4405_v29 = vsel %vm857_vm0, %v14091_v41, %v14090_v49  ;;  %v4605_v44 = vsel %vm3423_vm9, %v14094_v23, %v14093_v62  ;;  %v14095_v34 = vmax.f32 %v11367_v24, %v11655_v51  ;;  %v3024_v0 = vrot.slane %v2912_v15, 1  ;;  %v11800_v24 = vld [vmem:[%s13619_s3 + $0x60] sm:$0xff]  }
 0x2aa   : > { %v3040_v50 = vrot.slane %v2912_v15, 2  ;;  %v4415_v7 = vpack.c.bf16 %v4405_v29, %v4405_v29  ;;  %v2944_v36 = vmax.f32 %v2888_v18, %v2928_v5  ;;  %v2968_v47 = vmax.f32 %v2851_v37, %v2952_v16  ;;  %7121 = vmatprep.subr.bf16.mxu0 %v11800_v24 }
 0x2ab   : > { %v2853_v2 = vmax.f32 %v14095_v34, %v11763_v4  ;;  %v2992_v20 = vrot.slane %v2852_v56, 2  ;;  %v4690_v51 = vpack.c.bf16 %v4605_v44, %v4605_v44  ;;  %v7880_v19 = vunpack.i.h.bf16 %v11390_v58  ;;  %v11815_v58 = vld [vmem:[%s13619_s3 + $0x20] sm:$0xff]   ;;  %v11831_v44 = vld [vmem:[%s13619_s3 + $0x68] sm:$0xff]  }
 0x2ac   : > { %v7885_v8 = vunpack.i.h.bf16 %v11476_v35  ;;  %v695_v49 = vmul.f32 %v14096_v48, %v11495_v13  ;;  %v3161_v14 = vsel %vm3155_vm2, %v2912_v15, %v3024_v0  ;;  %7645 = vmatmul.mubr.msk.bf16.vlgmr.msra.gmra.mrb[24].mxu1 %vm3419_vm7, %v4415_v7  ;;  %v934_v18 = vrot.slane %v11605_v6, 1  ;;  %7122 = vmatpush3.bf16.msra.mxu0 %v11815_v58 }
 0x2ad   : > { %v2976_v37 = vmax.f32 %v2968_v47, %v2928_v5  ;;  %v3008_v56 = vmax.f32 %v2968_v47, %v2992_v20  ;;  %v3170_v41 = vsel %vm3164_vm3, %v3161_v14, %v3040_v50  ;;  %7183 = vmatpush3.bf16.msra.mxu1 %v11690_v53  ;;  %4731 = vmatprep.mubr.bf16.mxu1 %v4690_v51  ;;  %v3064_v29 = vrot.slane %v2944_v36, 3  ;;  %v11843_v36 = vld [vmem:[%s13619_s3 + $0x28] sm:$0xff]  }
 0x2ae   : > { %7184 = vmatprep.subr.bf16.mxu1 %v11702_v31  ;;  %v11820_v35 = vadd.f32 %v11652_v38, %v2745_v52  ;;  %v11823_v13 = vadd.f32 %v11652_v38, %v2746_v40  ;;  %v2873_v15 = vrot.slane %v2853_v2, 1  ;;  %v1228_v53 = vrot.slane %v11609_v27, 2  ;;  %7123 = vmatprep.subr.bf16.mxu0 %v11831_v44 }
 0x2af   : > { %v13748_v61 = vrot.slane %v11634_v25, 1  ;;  %v13747_v62 = vrot.slane %v11644_v30, 2  ;;  %v3088_v23 = vrot.slane %v2976_v37, 4  ;;  %v3104_v31 = vrot.slane %v2976_v37, 5 }
 0x2b0   : > { %14097 = vst [vmem:[#allocation16_spill] sm:$0xff] %v11820_v35  ;;  %v3179_v52 = vsel %vm3173_vm4, %v3170_v41, %v3064_v29  ;;  %v2854_v38 = vmax.f32 %v2830_v28, %v11820_v35  ;;  %v2855_v40 = vmax.f32 %v2831_v3, %v11823_v13  ;;  %v3120_v5 = vrot.slane %v2976_v37, 6  ;;  %7124 = vmatpush3.bf16.msra.mxu0 %v11843_v36  ;;  %v14098_v41 = vld [vmem:[#allocation11_spill] sm:$0xff] }
 0x2b1   : > { %v3188_v16 = vsel %vm3182_vm5, %v3179_v52, %v3088_v23  ;;  %7185 = vmatpush3.bf16.msra.mxu1 %v11723_v9  ;;  %v2889_v34 = vmax.f32 %v2853_v2, %v2873_v15  ;;  %v2897_v0 = vrot.slane %v2853_v2, 2  ;;  %v3144_v50 = vrot.slane %v3008_v56, 7  ;;  %v11851_v9 = vld [vmem:[%s13619_s3 + $0x70] sm:$0xff]  }
 0x2b2   : > { %v3197_v7 = vsel %vm3191_vm6, %v3188_v16, %v3104_v31  ;;  %7186 = vmatprep.subr.bf16.mxu1 %v11739_v11  ;;  %v2929_v3 = vrot.slane %v2854_v38, 2  ;;  %v2953_v28 = vrot.slane %v2854_v38, 1  ;;  %7125 = vmatprep.subr.bf16.mxu0 %v11851_v9  ;;  %v2993_v20 = vrot.slane %v2855_v40, 2  ;;  %v11872_v52 = vld [vmem:[%s13619_s3 + $0x30] sm:$0xff]  }
 0x2b3   : > { %v3205_v47 = vsel %vm1151_vm1, %v3197_v7, %v3120_v5  ;;  %v2913_v2 = vmax.f32 %v2889_v34, %v2897_v0  ;;  %v937_v51 = vsel %vm857_vm0, %v934_v18, %v13748_v61  ;;  %v4320_v29 = vsel %vm3419_vm7, %v14098_v41, %v7880_v19  ;;  %v11888_v5 = vld [vmem:[%s13619_s3 + $0x78] sm:$0xff]   ;;  %v14100_v0 = vld [vmem:[#allocation49_spill] sm:$0xff] }
 0x2b4   : > { %v3213_v11 = vsel %vm857_vm0, %v3205_v47, %v3144_v50  ;;  %v2945_v14 = vmax.f32 %v2889_v34, %v2929_v3  ;;  %v2969_v37 = vmax.f32 %v2854_v38, %v2953_v28  ;;  %v1040_v56 = vadd.f32 %v937_v51, %v695_v49  ;;  %7126 = vmatpush3.bf16.msra.mxu0 %v11872_v52  ;;  %v8282_v41 = vld [vmem:[%s13619_s3 + $0x38] sm:$0xff]  }
 0x2b5   : > { %v3229_v15 = vrot.slane %v3213_v11, 6  ;;  %7187 = vmatpush3.bf16.msra.mxu1 %v11759_v10  ;;  %v1231_v23 = vsel %vm1151_vm1, %v1228_v53, %v13747_v62  ;;  %v4321_v31 = vsel %vm3421_vm8, %v4320_v29, %v7885_v8  ;;  %v3025_v49 = vrot.slane %v2913_v2, 1  ;;  %7127 = vmatprep.subr.bf16.mxu0 %v11888_v5 }
 0x2b6   : > { %7188 = vmatprep.subr.bf16.mxu1 %v11772_v57  ;;  %v3009_v19 = vmax.f32 %v2969_v37, %v2993_v20  ;;  %v11876_v10 = vadd.f32 %v1231_v23, %v1040_v56  ;;  %v7890_v38 = vunpack.i.h.bf16 %v11452_v54  ;;  %v2977_v57 = vmax.f32 %v2969_v37, %v2929_v3  ;;  %v382_v56 = vld [vmem:[%s8544_s25 + $0x198] sm:$0xff] }
 0x2b7   : > { %v11880_v40 = vsel %vm3164_vm3, 0.0, %v3229_v15  ;;  %v11883_v8 = vsel %vm3164_vm3, %v3229_v15, 0.0  ;;  %v3041_v3 = vrot.slane %v2913_v2, 2  ;;  %v3065_v51 = vrot.slane %v2945_v14, 3 }
 0x2b8   : > { %14099 = vst [vmem:[#allocation19_spill] sm:$0xff] %v11883_v8  ;;  %v7921_v16 = vpack.i.bf16 %v11883_v8, %v11880_v40  ;;  %v4640_v54 = vrot.slane %v11880_v40, 1  ;;  %v4641_v34 = vrot.slane %v11883_v8, 1  ;;  %v7976_v50 = vpack.i.bf16 %v14100_v0, %v11880_v40  ;;  %7128 = vmatpush3.bf16.msra.mxu0 %v8282_v41 }
 0x2b9   : > { %v4649_v7 = vrot.slane %v11880_v40, 2  ;;  %v4650_v28 = vrot.slane %v11883_v8, 2  ;;  %v4322_v47 = vsel %vm3423_vm9, %v4321_v31, %v7890_v38  ;;  %7189 = vmatpush3.bf16.msra.mxu1 %v11793_v32  ;;  %v3162_v11 = vsel %vm3155_vm2, %v2913_v2, %v3025_v49  ;;  %v8283_v2 = vld [vmem:[%s13619_s3 + $0x140] sm:$0xff]  }
 0x2ba   : > { %7922 = vrot.lane.b32.xlu1 %v7921_v16, %s8437_s17  ;;  %v11903_v20 = vsel %vm857_vm0, %v4640_v54, %v4641_v34  ;;  %7977 = vrot.lane.b32.xlu0 %v7976_v50, %s8438_s22  ;;  %v800_v37 = vmul.f32 %v8582_v39, %v11533_v42  ;;  %v3089_v32 = vrot.slane %v2977_v57, 4  ;;  %v4409_v15 = vpack.c.bf16 %v4322_v47, %v4322_v47  ;;  %v8284_v47 = vld [vmem:[%s13619_s3 + $0x100] sm:$0xff]  }
 0x2bb   : > { %14101 = vst [vmem:[#allocation22_spill] sm:$0xff] %v11903_v20  ;;  %v7986_v29 = vpack.i.bf16 %v4641_v34, %v11903_v20  ;;  %7190 = vmatprep.subr.bf16.mxu1 %v11800_v24  ;;  %v3105_v23 = vrot.slane %v2977_v57, 5  ;;  %7157 = vmatprep.subr.bf16.mxu0 %v8283_v2  ;;  %v11919_v14 = vsel %vm1151_vm1, %v4649_v7, %v4650_v28  ;;  %v4658_v31 = vrot.slane %v11880_v40, 3 }
 0x2bc   : > { %14102 = vst [vmem:[#allocation20_spill] sm:$0xff] %v11919_v14  ;;  %v11923_v49 = vrot.slane %v11883_v8, 3  ;;  %v3171_v38 = vsel %vm3164_vm3, %v3162_v11, %v3041_v3  ;;  %v933_v16 = vrot.slane %v800_v37, 1  ;;  %v1094_v54 = vmul.f32 %v8591_v46, %v11533_v42  ;;  %4452 = vmatmul.mubr.bf16.vlgmr.msra.gmra.mrb[12].mxu0 %v4409_v15  ;;  %v8286_v11 = vld [vmem:[%s13619_s3 + $0x108] sm:$0xff]   ;;  %v387_v15 = vld [vmem:[%s8544_s25 + $0x1c0] sm:$0xf] }
 0x2bd   : > { %7191 = vmatpush3.bf16.msra.mxu1 %v11815_v58  ;;  %v3180_v24 = vsel %vm3173_vm4, %v3171_v38, %v3065_v51  ;;  %v3121_v34 = vrot.slane %v2977_v57, 6  ;;  %v7996_v50 = vpack.i.bf16 %v4650_v28, %v11919_v14  ;;  %v3145_v58 = vrot.slane %v3009_v19, 7  ;;  %7158 = vmatpush3.bf16.msra.mxu0 %v8284_v47  ;;  %v8293_v38 = vld [vmem:[%s13619_s3 + $0x168] sm:$0xff]  }
 0x2be   : > { %1341 = vperm.xlu1 %7755, %v382_v56   ;;  %7987 = vrot.lane.b32.xlu0 %v7986_v29, %s8437_s17  ;;  %v3189_v0 = vsel %vm3182_vm5, %v3180_v24, %v3089_v32  ;;  %v11940_v3 = vsel %vm3191_vm6, %v4658_v31, %v11923_v49  ;;  %v694_v28 = vmul.f32 %v14096_v48, %v11533_v42  ;;  %v1227_v51 = vrot.slane %v1094_v54, 2  ;;  %v8287_v42 = vld [vmem:[%s13619_s3 + $0x150] sm:$0xff]   ;;  %v384_v56 = vld [vmem:[%s8544_s25 + $0x1a8] sm:$0xf]  ;;  %v8289_v32 = vld [vmem:[%s13619_s3 + $0x158] sm:$0xff]  }
 0x2bf   : > { %7192 = vmatprep.subr.bf16.mxu1 %v11831_v44  ;;  %v3198_v7 = vsel %vm3191_vm6, %v3189_v0, %v3105_v23  ;;  %v8285_v44 = vld [vmem:[%s13619_s3 + $0x148] sm:$0xff]   ;;  %v935_v37 = vsel %vm857_vm0, %v933_v16, %v934_v18  ;;  %v8288_v18 = vld [vmem:[%s13619_s3 + $0x110] sm:$0xff]   ;;  %v8292_v23 = vld [vmem:[%s13619_s3 + $0x120] sm:$0xff]   ;;  %v4875_v31 = vrot.slane %v11246_v43, 4  ;;  %v12196_v62 = vmul.f32 %v8615_v1, %v11640_v63 }
 0x2c0   : > { %v3206_v57 = vsel %vm1151_vm1, %v3198_v7, %v3121_v34  ;;  %7159 = vmatprep.subr.bf16.mxu0 %v8285_v44  ;;  %v1229_v6 = vsel %vm1151_vm1, %v1227_v51, %v1228_v53  ;;  %v386_v53 = vld [vmem:[%s8544_s25 + $0x1b8] sm:$0xff]  ;;  %v14104_v16 = vld [vmem:[#allocation33_spill] sm:$0xff]  ;;  %v1404_v61 = vmul.f32 %v14009_v17, %v11640_v63  ;;  %v803_v14 = vmul.f32 %v8582_v39, %v14129_v33  ;;  %s13574_s25 = scalar_lea.hbm %s13625_s9, %s6972_s14 }
 0x2c1   : > { %7193 = vmatpush3.bf16.msra.mxu1 %v11843_v36  ;;  %v3214_v19 = vsel %vm857_vm0, %v3206_v57, %v3145_v58  ;;  %v8006_v36 = vpack.i.bf16 %v11923_v49, %v11940_v3  ;;  %7160 = vmatpush3.bf16.msra.mxu0 %v8286_v11  ;;  %v7961_v54 = vpack.i.bf16 %v14104_v16, %v11243_v55  ;;  %v8294_v34 = vld [vmem:[%s13619_s3 + $0x128] sm:$0xff]   ;;  %v8295_v58 = vld [vmem:[%s13619_s3 + $0x170] sm:$0xff]  }
 0x2c2   : > { %7932 = vrot.lane.b32.xlu1 %v7986_v29, %s8436_s16  ;;  %7997 = vrot.lane.b32.xlu0 %v7996_v50, %s8436_s16  ;;  %v8290_v29 = vld [vmem:[%s13619_s3 + $0x118] sm:$0xff]   ;;  %v3230_v24 = vrot.slane %v3214_v19, 6 }
 0x2c3   : > { %7194 = vmatprep.subr.bf16.mxu1 %v11851_v9  ;;  %7161 = vmatprep.subr.bf16.mxu0 %v8287_v42  ;;  %v1039_v9 = vadd.f32 %v935_v37, %v694_v28 }
 0x2c4   : > { %v12014_v57 = vsel %vm3164_vm3, %v3230_v24, 0.0 }
 0x2c5   : > { %7195 = vmatpush3.bf16.msra.mxu1 %v11872_v52  ;;  %7162 = vmatpush3.bf16.msra.mxu0 %v8288_v18  ;;  %v11975_v52 = vadd.f32 %v1229_v6, %v1039_v9  ;;  %14106 = vst [vmem:[#allocation38_spill] sm:$0xff] %v12014_v57  ;;  %v4921_v37 = vrot.slane %v12014_v57, 1 }
 0x2c6   : > { %7942 = vrot.lane.b32.xlu1 %v7996_v50, %s8438_s22  ;;  %8007 = vrot.lane.b32.xlu0 %v8006_v36, %s8438_s22  ;;  %v8296_v36 = vld [vmem:[%s13619_s3 + $0x130] sm:$0xff]  }
 0x2c7   : > { %7196 = vmatprep.subr.bf16.mxu1 %v11888_v5  ;;  %7163 = vmatprep.subr.bf16.mxu0 %v8289_v32  ;;  %v14103_v5 = vld [vmem:[#allocation42_spill] sm:$0xff] }
 0x2c8   : > { %v4689_v27 = vpack.c.bf16 %v14103_v5, %v14103_v5  ;;  %v8298_v5 = vld [vmem:[%s13619_s3 + $0x138] sm:$0xff]  }
 0x2c9   : > { %7197 = vmatpush3.bf16.msra.mxu1 %v8282_v41  ;;  %7164 = vmatpush3.bf16.msra.mxu0 %v8290_v29  ;;  %v8291_v41 = vld [vmem:[%s13619_s3 + $0x160] sm:$0xff]  }
 0x2ca   : > { %1351 = vperm.xlu1 %7755, %v384_v56   ;;  %7226 = vmatprep.subr.bf16.mxu1 %v8283_v2  ;;  %v4874_v2 = vrot.slane %v11243_v55, 4 }
 0x2cb   : > { %7165 = vmatprep.subr.bf16.mxu0 %v8291_v41  ;;  %v7013_v0 = vpop.f32.mrb[0].mxu1 }
 0x2cc   : > { %4732 = vmatmul.mubr.bf16.vlgmr.msra.gmra.mrb[28].mxu1 %v4689_v27  ;;  %v12004_v50 = vsel %vm3182_vm5, %v4874_v2, %v4875_v31  ;;  %v7014_v7 = vpop.f32.mrb[1].mxu1 }
 0x2cd   : > { %7227 = vmatpush3.bf16.msra.mxu1 %v8284_v47  ;;  %7166 = vmatpush3.bf16.msra.mxu0 %v8292_v23  ;;  %v12011_v47 = vsel %vm3164_vm3, 0.0, %v3230_v24  ;;  %v7016_v19 = vpop.f32.mrb[2].mxu1  ;;  %v7971_v51 = vpack.i.bf16 %v11243_v55, %v12004_v50  ;;  %v12044_v24 = vld [vmem:[%s13619_s3 + $0xc0] sm:$0xff]  }
 0x2ce   : > { %2053 = vperm.xlu1 %7755, %v386_v53   ;;  %7228 = vmatprep.subr.bf16.mxu1 %v8285_v44  ;;  %14105 = vst [vmem:[#allocation17_spill] sm:$0xff] %v12011_v47  ;;  %v7015_v44 = vadd.f32 %v7014_v7, %v7013_v0  ;;  %v7017_v28 = vpop.f32.mrb[3].mxu1 }
 0x2cf   : > { %7167 = vmatprep.subr.bf16.mxu0 %v8293_v38 }
 0x2d0   : > { %v6991_v9 = vpop.f32.mrb[0].mxu0 }
 0x2d1   : > { %7229 = vmatpush3.bf16.msra.mxu1 %v8286_v11  ;;  %7168 = vmatpush3.bf16.msra.mxu0 %v8294_v34  ;;  %v4920_v11 = vrot.slane %v12011_v47, 1  ;;  %v6992_v56 = vpop.f32.mrb[1].mxu0 }
 0x2d2   : > { %2058 = vperm.xlu1 %7755, %v387_v15   ;;  %7230 = vmatprep.subr.bf16.mxu1 %v8287_v42  ;;  %v8297_v42 = vld [vmem:[%s13619_s3 + $0x178] sm:$0xff]   ;;  %v6993_v6 = vadd.f32 %v6992_v56, %v6991_v9 }
 0x2d3   : > { %7169 = vmatprep.subr.bf16.mxu0 %v8295_v58  ;;  %v12032_v53 = vpop.f32.mrb[4].mxu1  ;;  %v12035_v15 = vsel %vm857_vm0, %v4920_v11, %v4921_v37 }
 0x2d4   : > { %14107 = vst [vmem:[#allocation40_spill] sm:$0xff] %v12035_v15  ;;  %v12039_v2 = vadd.f32 %v7015_v44, %v6993_v6  ;;  %v7630_v31 = vpop.f32.mrb[5].mxu1  ;;  %v12049_v0 = vpack.i.bf16 %v4921_v37, %v12035_v15  ;;  %v938_v15 = vrot.slane %v803_v14, 1 }
 0x2d5   : > { %7231 = vmatpush3.bf16.msra.mxu1 %v8288_v18  ;;  %7170 = vmatpush3.bf16.msra.mxu0 %v8296_v36  ;;  %v6994_v18 = vpop.f32.mrb[2].mxu0  ;;  %v3988_v16 = vpop.f32.mrb[6].mxu1 }
 0x2d6   : > { %7962 = vrot.lane.b32.xlu1 %v7961_v54, %s8438_s22  ;;  %7232 = vmatprep.subr.bf16.mxu1 %v8289_v32  ;;  %v7981_v32 = vpack.i.bf16 %v12014_v57, %v12011_v47  ;;  %v6995_v27 = vpop.f32.mrb[3].mxu0  ;;  %v7631_v54 = vpop.f32.mrb[7].mxu1  ;;  %14108 = vst [vmem:[#allocation23_spill] sm:$0xff] %v12049_v0  ;;  %v4351_v18 = vrot.slane %v11243_v55, 7 }
 0x2d7   : > { %7171 = vmatprep.subr.bf16.mxu0 %v8297_v42  ;;  %v14111_v27 = vld [vmem:[#allocation30_spill] sm:$0xff] }
 0x2d9   : > { %7233 = vmatpush3.bf16.msra.mxu1 %v8290_v29  ;;  %7172 = vmatpush3.bf16.msra.mxu0 %v8298_v5  ;;  %v4929_v29 = vrot.slane %v12011_v47, 2 }
 0x2da   : > { %7972 = vrot.lane.b32.xlu1 %v7971_v51, %s8436_s16  ;;  %7234 = vmatprep.subr.bf16.mxu1 %v8291_v41  ;;  %v4930_v41 = vrot.slane %v12014_v57, 2 }
 0x2db   : > { %7204 = vmatprep.subr.bf16.mxu0 %v12044_v24 }
 0x2dc   : > { %v12052_v7 = vsel %vm1151_vm1, %v4929_v29, %v4930_v41 }
 0x2dd   : > { %7235 = vmatpush3.bf16.msra.mxu1 %v8292_v23  ;;  %14109 = vst [vmem:[#allocation47_spill] sm:$0xff] %v12052_v7  ;;  %v12057_v19 = vpack.i.bf16 %v4930_v41, %v12052_v7  ;;  %v12206_v7 = vmul.f32 %v8591_v46, %v11640_v63 }
 0x2de   : > { %7982 = vrot.lane.b32.xlu1 %v7981_v32, %s8437_s17  ;;  %7236 = vmatprep.subr.bf16.mxu1 %v8293_v38  ;;  %v7893_v44 = vpop.permute.xlu0 %7892 }
 0x2df   : > { %14110 = vst [vmem:[#allocation31_spill] sm:$0xff] %v12057_v19  ;;  %v7894_v23 = vunpack.i.l.bf16 %v7893_v44 }
 0x2e1   : > { %7237 = vmatpush3.bf16.msra.mxu1 %v8294_v34  ;;  %v5163_v34 = vsel %vm3419_vm7, %v14080_v45, %v7894_v23  ;;  %v4387_v16 = vsel %vm3419_vm7, %v4351_v18, %v7894_v23 }
 0x2e2   : > { %7992 = vrot.lane.b32.xlu1 %v12049_v0, %s8436_s16  ;;  %7238 = vmatprep.subr.bf16.mxu1 %v8295_v58  ;;  %v697_v0 = vmul.f32 %v14096_v48, %v14129_v33 }
 0x2e4   : > { %v7898_v38 = vpop.permute.xlu0 %7897  ;;  %v7903_v28 = vpop.permute.xlu1 %7902 }
 0x2e5   : > { %7239 = vmatpush3.bf16.msra.mxu1 %v8296_v36  ;;  %v7904_v51 = vunpack.i.l.bf16 %v7903_v28  ;;  %v7900_v37 = vunpack.i.h.bf16 %v7898_v38  ;;  %v7899_v9 = vunpack.i.l.bf16 %v7898_v38  ;;  %v7895_v36 = vunpack.i.h.bf16 %v7893_v44 }
 0x2e6   : > { %8002 = vrot.lane.b32.xlu1 %v12057_v19, %s8438_s22  ;;  %7240 = vmatprep.subr.bf16.mxu1 %v8297_v42  ;;  %v7905_v42 = vunpack.i.h.bf16 %v7903_v28 }
 0x2e7   : > { %v5164_v58 = vsel %vm3421_vm8, %v5163_v34, %v7904_v51  ;;  %v4381_v45 = vsel %vm3419_vm7, %v10053_v21, %v7899_v9  ;;  %v4388_v31 = vsel %vm3419_vm7, %v4351_v18, %v7895_v36  ;;  %v4389_v21 = vsel %vm3421_vm8, %v4387_v16, %v7904_v51  ;;  %v12115_v16 = vld [vmem:[%s13619_s3 + $0x90] sm:$0xff]  }
 0x2e8   : > { %v4390_v9 = vsel %vm3421_vm8, %v4388_v31, %v7905_v42  ;;  %v12091_v42 = vld [vmem:[%s13619_s3 + $0x80] sm:$0xff]   ;;  %v12109_v31 = vld [vmem:[%s13619_s3 + $0xd0] sm:$0xff]   ;;  %14116 = vst [vmem:[#allocation29_spill] sm:$0xff] %v12115_v16 }
 0x2e9   : > { %7241 = vmatpush3.bf16.msra.mxu1 %v8298_v5  ;;  %v7908_v11 = vpop.permute.xlu0 %7907  ;;  %v4382_v5 = vsel %vm3419_vm7, %v14111_v27, %v7900_v37  ;;  %14115 = vst [vmem:[#allocation43_spill] sm:$0xff] %v12109_v31 }
 0x2ea   : > { %7648 = vmatprep.subr.bf16.mxu1 %v14017_v59  ;;  %v7910_v56 = vunpack.i.h.bf16 %v7908_v11  ;;  %v7909_v6 = vunpack.i.l.bf16 %v7908_v11 }
 0x2ec   : > { %v4383_v44 = vsel %vm3421_vm8, %v4381_v45, %v7909_v6  ;;  %v4384_v38 = vsel %vm3421_vm8, %v4382_v5, %v7910_v56 }
 0x2ed   : > { %v7913_v54 = vpop.permute.xlu1 %7912 }
 0x2ee   : > { %v7918_v32 = vpop.permute.xlu0 %7917  ;;  %v7915_v34 = vunpack.i.h.bf16 %v7913_v54  ;;  %v7914_v28 = vunpack.i.l.bf16 %v7913_v54  ;;  %v12121_v54 = vld [vmem:[%s13619_s3 + $0xd8] sm:$0xff]  }
 0x2ef   : > { %v7920_v29 = vunpack.i.h.bf16 %v7918_v32  ;;  %v7919_v41 = vunpack.i.l.bf16 %v7918_v32  ;;  %14117 = vst [vmem:[#allocation26_spill] sm:$0xff] %v12121_v54 }
 0x2f0   : > { %v4391_v23 = vsel %vm3423_vm9, %v4389_v21, %v7914_v28  ;;  %v4392_v6 = vsel %vm3423_vm9, %v4390_v9, %v7915_v34  ;;  %v12085_v5 = vsel %vm3423_vm9, %v5164_v58, %v7914_v28  ;;  %v12103_v58 = vld [vmem:[%s13619_s3 + $0x88] sm:$0xff]   ;;  %v12127_v34 = vld [vmem:[%s13619_s3 + $0x98] sm:$0xff]   ;;  %v12135_v21 = vld [vmem:[%s13619_s3 + $0xe0] sm:$0xff]  }
 0x2f1   : > { %v12075_v11 = vsel %vm3423_vm9, %v4383_v44, %v7919_v41  ;;  %v4386_v37 = vsel %vm3423_vm9, %v4384_v38, %v7920_v29  ;;  %v4400_v18 = vrot.slane %v4391_v23, 1  ;;  %v4401_v56 = vrot.slane %v4392_v6, 1  ;;  %14113 = vst [vmem:[#allocation8_spill] sm:$0xff] %v12085_v5  ;;  %v12097_v41 = vld [vmem:[%s13619_s3 + $0xc8] sm:$0xff]   ;;  %14114 = vst [vmem:[#allocation28_spill] sm:$0xff] %v12103_v58  ;;  %v12159_v6 = vld [vmem:[%s13619_s3 + $0xf0] sm:$0xff]  }
 0x2f2   : > { %14112 = vst [vmem:[#allocation34_spill] sm:$0xff] %v12075_v11  ;;  %v4397_v36 = vrot.slane %v12075_v11, 1  ;;  %v4398_v32 = vrot.slane %v4386_v37, 1  ;;  %14118 = vst [vmem:[#allocation12_spill] sm:$0xff] %v12127_v34  ;;  %v12153_v23 = vld [vmem:[%s13619_s3 + $0xa8] sm:$0xff]  }
 0x2f3   : > { %v4402_v45 = vsel %vm857_vm0, %v4400_v18, %v4401_v56  ;;  %14120 = vst [vmem:[#allocation24_spill] sm:$0xff] %v12135_v21  ;;  %14123 = vst [vmem:[#allocation21_spill] sm:$0xff] %v12153_v23  ;;  %v12165_v18 = vld [vmem:[%s13619_s3 + $0xb0] sm:$0xff]   ;;  %v12171_v56 = vld [vmem:[%s13619_s3 + $0xf8] sm:$0xff]  }
 0x2f4   : > { %v4399_v27 = vsel %vm857_vm0, %v4397_v36, %v4398_v32  ;;  %v4414_v51 = vpack.c.bf16 %v4402_v45, %v4402_v45  ;;  %v12141_v36 = vld [vmem:[%s13619_s3 + $0xa0] sm:$0xff]   ;;  %v12147_v32 = vld [vmem:[%s13619_s3 + $0xe8] sm:$0xff]   ;;  %14124 = vst [vmem:[#allocation25_spill] sm:$0xff] %v12159_v6  ;;  %14125 = vst [vmem:[#allocation13_spill] sm:$0xff] %v12165_v18 }
 0x2f5   : > { %v4413_v29 = vpack.c.bf16 %v4399_v27, %v4399_v27  ;;  %14121 = vst [vmem:[#allocation51_spill] sm:$0xff] %v12141_v36  ;;  %14122 = vst [vmem:[#allocation46_spill] sm:$0xff] %v12147_v32  ;;  %v12177_v27 = vld [vmem:[%s13619_s3 + $0xb8] sm:$0xff]   ;;  %v14128_v45 = vld [vmem:[#allocation50_spill] sm:$0xff] }
 0x2f6   : > { %4531 = vmatprep.mubr.bf16.mxu0 %v4414_v51  ;;  %14126 = vst [vmem:[#allocation45_spill] sm:$0xff] %v12171_v56  ;;  %14127 = vst [vmem:[#allocation5_spill] sm:$0xff] %v12177_v27  ;;  %v12183_v51 = vmul.f32 %v14010_v60, %v11683_v12  ;;  %v14130_v11 = vld [vmem:[#allocation14_spill] sm:$0xff] }
 0x2f7   : > { %4532 = vmatmul.mubr.bf16.vlgmr.msra.gmra.mrb[16].mxu0 %v4413_v29  ;;  %v7928_v29 = vpop.permute.xlu0 %7927 }
 0x2f8   : > { %7205 = vmatpush3.bf16.msra.mxu0 %v12091_v42 }
 0x2f9   : > { %7206 = vmatprep.subr.bf16.mxu0 %v12097_v41 }
 0x2fc   : > { %7207 = vmatpush3.bf16.msra.mxu0 %v12103_v58  ;;  %v7060_v44 = vpop.f32.mrb[8].mxu1 }
 0x2fd   : > { %7208 = vmatprep.subr.bf16.mxu0 %v12109_v31  ;;  %v7061_v38 = vpop.f32.mrb[9].mxu1 }
 0x2fe   : > { %v12130_v28 = vadd.f32 %v7061_v38, %v7060_v44  ;;  %v7063_v37 = vpop.f32.mrb[10].mxu1  ;;  %v7938_v44 = vpop.permute.xlu0 %7937  ;;  %v12187_v38 = vmul.f32 %v14010_v60, %v11640_v63 }
 0x2ff   : > { %v7064_v9 = vpop.f32.mrb[11].mxu1  ;;  %v12191_v37 = vmul.f32 %v8615_v1, %v11683_v12  ;;  %v7940_v57 = vunpack.i.h.bf16 %v7938_v44  ;;  %v7939_v47 = vunpack.i.l.bf16 %v7938_v44 }
 0x300   : > { %7209 = vmatpush3.bf16.msra.mxu0 %v12115_v16  ;;  %14119 = vst [vmem:[#allocation48_spill] sm:$0xff] %v12130_v28  ;;  %v696_v9 = vmul.f32 %v14096_v48, %v14130_v11  ;;  %v1642_v5 = vrot.slane %v12187_v38, 1  ;;  %v1455_v28 = vadd.f32 %v1404_v61, %v11876_v10  ;;  %v1097_v38 = vmul.f32 %v8591_v46, %v14129_v33 }
 0x301   : > { %7210 = vmatprep.subr.bf16.mxu0 %v12121_v54  ;;  %v1509_v61 = vmul.f32 %v14010_v60, %v14129_v33  ;;  %v7930_v10 = vunpack.i.h.bf16 %v7928_v29  ;;  %v14133_v19 = vrot.slane %v12191_v37, 2 }
 0x302   : > { %v7948_v20 = vpop.permute.xlu0 %7947 }
 0x304   : > { %7211 = vmatpush3.bf16.msra.mxu0 %v12127_v34  ;;  %v7950_v34 = vunpack.i.h.bf16 %v7948_v20 }
 0x305   : > { %7212 = vmatprep.subr.bf16.mxu0 %v12135_v21 }
 0x308   : > { %7213 = vmatpush3.bf16.msra.mxu0 %v12141_v36 }
 0x309   : > { %7214 = vmatprep.subr.bf16.mxu0 %v12147_v32  ;;  %v14134_v32 = vrot.slane %v12196_v62, 2 }
 0x30b   : > { %v1938_v14 = vsel %vm1151_vm1, %v14134_v32, %v14133_v19  ;;  %v12239_v36 = vpop.permute.xlu0 %1346  ;;  %v4662_v19 = vsel %vm3419_vm7, %v11246_v43, %v7930_v10 }
 0x30c   : > { %7215 = vmatpush3.bf16.msra.mxu0 %v12153_v23  ;;  %v4664_v58 = vsel %vm3421_vm8, %v4662_v19, %v7940_v57  ;;  %v14144_v19 = vld [vmem:[#allocation18_spill] sm:$0xff] }
 0x30d   : > { %7216 = vmatprep.subr.bf16.mxu0 %v12159_v6 }
 0x310   : > { %7217 = vmatpush3.bf16.msra.mxu0 %v12165_v18 }
 0x311   : > { %7218 = vmatprep.subr.bf16.mxu0 %v12171_v56  ;;  %v14131_v56 = vrot.slane %v12183_v51, 1 }
 0x313   : > { %v1645_v18 = vsel %vm857_vm0, %v1642_v5, %v14131_v56  ;;  %v14132_v56 = vrot.slane %v11634_v25, 1 }
 0x314   : > { %7219 = vmatpush3.bf16.msra.mxu0 %v12177_v27  ;;  %v7929_v27 = vunpack.i.l.bf16 %v7928_v29  ;;  %v1748_v23 = vadd.f32 %v1645_v18, %v1455_v28  ;;  %v7949_v29 = vunpack.i.l.bf16 %v7948_v20  ;;  %v1802_v28 = vmul.f32 %v8615_v1, %v14129_v33 }
 0x315   : > { %7251 = vmatprep.subr.bf16.mxu0 %v14128_v45  ;;  %v12200_v45 = vmul.f32 %v8582_v39, %v11640_v63  ;;  %v1041_v6 = vadd.f32 %v14132_v56, %v696_v9  ;;  %v1232_v9 = vrot.slane %v1097_v38, 2  ;;  %v1405_v18 = vmul.f32 %v14009_v17, %v11683_v12 }
 0x316   : > { %v4661_v20 = vsel %vm3419_vm7, %v11243_v55, %v7929_v27  ;;  %v4666_v55 = vsel %vm3423_vm9, %v4664_v58, %v7950_v34 }
 0x317   : > { %v939_v11 = vrot.slane %v12200_v45, 1  ;;  %v805_v45 = vmul.f32 %v8582_v39, %v11683_v12  ;;  %v1641_v39 = vrot.slane %v1509_v61, 1  ;;  %v4663_v31 = vsel %vm3421_vm8, %v4661_v20, %v7939_v47 }
 0x318   : > { %v12258_v43 = vsel %vm3423_vm9, %v4663_v31, %v7949_v29  ;;  %v14137_v31 = vrot.slane %v12206_v7, 2  ;;  %v4678_v34 = vrot.slane %v4666_v55, 1  ;;  %v12320_v55 = vmul.f32 %v8641_v22, %v12239_v36  ;;  %v14148_v7 = vld [vmem:[#allocation35_spill] sm:$0xff] }
 0x319   : > { %v940_v25 = vsel %vm857_vm0, %v938_v15, %v939_v11  ;;  %v14135_v15 = vrot.slane %v11644_v30, 2  ;;  %v941_v38 = vrot.slane %v805_v45, 1  ;;  %14136 = vst [vmem:[#allocation11_spill] sm:$0xff] %v12258_v43  ;;  %v1403_v30 = vmul.f32 %v14009_v17, %v14129_v33 }
 0x31a   : > { %v1042_v47 = vadd.f32 %v940_v25, %v697_v0  ;;  %v1643_v57 = vsel %vm857_vm0, %v1641_v39, %v1642_v5  ;;  %v1234_v10 = vsel %vm1151_vm1, %v1232_v9, %v14137_v31  ;;  %v4677_v0 = vrot.slane %v12258_v43, 1 }
 0x31b   : > { %v1335_v32 = vadd.f32 %v14135_v15, %v1041_v6  ;;  %v1454_v58 = vadd.f32 %v1403_v30, %v11975_v52  ;;  %v942_v33 = vsel %vm857_vm0, %v939_v11, %v941_v38  ;;  %v1934_v5 = vrot.slane %v1802_v28, 2 }
 0x31c   : > { %v14138_v25 = vrot.slane %v11923_v49, 1  ;;  %v14139_v9 = vrot.slane %v11940_v3, 1  ;;  %v2041_v11 = vadd.f32 %v1938_v14, %v1748_v23  ;;  %v14141_v49 = vrot.slane %v12196_v62, 2  ;;  %v14142_v14 = vld [vmem:[#allocation32_spill] sm:$0xff] }
 0x31d   : > { %v1456_v27 = vadd.f32 %v1405_v18, %v1335_v32  ;;  %v1407_v32 = vmul.f32 %v14009_v17, %v12239_v36 }
 0x31e   : > { %v12284_v52 = vsel %vm857_vm0, %v14139_v9, %v14138_v25  ;;  %v1936_v23 = vsel %vm1151_vm1, %v1934_v5, %v14141_v49 }
 0x328   : > { %v7035_v21 = vpop.f32.mrb[4].mxu0  ;;  %v7104_v54 = vpop.f32.mrb[12].mxu1 }
 0x329   : > { %v7036_v56 = vpop.f32.mrb[5].mxu0  ;;  %v7105_v61 = vpop.f32.mrb[13].mxu1 }
 0x32a   : > { %v7037_v44 = vadd.f32 %v7036_v56, %v7035_v21  ;;  %v7038_v16 = vpop.f32.mrb[6].mxu0  ;;  %v12255_v21 = vadd.f32 %v7105_v61, %v7104_v54  ;;  %v2049_v54 = vpop.permute.xlu0 %2048  ;;  %v1336_v56 = vadd.f32 %v1234_v10, %v1042_v47  ;;  %v12314_v61 = vsel %vm857_vm0, %v4677_v0, %v4678_v34 }
 0x32b   : > { %v7039_v8 = vpop.f32.mrb[7].mxu0  ;;  %v7107_v16 = vpop.f32.mrb[14].mxu1  ;;  %v12345_v5 = vmul.f32 %v8641_v22, %v2049_v54  ;;  %v12362_v49 = vmul.f32 %v8645_v26, %v2049_v54 }
 0x32c   : > { %v3946_v35 = vadd.f32 %v7037_v44, %v12039_v2  ;;  %v1099_v8 = vmul.f32 %v8591_v46, %v11683_v12  ;;  %v7108_v6 = vpop.f32.mrb[15].mxu1  ;;  %v699_v46 = vmul.f32 %v14096_v48, %v11683_v12  ;;  %v14140_v12 = vrot.slane %v12183_v51, 1  ;;  %v12290_v44 = vpop.permute.xlu1 %7922 }
 0x32d   : > { %v14143_v51 = vunpack.i.h.bf16 %v14142_v14  ;;  %v14145_v6 = vmov %v14137_v31  ;;  %v12330_v31 = vld [vmem:[%s13617_s1 + $0x8] ss:$0 sm:$0xff]  ;;  %v7924_v25 = vunpack.i.l.bf16 %v12290_v44 }
 0x32e   : > { %v12267_v2 = vadd.f32 %v12032_v53, %v3946_v35  ;;  %v698_v35 = vmul.f32 %v14096_v48, %v11640_v63  ;;  %v1747_v53 = vadd.f32 %v1643_v57, %v1454_v58  ;;  %v1235_v45 = vrot.slane %v1099_v8, 2  ;;  %v7953_v30 = vpop.permute.xlu0 %7952 }
 0x32f   : > { %v1044_v29 = vadd.f32 %v941_v38, %v699_v46  ;;  %v1749_v39 = vadd.f32 %v14140_v12, %v1456_v27  ;;  %v12294_v63 = vmul.f32 %v14010_v60, %v12239_v36  ;;  %v12298_v48 = vmul.f32 %v8615_v1, %v12239_v36 }
 0x330   : > { %v1043_v18 = vadd.f32 %v942_v33, %v698_v35  ;;  %v12307_v20 = vsel %vm3423_vm9, %v14144_v19, %v14143_v51  ;;  %v2111_v38 = vmul.f32 %v8645_v26, %v12239_v36  ;;  %v2040_v8 = vadd.f32 %v1936_v23, %v1747_v53 }
 0x331   : > { %v1236_v47 = vsel %vm1151_vm1, %v14145_v6, %v1235_v45  ;;  %v12325_v57 = vadd.f32 %v1235_v45, %v1044_v29  ;;  %v12334_v10 = vmul.f32 %v12330_v31, %v12239_v36  ;;  %v14146_v58 = vrot.slane %v12191_v37, 2 }
 0x332   : > { %v1337_v46 = vadd.f32 %v1236_v47, %v1043_v18  ;;  %v1647_v0 = vrot.slane %v12294_v63, 1  ;;  %v12349_v53 = vadd.f32 %v2111_v38, %v2041_v11  ;;  %v12352_v37 = vmul.f32 %v12330_v31, %v2049_v54  ;;  %v12366_v51 = vpop.permute.xlu0 %7957 }
 0x333   : > { %v12338_v33 = vadd.f32 %v14146_v58, %v1749_v39  ;;  %v7955_v12 = vunpack.i.h.bf16 %v7953_v30  ;;  %v7954_v11 = vunpack.i.l.bf16 %v7953_v30  ;;  %v5443_v30 = vsel %vm3419_vm7, %v12004_v50, %v7924_v25 }
 0x334   : > { %v12288_v28 = vpop.f32.mrb[16].mxu1  ;;  %v12355_v29 = vadd.f32 %v1407_v32, %v1337_v46  ;;  %v7960_v14 = vunpack.i.h.bf16 %v12366_v51 }
 0x335   : > { %v7638_v15 = vpop.f32.mrb[17].mxu1  ;;  %v4609_v62 = vsel %vm3419_vm7, %v14148_v7, %v7954_v11  ;;  %v14151_v11 = vrot.slane %v12320_v55, 1 }
 0x336   : > { %v4275_v16 = vpop.f32.mrb[18].mxu1 }
 0x337   : > { %v7639_v27 = vpop.f32.mrb[19].mxu1  ;;  %v7925_v16 = vunpack.i.h.bf16 %v12290_v44 }
 0x338   : > { %v14147_v27 = vld [vmem:[#allocation36_spill] sm:$0xff] }
 0x339   : > { %v4606_v58 = vsel %vm3419_vm7, %v14147_v27, %v7955_v12 }
 0x33d   : > { %v1342_v35 = vpop.permute.xlu1 %1341 }
 0x33e   : > { %v1512_v45 = vmul.f32 %v14010_v60, %v1342_v35  ;;  %v2216_v39 = vmul.f32 %v8641_v22, %v1342_v35  ;;  %v1406_v23 = vmul.f32 %v14009_v17, %v1342_v35  ;;  %v1805_v15 = vmul.f32 %v8615_v1, %v1342_v35 }
 0x33f   : > { %v2110_v32 = vmul.f32 %v8645_v26, %v1342_v35  ;;  %v2509_v46 = vmul.f32 %v12330_v31, %v1342_v35 }
 0x340   : > { %v1646_v19 = vrot.slane %v1512_v45, 1  ;;  %v2348_v47 = vrot.slane %v2216_v39, 1  ;;  %v1457_v36 = vadd.f32 %v1406_v23, %v1336_v56  ;;  %v14149_v39 = vrot.slane %v11880_v40, 7 }
 0x341   : > { %v7933_v38 = vpop.permute.xlu1 %7932  ;;  %v1939_v18 = vrot.slane %v1805_v15, 2  ;;  %v2161_v34 = vadd.f32 %v2110_v32, %v2040_v8 }
 0x342   : > { %v7934_v54 = vunpack.i.l.bf16 %v7933_v38  ;;  %v7935_v45 = vunpack.i.h.bf16 %v7933_v38  ;;  %v4667_v6 = vsel %vm3419_vm7, %v14149_v39, %v7924_v25  ;;  %v1648_v35 = vsel %vm857_vm0, %v1646_v19, %v1647_v0 }
 0x343   : > { %v14150_v12 = vmov %v14149_v39  ;;  %v2350_v56 = vsel %vm857_vm0, %v2348_v47, %v14151_v11  ;;  %v2641_v25 = vrot.slane %v2509_v46, 2  ;;  %v1750_v27 = vadd.f32 %v1648_v35, %v1457_v36 }
 0x344   : > { %v5444_v44 = vsel %vm3421_vm8, %v5443_v30, %v7934_v54  ;;  %v4668_v7 = vsel %vm3419_vm7, %v14150_v12, %v7925_v16  ;;  %v7959_v30 = vunpack.i.l.bf16 %v12366_v51  ;;  %v4669_v8 = vsel %vm3421_vm8, %v4667_v6, %v7934_v54 }
 0x345   : > { %v7943_v9 = vpop.permute.xlu1 %7942  ;;  %v4670_v15 = vsel %vm3421_vm8, %v4668_v7, %v7935_v45  ;;  %v2454_v39 = vadd.f32 %v2350_v56, %v2161_v34  ;;  %v14153_v36 = vrot.slane %v12334_v10, 2 }
 0x346   : > { %v7945_v23 = vunpack.i.h.bf16 %v7943_v9  ;;  %v7944_v38 = vunpack.i.l.bf16 %v7943_v9  ;;  %v14152_v9 = vrot.slane %v12298_v48, 2 }
 0x348   : > { %v4671_v32 = vsel %vm3423_vm9, %v4669_v8, %v7944_v38  ;;  %v4672_v19 = vsel %vm3423_vm9, %v4670_v15, %v7945_v23  ;;  %v12399_v16 = vsel %vm3423_vm9, %v5444_v44, %v7944_v38  ;;  %v1941_v51 = vsel %vm1151_vm1, %v1939_v18, %v14152_v9 }
 0x349   : > { %v4680_v12 = vrot.slane %v4671_v32, 1  ;;  %v4681_v47 = vrot.slane %v4672_v19, 1  ;;  %v1352_v11 = vpop.permute.xlu1 %1351  ;;  %v2643_v44 = vsel %vm1151_vm1, %v2641_v25, %v14153_v36  ;;  %v4607_v32 = vsel %vm3421_vm8, %v4606_v58, %v7960_v14  ;;  %v12417_v25 = vpop.permute.xlu0 %7967 }
 0x34a   : > { %v1408_v6 = vmul.f32 %v14009_v17, %v1352_v11  ;;  %v1514_v54 = vmul.f32 %v14010_v60, %v1352_v11  ;;  %v1807_v46 = vmul.f32 %v8615_v1, %v1352_v11  ;;  %v2112_v45 = vmul.f32 %v8645_v26, %v1352_v11 }
 0x34b   : > { %v2218_v34 = vmul.f32 %v8641_v22, %v1352_v11  ;;  %v2511_v35 = vmul.f32 %v12330_v31, %v1352_v11  ;;  %v4682_v7 = vsel %vm857_vm0, %v4680_v12, %v4681_v47  ;;  %v2043_v17 = vadd.f32 %v1941_v51, %v1750_v27 }
 0x34c   : > { %v1649_v56 = vrot.slane %v1514_v54, 1  ;;  %v2163_v18 = vadd.f32 %v2112_v45, %v12338_v33  ;;  %v4694_v23 = vpack.c.bf16 %v4682_v7, %v4682_v7  ;;  %v2747_v60 = vadd.f32 %v2643_v44, %v2454_v39 }
 0x34d   : > { %v1942_v38 = vrot.slane %v1807_v46, 2  ;;  %v2351_v1 = vrot.slane %v2218_v34, 1  ;;  %v2054_v8 = vpop.permute.xlu1 %2053  ;;  %v1459_v15 = vadd.f32 %v1408_v6, %v12325_v57  ;;  %v2644_v19 = vrot.slane %v2511_v35, 2 }
 0x34e   : > { %v1650_v12 = vsel %vm857_vm0, %v1647_v0, %v1649_v56  ;;  %v2220_v47 = vmul.f32 %v8641_v22, %v2054_v8  ;;  %4811 = vmatprep.mubr.bf16.mxu1 %v4694_v23  ;;  %v4610_v33 = vsel %vm3421_vm8, %v4609_v62, %v7959_v30  ;;  %v14154_v27 = vrot.slane %v12320_v55, 1  ;;  %v12436_v62 = vld [vmem:[%s13619_s3 + $0x180] sm:$0xff]  }
 0x34f   : > { %v2456_v11 = vadd.f32 %v2351_v1, %v2163_v18  ;;  %v1751_v57 = vadd.f32 %v1650_v12, %v12355_v29  ;;  %v14155_v14 = vpack.c.bf16 %v12314_v61, %v12314_v61  ;;  %v2513_v0 = vmul.f32 %v12330_v31, %v2054_v8 }
 0x350   : > { %v2352_v39 = vsel %vm857_vm0, %v14154_v27, %v2351_v1  ;;  %v2354_v58 = vrot.slane %v2220_v47, 1  ;;  %v1752_v55 = vadd.f32 %v1649_v56, %v1459_v15  ;;  %v7969_v29 = vunpack.i.l.bf16 %v12417_v25 }
 0x351   : > { %4812 = vmatmul.mubr.bf16.vlgmr.msra.gmra.mrb[32].mxu1 %v14155_v14  ;;  %v2455_v63 = vadd.f32 %v2352_v39, %v12349_v53  ;;  %v14156_v61 = vmov %v14152_v9  ;;  %v2164_v30 = vadd.f32 %v12362_v49, %v2043_v17  ;;  %v8317_v9 = vld [vmem:[%s13618_s2] ss:$0 sm:$0xff]  ;;  %v2059_v6 = vpop.permute.xlu1 %2058  ;;  %v14157_v54 = vmov %v14153_v36 }
 0x352   : > { %7649 = vmatpush3.bf16.msra.mxu1 %v12436_v62  ;;  %7652 = vmatprep.mubr.msk.bf16.mxu1 %vm8439_vm10, %v14017_v59  ;;  %v1943_v53 = vsel %vm1151_vm1, %v14156_v61, %v1942_v38  ;;  %v2805_v51 = vadd.f32 %v8317_v9, %v2747_v60  ;;  %v2645_v46 = vsel %vm1151_vm1, %v14157_v54, %v2644_v19  ;;  %v14158_v36 = vrot.slane %v12345_v5, 1  ;;  %v12465_v5 = vld [vmem:[%s13619_s3 + $0x188] sm:$0xff]   ;;  %v14160_v60 = vld [vmem:[#allocation52_spill] sm:$0xff] }
 0x353   : > { %7650 = vmatprep.subr.bf16.mxu1 %v14017_v59  ;;  %v2749_v45 = vadd.f32 %v2644_v19, %v2456_v11  ;;  %v2647_v44 = vrot.slane %v2513_v0, 2  ;;  %v2044_v34 = vadd.f32 %v1943_v53, %v1751_v57  ;;  %v2045_v35 = vadd.f32 %v1942_v38, %v1752_v55 }
 0x354   : > { %v2355_v48 = vsel %vm857_vm0, %v14158_v36, %v2354_v58  ;;  %v2115_v7 = vmul.f32 %v8645_v26, %v2059_v6  ;;  %v2748_v56 = vadd.f32 %v2645_v46, %v2455_v63  ;;  %v14159_v18 = vrot.slane %v12352_v37, 2 }
 0x355   : > { %v2457_v49 = vadd.f32 %v2355_v48, %v2164_v30  ;;  %v2221_v10 = vmul.f32 %v8641_v22, %v2059_v6  ;;  %v2514_v23 = vmul.f32 %v12330_v31, %v2059_v6  ;;  %v4889_v38 = vsel %vm3419_vm7, %v14160_v60, %v7969_v29  ;;  %v7963_v19 = vpop.permute.xlu1 %7962 }
 0x356   : > { %v2648_v17 = vsel %vm1151_vm1, %v14159_v18, %v2647_v44  ;;  %7651 = vmatpush3.bf16.msra.mxu1 %v12465_v5  ;;  %v2114_v1 = vmul.f32 %v8645_v26, %v2054_v8  ;;  %v2166_v37 = vadd.f32 %v2115_v7, %v2045_v35  ;;  %v2832_v22 = vmax.f32 %v11763_v4, %v2805_v51  ;;  %v12477_v26 = vpop.permute.xlu0 %7977  ;;  %v14164_v35 = vld [vmem:[#allocation43_spill] sm:$0xff]  ;;  %v12500_v18 = vld [vmem:[%s13619_s3] sm:$0xff]  }
 0x357   : > { %v2750_v15 = vadd.f32 %v2648_v17, %v2457_v49  ;;  %7273 = vmatprep.subr.bf16.mxu1 %v12044_v24  ;;  %v2356_v31 = vrot.slane %v2221_v10, 1  ;;  %v2649_v12 = vrot.slane %v2514_v23, 2  ;;  %v7965_v47 = vunpack.i.h.bf16 %v7963_v19  ;;  %v14165_v10 = vld [vmem:[#allocation19_spill] sm:$0xff] }
 0x358   : > { %v2165_v27 = vadd.f32 %v2114_v1, %v2044_v34  ;;  %v2807_v11 = vadd.f32 %v8317_v9, %v2749_v45  ;;  %v7964_v57 = vunpack.i.l.bf16 %v7963_v19  ;;  %v14161_v14 = vpack.c.bf16 %v12284_v52, %v12284_v52  ;;  %v14162_v45 = vld [vmem:[#allocation16_spill] sm:$0xff]  ;;  %v12512_v19 = vld [vmem:[%s13619_s3 + $0x48] sm:$0xff]  }
 0x359   : > { %v2808_v39 = vadd.f32 %v8317_v9, %v2750_v15  ;;  %v2357_v8 = vsel %vm857_vm0, %v2354_v58, %v2356_v31  ;;  %v2459_v63 = vadd.f32 %v2356_v31, %v2166_v37  ;;  %v2806_v24 = vadd.f32 %v8317_v9, %v2748_v56  ;;  %v12482_v61 = vpop.permute.xlu1 %7972 }
 0x35a   : > { %7653 = vmatmul.mubr.msk.bf16.vlgmr.msra.gmra.mrb[36].mxu1 %vm3419_vm7, %v14161_v14  ;;  %v4608_v4 = vsel %vm3423_vm9, %v4607_v32, %v7965_v47  ;;  %v2458_v55 = vadd.f32 %v2357_v8, %v2165_v27  ;;  %v4611_v52 = vsel %vm3423_vm9, %v4610_v33, %v7964_v57  ;;  %v2650_v53 = vsel %vm1151_vm1, %v2647_v44, %v2649_v12  ;;  %v14168_v14 = vld [vmem:[#allocation26_spill] sm:$0xff] }
 0x35b   : > { %7274 = vmatpush3.bf16.msra.mxu1 %v12091_v42  ;;  %v2856_v0 = vmax.f32 %v2832_v22, %v2808_v39  ;;  %v4691_v29 = vpack.c.bf16 %v4608_v4, %v4608_v4  ;;  %v2752_v30 = vadd.f32 %v2649_v12, %v2459_v63  ;;  %v7974_v58 = vunpack.i.l.bf16 %v12482_v61  ;;  %v14167_v12 = vld [vmem:[#allocation29_spill] sm:$0xff] }
 0x35c   : > { %7275 = vmatprep.subr.bf16.mxu1 %v12097_v41  ;;  %v4692_v51 = vpack.c.bf16 %v4611_v52, %v4611_v52  ;;  %v7979_v6 = vunpack.i.l.bf16 %v12477_v26  ;;  %v2834_v42 = vmax.f32 %v11823_v13, %v2807_v11  ;;  %v2751_v54 = vadd.f32 %v2650_v53, %v2458_v55  ;;  %v14163_v41 = vld [vmem:[#allocation28_spill] sm:$0xff]  ;;  %v7151_v13 = vpop.f32.mrb[20].mxu1  ;;  %v12539_v53 = vld [vmem:[%s13619_s3 + $0x50] sm:$0xff]  }
 0x35d   : > { %v2874_v32 = vrot.slane %v2856_v0, 1  ;;  %v2810_v46 = vadd.f32 %v8317_v9, %v2752_v30  ;;  %v2833_v36 = vmax.f32 %v14162_v45, %v2806_v24  ;;  %v4890_v48 = vsel %vm3421_vm8, %v4889_v38, %v7974_v58  ;;  %v12493_v49 = vpop.permute.xlu1 %7982  ;;  %v7152_v38 = vpop.f32.mrb[21].mxu1  ;;  %v12527_v24 = vld [vmem:[%s13619_s3 + $0x8] sm:$0xff]   ;;  %v14169_v58 = vld [vmem:[#allocation12_spill] sm:$0xff] }
 0x35e   : > { %4771 = vmatprep.mubr.bf16.mxu0 %v4692_v51  ;;  %v2898_v44 = vrot.slane %v2856_v0, 2  ;;  %v2809_v34 = vadd.f32 %v8317_v9, %v2751_v54  ;;  %v4891_v7 = vsel %vm3423_vm9, %v4890_v48, %v7979_v6  ;;  %v5154_v17 = vrot.slane %v11880_v40, 4  ;;  %v7154_v31 = vpop.f32.mrb[22].mxu1 }
 0x35f   : > { %7276 = vmatpush3.bf16.msra.mxu1 %v14163_v41  ;;  %v2890_v33 = vmax.f32 %v2856_v0, %v2874_v32  ;;  %4772 = vmatmul.mubr.bf16.vlgmr.msra.gmra.mrb[20].mxu0 %v4691_v29  ;;  %v2858_v56 = vmax.f32 %v2834_v42, %v2810_v46  ;;  %v5155_v9 = vrot.slane %v14165_v10, 4  ;;  %v14166_v23 = vpack.c.bf16 %v12307_v20, %v12307_v20  ;;  %v7155_v20 = vpop.f32.mrb[23].mxu1  ;;  %v14170_v46 = vld [vmem:[#allocation24_spill] sm:$0xff] }
 0x360   : > { %7277 = vmatprep.subr.bf16.mxu1 %v14164_v35  ;;  %7252 = vmatpush3.bf16.msra.mxu0 %v12500_v18  ;;  %v4972_v60 = vpack.c.bf16 %v4891_v7, %v4891_v7  ;;  %v2857_v15 = vmax.f32 %v2833_v36, %v2809_v34  ;;  %v7984_v37 = vunpack.i.l.bf16 %v12493_v49  ;;  %v12515_v22 = vadd.f32 %v7152_v38, %v7151_v13  ;;  %v12554_v36 = vld [vmem:[%s13619_s3 + $0x10] sm:$0xff]   ;;  %v12562_v34 = vld [vmem:[%s13619_s3 + $0x58] sm:$0xff]   ;;  %v12588_v31 = vld [vmem:[%s13619_s3 + $0x60] sm:$0xff]  }
 0x361   : > { %5011 = vmatprep.mubr.bf16.mxu0 %v14166_v23  ;;  %v2914_v1 = vmax.f32 %v2890_v33, %v2898_v44  ;;  %7253 = vmatprep.subr.bf16.mxu0 %v12512_v19  ;;  %v12518_v57 = vpop.permute.xlu1 %7992  ;;  %v2994_v8 = vrot.slane %v2858_v56, 2  ;;  %v12522_v63 = vsel %vm3182_vm5, %v5154_v17, %v5155_v9  ;;  %v7970_v45 = vunpack.i.h.bf16 %v12417_v25  ;;  %v14171_v35 = vld [vmem:[#allocation51_spill] sm:$0xff]  ;;  %v14174_v17 = vld [vmem:[#allocation44_spill] sm:$0xff] }
 0x362   : > { %5051 = vmatprep.mubr.bf16.mxu1 %v4972_v60  ;;  %v2930_v39 = vrot.slane %v2857_v15, 2  ;;  %v2954_v11 = vrot.slane %v2857_v15, 1  ;;  %v7994_v4 = vunpack.i.l.bf16 %v12518_v57  ;;  %v5699_v52 = vsel %vm3419_vm7, %v12522_v63, %v7984_v37  ;;  %v12580_v38 = vld [vmem:[%s13619_s3 + $0x18] sm:$0xff]  }
 0x363   : > { %7278 = vmatpush3.bf16.msra.mxu1 %v14167_v12  ;;  %v3026_v47 = vrot.slane %v2914_v1, 1  ;;  %v3042_v27 = vrot.slane %v2914_v1, 2  ;;  %v7975_v44 = vunpack.i.h.bf16 %v12482_v61  ;;  %v14173_v61 = vld [vmem:[#allocation46_spill] sm:$0xff]  ;;  %v4886_v9 = vsel %vm3419_vm7, %v14174_v17, %v7970_v45 }
 0x364   : > { %7279 = vmatprep.subr.bf16.mxu1 %v14168_v14  ;;  %7254 = vmatpush3.bf16.msra.mxu0 %v12527_v24  ;;  %v2946_v55 = vmax.f32 %v2890_v33, %v2930_v39  ;;  %v2970_v29 = vmax.f32 %v2857_v15, %v2954_v11  ;;  %v5700_v30 = vsel %vm3421_vm8, %v5699_v52, %v7994_v4  ;;  %v7980_v12 = vunpack.i.h.bf16 %v12477_v26  ;;  %v14177_v14 = vld [vmem:[#allocation25_spill] sm:$0xff] }
 0x365   : > { %v3163_v0 = vsel %vm3155_vm2, %v2914_v1, %v3026_v47  ;;  %7255 = vmatprep.subr.bf16.mxu0 %v12539_v53  ;;  %v12547_v54 = vpop.permute.xlu1 %8002  ;;  %v4887_v15 = vsel %vm3421_vm8, %v4886_v9, %v7975_v44  ;;  %v14175_v47 = vld [vmem:[#allocation21_spill] sm:$0xff] }
 0x366   : > { %v3172_v51 = vsel %vm3164_vm3, %v3163_v0, %v3042_v27  ;;  %v2978_v6 = vmax.f32 %v2970_v29, %v2930_v39  ;;  %v3010_v32 = vmax.f32 %v2970_v29, %v2994_v8  ;;  %v3066_v42 = vrot.slane %v2946_v55, 3  ;;  %v14176_v39 = vld [vmem:[#allocation17_spill] sm:$0xff]  ;;  %v14178_v29 = vld [vmem:[#allocation38_spill] sm:$0xff] }
 0x367   : > { %7280 = vmatpush3.bf16.msra.mxu1 %v14169_v58  ;;  %v8004_v48 = vunpack.i.l.bf16 %v12547_v54  ;;  %v4911_v11 = vrot.slane %v14176_v39, 7  ;;  %v4938_v8 = vrot.slane %v14176_v39, 3  ;;  %v7985_v0 = vunpack.i.h.bf16 %v12493_v49  ;;  %v12601_v55 = vld [vmem:[%s13619_s3 + $0x20] sm:$0xff]  }
 0x368   : > { %7281 = vmatprep.subr.bf16.mxu1 %v14170_v46  ;;  %7256 = vmatpush3.bf16.msra.mxu0 %v12554_v36  ;;  %v3090_v41 = vrot.slane %v2978_v6, 4  ;;  %v3106_v33 = vrot.slane %v2978_v6, 5  ;;  %v3181_v25 = vsel %vm3173_vm4, %v3172_v51, %v3066_v42  ;;  %v3122_v13 = vrot.slane %v2978_v6, 6  ;;  %v12616_v6 = vld [vmem:[%s13619_s3 + $0x68] sm:$0xff]  }
 0x369   : > { %7257 = vmatprep.subr.bf16.mxu0 %v12562_v34  ;;  %v12570_v7 = vsel %vm3423_vm9, %v5700_v30, %v8004_v48  ;;  %v3146_v23 = vrot.slane %v3010_v32, 7  ;;  %v4888_v26 = vsel %vm3423_vm9, %v4887_v15, %v7980_v12  ;;  %v12606_v52 = vrot.slane %v14178_v29, 3  ;;  %v14181_v42 = vld [vmem:[#allocation13_spill] sm:$0xff] }
 0x36a   : > { %14172 = vst [vmem:[#allocation49_spill] sm:$0xff] %v12570_v7  ;;  %v3190_v56 = vsel %vm3182_vm5, %v3181_v25, %v3090_v41  ;;  %v7995_v58 = vunpack.i.h.bf16 %v12518_v57  ;;  %v8005_v51 = vunpack.i.h.bf16 %v12547_v54  ;;  %v4947_v25 = vsel %vm3419_vm7, %v4911_v11, %v7984_v37  ;;  %v12657_v15 = vld [vmem:[%s13619_s3 + $0x28] sm:$0xff]  }
 0x36b   : > { %7282 = vmatpush3.bf16.msra.mxu1 %v14171_v35  ;;  %v3199_v60 = vsel %vm3191_vm6, %v3190_v56, %v3106_v33  ;;  %v14182_v35 = vld [vmem:[#allocation45_spill] sm:$0xff]  ;;  %v4948_v17 = vsel %vm3419_vm7, %v4911_v11, %v7985_v0 }
 0x36c   : > { %7283 = vmatprep.subr.bf16.mxu1 %v14173_v61  ;;  %7258 = vmatpush3.bf16.msra.mxu0 %v12580_v38  ;;  %v3207_v1 = vsel %vm1151_vm1, %v3199_v60, %v3122_v13  ;;  %v4949_v60 = vsel %vm3421_vm8, %v4947_v25, %v7994_v4  ;;  %v14184_v11 = vld [vmem:[#allocation5_spill] sm:$0xff] }
 0x36d   : > { %7259 = vmatprep.subr.bf16.mxu0 %v12588_v31  ;;  %v3215_v20 = vsel %vm857_vm0, %v3207_v1, %v3146_v23  ;;  %v4950_v1 = vsel %vm3421_vm8, %v4948_v17, %v7995_v58  ;;  %v4951_v57 = vsel %vm3423_vm9, %v4949_v60, %v8004_v48  ;;  %v14187_v58 = vld [vmem:[#allocation23_spill] sm:$0xff] }
 0x36e   : > { %v3231_v27 = vrot.slane %v3215_v20, 6  ;;  %v7082_v44 = vpop.f32.mrb[8].mxu0  ;;  %v12664_v20 = vsel %vm3191_vm6, %v4938_v8, %v12606_v52  ;;  %v4952_v4 = vsel %vm3423_vm9, %v4950_v1, %v8005_v51  ;;  %v4971_v8 = vpack.c.bf16 %v4888_v26, %v4888_v26 }
 0x36f   : > { %7284 = vmatpush3.bf16.msra.mxu1 %v14175_v47  ;;  %14183 = vst [vmem:[#allocation30_spill] sm:$0xff] %v12664_v20  ;;  %v4964_v51 = vrot.slane %v12606_v52, 1  ;;  %v4963_v25 = vrot.slane %v12664_v20, 1 }
 0x370   : > { %7285 = vmatprep.subr.bf16.mxu1 %v14177_v14  ;;  %7260 = vmatpush3.bf16.msra.mxu0 %v12601_v55  ;;  %v12609_v30 = vsel %vm3164_vm3, 0.0, %v3231_v27  ;;  %v12620_v32 = vsel %vm3164_vm3, %v3231_v27, 0.0  ;;  %v12673_v27 = vld [vmem:[%s13619_s3 + $0x70] sm:$0xff]   ;;  %v14185_v14 = vld [vmem:[#allocation48_spill] sm:$0xff] }
 0x371   : > { %14179 = vst [vmem:[#allocation42_spill] sm:$0xff] %v12609_v30  ;;  %7261 = vmatprep.subr.bf16.mxu0 %v12616_v6  ;;  %14180 = vst [vmem:[#allocation33_spill] sm:$0xff] %v12620_v32  ;;  %v8016_v46 = vpack.i.bf16 %v12004_v50, %v12620_v32  ;;  %v8011_v45 = vpack.i.bf16 %v12609_v30, %v11940_v3  ;;  %v5200_v41 = vrot.slane %v12609_v30, 1  ;;  %v12629_v33 = vrot.slane %v12620_v32, 1  ;;  %v7083_v50 = vpop.f32.mrb[9].mxu0 }
 0x372   : > { %v5209_v13 = vrot.slane %v12609_v30, 2  ;;  %v12637_v56 = vrot.slane %v12620_v32, 2  ;;  %v5218_v61 = vrot.slane %v12609_v30, 3  ;;  %v7084_v37 = vadd.f32 %v7083_v50, %v7082_v44  ;;  %v7085_v9 = vpop.f32.mrb[10].mxu0  ;;  %v12701_v44 = vld [vmem:[%s13619_s3 + $0x30] sm:$0xff]  }
 0x373   : > { %7286 = vmatpush3.bf16.msra.mxu1 %v14181_v42  ;;  %8017 = vrot.lane.b32.xlu0 %v8016_v46, %s8437_s17  ;;  %v12645_v49 = vsel %vm857_vm0, %v5200_v41, %v12629_v33  ;;  %v12648_v23 = vrot.slane %v12620_v32, 3  ;;  %v7086_v47 = vpop.f32.mrb[11].mxu0  ;;  %v4960_v46 = vrot.slane %v4951_v57, 1  ;;  %v12696_v41 = vld [vmem:[%s13620_s4] ss:$0 sm:$0xff]  ;;  %v8031_v50 = vpack.i.bf16 %v11880_v40, %v12629_v33  ;;  %v14191_v57 = vld [vmem:[#allocation22_spill] sm:$0xff] }
 0x374   : > { %7287 = vmatprep.subr.bf16.mxu1 %v14182_v35  ;;  %8012 = vrot.lane.b32.xlu1 %v8011_v45, %s8437_s17  ;;  %v8021_v12 = vpack.i.bf16 %v12645_v49, %v12522_v63  ;;  %v4193_v0 = vadd.f32 %v7084_v37, %v14185_v14  ;;  %v12681_v54 = vsel %vm1151_vm1, %v5209_v13, %v12637_v56  ;;  %v4961_v45 = vrot.slane %v4952_v4, 1  ;;  %v12709_v35 = vld [vmem:[%s13619_s3 + $0x78] sm:$0xff]   ;;  %v12742_v47 = vld [vmem:[%s13619_s3 + $0x140] sm:$0xff]  }
 0x375   : > { %7262 = vmatpush3.bf16.msra.mxu0 %v12657_v15  ;;  %14186 = vst [vmem:[#allocation50_spill] sm:$0xff] %v12681_v54  ;;  %v12685_v48 = vsel %vm3191_vm6, %v5218_v61, %v12648_v23  ;;  %14188 = vst [vmem:[#allocation6_spill] sm:$0xff] %v12696_v41  ;;  %v8036_v13 = vpack.i.bf16 %v12681_v54, %v14176_v39  ;;  %v5898_v37 = vadd.f32 %v12696_v41, %v12267_v2  ;;  %v12753_v14 = vld [vmem:[%s13619_s3 + $0x40] sm:$0xff]  }
 0x376   : > { %7263 = vmatprep.subr.bf16.mxu0 %v12673_v27  ;;  %v4233_v42 = vadd.f32 %v12255_v21, %v4193_v0  ;;  %v5243_v26 = vrot.slane %v12685_v48, 1  ;;  %v5244_v21 = vrot.slane %v12648_v23, 1  ;;  %v4962_v60 = vsel %vm857_vm0, %v4960_v46, %v4961_v45  ;;  %14190 = vst [vmem:[#allocation14_spill] sm:$0xff] %v12742_v47  ;;  %v12756_v0 = vpop.permute.xlu0 %7987  ;;  %v12766_v46 = vld [vmem:[%s13619_s3 + $0x100] sm:$0xff]  }
 0x377   : > { %7288 = vmatpush3.bf16.msra.mxu1 %v14184_v11  ;;  %8027 = vrot.lane.b32.xlu0 %v14187_v58, %s8437_s17  ;;  %v4965_v1 = vsel %vm857_vm0, %v4963_v25, %v4964_v51  ;;  %v8046_v4 = vpack.i.bf16 %v14191_v57, %v12637_v56  ;;  %v5434_v51 = vrot.slane %v14176_v39, 4  ;;  %14193 = vst [vmem:[#allocation32_spill] sm:$0xff] %v12766_v46  ;;  %v14194_v25 = vld [vmem:[#allocation8_spill] sm:$0xff] }
 0x378   : > { %7656 = vmatprep.subr.bf16.mxu1 %v14017_v59  ;;  %8022 = vrot.lane.b32.xlu1 %v8021_v12, %s8436_s16  ;;  %v4273_v61 = vadd.f32 %v12288_v28, %v4233_v42  ;;  %v12722_v17 = vsel %vm857_vm0, %v5243_v26, %v5244_v21  ;;  %v12732_v28 = vld [vmem:[%s13619_s3 + $0x38] sm:$0xff]   ;;  %v4975_v58 = vpack.c.bf16 %v4965_v1, %v4965_v1  ;;  %v5435_v42 = vrot.slane %v14178_v29, 4  ;;  %v12791_v1 = vld [vmem:[%s13619_s3 + $0x108] sm:$0xff]  }
 0x379   : > { %7264 = vmatpush3.bf16.msra.mxu0 %v12701_v44  ;;  %v14189_v12 = vld [vmem:[#allocation27_spill] sm:$0xff]  ;;  %v5250_v21 = vpack.c.bf16 %v14194_v25, %v14194_v25  ;;  %14196 = vst [vmem:[#allocation36_spill] sm:$0xff] %v12791_v1 }
 0x37a   : > { %5052 = vmatmul.mubr.bf16.vlgmr.msra.gmra.mrb[40].mxu1 %v4971_v8  ;;  %7265 = vmatprep.subr.bf16.mxu0 %v12709_v35  ;;  %v5899_v9 = vadd.f32 %v12696_v41, %v4273_v61  ;;  %v4969_v2 = vpack.c.bf16 %v14189_v12, %v14189_v12  ;;  %v4974_v8 = vpack.c.bf16 %v4962_v60, %v4962_v60  ;;  %v14192_v26 = vld [vmem:[#allocation31_spill] sm:$0xff]  ;;  %v12779_v61 = vld [vmem:[%s13619_s3 + $0x148] sm:$0xff]   ;;  %v7998_v12 = vpop.permute.xlu0 %7997 }
 0x37b   : > { %7657 = vmatpush3.bf16.msra.mxu1 %v12436_v62  ;;  %7660 = vmatprep.mubr.msk.bf16.mxu1 %vm8439_vm10, %v14017_v59  ;;  %14195 = vst [vmem:[#allocation18_spill] sm:$0xff] %v12779_v61  ;;  %v5436_v60 = vsel %vm3182_vm5, %v5434_v51, %v5435_v42  ;;  %v14201_v51 = vld [vmem:[#allocation10_spill] sm:$0xff] }
 0x37c   : > { %7658 = vmatprep.subr.bf16.mxu1 %v14017_v59  ;;  %8037 = vrot.lane.b32.xlu0 %v8036_v13, %s8438_s22  ;;  %v12748_v11 = vmax.f32 %v5898_v37, %v5899_v9  ;;  %v8056_v13 = vpack.i.bf16 %v12522_v63, %v12664_v20  ;;  %v8051_v37 = vpack.i.bf16 %v12606_v52, %v12664_v20  ;;  %v12798_v52 = vld [vmem:[%s13619_s3 + $0x150] sm:$0xff]   ;;  %v12866_v41 = vld [vmem:[%s13619_s3 + $0x168] sm:$0xff]  }
 0x37d   : > { %8032 = vrot.lane.b32.xlu1 %v8031_v50, %s8436_s16  ;;  %7266 = vmatpush3.bf16.msra.mxu0 %v12732_v28  ;;  %14197 = vst [vmem:[#allocation35_spill] sm:$0xff] %v12798_v52  ;;  %v8076_v42 = vpack.i.bf16 %v12681_v54, %v14201_v51  ;;  %14206 = vst [vmem:[#allocation29_spill] sm:$0xff] %v12866_v41  ;;  %v13049_v54 = vld [vmem:[%s13619_s3 + $0xb8] sm:$0xff]  }
 0x37e   : > { %7295 = vmatprep.subr.bf16.mxu0 %v12742_v47  ;;  %v8008_v25 = vpop.permute.xlu0 %8007 }
 0x37f   : > { %7659 = vmatpush3.bf16.msra.mxu1 %v12465_v5  ;;  %v12769_v45 = vpop.f32.mrb[24].mxu1 }
 0x380   : > { %7320 = vmatprep.subr.bf16.mxu1 %v12753_v14  ;;  %5012 = vmatmul.mubr.bf16.vlgmr.msra.gmra.mrb[24].mxu0 %v4969_v2  ;;  %v7646_v50 = vpop.f32.mrb[25].mxu1  ;;  %v14198_v2 = vld [vmem:[#allocation40_spill] sm:$0xff] }
 0x381   : > { %8047 = vrot.lane.b32.xlu0 %v8046_v4, %s8438_s22  ;;  %8042 = vrot.lane.b32.xlu1 %v14192_v26, %s8436_s16  ;;  %v4576_v9 = vpop.f32.mrb[26].mxu1  ;;  %v8066_v57 = vpack.i.bf16 %v14198_v2, %v12609_v30  ;;  %v8061_v4 = vpack.i.bf16 %v14176_v39, %v5436_v60  ;;  %v8071_v26 = vpack.i.bf16 %v12629_v33, %v12645_v49  ;;  %v7990_v50 = vunpack.i.h.bf16 %v12756_v0  ;;  %v12839_v33 = vld [vmem:[%s13619_s3 + $0x160] sm:$0xff]  }
 0x382   : > { %7296 = vmatpush3.bf16.msra.mxu0 %v12766_v46  ;;  %5091 = vmatprep.mubr.bf16.mxu0 %v4974_v8  ;;  %v7647_v63 = vpop.f32.mrb[27].mxu1  ;;  %v12811_v8 = vld [vmem:[%s13619_s3 + $0x110] sm:$0xff]   ;;  %14203 = vst [vmem:[#allocation43_spill] sm:$0xff] %v12839_v33  ;;  %v14204_v9 = vld [vmem:[#allocation9_spill] sm:$0xff]  ;;  %v8000_v2 = vunpack.i.h.bf16 %v7998_v12 }
 0x383   : > { %7661 = vmatmul.mubr.msk.bf16.vlgmr.msra.gmra.mrb[44].mxu1 %vm3419_vm7, %v4975_v58  ;;  %7297 = vmatprep.subr.bf16.mxu0 %v12779_v61  ;;  %14199 = vst [vmem:[#allocation52_spill] sm:$0xff] %v12811_v8  ;;  %v12817_v58 = vld [vmem:[%s13619_s3 + $0x158] sm:$0xff]   ;;  %v8081_v63 = vpack.i.bf16 %v12685_v48, %v14204_v9 }
 0x384   : > { %7321 = vmatpush3.bf16.msra.mxu1 %v12500_v18  ;;  %5291 = vmatprep.mubr.bf16.mxu1 %v5250_v21  ;;  %14200 = vst [vmem:[#allocation16_spill] sm:$0xff] %v12817_v58  ;;  %v7989_v21 = vunpack.i.l.bf16 %v12756_v0  ;;  %v5690_v0 = vrot.slane %v12609_v30, 4 }
 0x385   : > { %8057 = vrot.lane.b32.xlu0 %v8056_v13, %s8437_s17  ;;  %8052 = vrot.lane.b32.xlu1 %v8051_v37, %s8438_s22  ;;  %v12832_v13 = vld [vmem:[%s13619_s3 + $0x118] sm:$0xff]   ;;  %v7999_v37 = vunpack.i.l.bf16 %v7998_v12  ;;  %v12857_v12 = vld [vmem:[%s13619_s3 + $0x120] sm:$0xff]  }
 0x386   : > { %7298 = vmatpush3.bf16.msra.mxu0 %v12791_v1  ;;  %7322 = vmatprep.subr.bf16.mxu1 %v12512_v19  ;;  %14202 = vst [vmem:[#allocation28_spill] sm:$0xff] %v12832_v13  ;;  %v4941_v20 = vsel %vm3419_vm7, %v11880_v40, %v7989_v21  ;;  %14205 = vst [vmem:[#allocation19_spill] sm:$0xff] %v12857_v12  ;;  %v8086_v40 = vpack.i.bf16 %v5436_v60, %v12685_v48  ;;  %v12887_v48 = vld [vmem:[%s13619_s3 + $0x128] sm:$0xff]  }
 0x387   : > { %7299 = vmatprep.subr.bf16.mxu0 %v12798_v52  ;;  %14209 = vst [vmem:[#allocation24_spill] sm:$0xff] %v12887_v48 }
 0x388   : > { %7323 = vmatpush3.bf16.msra.mxu1 %v12527_v24 }
 0x389   : > { %8067 = vrot.lane.b32.xlu0 %v8066_v57, %s8438_s22  ;;  %7324 = vmatprep.subr.bf16.mxu1 %v12539_v53  ;;  %v8009_v57 = vunpack.i.l.bf16 %v8008_v25 }
 0x38a   : > { %8062 = vrot.lane.b32.xlu1 %v8061_v4, %s8436_s16  ;;  %7300 = vmatpush3.bf16.msra.mxu0 %v12811_v8  ;;  %v8010_v4 = vunpack.i.h.bf16 %v8008_v25  ;;  %v4942_v25 = vsel %vm3419_vm7, %v14165_v10, %v7990_v50 }
 0x38b   : > { %7301 = vmatprep.subr.bf16.mxu0 %v12817_v58 }
 0x38c   : > { %7325 = vmatpush3.bf16.msra.mxu1 %v12554_v36 }
 0x38d   : > { %8077 = vrot.lane.b32.xlu0 %v8076_v42, %s8436_s16  ;;  %7326 = vmatprep.subr.bf16.mxu1 %v12562_v34  ;;  %v5911_v42 = vrot.slane %v12748_v11, 1 }
 0x38e   : > { %8072 = vrot.lane.b32.xlu1 %v8071_v26, %s8437_s17  ;;  %7302 = vmatpush3.bf16.msra.mxu0 %v12832_v13  ;;  %v5691_v26 = vrot.slane %v12620_v32, 4 }
 0x38f   : > { %7303 = vmatprep.subr.bf16.mxu0 %v12839_v33 }
 0x390   : > { %7327 = vmatpush3.bf16.msra.mxu1 %v12580_v38  ;;  %v5692_v50 = vsel %vm3182_vm5, %v5690_v0, %v5691_v26 }
 0x391   : > { %8082 = vrot.lane.b32.xlu0 %v8081_v63, %s8438_s22  ;;  %7328 = vmatprep.subr.bf16.mxu1 %v12588_v31  ;;  %v4943_v63 = vsel %vm3421_vm8, %v4941_v20, %v7999_v37  ;;  %v12877_v20 = vmax.f32 %v12748_v11, %v5911_v42  ;;  %v7129_v37 = vpop.f32.mrb[12].mxu0  ;;  %v12893_v11 = vld [vmem:[%s13619_s3 + $0x170] sm:$0xff]   ;;  %v8091_v42 = vpack.i.bf16 %v12609_v30, %v5692_v50  ;;  %v12931_v50 = vld [vmem:[%s13619_s3 + $0x138] sm:$0xff]  }
 0x392   : > { %5460 = vrot.lane.b32.xlu1 %v12637_v56, %s8436_s16  ;;  %7304 = vmatpush3.bf16.msra.mxu0 %v12857_v12  ;;  %v4944_v56 = vsel %vm3421_vm8, %v4942_v25, %v8000_v2  ;;  %v12872_v21 = vsel %vm3423_vm9, %v4943_v63, %v8009_v57  ;;  %v7130_v60 = vpop.f32.mrb[13].mxu0  ;;  %14210 = vst [vmem:[#allocation51_spill] sm:$0xff] %v12893_v11  ;;  %14213 = vst [vmem:[#allocation21_spill] sm:$0xff] %v12931_v50 }
 0x393   : > { %7305 = vmatprep.subr.bf16.mxu0 %v12866_v41  ;;  %14207 = vst [vmem:[#allocation26_spill] sm:$0xff] %v12872_v21  ;;  %v4946_v10 = vsel %vm3423_vm9, %v4944_v56, %v8010_v4  ;;  %14208 = vst [vmem:[#allocation12_spill] sm:$0xff] %v12877_v20  ;;  %v7131_v2 = vadd.f32 %v7130_v60, %v7129_v37  ;;  %v7132_v57 = vpop.f32.mrb[14].mxu0  ;;  %v4957_v4 = vrot.slane %v12872_v21, 1  ;;  %v5927_v26 = vrot.slane %v12877_v20, 2  ;;  %v13042_v21 = vld [vmem:[%s13619_s3 + $0xf8] sm:$0xff]  }
 0x394   : > { %7329 = vmatpush3.bf16.msra.mxu1 %v12601_v55  ;;  %v7133_v0 = vpop.f32.mrb[15].mxu0  ;;  %v5933_v25 = vrot.slane %v12877_v20, 6  ;;  %v13035_v20 = vld [vmem:[%s13619_s3 + $0xb0] sm:$0xff]  }
 0x395   : > { %8087 = vrot.lane.b32.xlu0 %v8086_v40, %s8437_s17  ;;  %7330 = vmatprep.subr.bf16.mxu1 %v12616_v6  ;;  %v12905_v63 = vadd.f32 %v12515_v22, %v7131_v2  ;;  %v12911_v40 = vld [vmem:[%s13619_s3 + $0x130] sm:$0xff]   ;;  %v8096_v22 = vpack.i.bf16 %v12645_v49, %v14017_v59  ;;  %v12937_v49 = vld [vmem:[%s13619_s3 + $0xc0] sm:$0xff]  }
 0x396   : > { %5466 = vrot.lane.b32.xlu1 %v12648_v23, %s8438_s22  ;;  %7306 = vmatpush3.bf16.msra.mxu0 %v12887_v48  ;;  %v4958_v23 = vrot.slane %v4946_v10, 1  ;;  %14211 = vst [vmem:[#allocation46_spill] sm:$0xff] %v12911_v40  ;;  %v8101_v10 = vpack.i.bf16 %v5927_v26, %v5933_v25  ;;  %14214 = vst [vmem:[#allocation17_spill] sm:$0xff] %v12937_v49  ;;  %v14216_v2 = vld [vmem:[#allocation15_spill] sm:$0xff] }
 0x397   : > { %7307 = vmatprep.subr.bf16.mxu0 %v12893_v11 }
 0x398   : > { %7331 = vmatpush3.bf16.msra.mxu1 %v12657_v15  ;;  %v4959_v56 = vsel %vm857_vm0, %v4957_v4, %v4958_v23  ;;  %v12949_v4 = vld [vmem:[%s13619_s3 + $0x80] sm:$0xff]  }
 0x399   : > { %5708 = vrot.lane.b32.xlu0 %v14201_v51, %s8437_s17  ;;  %7332 = vmatprep.subr.bf16.mxu1 %v12673_v27  ;;  %v12917_v51 = vld [vmem:[%s13619_s3 + $0x178] sm:$0xff]   ;;  %v4973_v37 = vpack.c.bf16 %v4959_v56, %v4959_v56  ;;  %v12972_v56 = vld [vmem:[%s13619_s3 + $0xd0] sm:$0xff]  }
 0x39a   : > { %8092 = vrot.lane.b32.xlu1 %v8091_v42, %s8436_s16  ;;  %7308 = vmatpush3.bf16.msra.mxu0 %v12911_v40  ;;  %14212 = vst [vmem:[#allocation44_spill] sm:$0xff] %v12917_v51  ;;  %v12955_v42 = vld [vmem:[%s13619_s3 + $0xc8] sm:$0xff]  }
 0x39b   : > { %7309 = vmatprep.subr.bf16.mxu0 %v12917_v51 }
 0x39c   : > { %7333 = vmatpush3.bf16.msra.mxu1 %v12701_v44 }
 0x39d   : > { %5711 = vrot.lane.b32.xlu0 %v14204_v9, %s8436_s16  ;;  %7334 = vmatprep.subr.bf16.mxu1 %v12709_v35  ;;  %v14215_v9 = vld [vmem:[#allocation34_spill] sm:$0xff] }
 0x39e   : > { %8097 = vrot.lane.b32.xlu1 %v8096_v22, %s8438_s22  ;;  %7310 = vmatpush3.bf16.msra.mxu0 %v12931_v50  ;;  %v5249_v60 = vpack.c.bf16 %v14215_v9, %v14215_v9  ;;  %v12965_v22 = vld [vmem:[%s13619_s3 + $0x88] sm:$0xff]   ;;  %v12993_v9 = vld [vmem:[%s13619_s3 + $0x98] sm:$0xff]  }
 0x39f   : > { %7342 = vmatprep.subr.bf16.mxu0 %v12937_v49  ;;  %v7198_v57 = vpop.f32.mrb[28].mxu1 }
 0x3a0   : > { %7335 = vmatpush3.bf16.msra.mxu1 %v12732_v28  ;;  %v7199_v23 = vpop.f32.mrb[29].mxu1 }
 0x3a1   : > { %5092 = vmatmul.mubr.bf16.vlgmr.msra.gmra.mrb[28].mxu0 %v4973_v37  ;;  %8102 = vrot.lane.b32.xlu0 %v8101_v10, %s8436_s16  ;;  %v12958_v0 = vadd.f32 %v7199_v23, %v7198_v57  ;;  %v7201_v26 = vpop.f32.mrb[30].mxu1  ;;  %v12979_v10 = vld [vmem:[%s13619_s3 + $0x90] sm:$0xff]   ;;  %v12986_v37 = vld [vmem:[%s13619_s3 + $0xd8] sm:$0xff]   ;;  %v13007_v57 = vld [vmem:[%s13619_s3 + $0xa0] sm:$0xff]  }
 0x3a2   : > { %5714 = vrot.lane.b32.xlu1 %v14216_v2, %s8438_s22  ;;  %7343 = vmatpush3.bf16.msra.mxu0 %v12949_v4  ;;  %v7202_v25 = vpop.f32.mrb[31].mxu1  ;;  %v13014_v23 = vld [vmem:[%s13619_s3 + $0xe8] sm:$0xff]   ;;  %v14220_v2 = vld [vmem:[#allocation7_spill] sm:$0xff]  ;;  %s323_s22 = sand.u32 1, %s8424_s10  }
 0x3a3   : > { %5292 = vmatmul.mubr.bf16.vlgmr.msra.gmra.mrb[48].mxu1 %v5249_v60  ;;  %7344 = vmatprep.subr.bf16.mxu0 %v12955_v42  ;;  %14217 = vst [vmem:[#allocation25_spill] sm:$0xff] %v12958_v0  ;;  %v13000_v60 = vld [vmem:[%s13619_s3 + $0xe0] sm:$0xff]   ;;  %v13021_v26 = vld [vmem:[%s13619_s3 + $0xa8] sm:$0xff]   ;;  %v13028_v25 = vld [vmem:[%s13619_s3 + $0xf0] sm:$0xff]   ;;  %s324_s21 = scalar_lea.vmem [#allocation2], %s323_s22  ;;  %s6767_s26 = scalar_lea.sflag [#allocation3], %s323_s22 }
 0x3a4   : > { %7364 = vmatprep.subr.bf16.mxu1 %v12742_v47  ;;  %s6779_s23 = sshll.u32 %s324_s21, 4  ;;  %s13576_s23 = int_to_ptr.vmem [resolvable:$true] %s6779_s23 }
 0x3a5   : > { %7365 = vmatpush3.bf16.msra.mxu1 %v12766_v46  ;;  %s8370_s13 = scalar_lea.vmem %s13576_s23, 16  ;;  %p8377_p0 = scmp.lt.s32.totalorder %s13576_s23, %s8375_s28 }
 0x3a6   : > { %7345 = vmatpush3.bf16.msra.mxu0 %v12965_v22  ;;  %7366 = vmatprep.subr.bf16.mxu1 %v12779_v61  ;;  %p8371_p11 = scmp.ne.s32.totalorder %s13576_s23, %s8370_s13  ;;  %p8378_p1 = scmp.lt.s32.totalorder %s8376_s29, %s8370_s13 }
 0x3a7   : > { %7346 = vmatprep.subr.bf16.mxu0 %v12972_v56 }
 0x3a8   : > { %p8372_p12 = pnand %p8371_p11, %p8529_p5  ;;  %p8379_p2 = por %p8378_p1, %p8377_p0 }
 0x3a9   : > { %7367 = vmatpush3.bf16.msra.mxu1 %v12791_v1 }
 0x3aa   : > { %7347 = vmatpush3.bf16.msra.mxu0 %v12979_v10  ;;  %7368 = vmatprep.subr.bf16.mxu1 %v12798_v52  ;;  %p8373_p13 = pneg %p8372_p12 }
 0x3ab   : > { %7348 = vmatprep.subr.bf16.mxu0 %v12986_v37 }
 0x3ac   : > { %p8380_p3 = pnand %p8379_p2, %p8373_p13 }
 0x3ad   : > { %7369 = vmatpush3.bf16.msra.mxu1 %v12811_v8 }
 0x3ae   : > { %7349 = vmatpush3.bf16.msra.mxu0 %v12993_v9  ;;  %7370 = vmatprep.subr.bf16.mxu1 %v12817_v58 }
 0x3af   : > { %7350 = vmatprep.subr.bf16.mxu0 %v13000_v60 }
 0x3b1   : > { %7371 = vmatpush3.bf16.msra.mxu1 %v12832_v13 }
 0x3b2   : > { %7351 = vmatpush3.bf16.msra.mxu0 %v13007_v57  ;;  %7372 = vmatprep.subr.bf16.mxu1 %v12839_v33 }
 0x3b3   : > { %7352 = vmatprep.subr.bf16.mxu0 %v13014_v23 }
 0x3b5   : > { %7373 = vmatpush3.bf16.msra.mxu1 %v12857_v12 }
 0x3b6   : > { %7353 = vmatpush3.bf16.msra.mxu0 %v13021_v26  ;;  %7374 = vmatprep.subr.bf16.mxu1 %v12866_v41 }
 0x3b7   : > { %7354 = vmatprep.subr.bf16.mxu0 %v13028_v25 }
 0x3b9   : > { %7375 = vmatpush3.bf16.msra.mxu1 %v12887_v48 }
 0x3ba   : > { %7355 = vmatpush3.bf16.msra.mxu0 %v13035_v20  ;;  %7376 = vmatprep.subr.bf16.mxu1 %v12893_v11 }
 0x3bb   : > { %7356 = vmatprep.subr.bf16.mxu0 %v13042_v21 }
 0x3bd   : > { %7377 = vmatpush3.bf16.msra.mxu1 %v12911_v40 }
 0x3be   : > { %7357 = vmatpush3.bf16.msra.mxu0 %v13049_v54  ;;  %7378 = vmatprep.subr.bf16.mxu1 %v12917_v51 }
 0x3bf   : > { %7664 = vmatprep.subr.bf16.mxu0 %v14017_v59 }
 0x3c1   : > { %7379 = vmatpush3.bf16.msra.mxu1 %v12931_v50 }
 0x3c2   : > { %7411 = vmatprep.subr.bf16.mxu1 %v12937_v49 }
 0x3ca   : > { %v7173_v11 = vpop.f32.mrb[16].mxu0 }
 0x3cb   : > { %v7174_v48 = vpop.f32.mrb[17].mxu0 }
 0x3cc   : > { %v7175_v0 = vadd.f32 %v7174_v48, %v7173_v11  ;;  %v7176_v41 = vpop.f32.mrb[18].mxu0  ;;  %v14219_v48 = vld [vmem:[#allocation20_spill] sm:$0xff]  ;;  %v5191_v11 = vrot.slane %v12609_v30, 7 }
 0x3cd   : > { %v7177_v40 = vpop.f32.mrb[19].mxu0 }
 0x3ce   : > { %v4534_v12 = vadd.f32 %v7175_v0, %v12905_v63 }
 0x3d0   : > { %v13058_v32 = vadd.f32 %v12769_v45, %v4534_v12 }
 0x3d2   : > { %14218 = vst [vmem:[#allocation38_spill] sm:$0xff] %v13058_v32 }
 0x3e5   : > { %v8018_v13 = vpop.permute.xlu0 %8017 }
 0x3e6   : > { %v8013_v33 = vpop.permute.xlu1 %8012  ;;  %v8020_v50 = vunpack.i.h.bf16 %v8018_v13  ;;  %v8019_v1 = vunpack.i.l.bf16 %v8018_v13 }
 0x3e7   : > { %v8014_v8 = vunpack.i.l.bf16 %v8013_v33  ;;  %v8015_v52 = vunpack.i.h.bf16 %v8013_v33 }
 0x3e8   : > { %v5228_v13 = vsel %vm3419_vm7, %v5191_v11, %v8019_v1 }
 0x3e9   : > { %v8028_v51 = vpop.permute.xlu0 %8027  ;;  %v5169_v41 = vsel %vm3419_vm7, %v14219_v48, %v8014_v8  ;;  %v5227_v32 = vsel %vm3419_vm7, %v5191_v11, %v8015_v52 }
 0x3ea   : > { %v8023_v58 = vpop.permute.xlu1 %8022  ;;  %v8030_v30 = vunpack.i.h.bf16 %v8028_v51 }
 0x3eb   : > { %v8024_v7 = vunpack.i.l.bf16 %v8023_v58  ;;  %v8025_v49 = vunpack.i.h.bf16 %v8023_v58  ;;  %v5166_v58 = vsel %vm3419_vm7, %v14220_v2, %v8020_v50 }
 0x3ed   : > { %v5170_v12 = vsel %vm3421_vm8, %v5169_v41, %v8024_v7  ;;  %v5229_v47 = vsel %vm3421_vm8, %v5227_v32, %v8025_v49 }
 0x3ee   : > { %v8038_v46 = vpop.permute.xlu0 %8037 }
 0x3ef   : > { %v8033_v61 = vpop.permute.xlu1 %8032  ;;  %v8040_v63 = vunpack.i.h.bf16 %v8038_v46  ;;  %v8039_v45 = vunpack.i.l.bf16 %v8038_v46 }
 0x3f0   : > { %v8035_v40 = vunpack.i.h.bf16 %v8033_v61  ;;  %v8034_v0 = vunpack.i.l.bf16 %v8033_v61  ;;  %v8029_v61 = vunpack.i.l.bf16 %v8028_v51 }
 0x3f1   : > { %v5171_v33 = vsel %vm3423_vm9, %v5170_v12, %v8039_v45  ;;  %v5231_v46 = vsel %vm3423_vm9, %v5229_v47, %v8040_v63  ;;  %v5222_v47 = vsel %vm3419_vm7, %v14178_v29, %v8030_v30 }
 0x3f2   : > { %v5252_v48 = vpack.c.bf16 %v5171_v33, %v5171_v33  ;;  %v5167_v52 = vsel %vm3421_vm8, %v5166_v58, %v8035_v40  ;;  %v5230_v45 = vsel %vm3421_vm8, %v5228_v13, %v8034_v0  ;;  %v5240_v49 = vrot.slane %v5231_v46, 1 }
 0x3f3   : > { %v8048_v8 = vpop.permute.xlu0 %8047  ;;  %v8043_v43 = vpop.permute.xlu1 %8042  ;;  %v5221_v63 = vsel %vm3419_vm7, %v14176_v39, %v8029_v61 }
 0x3f4   : > { %v8050_v7 = vunpack.i.h.bf16 %v8048_v8  ;;  %v8049_v41 = vunpack.i.l.bf16 %v8048_v8  ;;  %5331 = vmatprep.mubr.bf16.mxu0 %v5252_v48  ;;  %v8045_v12 = vunpack.i.h.bf16 %v8043_v43  ;;  %v8044_v50 = vunpack.i.l.bf16 %v8043_v43 }
 0x3f6   : > { %v5168_v1 = vsel %vm3423_vm9, %v5167_v52, %v8050_v7  ;;  %v5232_v32 = vsel %vm3423_vm9, %v5230_v45, %v8049_v41  ;;  %v5223_v58 = vsel %vm3421_vm8, %v5221_v63, %v8044_v50  ;;  %v5224_v13 = vsel %vm3421_vm8, %v5222_v47, %v8045_v12  ;;  %v14221_v45 = vld [vmem:[#allocation47_spill] sm:$0xff] }
 0x3f7   : > { %v5241_v2 = vrot.slane %v5232_v32, 1  ;;  %v5251_v11 = vpack.c.bf16 %v5168_v1, %v5168_v1  ;;  %v13075_v33 = vpop.permute.xlu0 %8057  ;;  %v8053_v51 = vpop.permute.xlu1 %8052 }
 0x3f8   : > { %v8055_v40 = vunpack.i.h.bf16 %v8053_v51  ;;  %v8054_v0 = vunpack.i.l.bf16 %v8053_v51  ;;  %v8059_v8 = vunpack.i.l.bf16 %v13075_v33  ;;  %v5506_v51 = vpack.c.bf16 %v12399_v16, %v12399_v16 }
 0x3f9   : > { %5332 = vmatmul.mubr.bf16.vlgmr.msra.gmra.mrb[32].mxu0 %v5251_v11  ;;  %v5242_v43 = vsel %vm857_vm0, %v5240_v49, %v5241_v2  ;;  %v5255_v2 = vpack.c.bf16 %v12722_v17, %v12722_v17 }
 0x3fa   : > { %7665 = vmatpush3.bf16.msra.mxu0 %v12436_v62  ;;  %v5254_v48 = vpack.c.bf16 %v5242_v43, %v5242_v43  ;;  %7668 = vmatprep.mubr.msk.bf16.mxu0 %vm8439_vm10, %v14017_v59  ;;  %v5225_v29 = vsel %vm3423_vm9, %v5223_v58, %v8054_v0  ;;  %v5226_v39 = vsel %vm3423_vm9, %v5224_v13, %v8055_v40  ;;  %v14222_v0 = vld [vmem:[#allocation37_spill] sm:$0xff]  ;;  %v14223_v58 = vld [vmem:[#allocation39_spill] sm:$0xff] }
 0x3fb   : > { %v13090_v30 = vpop.permute.xlu0 %8067  ;;  %7666 = vmatprep.subr.bf16.mxu0 %v14017_v59  ;;  %v5237_v46 = vrot.slane %v5225_v29, 1  ;;  %v5238_v7 = vrot.slane %v5226_v39, 1  ;;  %v5449_v12 = vsel %vm3419_vm7, %v14221_v45, %v8059_v8  ;;  %v5496_v13 = vrot.slane %v14223_v58, 1  ;;  %v14225_v45 = vld [vmem:[#allocation14_spill] sm:$0xff] }
 0x3fc   : > { %v8063_v41 = vpop.permute.xlu1 %8062  ;;  %v8069_v61 = vunpack.i.l.bf16 %v13090_v30  ;;  %5371 = vmatprep.mubr.bf16.mxu1 %v5254_v48  ;;  %v8060_v29 = vunpack.i.h.bf16 %v13075_v33 }
 0x3fd   : > { %v8064_v52 = vunpack.i.l.bf16 %v8063_v41  ;;  %v5239_v50 = vsel %vm857_vm0, %v5237_v46, %v5238_v7  ;;  %v8065_v39 = vunpack.i.h.bf16 %v8063_v41  ;;  %v8070_v7 = vunpack.i.h.bf16 %v13090_v30  ;;  %v14224_v41 = vld [vmem:[#allocation11_spill] sm:$0xff] }
 0x3fe   : > { %7667 = vmatpush3.bf16.msra.mxu0 %v12465_v5  ;;  %v5253_v49 = vpack.c.bf16 %v5239_v50, %v5239_v50  ;;  %v5446_v46 = vsel %vm3419_vm7, %v11940_v3, %v8060_v29  ;;  %v5505_v3 = vpack.c.bf16 %v14224_v41, %v14224_v41  ;;  %v14226_v50 = vld [vmem:[#allocation15_spill] sm:$0xff] }
 0x3ff   : > { %v5450_v1 = vsel %vm3421_vm8, %v5449_v12, %v8064_v52  ;;  %v13099_v32 = vpop.permute.xlu0 %8077  ;;  %7389 = vmatprep.subr.bf16.mxu0 %v12753_v14 }
 0x400   : > { %v5451_v11 = vsel %vm3423_vm9, %v5450_v1, %v8069_v61  ;;  %v8079_v47 = vunpack.i.l.bf16 %v13099_v32  ;;  %5372 = vmatmul.mubr.bf16.vlgmr.msra.gmra.mrb[52].mxu1 %v5253_v49  ;;  %v5447_v61 = vsel %vm3421_vm8, %v5446_v46, %v8065_v39  ;;  %v8073_v52 = vpop.permute.xlu1 %8072  ;;  %v5499_v1 = vrot.slane %v14226_v50, 1  ;;  %v14227_v49 = vld [vmem:[#allocation32_spill] sm:$0xff] }
 0x401   : > { %7669 = vmatmul.mubr.msk.bf16.vlgmr.msra.gmra.mrb[36].mxu0 %vm3419_vm7, %v5255_v2  ;;  %v5508_v63 = vpack.c.bf16 %v5451_v11, %v5451_v11  ;;  %7412 = vmatpush3.bf16.msra.mxu1 %v12949_v4  ;;  %v5448_v33 = vsel %vm3423_vm9, %v5447_v61, %v8070_v7  ;;  %v14228_v2 = vld [vmem:[#allocation18_spill] sm:$0xff]  ;;  %v8075_v29 = vunpack.i.h.bf16 %v8073_v52  ;;  %v14234_v46 = vld [vmem:[#allocation28_spill] sm:$0xff]  ;;  %v8074_v61 = vunpack.i.l.bf16 %v8073_v52 }
 0x402   : > { %7390 = vmatpush3.bf16.msra.mxu0 %v12500_v18  ;;  %5547 = vmatprep.mubr.bf16.mxu0 %v5506_v51  ;;  %v5486_v43 = vsel %vm3421_vm8, %v14222_v0, %v8079_v47  ;;  %v5507_v30 = vpack.c.bf16 %v5448_v33, %v5448_v33  ;;  %v13167_v51 = vpack.c.bf16 %v5499_v1, %v5499_v1  ;;  %v14230_v0 = vld [vmem:[#allocation35_spill] sm:$0xff] }
 0x403   : > { %5587 = vmatprep.mubr.bf16.mxu1 %v5508_v63  ;;  %v13111_v40 = vpop.permute.xlu0 %8082  ;;  %7413 = vmatprep.subr.bf16.mxu1 %v12955_v42  ;;  %v14229_v63 = vld [vmem:[#allocation36_spill] sm:$0xff] }
 0x404   : > { %v8084_v17 = vunpack.i.l.bf16 %v13111_v40  ;;  %7391 = vmatprep.subr.bf16.mxu0 %v12512_v19  ;;  %v5461_v11 = vpop.permute.xlu1 %5460  ;;  %v8085_v1 = vunpack.i.h.bf16 %v13111_v40 }
 0x405   : > { %7414 = vmatpush3.bf16.msra.mxu1 %v12965_v22 }
 0x406   : > { %v5488_v16 = vsel %vm3423_vm9, %v5486_v43, %v8084_v17  ;;  %7392 = vmatpush3.bf16.msra.mxu0 %v12527_v24  ;;  %7415 = vmatprep.subr.bf16.mxu1 %v12972_v56 }
 0x407   : > { %v5497_v8 = vrot.slane %v5488_v16, 1  ;;  %7393 = vmatprep.subr.bf16.mxu0 %v12539_v53  ;;  %v14231_v16 = vld [vmem:[#allocation49_spill] sm:$0xff] }
 0x408   : > { %v5727_v58 = vpack.c.bf16 %v14231_v16, %v14231_v16  ;;  %v13198_v16 = vpop.permute.xlu0 %8087 }
 0x409   : > { %v5498_v48 = vsel %vm857_vm0, %v5496_v13, %v5497_v8  ;;  %7416 = vmatpush3.bf16.msra.mxu1 %v12979_v10  ;;  %v14232_v8 = vld [vmem:[#allocation52_spill] sm:$0xff] }
 0x40a   : > { %7394 = vmatpush3.bf16.msra.mxu0 %v12554_v36  ;;  %7417 = vmatprep.subr.bf16.mxu1 %v12986_v37  ;;  %v13157_v12 = vpack.c.bf16 %v5498_v48, %v5498_v48 }
 0x40b   : > { %7395 = vmatprep.subr.bf16.mxu0 %v12562_v34 }
 0x40d   : > { %7418 = vmatpush3.bf16.msra.mxu1 %v12993_v9 }
 0x40e   : > { %7396 = vmatpush3.bf16.msra.mxu0 %v12580_v38  ;;  %7419 = vmatprep.subr.bf16.mxu1 %v13000_v60 }
 0x40f   : > { %7397 = vmatprep.subr.bf16.mxu0 %v12588_v31 }
 0x411   : > { %7420 = vmatpush3.bf16.msra.mxu1 %v13007_v57 }
 0x412   : > { %7398 = vmatpush3.bf16.msra.mxu0 %v12601_v55  ;;  %7421 = vmatprep.subr.bf16.mxu1 %v13014_v23 }
 0x413   : > { %7399 = vmatprep.subr.bf16.mxu0 %v12616_v6 }
 0x415   : > { %7422 = vmatpush3.bf16.msra.mxu1 %v13021_v26 }
 0x416   : > { %7400 = vmatpush3.bf16.msra.mxu0 %v12657_v15  ;;  %7423 = vmatprep.subr.bf16.mxu1 %v13028_v25 }
 0x417   : > { %7401 = vmatprep.subr.bf16.mxu0 %v12673_v27 }
 0x419   : > { %7424 = vmatpush3.bf16.msra.mxu1 %v13035_v20 }
 0x41a   : > { %7402 = vmatpush3.bf16.msra.mxu0 %v12701_v44  ;;  %7425 = vmatprep.subr.bf16.mxu1 %v13042_v21 }
 0x41b   : > { %7403 = vmatprep.subr.bf16.mxu0 %v12709_v35 }
 0x41d   : > { %7426 = vmatpush3.bf16.msra.mxu1 %v13049_v54 }
 0x41e   : > { %7404 = vmatpush3.bf16.msra.mxu0 %v12732_v28  ;;  %7672 = vmatprep.subr.bf16.mxu1 %v14017_v59 }
 0x41f   : > { %7433 = vmatprep.subr.bf16.mxu0 %v14225_v45 }
 0x420   : > { %5588 = vmatmul.mubr.bf16.vlgmr.msra.gmra.mrb[56].mxu1 %v5507_v30  ;;  %v8080_v30 = vunpack.i.h.bf16 %v13099_v32 }
 0x421   : > { %5548 = vmatmul.mubr.bf16.vlgmr.msra.gmra.mrb[40].mxu0 %v5505_v3  ;;  %7673 = vmatpush3.bf16.msra.mxu1 %v12436_v62  ;;  %v14236_v3 = vld [vmem:[#allocation33_spill] sm:$0xff] }
 0x422   : > { %7434 = vmatpush3.bf16.msra.mxu0 %v14227_v49  ;;  %5627 = vmatprep.mubr.bf16.mxu0 %v13157_v12 }
 0x423   : > { %7674 = vmatprep.subr.bf16.mxu1 %v14017_v59  ;;  %7435 = vmatprep.subr.bf16.mxu0 %v14228_v2 }
 0x424   : > { %7676 = vmatprep.mubr.msk.bf16.mxu1 %vm8439_vm10, %v14017_v59  ;;  %v7242_v47 = vpop.f32.mrb[32].mxu1 }
 0x425   : > { %7675 = vmatpush3.bf16.msra.mxu1 %v12465_v5  ;;  %v7243_v62 = vpop.f32.mrb[33].mxu1  ;;  %v5467_v5 = vpop.permute.xlu1 %5466 }
 0x426   : > { %7436 = vmatpush3.bf16.msra.mxu0 %v14229_v63  ;;  %7458 = vmatprep.subr.bf16.mxu1 %v12753_v14  ;;  %v7244_v17 = vadd.f32 %v7243_v62, %v7242_v47  ;;  %v7245_v43 = vpop.f32.mrb[34].mxu1  ;;  %v14233_v14 = vld [vmem:[#allocation16_spill] sm:$0xff]  ;;  %v14239_v47 = vld [vmem:[#allocation29_spill] sm:$0xff] }
 0x427   : > { %7437 = vmatprep.subr.bf16.mxu0 %v14230_v0  ;;  %v7246_v13 = vpop.f32.mrb[35].mxu1 }
 0x428   : > { %7677 = vmatmul.mubr.msk.bf16.vlgmr.msra.gmra.mrb[60].mxu1 %vm3419_vm7, %v13167_v51 }
 0x429   : > { %7459 = vmatpush3.bf16.msra.mxu1 %v12500_v18  ;;  %5763 = vmatprep.mubr.bf16.mxu1 %v5727_v58  ;;  %v14235_v18 = vld [vmem:[#allocation43_spill] sm:$0xff]  ;;  %v13185_v41 = vpop.permute.xlu1 %8092 }
 0x42a   : > { %7438 = vmatpush3.bf16.msra.mxu0 %v14232_v8  ;;  %7460 = vmatprep.subr.bf16.mxu1 %v12512_v19  ;;  %v5479_v19 = vsel %vm3419_vm7, %v14236_v3, %v8075_v29 }
 0x42b   : > { %7439 = vmatprep.subr.bf16.mxu0 %v14233_v14  ;;  %v5481_v43 = vsel %vm3421_vm8, %v5479_v19, %v5461_v11 }
 0x42c   : > { %v5483_v32 = vsel %vm3423_vm9, %v5481_v43, %v5467_v5  ;;  %v14247_v43 = vld [vmem:[#allocation6_spill] sm:$0xff] }
 0x42d   : > { %v4853_v48 = vpop.f32.mrb[36].mxu1  ;;  %7461 = vmatpush3.bf16.msra.mxu1 %v12527_v24  ;;  %v14237_v24 = vld [vmem:[#allocation19_spill] sm:$0xff]  ;;  %v13203_v29 = vpop.permute.xlu1 %8097  ;;  %v5494_v5 = vrot.slane %v5483_v32, 1 }
 0x42e   : > { %v7654_v39 = vpop.f32.mrb[37].mxu1  ;;  %7440 = vmatpush3.bf16.msra.mxu0 %v14234_v46  ;;  %7462 = vmatprep.subr.bf16.mxu1 %v12539_v53  ;;  %v14238_v53 = vld [vmem:[#allocation42_spill] sm:$0xff]  ;;  %v8099_v19 = vunpack.i.l.bf16 %v13203_v29 }
 0x42f   : > { %v4856_v7 = vpop.f32.mrb[38].mxu1  ;;  %7441 = vmatprep.subr.bf16.mxu0 %v14235_v18  ;;  %v5478_v52 = vsel %vm3419_vm7, %v14238_v53, %v8074_v61  ;;  %v14240_v39 = vld [vmem:[#allocation25_spill] sm:$0xff]  ;;  %v8089_v61 = vunpack.i.l.bf16 %v13198_v16  ;;  %v14243_v53 = vld [vmem:[#allocation46_spill] sm:$0xff] }
 0x430   : > { %v7655_v33 = vpop.f32.mrb[39].mxu1  ;;  %v5480_v13 = vsel %vm3421_vm8, %v5478_v52, %v8080_v30  ;;  %v14241_v7 = vld [vmem:[#allocation24_spill] sm:$0xff] }
 0x431   : > { %7463 = vmatpush3.bf16.msra.mxu1 %v12554_v36  ;;  %v5482_v11 = vsel %vm3423_vm9, %v5480_v13, %v8085_v1  ;;  %v14242_v33 = vld [vmem:[#allocation51_spill] sm:$0xff]  ;;  %v14245_v1 = vld [vmem:[#allocation44_spill] sm:$0xff]  ;;  %v14249_v13 = vld [vmem:[#allocation17_spill] sm:$0xff] }
 0x432   : > { %7442 = vmatpush3.bf16.msra.mxu0 %v14237_v24  ;;  %7464 = vmatprep.subr.bf16.mxu1 %v12562_v34  ;;  %v7220_v50 = vpop.f32.mrb[20].mxu0  ;;  %v5493_v30 = vrot.slane %v5482_v11, 1 }
 0x433   : > { %7443 = vmatprep.subr.bf16.mxu0 %v14239_v47  ;;  %v7221_v62 = vpop.f32.mrb[21].mxu0 }
 0x434   : > { %v7222_v36 = vadd.f32 %v7221_v62, %v7220_v50  ;;  %v7223_v58 = vpop.f32.mrb[22].mxu0  ;;  %v14246_v62 = vld [vmem:[#allocation38_spill] sm:$0xff] }
 0x435   : > { %7465 = vmatpush3.bf16.msra.mxu1 %v12580_v38  ;;  %v7224_v34 = vpop.f32.mrb[23].mxu0  ;;  %v8094_v38 = vunpack.i.l.bf16 %v13185_v41 }
 0x436   : > { %v4774_v40 = vadd.f32 %v7222_v36, %v14240_v39  ;;  %7444 = vmatpush3.bf16.msra.mxu0 %v14241_v7  ;;  %7466 = vmatprep.subr.bf16.mxu1 %v12588_v31  ;;  %v14244_v31 = vld [vmem:[#allocation50_spill] sm:$0xff]  ;;  %v5900_v36 = vadd.f32 %v14247_v43, %v14246_v62 }
 0x437   : > { %7445 = vmatprep.subr.bf16.mxu0 %v14242_v33  ;;  %v5705_v52 = vsel %vm3419_vm7, %v14244_v31, %v8089_v61  ;;  %v14250_v61 = vld [vmem:[#allocation26_spill] sm:$0xff] }
 0x438   : > { %v4814_v3 = vadd.f32 %v7244_v17, %v4774_v40  ;;  %v5495_v17 = vsel %vm857_vm0, %v5493_v30, %v5494_v5  ;;  %v5706_v58 = vsel %vm3421_vm8, %v5705_v52, %v8094_v38  ;;  %v5726_v5 = vpack.c.bf16 %v14250_v61, %v14250_v61  ;;  %v5715_v38 = vpop.permute.xlu1 %5714  ;;  %v8171_v30 = vld [vmem:[%s13621_s5 + $0x40] sm:$0xff]   ;;  %v8368_v62 = vld [vmem:[%s13619_s3 + $0x188] sm:$0xff]  }
 0x439   : > { %7467 = vmatpush3.bf16.msra.mxu1 %v12601_v55  ;;  %v5509_v34 = vpack.c.bf16 %v5495_v17, %v5495_v17  ;;  %v8188_v52 = vld [vmem:[%s13621_s5 + $0x80] sm:$0xff]   ;;  %v8189_v17 = vld [vmem:[%s13621_s5 + $0xc8] sm:$0xff]  }
 0x43a   : > { %v4854_v50 = vadd.f32 %v4853_v48, %v4814_v3  ;;  %7446 = vmatpush3.bf16.msra.mxu0 %v14243_v53  ;;  %7468 = vmatprep.subr.bf16.mxu1 %v12616_v6  ;;  %v5707_v48 = vsel %vm3423_vm9, %v5706_v58, %v8099_v19  ;;  %v14248_v6 = vld [vmem:[#allocation21_spill] sm:$0xff] }
 0x43b   : > { %7447 = vmatprep.subr.bf16.mxu0 %v14245_v1  ;;  %v5729_v40 = vpack.c.bf16 %v5707_v48, %v5707_v48  ;;  %v8174_v48 = vld [vmem:[%s13621_s5 + $0x8] sm:$0xff]  }
 0x43c   : > { %v5901_v55 = vadd.f32 %v14247_v43, %v4854_v50  ;;  %v14253_v50 = vld [vmem:[#allocation12_spill] sm:$0xff] }
 0x43d   : > { %7469 = vmatpush3.bf16.msra.mxu1 %v12657_v15  ;;  %v8172_v43 = vld [vmem:[%s13621_s5] sm:$0xff]  }
 0x43e   : > { %v5907_v32 = vmax.f32 %v5900_v36, %v5901_v55  ;;  %7448 = vmatpush3.bf16.msra.mxu0 %v14248_v6  ;;  %7470 = vmatprep.subr.bf16.mxu1 %v12673_v27  ;;  %v8173_v36 = vld [vmem:[%s13621_s5 + $0x48] sm:$0xff]  }
 0x43f   : > { %7480 = vmatprep.subr.bf16.mxu0 %v14249_v13  ;;  %v8190_v55 = vld [vmem:[%s13621_s5 + $0x88] sm:$0xff]   ;;  %v8193_v13 = vld [vmem:[%s13621_s5 + $0xd8] sm:$0xff]  }
 0x440   : > { %v5915_v39 = vrot.slane %v5907_v32, 1 }
 0x441   : > { %5628 = vmatmul.mubr.bf16.vlgmr.msra.gmra.mrb[44].mxu0 %v5509_v34  ;;  %7471 = vmatpush3.bf16.msra.mxu1 %v12701_v44  ;;  %v8176_v34 = vld [vmem:[%s13621_s5 + $0x10] sm:$0xff]  }
 0x442   : > { %v13230_v11 = vmax.f32 %v5907_v32, %v5915_v39  ;;  %7481 = vmatpush3.bf16.msra.mxu0 %v12949_v4  ;;  %5803 = vmatprep.mubr.bf16.mxu0 %v5729_v40  ;;  %v8191_v32 = vld [vmem:[%s13621_s5 + $0xd0] sm:$0xff]   ;;  %v8177_v39 = vld [vmem:[%s13621_s5 + $0x58] sm:$0xff]  }
 0x443   : > { %7472 = vmatprep.subr.bf16.mxu1 %v12709_v35  ;;  %7482 = vmatprep.subr.bf16.mxu0 %v12955_v42  ;;  %v8194_v40 = vld [vmem:[%s13621_s5 + $0x98] sm:$0xff]  }
 0x444   : > { %v5938_v15 = vrot.slane %v13230_v11, 2  ;;  %v5944_v27 = vrot.slane %v13230_v11, 6 }
 0x445   : > { %7473 = vmatpush3.bf16.msra.mxu1 %v12732_v28 }
 0x446   : > { %7483 = vmatpush3.bf16.msra.mxu0 %v12965_v22  ;;  %7502 = vmatprep.subr.bf16.mxu1 %v14225_v45  ;;  %v8106_v44 = vpack.i.bf16 %v5938_v15, %v5944_v27  ;;  %v8178_v15 = vld [vmem:[%s13621_s5 + $0x18] sm:$0xff]   ;;  %v8195_v27 = vld [vmem:[%s13621_s5 + $0xe0] sm:$0xff]  }
 0x447   : > { %7484 = vmatprep.subr.bf16.mxu0 %v12972_v56  ;;  %v5709_v56 = vpop.permute.xlu0 %5708 }
 0x448   : > { %5764 = vmatmul.mubr.bf16.vlgmr.msra.gmra.mrb[64].mxu1 %v5726_v5  ;;  %8107 = vrot.lane.b32.xlu1 %v8106_v44, %s8436_s16  ;;  %v8179_v5 = vld [vmem:[%s13621_s5 + $0x60] sm:$0xff]  }
 0x449   : > { %7503 = vmatpush3.bf16.msra.mxu1 %v14227_v49  ;;  %5843 = vmatprep.mubr.bf16.mxu1 %v13157_v12  ;;  %v5717_v49 = vsel %vm3419_vm7, 0.0, %v5709_v56 }
 0x44a   : > { %7485 = vmatpush3.bf16.msra.mxu0 %v12979_v10  ;;  %7504 = vmatprep.subr.bf16.mxu1 %v14228_v2 }
 0x44b   : > { %7486 = vmatprep.subr.bf16.mxu0 %v12986_v37 }
 0x44d   : > { %v7289_v35 = vpop.f32.mrb[40].mxu1  ;;  %7505 = vmatpush3.bf16.msra.mxu1 %v14229_v63  ;;  %v8095_v63 = vunpack.i.h.bf16 %v13185_v41 }
 0x44e   : > { %v7290_v28 = vpop.f32.mrb[41].mxu1  ;;  %7487 = vmatpush3.bf16.msra.mxu0 %v12993_v9  ;;  %7506 = vmatprep.subr.bf16.mxu1 %v14230_v0 }
 0x44f   : > { %v7291_v4 = vadd.f32 %v7290_v28, %v7289_v35  ;;  %v7292_v42 = vpop.f32.mrb[42].mxu1  ;;  %7488 = vmatprep.subr.bf16.mxu0 %v13000_v60  ;;  %v8090_v60 = vunpack.i.h.bf16 %v13198_v16 }
 0x450   : > { %v7293_v22 = vpop.f32.mrb[43].mxu1  ;;  %v8196_v42 = vld [vmem:[%s13621_s5 + $0xa0] sm:$0xff]  }
 0x451   : > { %7507 = vmatpush3.bf16.msra.mxu1 %v14232_v8  ;;  %v8100_v8 = vunpack.i.h.bf16 %v13203_v29 }
 0x452   : > { %7489 = vmatpush3.bf16.msra.mxu0 %v13007_v57  ;;  %7508 = vmatprep.subr.bf16.mxu1 %v14233_v14  ;;  %v5712_v14 = vpop.permute.xlu0 %5711 }
 0x453   : > { %v7267_v10 = vpop.f32.mrb[24].mxu0  ;;  %7490 = vmatprep.subr.bf16.mxu0 %v13014_v23  ;;  %v5718_v16 = vsel %vm3421_vm8, %v5717_v49, %v5712_v14  ;;  %v8181_v49 = vld [vmem:[%s13621_s5 + $0x68] sm:$0xff]   ;;  %v8184_v14 = vld [vmem:[%s13621_s5 + $0x30] sm:$0xff]  }
 0x454   : > { %v7268_v37 = vpop.f32.mrb[25].mxu0  ;;  %v5719_v41 = vsel %vm3423_vm9, %v5718_v16, %v5715_v38  ;;  %v8185_v16 = vld [vmem:[%s13621_s5 + $0x78] sm:$0xff]  }
 0x455   : > { %v7269_v45 = vadd.f32 %v7268_v37, %v7267_v10  ;;  %7509 = vmatpush3.bf16.msra.mxu1 %v14234_v46  ;;  %v7270_v9 = vpop.f32.mrb[26].mxu0  ;;  %v8180_v10 = vld [vmem:[%s13621_s5 + $0x20] sm:$0xff]   ;;  %v8197_v37 = vld [vmem:[%s13621_s5 + $0xe8] sm:$0xff]  }
 0x456   : > { %v13258_v12 = vpop.f32.mrb[44].mxu1  ;;  %7491 = vmatpush3.bf16.msra.mxu0 %v13021_v26  ;;  %v7271_v2 = vpop.f32.mrb[27].mxu0  ;;  %7510 = vmatprep.subr.bf16.mxu1 %v14235_v18  ;;  %v14251_v26 = vld [vmem:[#allocation30_spill] sm:$0xff] }
 0x457   : > { %v7662_v57 = vpop.f32.mrb[45].mxu1  ;;  %v13265_v23 = vadd.f32 %v7291_v4, %v7269_v45  ;;  %7492 = vmatprep.subr.bf16.mxu0 %v13028_v25  ;;  %v5702_v3 = vsel %vm3419_vm7, %v14251_v26, %v8090_v60  ;;  %v13280_v29 = vpop.permute.xlu0 %8102  ;;  %v8202_v26 = vld [vmem:[%s13621_s5 + $0xb8] sm:$0xff]  }
 0x458   : > { %v5136_v0 = vpop.f32.mrb[46].mxu1  ;;  %v5703_v18 = vsel %vm3421_vm8, %v5702_v3, %v8095_v63  ;;  %v8198_v63 = vld [vmem:[%s13621_s5 + $0xa8] sm:$0xff]   ;;  %v8105_v38 = vunpack.i.h.bf16 %v13280_v29  ;;  %v8186_v3 = vld [vmem:[%s13621_s5 + $0x38] sm:$0xff]  }
 0x459   : > { %v7663_v46 = vpop.f32.mrb[47].mxu1  ;;  %7511 = vmatpush3.bf16.msra.mxu1 %v14237_v24  ;;  %v5704_v25 = vsel %vm3423_vm9, %v5703_v18, %v8100_v8  ;;  %v8199_v0 = vld [vmem:[%s13621_s5 + $0xf0] sm:$0xff]  }
 0x45a   : > { %7493 = vmatpush3.bf16.msra.mxu0 %v13035_v20  ;;  %7512 = vmatprep.subr.bf16.mxu1 %v14239_v47  ;;  %v5728_v24 = vpack.c.bf16 %v5704_v25, %v5704_v25  ;;  %v5723_v20 = vrot.slane %v5719_v41, 1  ;;  %v14252_v47 = vld [vmem:[#allocation41_spill] sm:$0xff]  ;;  %v8200_v8 = vld [vmem:[%s13621_s5 + $0xb0] sm:$0xff]   ;;  %v8201_v46 = vld [vmem:[%s13621_s5 + $0xf8] sm:$0xff]   ;;  %v5970_v18 = vsel %vm3421_vm8, %v14253_v50, %v8105_v38 }
 0x45b   : > { %7494 = vmatprep.subr.bf16.mxu0 %v13042_v21  ;;  %v5722_v19 = vrot.slane %v14252_v47, 1  ;;  %v8104_v21 = vunpack.i.l.bf16 %v13280_v29  ;;  %v5978_v25 = vpack.c.bf16 %v5970_v18, %v5970_v18 }
 0x45d   : > { %7513 = vmatpush3.bf16.msra.mxu1 %v14241_v7  ;;  %v8367_v7 = vld [vmem:[%s13619_s3 + $0x180] sm:$0xff]  }
 0x45e   : > { %7495 = vmatpush3.bf16.msra.mxu0 %v13049_v54  ;;  %7514 = vmatprep.subr.bf16.mxu1 %v14242_v33  ;;  %v8187_v54 = vld [vmem:[%s13621_s5 + $0xc0] sm:$0xff]   ;;  %v5724_v33 = vsel %vm857_vm0, %v5722_v19, %v5723_v20  ;;  %v5942_v20 = vrot.slane %v13230_v11, 4 }
 0x45f   : > { %7680 = vmatprep.subr.bf16.mxu0 %v14017_v59 }
 0x461   : > { %5804 = vmatmul.mubr.bf16.vlgmr.msra.gmra.mrb[48].mxu0 %v5728_v24  ;;  %7515 = vmatpush3.bf16.msra.mxu1 %v14243_v53  ;;  %v5931_v53 = vrot.slane %v14253_v50, 4 }
 0x462   : > { %7681 = vmatpush3.bf16.msra.mxu0 %v8367_v7  ;;  %7516 = vmatprep.subr.bf16.mxu1 %v14245_v1  ;;  %v5730_v1 = vpack.c.bf16 %v5724_v33, %v5724_v33  ;;  %v8204_v33 = vld [vmem:[%s13621_s5 + $0x100] sm:$0xff]  }
 0x463   : > { %7682 = vmatprep.subr.bf16.mxu0 %v14017_v59  ;;  %7684 = vmatprep.mubr.msk.bf16.mxu0 %vm8439_vm10, %v14017_v59  ;;  %v5971_v31 = vsel %vm3421_vm8, %v5931_v53, %v8104_v21  ;;  %v8206_v53 = vld [vmem:[%s13621_s5 + $0x108] sm:$0xff]  }
 0x464   : > { %v5979_v58 = vpack.c.bf16 %v5971_v31, %v5971_v31 }
 0x465   : > { %7517 = vmatpush3.bf16.msra.mxu1 %v14248_v6  ;;  %v8192_v6 = vld [vmem:[%s13621_s5 + $0x90] sm:$0xff]  }
 0x466   : > { %7683 = vmatpush3.bf16.msra.mxu0 %v8368_v62  ;;  %7549 = vmatprep.subr.bf16.mxu1 %v8187_v54  ;;  %v8203_v54 = vld [vmem:[%s13621_s5 + $0x140] sm:$0xff]  }
 0x467   : > { %7527 = vmatprep.subr.bf16.mxu0 %v8171_v30  ;;  %v8205_v30 = vld [vmem:[%s13621_s5 + $0x148] sm:$0xff]  }
 0x468   : > { %5844 = vmatmul.mubr.bf16.vlgmr.msra.gmra.mrb[68].mxu1 %v5730_v1  ;;  %v8207_v1 = vld [vmem:[%s13621_s5 + $0x150] sm:$0xff]  }
 0x469   : > { %7685 = vmatmul.mubr.msk.bf16.vlgmr.msra.gmra.mrb[52].mxu0 %vm3419_vm7, %v13167_v51  ;;  %7550 = vmatpush3.bf16.msra.mxu1 %v8188_v52  ;;  %v8175_v51 = vld [vmem:[%s13621_s5 + $0x50] sm:$0xff]  }
 0x46a   : > { %7528 = vmatpush3.bf16.msra.mxu0 %v8172_v43  ;;  %6531 = vmatprep.mubr.bf16.mxu0 %v5979_v58 }
 0x46b   : > { %7529 = vmatprep.subr.bf16.mxu0 %v8173_v36  ;;  %7551 = vmatprep.subr.bf16.mxu1 %v8189_v17  ;;  %v8208_v36 = vld [vmem:[%s13621_s5 + $0x110] sm:$0xff]   ;;  %v8209_v17 = vld [vmem:[%s13621_s5 + $0x158] sm:$0xff]  }
 0x46d   : > { %7552 = vmatpush3.bf16.msra.mxu1 %v8190_v55 }
 0x46e   : > { %7530 = vmatpush3.bf16.msra.mxu0 %v8174_v48  ;;  %7553 = vmatprep.subr.bf16.mxu1 %v8191_v32 }
 0x46f   : > { %7531 = vmatprep.subr.bf16.mxu0 %v8175_v51  ;;  %v8210_v51 = vld [vmem:[%s13621_s5 + $0x118] sm:$0xff]  }
 0x471   : > { %7554 = vmatpush3.bf16.msra.mxu1 %v8192_v6 }
 0x472   : > { %7532 = vmatpush3.bf16.msra.mxu0 %v8176_v34  ;;  %7555 = vmatprep.subr.bf16.mxu1 %v8193_v13 }
 0x473   : > { %7533 = vmatprep.subr.bf16.mxu0 %v8177_v39  ;;  %v8211_v39 = vld [vmem:[%s13621_s5 + $0x160] sm:$0xff]  }
 0x474   : > { %v7311_v61 = vpop.f32.mrb[28].mxu0 }
 0x475   : > { %v7312_v44 = vpop.f32.mrb[29].mxu0  ;;  %7556 = vmatpush3.bf16.msra.mxu1 %v8194_v40 }
 0x476   : > { %v7313_v35 = vadd.f32 %v7312_v44, %v7311_v61  ;;  %v7314_v28 = vpop.f32.mrb[30].mxu0  ;;  %v7336_v4 = vpop.f32.mrb[48].mxu1  ;;  %7534 = vmatpush3.bf16.msra.mxu0 %v8178_v15  ;;  %7557 = vmatprep.subr.bf16.mxu1 %v8195_v27  ;;  %v8212_v61 = vld [vmem:[%s13621_s5 + $0x120] sm:$0xff]   ;;  %v8213_v44 = vld [vmem:[%s13621_s5 + $0x168] sm:$0xff]  }
 0x477   : > { %v7315_v22 = vpop.f32.mrb[31].mxu0  ;;  %v7337_v56 = vpop.f32.mrb[49].mxu1  ;;  %7535 = vmatprep.subr.bf16.mxu0 %v8179_v5 }
 0x478   : > { %v5094_v45 = vadd.f32 %v7313_v35, %v13265_v23  ;;  %v7338_v9 = vadd.f32 %v7337_v56, %v7336_v4  ;;  %v7339_v60 = vpop.f32.mrb[50].mxu1  ;;  %v8182_v23 = vld [vmem:[%s13621_s5 + $0x28] sm:$0xff]   ;;  %v13447_v35 = vld [vmem:[%s13620_s4] ss:$0 sm:$0xff]  ;;  %v8215_v56 = vld [vmem:[%s13621_s5 + $0x170] sm:$0xff]  }
 0x479   : > { %v7340_v2 = vpop.f32.mrb[51].mxu1  ;;  %7558 = vmatpush3.bf16.msra.mxu1 %v8196_v42  ;;  %v8214_v42 = vld [vmem:[%s13621_s5 + $0x128] sm:$0xff]  }
 0x47a   : > { %v13372_v57 = vadd.f32 %v13258_v12, %v5094_v45  ;;  %7536 = vmatpush3.bf16.msra.mxu0 %v8180_v10  ;;  %7559 = vmatprep.subr.bf16.mxu1 %v8197_v37  ;;  %v8183_v12 = vld [vmem:[%s13621_s5 + $0x70] sm:$0xff]   ;;  %v8218_v2 = vld [vmem:[%s13621_s5 + $0x138] sm:$0xff]  }
 0x47b   : > { %7537 = vmatprep.subr.bf16.mxu0 %v8181_v49  ;;  %v8216_v37 = vld [vmem:[%s13621_s5 + $0x130] sm:$0xff]  }
 0x47c   : > { %v5902_v28 = vadd.f32 %v13447_v35, %v13372_v57 }
 0x47d   : > { %7560 = vmatpush3.bf16.msra.mxu1 %v8198_v63 }
 0x47e   : > { %7538 = vmatpush3.bf16.msra.mxu0 %v8182_v23  ;;  %7561 = vmatprep.subr.bf16.mxu1 %v8199_v0 }
 0x47f   : > { %7539 = vmatprep.subr.bf16.mxu0 %v8183_v12 }
 0x481   : > { %7562 = vmatpush3.bf16.msra.mxu1 %v8200_v8 }
 0x482   : > { %7540 = vmatpush3.bf16.msra.mxu0 %v8184_v14  ;;  %7563 = vmatprep.subr.bf16.mxu1 %v8201_v46 }
 0x483   : > { %7541 = vmatprep.subr.bf16.mxu0 %v8185_v16 }
 0x485   : > { %7564 = vmatpush3.bf16.msra.mxu1 %v8202_v26 }
 0x486   : > { %7542 = vmatpush3.bf16.msra.mxu0 %v8186_v3 }
 0x487   : > { %7571 = vmatprep.subr.bf16.mxu0 %v8203_v54  ;;  %v8219_v54 = vld [vmem:[%s13621_s5 + $0x1c0] sm:$0xff]  }
 0x488   : > { %7593 = vmatprep.subr.bf16.mxu1 %v8219_v54 }
 0x489   : > { %6532 = vmatmul.mubr.bf16.vlgmr.msra.gmra.mrb[56].mxu0 %v5978_v25 }
 0x48a   : > { %7572 = vmatpush3.bf16.msra.mxu0 %v8204_v33  ;;  %v8220_v33 = vld [vmem:[%s13621_s5 + $0x180] sm:$0xff]  }
 0x48b   : > { %7573 = vmatprep.subr.bf16.mxu0 %v8205_v30  ;;  %v8221_v30 = vld [vmem:[%s13621_s5 + $0x1c8] sm:$0xff]  }
 0x48e   : > { %7574 = vmatpush3.bf16.msra.mxu0 %v8206_v53  ;;  %v8222_v53 = vld [vmem:[%s13621_s5 + $0x188] sm:$0xff]  }
 0x48f   : > { %7575 = vmatprep.subr.bf16.mxu0 %v8207_v1 }
 0x492   : > { %7576 = vmatpush3.bf16.msra.mxu0 %v8208_v36  ;;  %v8224_v36 = vld [vmem:[%s13621_s5 + $0x190] sm:$0xff]  }
 0x493   : > { %7577 = vmatprep.subr.bf16.mxu0 %v8209_v17  ;;  %v8225_v17 = vld [vmem:[%s13621_s5 + $0x1d8] sm:$0xff]  }
 0x496   : > { %7578 = vmatpush3.bf16.msra.mxu0 %v8210_v51  ;;  %v8230_v51 = vld [vmem:[%s13621_s5 + $0x1a8] sm:$0xff]  }
 0x497   : > { %7579 = vmatprep.subr.bf16.mxu0 %v8211_v39 }
 0x49a   : > { %7580 = vmatpush3.bf16.msra.mxu0 %v8212_v61 }
 0x49b   : > { %7581 = vmatprep.subr.bf16.mxu0 %v8213_v44 }
 0x49e   : > { %7582 = vmatpush3.bf16.msra.mxu0 %v8214_v42 }
 0x49f   : > { %7583 = vmatprep.subr.bf16.mxu0 %v8215_v56 }
 0x4a2   : > { %7584 = vmatpush3.bf16.msra.mxu0 %v8216_v37 }
 0x4ba   : > { %v8108_v41 = vpop.permute.xlu1 %8107 }
 0x4bb   : > { %v8110_v29 = vunpack.i.h.bf16 %v8108_v41  ;;  %v8109_v24 = vunpack.i.l.bf16 %v8108_v41 }
 0x4bd   : > { %v5972_v47 = vsel %vm3421_vm8, %v13230_v11, %v8110_v29  ;;  %v5973_v19 = vsel %vm3421_vm8, %v5942_v20, %v8109_v24 }
 0x4be   : > { %v5980_v21 = vpack.c.bf16 %v5972_v47, %v5972_v47  ;;  %v5981_v7 = vpack.c.bf16 %v5973_v19, %v5973_v19 }
 0x4c0   : > { %6571 = vmatprep.mubr.bf16.mxu1 %v5981_v7 }
 0x4c1   : > { %6572 = vmatmul.mubr.bf16.vlgmr.msra.gmra.mrb[72].mxu1 %v5980_v21 }
 0x4c2   : > { %7594 = vmatpush3.bf16.msra.mxu1 %v8220_v33 }
 0x4c3   : > { %7595 = vmatprep.subr.bf16.mxu1 %v8221_v30 }
 0x4c6   : > { %7596 = vmatpush3.bf16.msra.mxu1 %v8222_v53  ;;  %v8235_v53 = vld [vmem:[%s13623_s7] sm:$0xff]  }
 0x4cc   : > { %v7358_v50 = vpop.f32.mrb[32].mxu0 }
 0x4cd   : > { %v7359_v11 = vpop.f32.mrb[33].mxu0 }
 0x4ce   : > { %v7360_v31 = vadd.f32 %v7359_v11, %v7358_v50  ;;  %v7361_v52 = vpop.f32.mrb[34].mxu0 }
 0x4cf   : > { %v7362_v62 = vpop.f32.mrb[35].mxu0  ;;  %v8223_v52 = vld [vmem:[%s13621_s5 + $0x1d0] sm:$0xff]  }
 0x4d0   : > { %v5334_v43 = vadd.f32 %v7360_v31, %v7338_v9  ;;  %v8217_v9 = vld [vmem:[%s13621_s5 + $0x178] sm:$0xff]   ;;  %7597 = vmatprep.subr.bf16.mxu1 %v8223_v52  ;;  %v8237_v52 = vld [vmem:[%s13623_s7 + $0x10] sm:$0xff]  }
 0x4d1   : > { %7585 = vmatprep.subr.bf16.mxu0 %v8217_v9  ;;  %7598 = vmatpush3.bf16.msra.mxu1 %v8224_v36 }
 0x4d2   : > { %7586 = vmatpush3.bf16.msra.mxu0 %v8218_v2  ;;  %7599 = vmatprep.subr.bf16.mxu1 %v8225_v17 }
 0x4d3   : > { %v7380_v58 = vpop.f32.mrb[52].mxu1  ;;  %7688 = vmatprep.subr.bf16.mxu0 %v14017_v59 }
 0x4d4   : > { %v5413_v55 = vpop.f32.mrb[36].mxu0  ;;  %v7381_v48 = vpop.f32.mrb[53].mxu1 }
 0x4d5   : > { %v7670_v32 = vpop.f32.mrb[37].mxu0  ;;  %v7382_v6 = vadd.f32 %v7381_v48, %v7380_v58  ;;  %v7383_v34 = vpop.f32.mrb[54].mxu1  ;;  %v8226_v58 = vld [vmem:[%s13621_s5 + $0x198] sm:$0xff]   ;;  %v8228_v48 = vld [vmem:[%s13621_s5 + $0x1a0] sm:$0xff]  }
 0x4d6   : > { %v5416_v13 = vpop.f32.mrb[38].mxu0  ;;  %v7384_v40 = vpop.f32.mrb[55].mxu1  ;;  %7600 = vmatpush3.bf16.msra.mxu1 %v8226_v58  ;;  %v8229_v32 = vld [vmem:[%s13621_s5 + $0x1e8] sm:$0xff]  }
 0x4d7   : > { %v7671_v15 = vpop.f32.mrb[39].mxu0  ;;  %v5374_v27 = vadd.f32 %v7382_v6, %v5334_v43  ;;  %v8231_v6 = vld [vmem:[%s13621_s5 + $0x1f0] sm:$0xff]  }
 0x4d9   : > { %v5414_v5 = vadd.f32 %v5413_v55, %v5374_v27  ;;  %v8227_v55 = vld [vmem:[%s13621_s5 + $0x1e0] sm:$0xff]  }
 0x4da   : > { %7601 = vmatprep.subr.bf16.mxu1 %v8227_v55 }
 0x4db   : > { %v5903_v4 = vadd.f32 %v13447_v35, %v5414_v5  ;;  %7602 = vmatpush3.bf16.msra.mxu1 %v8228_v48 }
 0x4dc   : > { %7603 = vmatprep.subr.bf16.mxu1 %v8229_v32 }
 0x4dd   : > { %v5908_v22 = vmax.f32 %v5902_v28, %v5903_v4 }
 0x4df   : > { %v5919_v10 = vrot.slane %v5908_v22, 1  ;;  %7604 = vmatpush3.bf16.msra.mxu1 %v8230_v51  ;;  %v8239_v51 = vld [vmem:[%s13623_s7 + $0x20] sm:$0xff]  }
 0x4e0   : > { %7605 = vmatprep.subr.bf16.mxu1 %v8231_v6  ;;  %v8240_v6 = vld [vmem:[%s13623_s7 + $0x28] sm:$0xff]  }
 0x4e1   : > { %v13461_v45 = vmax.f32 %v5908_v22, %v5919_v10 }
 0x4e3   : > { %v5949_v60 = vrot.slane %v13461_v45, 2  ;;  %v5955_v49 = vrot.slane %v13461_v45, 6 }
 0x4e5   : > { %v8111_v57 = vpack.i.bf16 %v5949_v60, %v5955_v49 }
 0x4e7   : > { %8112 = vrot.lane.b32.xlu0 %v8111_v57, %s8436_s16  ;;  %v8232_v57 = vld [vmem:[%s13621_s5 + $0x1b0] sm:$0xff]  }
 0x4e8   : > { %7606 = vmatpush3.bf16.msra.mxu1 %v8232_v57 }
 0x4f3   : > { %v7427_v63 = vpop.f32.mrb[56].mxu1 }
 0x4f4   : > { %v7405_v23 = vpop.f32.mrb[40].mxu0  ;;  %v7428_v0 = vpop.f32.mrb[57].mxu1 }
 0x4f5   : > { %v7406_v12 = vpop.f32.mrb[41].mxu0  ;;  %v7429_v8 = vadd.f32 %v7428_v0, %v7427_v63  ;;  %v7430_v46 = vpop.f32.mrb[58].mxu1  ;;  %v8233_v63 = vld [vmem:[%s13621_s5 + $0x1f8] sm:$0xff]  }
 0x4f6   : > { %v7407_v14 = vadd.f32 %v7406_v12, %v7405_v23  ;;  %v7408_v16 = vpop.f32.mrb[42].mxu0  ;;  %v7431_v38 = vpop.f32.mrb[59].mxu1  ;;  %v8234_v0 = vld [vmem:[%s13621_s5 + $0x1b8] sm:$0xff]   ;;  %7607 = vmatprep.subr.bf16.mxu1 %v8233_v63 }
 0x4f7   : > { %v7409_v26 = vpop.f32.mrb[43].mxu0  ;;  %7608 = vmatpush3.bf16.msra.mxu1 %v8234_v0 }
 0x4f8   : > { %v5590_v3 = vadd.f32 %v7429_v8, %v7407_v14  ;;  %v5953_v26 = vrot.slane %v13461_v45, 4 }
 0x4fb   : > { %v5669_v18 = vpop.f32.mrb[60].mxu1 }
 0x4fc   : > { %v7678_v25 = vpop.f32.mrb[61].mxu1 }
 0x4fd   : > { %v5672_v41 = vpop.f32.mrb[62].mxu1 }
 0x4fe   : > { %v7679_v29 = vpop.f32.mrb[63].mxu1 }
 0x514   : > { %v7449_v24 = vpop.f32.mrb[44].mxu0 }
 0x515   : > { %v7450_v20 = vpop.f32.mrb[45].mxu0 }
 0x516   : > { %v7451_v47 = vadd.f32 %v7450_v20, %v7449_v24  ;;  %v7452_v19 = vpop.f32.mrb[46].mxu0 }
 0x517   : > { %v7453_v21 = vpop.f32.mrb[47].mxu0 }
 0x518   : > { %v5630_v7 = vadd.f32 %v7451_v47, %v5590_v3  ;;  %v6114_v21 = vld [vmem:[%s13622_s6] sm:$0x1] }
 0x51a   : > { %v5670_v50 = vadd.f32 %v5669_v18, %v5630_v7 }
 0x51b   : > { %v7474_v11 = vpop.f32.mrb[64].mxu1 }
 0x51c   : > { %v7475_v31 = vpop.f32.mrb[65].mxu1  ;;  %v5904_v60 = vadd.f32 %v13447_v35, %v5670_v50 }
 0x51d   : > { %v7476_v1 = vadd.f32 %v7475_v31, %v7474_v11  ;;  %v7477_v62 = vpop.f32.mrb[66].mxu1  ;;  %v8236_v31 = vld [vmem:[%s13623_s7 + $0x8] sm:$0xff]  }
 0x51e   : > { %v7478_v43 = vpop.f32.mrb[67].mxu1  ;;  %v8238_v62 = vld [vmem:[%s13623_s7 + $0x18] sm:$0xff]  }
 0x534   : > { %v7496_v34 = vpop.f32.mrb[48].mxu0 }
 0x535   : > { %v7497_v13 = vpop.f32.mrb[49].mxu0 }
 0x536   : > { %v7498_v39 = vadd.f32 %v7497_v13, %v7496_v34  ;;  %v7499_v40 = vpop.f32.mrb[50].mxu0  ;;  %v8241_v34 = vld [vmem:[%s13623_s7 + $0x30] sm:$0xff]   ;;  %v8242_v13 = vld [vmem:[%s13623_s7 + $0x38] sm:$0xff]  }
 0x537   : > { %v7500_v15 = vpop.f32.mrb[51].mxu0 }
 0x538   : > { %v5806_v27 = vadd.f32 %v7498_v39, %v7476_v1 }
 0x53b   : > { %v7518_v61 = vpop.f32.mrb[68].mxu1 }
 0x53c   : > { %v7519_v5 = vpop.f32.mrb[69].mxu1  ;;  %v5885_v44 = vpop.f32.mrb[52].mxu0 }
 0x53d   : > { %v7520_v28 = vadd.f32 %v7519_v5, %v7518_v61  ;;  %v7521_v4 = vpop.f32.mrb[70].mxu1  ;;  %v7686_v42 = vpop.f32.mrb[53].mxu0 }
 0x53e   : > { %v7522_v22 = vpop.f32.mrb[71].mxu1  ;;  %v5888_v56 = vpop.f32.mrb[54].mxu0 }
 0x53f   : > { %v5846_v10 = vadd.f32 %v7520_v28, %v5806_v27  ;;  %v7687_v37 = vpop.f32.mrb[55].mxu0 }
 0x541   : > { %v5886_v9 = vadd.f32 %v5885_v44, %v5846_v10 }
 0x543   : > { %v5905_v49 = vadd.f32 %v13447_v35, %v5886_v9 }
 0x545   : > { %v5909_v2 = vmax.f32 %v5904_v60, %v5905_v49 }
 0x547   : > { %v5923_v23 = vrot.slane %v5909_v2, 1 }
 0x549   : > { %v5925_v12 = vmax.f32 %v5909_v2, %v5923_v23 }
 0x54b   : > { %v5960_v8 = vrot.slane %v5925_v12, 2  ;;  %v5966_v14 = vrot.slane %v5925_v12, 6  ;;  %v5964_v17 = vrot.slane %v5925_v12, 4 }
 0x54d   : > { %v8116_v35 = vpack.i.bf16 %v5960_v8, %v5966_v14 }
 0x54f   : > { %8117 = vrot.lane.b32.xlu1 %v8116_v35, %s8436_s16 }
 0x559   : > { %v8113_v46 = vpop.permute.xlu0 %8112 }
 0x55a   : > { %v8115_v16 = vunpack.i.h.bf16 %v8113_v46  ;;  %v8114_v38 = vunpack.i.l.bf16 %v8113_v46 }
 0x55c   : > { %v5974_v3 = vsel %vm3421_vm8, %v13461_v45, %v8115_v16  ;;  %v7543_v18 = vpop.f32.mrb[56].mxu0  ;;  %v5975_v25 = vsel %vm3421_vm8, %v5953_v26, %v8114_v38 }
 0x55d   : > { %v5982_v41 = vpack.c.bf16 %v5974_v3, %v5974_v3  ;;  %v7544_v29 = vpop.f32.mrb[57].mxu0  ;;  %v5983_v24 = vpack.c.bf16 %v5975_v25, %v5975_v25 }
 0x55e   : > { %v7545_v20 = vadd.f32 %v7544_v29, %v7543_v18  ;;  %v7546_v47 = vpop.f32.mrb[58].mxu0 }
 0x55f   : > { %v7547_v19 = vpop.f32.mrb[59].mxu0  ;;  %6611 = vmatprep.mubr.bf16.mxu0 %v5983_v24 }
 0x560   : > { %6612 = vmatmul.mubr.bf16.vlgmr.msra.gmra.mrb[60].mxu0 %v5982_v41  ;;  %v6534_v54 = vadd.f32 %v7545_v20, %v6114_v21 }
 0x561   : > { %7704 = vmatprep.mubr.msk.bf16.mxu0 %vm8439_vm10, %v14017_v59  ;;  %7689 = vmatpush3.bf16.msra.mxu0 %v8235_v53 }
 0x562   : > { %7690 = vmatprep.subr.bf16.mxu0 %v14017_v59 }
 0x565   : > { %7691 = vmatpush3.bf16.msra.mxu0 %v8236_v31 }
 0x566   : > { %7692 = vmatprep.subr.bf16.mxu0 %v14017_v59 }
 0x569   : > { %7693 = vmatpush3.bf16.msra.mxu0 %v8237_v52 }
 0x56a   : > { %7694 = vmatprep.subr.bf16.mxu0 %v14017_v59 }
 0x56d   : > { %7695 = vmatpush3.bf16.msra.mxu0 %v8238_v62 }
 0x56e   : > { %7696 = vmatprep.subr.bf16.mxu0 %v14017_v59 }
 0x571   : > { %7697 = vmatpush3.bf16.msra.mxu0 %v8239_v51 }
 0x572   : > { %7698 = vmatprep.subr.bf16.mxu0 %v14017_v59 }
 0x575   : > { %7699 = vmatpush3.bf16.msra.mxu0 %v8240_v6 }
 0x576   : > { %7700 = vmatprep.subr.bf16.mxu0 %v14017_v59 }
 0x579   : > { %7701 = vmatpush3.bf16.msra.mxu0 %v8241_v34 }
 0x57a   : > { %7702 = vmatprep.subr.bf16.mxu0 %v14017_v59  ;;  %v6676_v59 = vld [vmem:[%s13624_s8] sm:$0x1] }
 0x57d   : > { %7703 = vmatpush3.bf16.msra.mxu0 %v8242_v13 }
 0x594   : > { %v7565_v7 = vpop.f32.mrb[72].mxu1 }
 0x595   : > { %v7566_v45 = vpop.f32.mrb[73].mxu1 }
 0x596   : > { %v7567_v33 = vadd.f32 %v7566_v45, %v7565_v7  ;;  %v7568_v30 = vpop.f32.mrb[74].mxu1 }
 0x597   : > { %v7569_v50 = vpop.f32.mrb[75].mxu1 }
 0x598   : > { %v6574_v11 = vadd.f32 %v7567_v33, %v6534_v54 }
 0x5c1   : > { %v8118_v1 = vpop.permute.xlu1 %8117 }
 0x5c2   : > { %v8120_v43 = vunpack.i.h.bf16 %v8118_v1  ;;  %v8119_v36 = vunpack.i.l.bf16 %v8118_v1 }
 0x5c4   : > { %v5976_v58 = vsel %vm3421_vm8, %v5925_v12, %v8120_v43  ;;  %v5977_v55 = vsel %vm3421_vm8, %v5964_v17, %v8119_v36 }
 0x5c5   : > { %v5984_v48 = vpack.c.bf16 %v5976_v58, %v5976_v58  ;;  %v5985_v32 = vpack.c.bf16 %v5977_v55, %v5977_v55 }
 0x5c7   : > { %6651 = vmatprep.mubr.bf16.mxu1 %v5985_v32 }
 0x5c8   : > { %6652 = vmatmul.mubr.bf16.vlgmr.msra.gmra.mrb[76].mxu1 %v5984_v48 }
 0x633   : > { %v7587_v39 = vpop.f32.mrb[60].mxu0 }
 0x634   : > { %v7588_v40 = vpop.f32.mrb[61].mxu0 }
 0x635   : > { %v7589_v15 = vadd.f32 %v7588_v40, %v7587_v39  ;;  %v7590_v27 = vpop.f32.mrb[62].mxu0 }
 0x636   : > { %v7591_v61 = vpop.f32.mrb[63].mxu0 }
 0x637   : > { %v6614_v5 = vadd.f32 %v7589_v15, %v6574_v11 }
 0x69b   : > { %v7609_v44 = vpop.f32.mrb[76].mxu1 }
 0x69c   : > { %v7610_v28 = vpop.f32.mrb[77].mxu1 }
 0x69d   : > { %v7611_v4 = vadd.f32 %v7610_v28, %v7609_v44  ;;  %v7612_v42 = vpop.f32.mrb[78].mxu1 }
 0x69e   : > { %v7613_v22 = vpop.f32.mrb[79].mxu1 }
 0x69f   : > { %v6654_v56 = vadd.f32 %v7611_v4, %v6614_v5 }
 0x6a1   : > { %v6659_v10 = vpack.c.bf16 %v6654_v56, %v6654_v56 }
 0x6a3   : > { %7705 = vmatmul.mubr.bf16.vlgmr.msra.gmra.mrb[64].mxu0 %v6659_v10 }
 0x776   : > { %v6759_v37 = vpop.f32.mrb[64].mxu0 }
 0x777   : > { %v6760_v9 = vadd.f32 %v6759_v37, %v6676_v59  ;;  %v7706_v60 = vpop.f32.mrb[65].mxu0 }
 0x778   : > { %v6762_v49 = vpop.f32.mrb[66].mxu0 }
 0x779   : > { %6765 = vst [vmem:[%s324_s21] sm:$0x1] %v6760_v9  ;;  %v7707_v2 = vpop.f32.mrb[67].mxu0 }
 0x77a   : > { %8383 = shalt.err (!%p8380_p3)
}
 0x77b   : > { %s8384_s22 = scalar_lea.hbm %s13574_s25, 16  ;;  %s8388_s21 = scalar_lea.hbm %s13625_s9, 32 }
 0x77c   : > { %p8385_p4 = scmp.ne.s32.totalorder %s13574_s25, %s8384_s22  ;;  %p8389_p9 = scmp.lt.u32.totalorder %s13574_s25, %s13625_s9 }
 0x77d   : > { %p8390_p10 = scmp.lt.u32.totalorder %s8388_s21, %s8384_s22  ;;  %p8392_p12 = scmp.lt.u32.totalorder %s8384_s22, %s13574_s25 }
 0x77e   : > { %p8386_p7 = pnand %p8385_p4, %p8529_p5 }
 0x77f   : > { %p8391_p11 = por %p8390_p10, %p8389_p9 }
 0x780   : > { %p8387_p8 = pneg %p8386_p7 }
 0x781   : > { %p8393_p13 = por %p8392_p12, %p8391_p11 }
 0x783   : > { %p8394_p0 = pnand %p8393_p13, %p8387_p8 }
 0x785   : > { %8397 = shalt.err (!%p8394_p0)
}
 0x786   : > { %7709 = dma.vmem_to_hbm [thread:$0]  (%p8529_p5), %s13576_s23, 16, %s13574_s25, %s6767_s26  }
 0x787 PF: > { %p7715_p1 = scmp.ge.s32.totalorder %s8432_s12, 2  ;;  %s6791_s13 = sand.u32 1, %s8420_s30  }
 0x788   : > { %s6792_s27 = scalar_lea.sflag [#allocation3], %s6791_s13 }
 0x789   : > { %p7712_p2 = pnand %p7715_p1, %p8533_p6 }
 0x78b   : > { %8415 = dma.done.wait (!%p7712_p2), %s6792_s27, 16  }
 0x78c   : > { %8417 = vsyncadd (!%p7712_p2), %s6792_s27, 4294967280  ;;  %p19_p3 = scmp.ge.s32.totalorder %s8516_s15, 4   ;;  %s14254_s30 = smov %s8424_s10 }
 0x78d   : > { %s14255_s10 = smov %s8428_s11  ;;  %s14256_s11 = smov %s8527_s18 }
 0x78e   : > { %s14257_s12 = smov %s8516_s15  ;;  %21 = sbr.rel (!%p19_p3) target bundleno = 3 (0x3), region = 91 }
 0x795   :  { %6796 = vsyncpa [#allocation3], 1 }
 0x796   :  { %6798 = vsyncpa [#allocation3 + $0x1], 1 }

</bundles_post_ra>
